<compile_context>
chip_gen: v7x
topology: tpu7x:2x2x1
jax: 0.10.0
libtpu: 0.0.40
codegen_flags: <defaults>
</compile_context>

<pallas_src>
import functools
import math

import jax
import jax.numpy as jnp
from jax.experimental import pallas as pl
from jax.experimental.pallas import tpu as pltpu

# ---- small, ResNet-analogous hyper-parameters -------------------------------
BATCH = 2
C_IN = 4
SPATIAL = 16             # input H = W
EMBED = 32               # stands in for model.fc.in_features (2048 in ResNet-101)
NUM_HEADS = 8
HEAD_DIM = EMBED // NUM_HEADS
KSIZE = 3
STRIDE = 2
PAD = 1

K_RAW = C_IN * KSIZE * KSIZE      # 36  (conv contraction dim)
LANE = 128
K_PAD = LANE                      # conv contraction dim padded to lane/MXU width
E_PAD = LANE                      # feature dim padded -> lane-dense matmuls/stores
QKV_PAD = LANE                    # 3*H*D = 96 -> 128


# -----------------------------------------------------------------------------
# Fused kernel: conv stem (im2col matmul + bias + ReLU) -> fused-QKV multi-head
# self-attention -> fused output projection.  Single grid step (batch folded).
# -----------------------------------------------------------------------------
def _fused_encoder_kernel(p_ref, wc_ref, bc_ref, wqkv_ref, bqkv_ref,
                          wo_ref, bo_ref, o_ref, *,
                          n_batch, seq, num_heads, head_dim):
    # p_ref:    (N*S, K_PAD)   bf16   im2col patches, batch-folded, zero-padded K
    # wc_ref:   (K_PAD, E_PAD) bf16   conv weight, transposed + zero-padded
    # bc_ref:   (1, E_PAD)     f32
    # wqkv_ref: (E_PAD, QKV_PAD) bf16 packed q/k/v weights (scale folded into q)
    # bqkv_ref: (1, QKV_PAD)   f32    packed q/k/v bias (scale folded into q)
    # wo_ref:   (H*D, E_PAD)   bf16   out-proj weight
    # bo_ref:   (1, E_PAD)     f32
    # o_ref:    (N*S, E_PAD)   bf16   lane-dense output block

    # ---- conv stem: one full 128x128x128 MXU matmul --------------------------
    y = jnp.dot(p_ref[...], wc_ref[...],
                preferred_element_type=jnp.float32)            # (N*S, E_PAD) f32
    feats = jnp.maximum(y + bc_ref[...], 0.0)                  # ReLU, f32

    # ---- fused q/k/v projection: single lane-dense matmul --------------------
    x16 = feats.astype(jnp.bfloat16)
    qkv = jnp.dot(x16, wqkv_ref[...],
                  preferred_element_type=jnp.float32) + bqkv_ref[...]  # (N*S, QKV_PAD)

    hd = num_heads * head_dim
    ctx_batches = []
    for b in range(n_batch):                                   # static unroll (N=2)
        blk = qkv[b * seq:(b + 1) * seq, :]                    # (S, QKV_PAD) static slice

        def split_heads(off):
            # (S, H*D) -> (H, S, D) via static lane slices + leading-axis stack
            return jnp.stack(
                [blk[:, off + h * head_dim: off + (h + 1) * head_dim]
                 for h in range(num_heads)], axis=0)

        q = split_heads(0).astype(jnp.bfloat16)                # scale already folded in
        k = split_heads(hd).astype(jnp.bfloat16)
        v = split_heads(2 * hd).astype(jnp.bfloat16)

        s = jnp.einsum("hsd,htd->hst", q, k,
                       preferred_element_type=jnp.float32)     # (H, S, S) f32
        s = s - jnp.max(s, axis=-1, keepdims=True)
        p = jnp.exp(s)
        p = p * pl.reciprocal(jnp.sum(p, axis=-1, keepdims=True), approx=True)
        # (attention dropout = identity at inference)
        ctx = jnp.einsum("hst,htd->hsd", p.astype(jnp.bfloat16), v,
                         preferred_element_type=jnp.float32)   # (H, S, D) f32
        # merge heads along lanes: (H, S, D) -> (S, H*D)
        ctx_batches.append(
            jnp.concatenate([ctx[h] for h in range(num_heads)], axis=1))

    ctx_all = jnp.concatenate(ctx_batches, axis=0)             # (N*S, H*D) f32

    # ---- fused output projection: one matmul, contraction over H*D=32 --------
    out = jnp.dot(ctx_all.astype(jnp.bfloat16), wo_ref[...],
                  preferred_element_type=jnp.float32) + bo_ref[...]    # (N*S, E_PAD)
    o_ref[...] = out.astype(o_ref.dtype)


# -----------------------------------------------------------------------------
# Glue (plain JAX): im2col, one-time weight re-layout, pallas_call wrapper
# -----------------------------------------------------------------------------
def im2col(x, ksize=KSIZE, stride=STRIDE, pad=PAD):
    # TODO(synk): at real backbone scale generate patches in-kernel from a
    #   VMEM-resident input tile instead of this HBM pre-pass.
    N, C, H, W = x.shape
    xp = jnp.pad(x, ((0, 0), (0, 0), (pad, pad), (pad, pad)))
    Ho = (H + 2 * pad - ksize) // stride + 1
    Wo = (W + 2 * pad - ksize) // stride + 1
    taps = []
    for i in range(ksize):
        for j in range(ksize):
            taps.append(xp[:, :, i:i + stride * Ho:stride, j:j + stride * Wo:stride])
    p = jnp.stack(taps, axis=2)                      # (N, C, k*k, Ho, Wo)
    p = p.reshape(N, C * ksize * ksize, Ho * Wo)     # K index = c*k*k + (i*k+j)
    return p.transpose(0, 2, 1), Ho, Wo              # (N, P, K)


def prepare_encoder_params(params):
    """One-time weight padding / casting / re-layout (cache the result)."""
    conv_w = params["conv_w"].reshape(EMBED, K_RAW)
    wc_t = jnp.pad(conv_w.T, ((0, K_PAD - K_RAW), (0, E_PAD - EMBED)))
    wc_t = wc_t.astype(jnp.bfloat16)
    bc = jnp.pad(params["conv_b"], (0, E_PAD - EMBED)).reshape(1, E_PAD)
    bc = bc.astype(jnp.float32)

    # Packed q/k/v weight rows are already [q(H*D); k(H*D); v(H*D)], head-major.
    # Fold the 1/sqrt(head_dim) softmax scale into W_q / b_q (exact: 0.5).
    scale = 1.0 / math.sqrt(HEAD_DIM)
    w_in = params["in_proj_w"].at[:EMBED].multiply(scale)      # (3E, E)
    b_in = params["in_proj_b"].at[:EMBED].multiply(scale)      # (3E,)
    wqkv_t = jnp.pad(w_in.T, ((0, E_PAD - EMBED), (0, QKV_PAD - 3 * EMBED)))
    wqkv_t = wqkv_t.astype(jnp.bfloat16)                        # (E_PAD, QKV_PAD)
    bqkv = jnp.pad(b_in, (0, QKV_PAD - 3 * EMBED)).reshape(1, QKV_PAD)
    bqkv = bqkv.astype(jnp.float32)

    wo = jnp.pad(params["out_proj_w"].T, ((0, 0), (0, E_PAD - EMBED)))
    wo = wo.astype(jnp.bfloat16)                                # (H*D, E_PAD)
    bo = jnp.pad(params["out_proj_b"], (0, E_PAD - EMBED)).reshape(1, E_PAD)
    bo = bo.astype(jnp.float32)

    return dict(wc_t=wc_t, bc=bc, wqkv_t=wqkv_t, bqkv=bqkv, wo=wo, bo=bo)


@jax.jit
def image_encoder_forward(images, prep):
    patches, Ho, Wo = im2col(images)                 # (N, S, K_RAW) f32
    N, S, K = patches.shape
    p = jnp.pad(patches, ((0, 0), (0, 0), (0, K_PAD - K)))
    p = p.reshape(N * S, K_PAD).astype(jnp.bfloat16)  # batch-folded, lane-dense

    kernel = functools.partial(_fused_encoder_kernel, n_batch=N, seq=S,
                               num_heads=NUM_HEADS, head_dim=HEAD_DIM)
    out = pl.pallas_call(
        kernel,
        out_shape=jax.ShapeDtypeStruct((N * S, E_PAD), jnp.bfloat16),
        grid=(1,),
        in_specs=[
            pl.BlockSpec((N * S, K_PAD), lambda i: (0, 0)),
            pl.BlockSpec((K_PAD, E_PAD), lambda i: (0, 0)),
            pl.BlockSpec((1, E_PAD), lambda i: (0, 0)),
            pl.BlockSpec((E_PAD, QKV_PAD), lambda i: (0, 0)),
            pl.BlockSpec((1, QKV_PAD), lambda i: (0, 0)),
            pl.BlockSpec((EMBED, E_PAD), lambda i: (0, 0)),
            pl.BlockSpec((1, E_PAD), lambda i: (0, 0)),
        ],
        out_specs=pl.BlockSpec((N * S, E_PAD), lambda i: (0, 0)),
        compiler_params=pltpu.CompilerParams(
            dimension_semantics=("arbitrary",)),
    )(p, prep["wc_t"], prep["bc"], prep["wqkv_t"], prep["bqkv"],
      prep["wo"], prep["bo"])

    out = out[:, :EMBED].astype(jnp.float32)          # drop zero padding
    # == attention_output.permute(1, 2, 0).view(orig_shape)
    return out.reshape(N, S, EMBED).transpose(0, 2, 1).reshape(N, EMBED, Ho, Wo)


# -----------------------------------------------------------------------------
# Pure-JAX f32 reference (mirrors the PyTorch forward) and setup
# -----------------------------------------------------------------------------
def reference_forward(images, params):
    patches, Ho, Wo = im2col(images)
    N, P, K = patches.shape
    w = params["conv_w"].reshape(EMBED, K)
    feats = jnp.einsum("npk,ek->npe", patches, w) + params["conv_b"]
    feats = jnp.maximum(feats, 0.0)                               # (N, S, E)

    wq, wk, wv = jnp.split(params["in_proj_w"], 3, axis=0)
    bq, bk, bv = jnp.split(params["in_proj_b"], 3)
    q = feats @ wq.T + bq
    k = feats @ wk.T + bk
    v = feats @ wv.T + bv

    def split_heads(t):
        return t.reshape(N, P, NUM_HEADS, HEAD_DIM).transpose(0, 2, 1, 3)

    qh, kh, vh = split_heads(q), split_heads(k), split_heads(v)
    s = jnp.einsum("nhsd,nhtd->nhst", qh, kh) / jnp.sqrt(float(HEAD_DIM))
    p = jax.nn.softmax(s, axis=-1)
    ctx = jnp.einsum("nhst,nhtd->nhsd", p, vh)
    ctx = ctx.transpose(0, 2, 1, 3).reshape(N, P, EMBED)
    out = ctx @ params["out_proj_w"].T + params["out_proj_b"]
    return out.transpose(0, 2, 1).reshape(N, EMBED, Ho, Wo)


def init_params(key):
    k = jax.random.split(key, 6)
    s = 0.1
    return {
        "conv_w": s * jax.random.normal(k[0], (EMBED, C_IN, KSIZE, KSIZE), jnp.float32),
        "conv_b": s * jax.random.normal(k[1], (EMBED,), jnp.float32),
        "in_proj_w": s * jax.random.normal(k[2], (3 * EMBED, EMBED), jnp.float32),
        "in_proj_b": s * jax.random.normal(k[3], (3 * EMBED,), jnp.float32),
        "out_proj_w": s * jax.random.normal(k[4], (EMBED, EMBED), jnp.float32),
        "out_proj_b": s * jax.random.normal(k[5], (EMBED,), jnp.float32),
    }


if __name__ == "__main__":
    key = jax.random.PRNGKey(0)
    k_in, k_par = jax.random.split(key)
    images = jax.random.normal(k_in, (BATCH, C_IN, SPATIAL, SPATIAL), jnp.float32)
    params = init_params(k_par)

    prep = jax.tree_util.tree_map(jax.block_until_ready,
                                  prepare_encoder_params(params))  # cached re-layout

    out = jax.block_until_ready(image_encoder_forward(images, prep))

    expected_shape = (BATCH, EMBED, SPATIAL // STRIDE, SPATIAL // STRIDE)
    assert out.shape == expected_shape, (out.shape, expected_shape)
    assert bool(jnp.all(jnp.isfinite(out)))

    ref = reference_forward(images, params)
    max_err = float(jnp.max(jnp.abs(out - ref)))
    assert max_err < 5e-2, f"max abs error vs f32 reference: {max_err}"

    print("KERNEL_OK")
</pallas_src>

<mosaic_0001>
module attributes {stable_mosaic.version = 11 : i64} {
  func.func @_fused_encoder_kernel(%arg0: i32, %arg1: memref<128x128xbf16, #tpu.memory_space<vmem>>, %arg2: memref<128x128xbf16, #tpu.memory_space<vmem>>, %arg3: memref<1x128xf32, #tpu.memory_space<vmem>>, %arg4: memref<128x128xbf16, #tpu.memory_space<vmem>>, %arg5: memref<1x128xf32, #tpu.memory_space<vmem>>, %arg6: memref<32x128xbf16, #tpu.memory_space<vmem>>, %arg7: memref<1x128xf32, #tpu.memory_space<vmem>>, %arg8: memref<128x128xbf16, #tpu.memory_space<vmem>>) attributes {dimension_semantics = [#tpu.dimension_semantics<arbitrary>], iteration_bounds = array<i64: 1>, scalar_prefetch = 0 : i64, scratch_operands = 0 : i64, tpu.core_type = #tpu.core_type<tc>, window_params = [{pipeline_mode = #tpu.pipeline_mode<synchronous>, transform_indices = @transform_0, window_bounds = array<i64: 128, 128>}, {pipeline_mode = #tpu.pipeline_mode<synchronous>, transform_indices = @transform_1, window_bounds = array<i64: 128, 128>}, {pipeline_mode = #tpu.pipeline_mode<synchronous>, transform_indices = @transform_2, window_bounds = array<i64: 1, 128>}, {pipeline_mode = #tpu.pipeline_mode<synchronous>, transform_indices = @transform_3, window_bounds = array<i64: 128, 128>}, {pipeline_mode = #tpu.pipeline_mode<synchronous>, transform_indices = @transform_4, window_bounds = array<i64: 1, 128>}, {pipeline_mode = #tpu.pipeline_mode<synchronous>, transform_indices = @transform_5, window_bounds = array<i64: 32, 128>}, {pipeline_mode = #tpu.pipeline_mode<synchronous>, transform_indices = @transform_6, window_bounds = array<i64: 1, 128>}, {pipeline_mode = #tpu.pipeline_mode<synchronous>, transform_indices = @transform_7, window_bounds = array<i64: 128, 128>}]} {
    %c0 = arith.constant 0 : index
    %c0_0 = arith.constant 0 : index
    %0 = vector.load %arg1[%c0, %c0_0] : memref<128x128xbf16, #tpu.memory_space<vmem>>, vector<128x128xbf16>
    %c0_1 = arith.constant 0 : index
    %c0_2 = arith.constant 0 : index
    %1 = vector.load %arg2[%c0_1, %c0_2] : memref<128x128xbf16, #tpu.memory_space<vmem>>, vector<128x128xbf16>
    %cst = arith.constant dense<0.000000e+00> : vector<128x128xf32>
    %2 = tpu.matmul %0, %1, %cst {dimension_numbers = #tpu.dot_dimension_numbers<[1], [0], [0], [1], [0, 0, 1, 1], [], []>} : vector<128x128xbf16>, vector<128x128xbf16>, vector<128x128xf32> -> vector<128x128xf32>
    %c0_3 = arith.constant 0 : index
    %c0_4 = arith.constant 0 : index
    %3 = vector.load %arg3[%c0_3, %c0_4] : memref<1x128xf32, #tpu.memory_space<vmem>>, vector<1x128xf32>
    %4 = vector.broadcast %3 : vector<1x128xf32> to vector<128x128xf32>
    %5 = arith.addf %2, %4 : vector<128x128xf32>
    %cst_5 = arith.constant 0.000000e+00 : f32
    %6 = vector.broadcast %cst_5 : f32 to vector<128x128xf32>
    %7 = arith.maximumf %5, %6 : vector<128x128xf32>
    %8 = arith.truncf %7 : vector<128x128xf32> to vector<128x128xbf16>
    %c0_6 = arith.constant 0 : index
    %c0_7 = arith.constant 0 : index
    %9 = vector.load %arg4[%c0_6, %c0_7] : memref<128x128xbf16, #tpu.memory_space<vmem>>, vector<128x128xbf16>
    %cst_8 = arith.constant dense<0.000000e+00> : vector<128x128xf32>
    %10 = tpu.matmul %8, %9, %cst_8 {dimension_numbers = #tpu.dot_dimension_numbers<[1], [0], [0], [1], [0, 0, 1, 1], [], []>} : vector<128x128xbf16>, vector<128x128xbf16>, vector<128x128xf32> -> vector<128x128xf32>
    %c0_9 = arith.constant 0 : index
    %c0_10 = arith.constant 0 : index
    %11 = vector.load %arg5[%c0_9, %c0_10] : memref<1x128xf32, #tpu.memory_space<vmem>>, vector<1x128xf32>
    %12 = vector.broadcast %11 : vector<1x128xf32> to vector<128x128xf32>
    %13 = arith.addf %10, %12 : vector<128x128xf32>
    %14 = vector.extract_strided_slice %13 {offsets = [0, 0], sizes = [64, 128], strides = [1, 1]} : vector<128x128xf32> to vector<64x128xf32>
    %15 = vector.extract_strided_slice %14 {offsets = [0, 0], sizes = [64, 4], strides = [1, 1]} : vector<64x128xf32> to vector<64x4xf32>
    %16 = vector.extract_strided_slice %14 {offsets = [0, 4], sizes = [64, 4], strides = [1, 1]} : vector<64x128xf32> to vector<64x4xf32>
    %17 = vector.extract_strided_slice %14 {offsets = [0, 8], sizes = [64, 4], strides = [1, 1]} : vector<64x128xf32> to vector<64x4xf32>
    %18 = vector.extract_strided_slice %14 {offsets = [0, 12], sizes = [64, 4], strides = [1, 1]} : vector<64x128xf32> to vector<64x4xf32>
    %19 = vector.extract_strided_slice %14 {offsets = [0, 16], sizes = [64, 4], strides = [1, 1]} : vector<64x128xf32> to vector<64x4xf32>
    %20 = vector.extract_strided_slice %14 {offsets = [0, 20], sizes = [64, 4], strides = [1, 1]} : vector<64x128xf32> to vector<64x4xf32>
    %21 = vector.extract_strided_slice %14 {offsets = [0, 24], sizes = [64, 4], strides = [1, 1]} : vector<64x128xf32> to vector<64x4xf32>
    %22 = vector.extract_strided_slice %14 {offsets = [0, 28], sizes = [64, 4], strides = [1, 1]} : vector<64x128xf32> to vector<64x4xf32>
    %23 = vector.shape_cast %15 : vector<64x4xf32> to vector<1x64x4xf32>
    %24 = vector.shape_cast %16 : vector<64x4xf32> to vector<1x64x4xf32>
    %25 = vector.shape_cast %17 : vector<64x4xf32> to vector<1x64x4xf32>
    %26 = vector.shape_cast %18 : vector<64x4xf32> to vector<1x64x4xf32>
    %27 = vector.shape_cast %19 : vector<64x4xf32> to vector<1x64x4xf32>
    %28 = vector.shape_cast %20 : vector<64x4xf32> to vector<1x64x4xf32>
    %29 = vector.shape_cast %21 : vector<64x4xf32> to vector<1x64x4xf32>
    %30 = vector.shape_cast %22 : vector<64x4xf32> to vector<1x64x4xf32>
    %31 = tpu.concatenate %23, %24, %25, %26, %27, %28, %29, %30 in 0 : vector<1x64x4xf32>, vector<1x64x4xf32>, vector<1x64x4xf32>, vector<1x64x4xf32>, vector<1x64x4xf32>, vector<1x64x4xf32>, vector<1x64x4xf32>, vector<1x64x4xf32> -> vector<8x64x4xf32>
    %32 = arith.truncf %31 : vector<8x64x4xf32> to vector<8x64x4xbf16>
    %33 = vector.extract_strided_slice %14 {offsets = [0, 32], sizes = [64, 4], strides = [1, 1]} : vector<64x128xf32> to vector<64x4xf32>
    %34 = vector.extract_strided_slice %14 {offsets = [0, 36], sizes = [64, 4], strides = [1, 1]} : vector<64x128xf32> to vector<64x4xf32>
    %35 = vector.extract_strided_slice %14 {offsets = [0, 40], sizes = [64, 4], strides = [1, 1]} : vector<64x128xf32> to vector<64x4xf32>
    %36 = vector.extract_strided_slice %14 {offsets = [0, 44], sizes = [64, 4], strides = [1, 1]} : vector<64x128xf32> to vector<64x4xf32>
    %37 = vector.extract_strided_slice %14 {offsets = [0, 48], sizes = [64, 4], strides = [1, 1]} : vector<64x128xf32> to vector<64x4xf32>
    %38 = vector.extract_strided_slice %14 {offsets = [0, 52], sizes = [64, 4], strides = [1, 1]} : vector<64x128xf32> to vector<64x4xf32>
    %39 = vector.extract_strided_slice %14 {offsets = [0, 56], sizes = [64, 4], strides = [1, 1]} : vector<64x128xf32> to vector<64x4xf32>
    %40 = vector.extract_strided_slice %14 {offsets = [0, 60], sizes = [64, 4], strides = [1, 1]} : vector<64x128xf32> to vector<64x4xf32>
    %41 = vector.shape_cast %33 : vector<64x4xf32> to vector<1x64x4xf32>
    %42 = vector.shape_cast %34 : vector<64x4xf32> to vector<1x64x4xf32>
    %43 = vector.shape_cast %35 : vector<64x4xf32> to vector<1x64x4xf32>
    %44 = vector.shape_cast %36 : vector<64x4xf32> to vector<1x64x4xf32>
    %45 = vector.shape_cast %37 : vector<64x4xf32> to vector<1x64x4xf32>
    %46 = vector.shape_cast %38 : vector<64x4xf32> to vector<1x64x4xf32>
    %47 = vector.shape_cast %39 : vector<64x4xf32> to vector<1x64x4xf32>
    %48 = vector.shape_cast %40 : vector<64x4xf32> to vector<1x64x4xf32>
    %49 = tpu.concatenate %41, %42, %43, %44, %45, %46, %47, %48 in 0 : vector<1x64x4xf32>, vector<1x64x4xf32>, vector<1x64x4xf32>, vector<1x64x4xf32>, vector<1x64x4xf32>, vector<1x64x4xf32>, vector<1x64x4xf32>, vector<1x64x4xf32> -> vector<8x64x4xf32>
    %50 = arith.truncf %49 : vector<8x64x4xf32> to vector<8x64x4xbf16>
    %51 = vector.extract_strided_slice %14 {offsets = [0, 64], sizes = [64, 4], strides = [1, 1]} : vector<64x128xf32> to vector<64x4xf32>
    %52 = vector.extract_strided_slice %14 {offsets = [0, 68], sizes = [64, 4], strides = [1, 1]} : vector<64x128xf32> to vector<64x4xf32>
    %53 = vector.extract_strided_slice %14 {offsets = [0, 72], sizes = [64, 4], strides = [1, 1]} : vector<64x128xf32> to vector<64x4xf32>
    %54 = vector.extract_strided_slice %14 {offsets = [0, 76], sizes = [64, 4], strides = [1, 1]} : vector<64x128xf32> to vector<64x4xf32>
    %55 = vector.extract_strided_slice %14 {offsets = [0, 80], sizes = [64, 4], strides = [1, 1]} : vector<64x128xf32> to vector<64x4xf32>
    %56 = vector.extract_strided_slice %14 {offsets = [0, 84], sizes = [64, 4], strides = [1, 1]} : vector<64x128xf32> to vector<64x4xf32>
    %57 = vector.extract_strided_slice %14 {offsets = [0, 88], sizes = [64, 4], strides = [1, 1]} : vector<64x128xf32> to vector<64x4xf32>
    %58 = vector.extract_strided_slice %14 {offsets = [0, 92], sizes = [64, 4], strides = [1, 1]} : vector<64x128xf32> to vector<64x4xf32>
    %59 = vector.shape_cast %51 : vector<64x4xf32> to vector<1x64x4xf32>
    %60 = vector.shape_cast %52 : vector<64x4xf32> to vector<1x64x4xf32>
    %61 = vector.shape_cast %53 : vector<64x4xf32> to vector<1x64x4xf32>
    %62 = vector.shape_cast %54 : vector<64x4xf32> to vector<1x64x4xf32>
    %63 = vector.shape_cast %55 : vector<64x4xf32> to vector<1x64x4xf32>
    %64 = vector.shape_cast %56 : vector<64x4xf32> to vector<1x64x4xf32>
    %65 = vector.shape_cast %57 : vector<64x4xf32> to vector<1x64x4xf32>
    %66 = vector.shape_cast %58 : vector<64x4xf32> to vector<1x64x4xf32>
    %67 = tpu.concatenate %59, %60, %61, %62, %63, %64, %65, %66 in 0 : vector<1x64x4xf32>, vector<1x64x4xf32>, vector<1x64x4xf32>, vector<1x64x4xf32>, vector<1x64x4xf32>, vector<1x64x4xf32>, vector<1x64x4xf32>, vector<1x64x4xf32> -> vector<8x64x4xf32>
    %68 = arith.truncf %67 : vector<8x64x4xf32> to vector<8x64x4xbf16>
    "tpu.trace_start"() <{level = 10 : i32, message = "hsd,htd->hst"}> : () -> ()
    %cst_11 = arith.constant dense<0.000000e+00> : vector<8x64x64xf32>
    %69 = tpu.matmul %32, %50, %cst_11 {dimension_numbers = #tpu.dot_dimension_numbers<[2], [2], [1], [1], [0, 0, 0, 1, 1, 1], [0], [0]>} : vector<8x64x4xbf16>, vector<8x64x4xbf16>, vector<8x64x64xf32> -> vector<8x64x64xf32>
    "tpu.trace_stop"() : () -> ()
    %cst_12 = arith.constant dense<0xFF800000> : vector<8x64xf32>
    %70 = vector.multi_reduction <maximumf>, %69, %cst_12 [2] : vector<8x64x64xf32> to vector<8x64xf32>
    %71 = vector.shape_cast %70 : vector<8x64xf32> to vector<8x64x1xf32>
    %72 = vector.broadcast %71 : vector<8x64x1xf32> to vector<8x64x64xf32>
    %73 = arith.subf %69, %72 : vector<8x64x64xf32>
    %74 = math.exp %73 : vector<8x64x64xf32>
    %cst_13 = arith.constant dense<0.000000e+00> : vector<8x64xf32>
    %75 = vector.multi_reduction <add>, %74, %cst_13 [2] : vector<8x64x64xf32> to vector<8x64xf32>
    %76 = vector.shape_cast %75 : vector<8x64xf32> to vector<8x64x1xf32>
    %77 = tpu.reciprocal %76 {approx = true} : vector<8x64x1xf32> -> vector<8x64x1xf32>
    %78 = vector.broadcast %77 : vector<8x64x1xf32> to vector<8x64x64xf32>
    %79 = arith.mulf %74, %78 : vector<8x64x64xf32>
    %80 = arith.truncf %79 : vector<8x64x64xf32> to vector<8x64x64xbf16>
    "tpu.trace_start"() <{level = 10 : i32, message = "hst,htd->hsd"}> : () -> ()
    %cst_14 = arith.constant dense<0.000000e+00> : vector<8x64x4xf32>
    %81 = tpu.matmul %80, %68, %cst_14 {dimension_numbers = #tpu.dot_dimension_numbers<[2], [1], [1], [2], [0, 0, 0, 1, 1, 2], [0], [0]>} : vector<8x64x64xbf16>, vector<8x64x4xbf16>, vector<8x64x4xf32> -> vector<8x64x4xf32>
    "tpu.trace_stop"() : () -> ()
    %82 = vector.extract_strided_slice %81 {offsets = [0, 0, 0], sizes = [1, 64, 4], strides = [1, 1, 1]} : vector<8x64x4xf32> to vector<1x64x4xf32>
    %83 = vector.shape_cast %82 : vector<1x64x4xf32> to vector<64x4xf32>
    %84 = vector.extract_strided_slice %81 {offsets = [1, 0, 0], sizes = [1, 64, 4], strides = [1, 1, 1]} : vector<8x64x4xf32> to vector<1x64x4xf32>
    %85 = vector.shape_cast %84 : vector<1x64x4xf32> to vector<64x4xf32>
    %86 = vector.extract_strided_slice %81 {offsets = [2, 0, 0], sizes = [1, 64, 4], strides = [1, 1, 1]} : vector<8x64x4xf32> to vector<1x64x4xf32>
    %87 = vector.shape_cast %86 : vector<1x64x4xf32> to vector<64x4xf32>
    %88 = vector.extract_strided_slice %81 {offsets = [3, 0, 0], sizes = [1, 64, 4], strides = [1, 1, 1]} : vector<8x64x4xf32> to vector<1x64x4xf32>
    %89 = vector.shape_cast %88 : vector<1x64x4xf32> to vector<64x4xf32>
    %90 = vector.extract_strided_slice %81 {offsets = [4, 0, 0], sizes = [1, 64, 4], strides = [1, 1, 1]} : vector<8x64x4xf32> to vector<1x64x4xf32>
    %91 = vector.shape_cast %90 : vector<1x64x4xf32> to vector<64x4xf32>
    %92 = vector.extract_strided_slice %81 {offsets = [5, 0, 0], sizes = [1, 64, 4], strides = [1, 1, 1]} : vector<8x64x4xf32> to vector<1x64x4xf32>
    %93 = vector.shape_cast %92 : vector<1x64x4xf32> to vector<64x4xf32>
    %94 = vector.extract_strided_slice %81 {offsets = [6, 0, 0], sizes = [1, 64, 4], strides = [1, 1, 1]} : vector<8x64x4xf32> to vector<1x64x4xf32>
    %95 = vector.shape_cast %94 : vector<1x64x4xf32> to vector<64x4xf32>
    %96 = vector.extract_strided_slice %81 {offsets = [7, 0, 0], sizes = [1, 64, 4], strides = [1, 1, 1]} : vector<8x64x4xf32> to vector<1x64x4xf32>
    %97 = vector.shape_cast %96 : vector<1x64x4xf32> to vector<64x4xf32>
    %98 = tpu.concatenate %83, %85, %87, %89, %91, %93, %95, %97 in 1 : vector<64x4xf32>, vector<64x4xf32>, vector<64x4xf32>, vector<64x4xf32>, vector<64x4xf32>, vector<64x4xf32>, vector<64x4xf32>, vector<64x4xf32> -> vector<64x32xf32>
    %99 = vector.extract_strided_slice %13 {offsets = [64, 0], sizes = [64, 128], strides = [1, 1]} : vector<128x128xf32> to vector<64x128xf32>
    %100 = vector.extract_strided_slice %99 {offsets = [0, 0], sizes = [64, 4], strides = [1, 1]} : vector<64x128xf32> to vector<64x4xf32>
    %101 = vector.extract_strided_slice %99 {offsets = [0, 4], sizes = [64, 4], strides = [1, 1]} : vector<64x128xf32> to vector<64x4xf32>
    %102 = vector.extract_strided_slice %99 {offsets = [0, 8], sizes = [64, 4], strides = [1, 1]} : vector<64x128xf32> to vector<64x4xf32>
    %103 = vector.extract_strided_slice %99 {offsets = [0, 12], sizes = [64, 4], strides = [1, 1]} : vector<64x128xf32> to vector<64x4xf32>
    %104 = vector.extract_strided_slice %99 {offsets = [0, 16], sizes = [64, 4], strides = [1, 1]} : vector<64x128xf32> to vector<64x4xf32>
    %105 = vector.extract_strided_slice %99 {offsets = [0, 20], sizes = [64, 4], strides = [1, 1]} : vector<64x128xf32> to vector<64x4xf32>
    %106 = vector.extract_strided_slice %99 {offsets = [0, 24], sizes = [64, 4], strides = [1, 1]} : vector<64x128xf32> to vector<64x4xf32>
    %107 = vector.extract_strided_slice %99 {offsets = [0, 28], sizes = [64, 4], strides = [1, 1]} : vector<64x128xf32> to vector<64x4xf32>
    %108 = vector.shape_cast %100 : vector<64x4xf32> to vector<1x64x4xf32>
    %109 = vector.shape_cast %101 : vector<64x4xf32> to vector<1x64x4xf32>
    %110 = vector.shape_cast %102 : vector<64x4xf32> to vector<1x64x4xf32>
    %111 = vector.shape_cast %103 : vector<64x4xf32> to vector<1x64x4xf32>
    %112 = vector.shape_cast %104 : vector<64x4xf32> to vector<1x64x4xf32>
    %113 = vector.shape_cast %105 : vector<64x4xf32> to vector<1x64x4xf32>
    %114 = vector.shape_cast %106 : vector<64x4xf32> to vector<1x64x4xf32>
    %115 = vector.shape_cast %107 : vector<64x4xf32> to vector<1x64x4xf32>
    %116 = tpu.concatenate %108, %109, %110, %111, %112, %113, %114, %115 in 0 : vector<1x64x4xf32>, vector<1x64x4xf32>, vector<1x64x4xf32>, vector<1x64x4xf32>, vector<1x64x4xf32>, vector<1x64x4xf32>, vector<1x64x4xf32>, vector<1x64x4xf32> -> vector<8x64x4xf32>
    %117 = arith.truncf %116 : vector<8x64x4xf32> to vector<8x64x4xbf16>
    %118 = vector.extract_strided_slice %99 {offsets = [0, 32], sizes = [64, 4], strides = [1, 1]} : vector<64x128xf32> to vector<64x4xf32>
    %119 = vector.extract_strided_slice %99 {offsets = [0, 36], sizes = [64, 4], strides = [1, 1]} : vector<64x128xf32> to vector<64x4xf32>
    %120 = vector.extract_strided_slice %99 {offsets = [0, 40], sizes = [64, 4], strides = [1, 1]} : vector<64x128xf32> to vector<64x4xf32>
    %121 = vector.extract_strided_slice %99 {offsets = [0, 44], sizes = [64, 4], strides = [1, 1]} : vector<64x128xf32> to vector<64x4xf32>
    %122 = vector.extract_strided_slice %99 {offsets = [0, 48], sizes = [64, 4], strides = [1, 1]} : vector<64x128xf32> to vector<64x4xf32>
    %123 = vector.extract_strided_slice %99 {offsets = [0, 52], sizes = [64, 4], strides = [1, 1]} : vector<64x128xf32> to vector<64x4xf32>
    %124 = vector.extract_strided_slice %99 {offsets = [0, 56], sizes = [64, 4], strides = [1, 1]} : vector<64x128xf32> to vector<64x4xf32>
    %125 = vector.extract_strided_slice %99 {offsets = [0, 60], sizes = [64, 4], strides = [1, 1]} : vector<64x128xf32> to vector<64x4xf32>
    %126 = vector.shape_cast %118 : vector<64x4xf32> to vector<1x64x4xf32>
    %127 = vector.shape_cast %119 : vector<64x4xf32> to vector<1x64x4xf32>
    %128 = vector.shape_cast %120 : vector<64x4xf32> to vector<1x64x4xf32>
    %129 = vector.shape_cast %121 : vector<64x4xf32> to vector<1x64x4xf32>
    %130 = vector.shape_cast %122 : vector<64x4xf32> to vector<1x64x4xf32>
    %131 = vector.shape_cast %123 : vector<64x4xf32> to vector<1x64x4xf32>
    %132 = vector.shape_cast %124 : vector<64x4xf32> to vector<1x64x4xf32>
    %133 = vector.shape_cast %125 : vector<64x4xf32> to vector<1x64x4xf32>
    %134 = tpu.concatenate %126, %127, %128, %129, %130, %131, %132, %133 in 0 : vector<1x64x4xf32>, vector<1x64x4xf32>, vector<1x64x4xf32>, vector<1x64x4xf32>, vector<1x64x4xf32>, vector<1x64x4xf32>, vector<1x64x4xf32>, vector<1x64x4xf32> -> vector<8x64x4xf32>
    %135 = arith.truncf %134 : vector<8x64x4xf32> to vector<8x64x4xbf16>
    %136 = vector.extract_strided_slice %99 {offsets = [0, 64], sizes = [64, 4], strides = [1, 1]} : vector<64x128xf32> to vector<64x4xf32>
    %137 = vector.extract_strided_slice %99 {offsets = [0, 68], sizes = [64, 4], strides = [1, 1]} : vector<64x128xf32> to vector<64x4xf32>
    %138 = vector.extract_strided_slice %99 {offsets = [0, 72], sizes = [64, 4], strides = [1, 1]} : vector<64x128xf32> to vector<64x4xf32>
    %139 = vector.extract_strided_slice %99 {offsets = [0, 76], sizes = [64, 4], strides = [1, 1]} : vector<64x128xf32> to vector<64x4xf32>
    %140 = vector.extract_strided_slice %99 {offsets = [0, 80], sizes = [64, 4], strides = [1, 1]} : vector<64x128xf32> to vector<64x4xf32>
    %141 = vector.extract_strided_slice %99 {offsets = [0, 84], sizes = [64, 4], strides = [1, 1]} : vector<64x128xf32> to vector<64x4xf32>
    %142 = vector.extract_strided_slice %99 {offsets = [0, 88], sizes = [64, 4], strides = [1, 1]} : vector<64x128xf32> to vector<64x4xf32>
    %143 = vector.extract_strided_slice %99 {offsets = [0, 92], sizes = [64, 4], strides = [1, 1]} : vector<64x128xf32> to vector<64x4xf32>
    %144 = vector.shape_cast %136 : vector<64x4xf32> to vector<1x64x4xf32>
    %145 = vector.shape_cast %137 : vector<64x4xf32> to vector<1x64x4xf32>
    %146 = vector.shape_cast %138 : vector<64x4xf32> to vector<1x64x4xf32>
    %147 = vector.shape_cast %139 : vector<64x4xf32> to vector<1x64x4xf32>
    %148 = vector.shape_cast %140 : vector<64x4xf32> to vector<1x64x4xf32>
    %149 = vector.shape_cast %141 : vector<64x4xf32> to vector<1x64x4xf32>
    %150 = vector.shape_cast %142 : vector<64x4xf32> to vector<1x64x4xf32>
    %151 = vector.shape_cast %143 : vector<64x4xf32> to vector<1x64x4xf32>
    %152 = tpu.concatenate %144, %145, %146, %147, %148, %149, %150, %151 in 0 : vector<1x64x4xf32>, vector<1x64x4xf32>, vector<1x64x4xf32>, vector<1x64x4xf32>, vector<1x64x4xf32>, vector<1x64x4xf32>, vector<1x64x4xf32>, vector<1x64x4xf32> -> vector<8x64x4xf32>
    %153 = arith.truncf %152 : vector<8x64x4xf32> to vector<8x64x4xbf16>
    "tpu.trace_start"() <{level = 10 : i32, message = "hsd,htd->hst"}> : () -> ()
    %cst_15 = arith.constant dense<0.000000e+00> : vector<8x64x64xf32>
    %154 = tpu.matmul %117, %135, %cst_15 {dimension_numbers = #tpu.dot_dimension_numbers<[2], [2], [1], [1], [0, 0, 0, 1, 1, 1], [0], [0]>} : vector<8x64x4xbf16>, vector<8x64x4xbf16>, vector<8x64x64xf32> -> vector<8x64x64xf32>
    "tpu.trace_stop"() : () -> ()
    %cst_16 = arith.constant dense<0xFF800000> : vector<8x64xf32>
    %155 = vector.multi_reduction <maximumf>, %154, %cst_16 [2] : vector<8x64x64xf32> to vector<8x64xf32>
    %156 = vector.shape_cast %155 : vector<8x64xf32> to vector<8x64x1xf32>
    %157 = vector.broadcast %156 : vector<8x64x1xf32> to vector<8x64x64xf32>
    %158 = arith.subf %154, %157 : vector<8x64x64xf32>
    %159 = math.exp %158 : vector<8x64x64xf32>
    %cst_17 = arith.constant dense<0.000000e+00> : vector<8x64xf32>
    %160 = vector.multi_reduction <add>, %159, %cst_17 [2] : vector<8x64x64xf32> to vector<8x64xf32>
    %161 = vector.shape_cast %160 : vector<8x64xf32> to vector<8x64x1xf32>
    %162 = tpu.reciprocal %161 {approx = true} : vector<8x64x1xf32> -> vector<8x64x1xf32>
    %163 = vector.broadcast %162 : vector<8x64x1xf32> to vector<8x64x64xf32>
    %164 = arith.mulf %159, %163 : vector<8x64x64xf32>
    %165 = arith.truncf %164 : vector<8x64x64xf32> to vector<8x64x64xbf16>
    "tpu.trace_start"() <{level = 10 : i32, message = "hst,htd->hsd"}> : () -> ()
    %cst_18 = arith.constant dense<0.000000e+00> : vector<8x64x4xf32>
    %166 = tpu.matmul %165, %153, %cst_18 {dimension_numbers = #tpu.dot_dimension_numbers<[2], [1], [1], [2], [0, 0, 0, 1, 1, 2], [0], [0]>} : vector<8x64x64xbf16>, vector<8x64x4xbf16>, vector<8x64x4xf32> -> vector<8x64x4xf32>
    "tpu.trace_stop"() : () -> ()
    %167 = vector.extract_strided_slice %166 {offsets = [0, 0, 0], sizes = [1, 64, 4], strides = [1, 1, 1]} : vector<8x64x4xf32> to vector<1x64x4xf32>
    %168 = vector.shape_cast %167 : vector<1x64x4xf32> to vector<64x4xf32>
    %169 = vector.extract_strided_slice %166 {offsets = [1, 0, 0], sizes = [1, 64, 4], strides = [1, 1, 1]} : vector<8x64x4xf32> to vector<1x64x4xf32>
    %170 = vector.shape_cast %169 : vector<1x64x4xf32> to vector<64x4xf32>
    %171 = vector.extract_strided_slice %166 {offsets = [2, 0, 0], sizes = [1, 64, 4], strides = [1, 1, 1]} : vector<8x64x4xf32> to vector<1x64x4xf32>
    %172 = vector.shape_cast %171 : vector<1x64x4xf32> to vector<64x4xf32>
    %173 = vector.extract_strided_slice %166 {offsets = [3, 0, 0], sizes = [1, 64, 4], strides = [1, 1, 1]} : vector<8x64x4xf32> to vector<1x64x4xf32>
    %174 = vector.shape_cast %173 : vector<1x64x4xf32> to vector<64x4xf32>
    %175 = vector.extract_strided_slice %166 {offsets = [4, 0, 0], sizes = [1, 64, 4], strides = [1, 1, 1]} : vector<8x64x4xf32> to vector<1x64x4xf32>
    %176 = vector.shape_cast %175 : vector<1x64x4xf32> to vector<64x4xf32>
    %177 = vector.extract_strided_slice %166 {offsets = [5, 0, 0], sizes = [1, 64, 4], strides = [1, 1, 1]} : vector<8x64x4xf32> to vector<1x64x4xf32>
    %178 = vector.shape_cast %177 : vector<1x64x4xf32> to vector<64x4xf32>
    %179 = vector.extract_strided_slice %166 {offsets = [6, 0, 0], sizes = [1, 64, 4], strides = [1, 1, 1]} : vector<8x64x4xf32> to vector<1x64x4xf32>
    %180 = vector.shape_cast %179 : vector<1x64x4xf32> to vector<64x4xf32>
    %181 = vector.extract_strided_slice %166 {offsets = [7, 0, 0], sizes = [1, 64, 4], strides = [1, 1, 1]} : vector<8x64x4xf32> to vector<1x64x4xf32>
    %182 = vector.shape_cast %181 : vector<1x64x4xf32> to vector<64x4xf32>
    %183 = tpu.concatenate %168, %170, %172, %174, %176, %178, %180, %182 in 1 : vector<64x4xf32>, vector<64x4xf32>, vector<64x4xf32>, vector<64x4xf32>, vector<64x4xf32>, vector<64x4xf32>, vector<64x4xf32>, vector<64x4xf32> -> vector<64x32xf32>
    %184 = tpu.concatenate %98, %183 in 0 : vector<64x32xf32>, vector<64x32xf32> -> vector<128x32xf32>
    %185 = arith.truncf %184 : vector<128x32xf32> to vector<128x32xbf16>
    %c0_19 = arith.constant 0 : index
    %c0_20 = arith.constant 0 : index
    %186 = vector.load %arg6[%c0_19, %c0_20] : memref<32x128xbf16, #tpu.memory_space<vmem>>, vector<32x128xbf16>
    %cst_21 = arith.constant dense<0.000000e+00> : vector<128x128xf32>
    %187 = tpu.matmul %185, %186, %cst_21 {dimension_numbers = #tpu.dot_dimension_numbers<[1], [0], [0], [1], [0, 0, 1, 1], [], []>} : vector<128x32xbf16>, vector<32x128xbf16>, vector<128x128xf32> -> vector<128x128xf32>
    %c0_22 = arith.constant 0 : index
    %c0_23 = arith.constant 0 : index
    %188 = vector.load %arg7[%c0_22, %c0_23] : memref<1x128xf32, #tpu.memory_space<vmem>>, vector<1x128xf32>
    %189 = vector.broadcast %188 : vector<1x128xf32> to vector<128x128xf32>
    %190 = arith.addf %187, %189 : vector<128x128xf32>
    %191 = arith.truncf %190 : vector<128x128xf32> to vector<128x128xbf16>
    %c0_24 = arith.constant 0 : index
    %c0_25 = arith.constant 0 : index
    %192 = vector.load %arg8[%c0_24, %c0_25] : memref<128x128xbf16, #tpu.memory_space<vmem>>, vector<128x128xbf16>
    tpu.vector_store %arg8[%c0_24, %c0_25], %191 {strides = array<i32>} : memref<128x128xbf16, #tpu.memory_space<vmem>>, vector<128x128xbf16>,
    return
  }
  func.func @transform_0(%arg0: i32) -> (i32, i32) {
    %c0_i32 = arith.constant 0 : i32
    %c0_i32_0 = arith.constant 0 : i32
    %c0_i32_1 = arith.constant 0 : i32
    return %c0_i32, %c0_i32_0 : i32, i32
  }
  func.func @transform_1(%arg0: i32) -> (i32, i32) {
    %c0_i32 = arith.constant 0 : i32
    %c0_i32_0 = arith.constant 0 : i32
    %c0_i32_1 = arith.constant 0 : i32
    return %c0_i32, %c0_i32_0 : i32, i32
  }
  func.func @transform_2(%arg0: i32) -> (i32, i32) {
    %c0_i32 = arith.constant 0 : i32
    %c0_i32_0 = arith.constant 0 : i32
    %c0_i32_1 = arith.constant 0 : i32
    return %c0_i32, %c0_i32_0 : i32, i32
  }
  func.func @transform_3(%arg0: i32) -> (i32, i32) {
    %c0_i32 = arith.constant 0 : i32
    %c0_i32_0 = arith.constant 0 : i32
    %c0_i32_1 = arith.constant 0 : i32
    return %c0_i32, %c0_i32_0 : i32, i32
  }
  func.func @transform_4(%arg0: i32) -> (i32, i32) {
    %c0_i32 = arith.constant 0 : i32
    %c0_i32_0 = arith.constant 0 : i32
    %c0_i32_1 = arith.constant 0 : i32
    return %c0_i32, %c0_i32_0 : i32, i32
  }
  func.func @transform_5(%arg0: i32) -> (i32, i32) {
    %c0_i32 = arith.constant 0 : i32
    %c0_i32_0 = arith.constant 0 : i32
    %c0_i32_1 = arith.constant 0 : i32
    return %c0_i32, %c0_i32_0 : i32, i32
  }
  func.func @transform_6(%arg0: i32) -> (i32, i32) {
    %c0_i32 = arith.constant 0 : i32
    %c0_i32_0 = arith.constant 0 : i32
    %c0_i32_1 = arith.constant 0 : i32
    return %c0_i32, %c0_i32_0 : i32, i32
  }
  func.func @transform_7(%arg0: i32) -> (i32, i32) {
    %c0_i32 = arith.constant 0 : i32
    %c0_i32_0 = arith.constant 0 : i32
    %c0_i32_1 = arith.constant 0 : i32
    return %c0_i32, %c0_i32_0 : i32, i32
  }
}

</mosaic_0001>

<bundles_post_ra>
// kernel: image_encoder_forward.1
= control target key start
LH: loop header
LB: loop body
LE: loop exit
PB: predicated region body
PF: predicated region fallthrough
CT: control target
= control target key end

     0   :  { %vm671_vm0 = vcmask 31744   ;;  %s8501_s26 = smov 120   ;;  %s8502_s27 = smov 116   ;;  %vm1468_vm1 = vcmask 523264   ;;  %vm3149_vm2 = vcmask 64512   ;;  %vm3158_vm3 = vcmask 97280   ;;  %s11725_s1 = inlined_call_operand.vmem [shape: bf16[128,128], index: 1, kind: input, shape index: {}]   ;;  %s11726_s0 = inlined_call_operand.vmem [shape: bf16[128,128], index: 0, kind: input, shape index: {}]   ;;  %s11727_s3 = inlined_call_operand.vmem [shape: bf16[128,128], index: 3, kind: input, shape index: {}]   ;;  %s11728_s2 = inlined_call_operand.vmem [shape: f32[1,128], index: 2, kind: input, shape index: {}]   ;;  %s11729_s4 = inlined_call_operand.vmem [shape: f32[1,128], index: 4, kind: input, shape index: {}]   ;;  %s11730_s5 = inlined_call_operand.vmem [shape: bf16[32,128], index: 5, kind: input, shape index: {}]   ;;  %s11731_s6 = inlined_call_operand.vmem [shape: f32[1,128], index: 6, kind: input, shape index: {}]   ;;  %s11732_s7 = inlined_call_operand.vmem [shape: bf16[128,128], index: 7, kind: output, shape index: {}]  }
   0x1   :  { %v7962_v0 = vld [vmem:[%s11725_s1] sm:$0xff]   ;;  %v7963_v1 = vld [vmem:[%s11725_s1 + $0x8] sm:$0xff]   ;;  %v7964_v2 = vld [vmem:[%s11725_s1 + $0x10] sm:$0xff]   ;;  %s8503_s28 = smov 96   ;;  %s8504_s29 = smov 112   ;;  %vm3167_vm4 = vcmask 130048  }
   0x2   :  { %6726 = vmatprep.subr.bf16.mxu0 %v7962_v0  ;;  %v7965_v3 = vld [vmem:[%s11725_s1 + $0x18] sm:$0xff]   ;;  %v7970_v4 = vld [vmem:[%s11726_s0] sm:$0xff]   ;;  %v7975_v7 = vld [vmem:[%s11727_s3 + $0x8] sm:$0xff]   ;;  %s8505_s30 = smov 108   ;;  %s8506_s8 = smov 104   ;;  %vm3176_vm5 = vcmask 162816  }
   0x3   :  { %6727 = vmatpush3.bf16.msra.mxu0 %v7962_v0  ;;  %6742 = vmatprep.mubr.bf16.mxu0 %v7970_v4  ;;  %v7966_v5 = vld [vmem:[%s11725_s1 + $0x20] sm:$0xff]   ;;  %v7967_v8 = vld [vmem:[%s11725_s1 + $0x28] sm:$0xff]   ;;  %v7976_v9 = vld [vmem:[%s11727_s3 + $0x10] sm:$0xff]   ;;  %s8507_s9 = smov 100   ;;  %s8508_s10 = smov 64   ;;  %vm3185_vm6 = vcmask 195584  }
   0x4   :  { %6728 = vmatprep.subr.bf16.mxu0 %v7963_v1  ;;  %v7974_v6 = vld [vmem:[%s11727_s3] sm:$0xff]   ;;  %v7968_v10 = vld [vmem:[%s11725_s1 + $0x30] sm:$0xff]   ;;  %v7977_v11 = vld [vmem:[%s11727_s3 + $0x18] sm:$0xff]   ;;  %s8510_s11 = smov 8   ;;  %s8511_s12 = smov 12   ;;  %vm3194_vm7 = vcmask 228352  }
   0x5   :  { %6758 = vmatprep.subr.bf16.mxu1 %v7974_v6  ;;  %v7969_v12 = vld [vmem:[%s11725_s1 + $0x38] sm:$0xff]   ;;  %v7978_v13 = vld [vmem:[%s11727_s3 + $0x20] sm:$0xff]   ;;  %v7979_v14 = vld [vmem:[%s11727_s3 + $0x28] sm:$0xff]   ;;  %s8509_s1 = smov 4   ;;  %s8512_s13 = smov 16   ;;  %vm5978_vm8 = vcmask 261120  }
   0x6   :  { %6759 = vmatpush3.bf16.msra.mxu1 %v7974_v6  ;;  %v7971_v15 = vld [vmem:[%s11726_s0 + $0x8] sm:$0xff]   ;;  %v7972_v16 = vld [vmem:[%s11726_s0 + $0x10] sm:$0xff]   ;;  %v7973_v17 = vld [vmem:[%s11726_s0 + $0x18] sm:$0xff]   ;;  %s8513_s14 = smov 20   ;;  %s8514_s15 = smov 24  }
   0x7   :  { %6729 = vmatpush3.bf16.msra.mxu0 %v7963_v1  ;;  %6760 = vmatprep.subr.bf16.mxu1 %v7975_v7  ;;  %v7980_v18 = vld [vmem:[%s11727_s3 + $0x30] sm:$0xff]   ;;  %v7981_v19 = vld [vmem:[%s11727_s3 + $0x38] sm:$0xff]   ;;  %v7982_v20 = vld [vmem:[%s11726_s0 + $0x20] sm:$0xff]   ;;  %s8515_s16 = smov 28  }
   0x8   :  { %6730 = vmatprep.subr.bf16.mxu0 %v7964_v2  ;;  %v7983_v21 = vld [vmem:[%s11726_s0 + $0x28] sm:$0xff]   ;;  %v7984_v22 = vld [vmem:[%s11726_s0 + $0x30] sm:$0xff]   ;;  %v7985_v23 = vld [vmem:[%s11726_s0 + $0x38] sm:$0xff]  }
   0x9   :  { %v6184_v24 = vld [vmem:[%s11728_s2] ss:$0 sm:$0xff] }
   0xa   :  { %6761 = vmatpush3.bf16.msra.mxu1 %v7975_v7 }
   0xb   :  { %6731 = vmatpush3.bf16.msra.mxu0 %v7964_v2  ;;  %6762 = vmatprep.subr.bf16.mxu1 %v7976_v9 }
   0xc   :  { %6732 = vmatprep.subr.bf16.mxu0 %v7965_v3 }
   0xe   :  { %6763 = vmatpush3.bf16.msra.mxu1 %v7976_v9 }
   0xf   :  { %6733 = vmatpush3.bf16.msra.mxu0 %v7965_v3  ;;  %6764 = vmatprep.subr.bf16.mxu1 %v7977_v11 }
  0x10   :  { %6734 = vmatprep.subr.bf16.mxu0 %v7966_v5 }
  0x12   :  { %6765 = vmatpush3.bf16.msra.mxu1 %v7977_v11 }
  0x13   :  { %6735 = vmatpush3.bf16.msra.mxu0 %v7966_v5  ;;  %6766 = vmatprep.subr.bf16.mxu1 %v7978_v13 }
  0x14   :  { %6736 = vmatprep.subr.bf16.mxu0 %v7967_v8 }
  0x16   :  { %6767 = vmatpush3.bf16.msra.mxu1 %v7978_v13 }
  0x17   :  { %6737 = vmatpush3.bf16.msra.mxu0 %v7967_v8  ;;  %6768 = vmatprep.subr.bf16.mxu1 %v7979_v14 }
  0x18   :  { %6738 = vmatprep.subr.bf16.mxu0 %v7968_v10 }
  0x1a   :  { %6769 = vmatpush3.bf16.msra.mxu1 %v7979_v14 }
  0x1b   :  { %6739 = vmatpush3.bf16.msra.mxu0 %v7968_v10  ;;  %6770 = vmatprep.subr.bf16.mxu1 %v7980_v18 }
  0x1c   :  { %6740 = vmatprep.subr.bf16.mxu0 %v7969_v12 }
  0x1e   :  { %6771 = vmatpush3.bf16.msra.mxu1 %v7980_v18  ;;  %v8634_v18 = vld [vmem:[%s11729_s4] ss:$0 sm:$0xff]  ;;  %s8500_s4 = smov 124  }
  0x1f   :  { %6741 = vmatpush3.bf16.msra.mxu0 %v7969_v12  ;;  %6772 = vmatprep.subr.bf16.mxu1 %v7981_v19 }
  0x22   :  { %6743 = vmatmul.mubr.bf16.vlgmr.msra.gmra.mrb[0].mxu0 %v7971_v15  ;;  %6773 = vmatpush3.bf16.msra.mxu1 %v7981_v19 }
  0x23   :  { %6746 = vmatprep.mubr.bf16.mxu0 %v7972_v16 }
  0x2a   :  { %6747 = vmatmul.mubr.bf16.gmra.mrb[4].mxu0 %v7973_v17 }
  0x2b   :  { %6750 = vmatprep.mubr.bf16.mxu0 %v7982_v20 }
  0x32   :  { %6751 = vmatmul.mubr.bf16.gmra.mrb[8].mxu0 %v7983_v21 }
  0x33   :  { %6754 = vmatprep.mubr.bf16.mxu0 %v7984_v22 }
  0x3a   :  { %6755 = vmatmul.mubr.bf16.gmra.mrb[12].mxu0 %v7985_v23 }
  0xf5   :  { %v6744_v25 = vpop.f32.mrb[0].mxu0 }
  0xf6   :  { %v205_v26 = vadd.f32 %v6744_v25, %v6184_v24  ;;  %v196_v27 = vpop.f32.mrb[1].mxu0 }
  0xf7   :  { %v197_v28 = vadd.f32 %v6184_v24, %v196_v27  ;;  %v6745_v29 = vpop.f32.mrb[2].mxu0 }
  0xf8   :  { %v208_v30 = vadd.f32 %v6745_v29, %v6184_v24  ;;  %v199_v31 = vpop.f32.mrb[3].mxu0  ;;  %v261_v33 = vmax.f32 %v205_v26, 0.0 }
  0xf9   :  { %v200_v32 = vadd.f32 %v6184_v24, %v199_v31  ;;  %v259_v35 = vmax.f32 %v197_v28, 0.0 }
  0xfa   :  { %v262_v34 = vmax.f32 %v208_v30, 0.0 }
  0xfb   :  { %v260_v36 = vmax.f32 %v200_v32, 0.0 }
  0xfc   :  { %v276_v37 = vpack.c.bf16 %v262_v34, %v261_v33 }
  0xfd   :  { %v6748_v38 = vpop.f32.mrb[4].mxu0  ;;  %v275_v39 = vpack.c.bf16 %v260_v36, %v259_v35 }
  0xfe   :  { %v221_v40 = vadd.f32 %v6748_v38, %v6184_v24  ;;  %v212_v41 = vpop.f32.mrb[5].mxu0 }
  0xff   :  { %v213_v42 = vadd.f32 %v6184_v24, %v212_v41  ;;  %v6749_v43 = vpop.f32.mrb[6].mxu0  ;;  %6774 = vmatprep.mubr.bf16.mxu1 %v275_v39 }
 0x100   :  { %v265_v44 = vmax.f32 %v221_v40, 0.0  ;;  %v224_v45 = vadd.f32 %v6749_v43, %v6184_v24  ;;  %v215_v46 = vpop.f32.mrb[7].mxu0  ;;  %6775 = vmatmul.mubr.bf16.vlgmr.msra.gmra.mrb[0].mxu1 %v276_v37 }
 0x101   :  { %v263_v47 = vmax.f32 %v213_v42, 0.0  ;;  %v216_v48 = vadd.f32 %v6184_v24, %v215_v46 }
 0x102   :  { %v266_v49 = vmax.f32 %v224_v45, 0.0 }
 0x103   :  { %v264_v50 = vmax.f32 %v216_v48, 0.0 }
 0x104   :  { %v278_v51 = vpack.c.bf16 %v266_v49, %v265_v44 }
 0x105   :  { %v277_v52 = vpack.c.bf16 %v264_v50, %v263_v47  ;;  %v6752_v53 = vpop.f32.mrb[8].mxu0 }
 0x106   :  { %v237_v54 = vadd.f32 %v6752_v53, %v6184_v24  ;;  %v228_v55 = vpop.f32.mrb[9].mxu0 }
 0x107   :  { %6778 = vmatprep.mubr.bf16.mxu1 %v277_v52  ;;  %v229_v56 = vadd.f32 %v6184_v24, %v228_v55  ;;  %v6753_v57 = vpop.f32.mrb[10].mxu0 }
 0x108   :  { %6779 = vmatmul.mubr.bf16.gmra.mrb[4].mxu1 %v278_v51  ;;  %v269_v58 = vmax.f32 %v237_v54, 0.0  ;;  %v240_v59 = vadd.f32 %v6753_v57, %v6184_v24  ;;  %v231_v60 = vpop.f32.mrb[11].mxu0 }
 0x109   :  { %v267_v61 = vmax.f32 %v229_v56, 0.0  ;;  %v232_v62 = vadd.f32 %v6184_v24, %v231_v60 }
 0x10a   :  { %v270_v0 = vmax.f32 %v240_v59, 0.0 }
 0x10b   :  { %v268_v3 = vmax.f32 %v232_v62, 0.0 }
 0x10c   :  { %v280_v6 = vpack.c.bf16 %v270_v0, %v269_v58 }
 0x10d   :  { %v6756_v63 = vpop.f32.mrb[12].mxu0  ;;  %v279_v10 = vpack.c.bf16 %v268_v3, %v267_v61 }
 0x10e   :  { %v253_v1 = vadd.f32 %v6756_v63, %v6184_v24  ;;  %v244_v2 = vpop.f32.mrb[13].mxu0 }
 0x10f   :  { %v245_v4 = vadd.f32 %v6184_v24, %v244_v2  ;;  %v6757_v5 = vpop.f32.mrb[14].mxu0  ;;  %6782 = vmatprep.mubr.bf16.mxu1 %v279_v10 }
 0x110   :  { %v273_v7 = vmax.f32 %v253_v1, 0.0  ;;  %v256_v8 = vadd.f32 %v6757_v5, %v6184_v24  ;;  %v247_v9 = vpop.f32.mrb[15].mxu0  ;;  %6783 = vmatmul.mubr.bf16.gmra.mrb[8].mxu1 %v280_v6 }
 0x111   :  { %v271_v11 = vmax.f32 %v245_v4, 0.0  ;;  %v248_v12 = vadd.f32 %v6184_v24, %v247_v9 }
 0x112   :  { %v274_v13 = vmax.f32 %v256_v8, 0.0 }
 0x113   :  { %v272_v14 = vmax.f32 %v248_v12, 0.0 }
 0x114   :  { %v282_v15 = vpack.c.bf16 %v274_v13, %v273_v7 }
 0x115   :  { %v281_v16 = vpack.c.bf16 %v272_v14, %v271_v11 }
 0x117   :  { %6786 = vmatprep.mubr.bf16.mxu1 %v281_v16 }
 0x118   :  { %6787 = vmatmul.mubr.bf16.gmra.mrb[12].mxu1 %v282_v15 }
 0x1d3   :  { %v6776_v17 = vpop.f32.mrb[0].mxu1 }
 0x1d4   :  { %v388_v19 = vpop.f32.mrb[1].mxu1  ;;  %v397_v21 = vadd.f32 %v6776_v17, %v8634_v18 }
 0x1d5   :  { %v6777_v20 = vpop.f32.mrb[2].mxu1  ;;  %v389_v24 = vadd.f32 %v8634_v18, %v388_v19 }
 0x1d6   :  { %v400_v22 = vadd.f32 %v6777_v20, %v8634_v18  ;;  %v391_v23 = vpop.f32.mrb[3].mxu1 }
 0x1d7   :  { %v392_v25 = vadd.f32 %v8634_v18, %v391_v23 }
 0x1d8   :  { %v8640_v26 = vpack.i.bf16 %v400_v22, %v397_v21  ;;  %v8642_v27 = vpack.c.bf16 %v400_v22, %v397_v21 }
 0x1d9   :  { %v8644_v28 = vpack.i.bf16 %v392_v25, %v389_v24  ;;  %v8646_v29 = vpack.c.bf16 %v392_v25, %v389_v24 }
 0x1db   :  { %v6780_v30 = vpop.f32.mrb[4].mxu1  ;;  %7403 = vrot.lane.b32.xlu0 %v8644_v28, %s8500_s4  ;;  %6798 = vmatprep.mubr.msk.bf16.mxu0 %vm671_vm0, %v8646_v29 }
 0x1dc   :  { %v413_v31 = vadd.f32 %v6780_v30, %v8634_v18  ;;  %v404_v32 = vpop.f32.mrb[5].mxu1 }
 0x1dd   :  { %v405_v33 = vadd.f32 %v8634_v18, %v404_v32  ;;  %v6781_v34 = vpop.f32.mrb[6].mxu1 }
 0x1de   :  { %v416_v35 = vadd.f32 %v6781_v34, %v8634_v18  ;;  %v407_v36 = vpop.f32.mrb[7].mxu1 }
 0x1df   :  { %v408_v37 = vadd.f32 %v8634_v18, %v407_v36  ;;  %7408 = vrot.lane.b32.xlu0 %v8640_v26, %s8500_s4 }
 0x1e0   :  { %v8658_v38 = vpack.i.bf16 %v416_v35, %v413_v31  ;;  %v8660_v39 = vpack.c.bf16 %v416_v35, %v413_v31 }
 0x1e1   :  { %v8662_v40 = vpack.i.bf16 %v408_v37, %v405_v33  ;;  %v8664_v41 = vpack.c.bf16 %v408_v37, %v405_v33 }
 0x1e3   :  { %7413 = vrot.lane.b32.xlu1 %v8662_v40, %s8500_s4  ;;  %7423 = vrot.lane.b32.xlu0 %v8644_v28, %s8501_s26 }
 0x1e7   :  { %7418 = vrot.lane.b32.xlu1 %v8658_v38, %s8500_s4  ;;  %7433 = vrot.lane.b32.xlu0 %v8640_v26, %s8501_s26 }
 0x1eb   :  { %7428 = vrot.lane.b32.xlu1 %v8644_v28, %s8502_s27  ;;  %7443 = vrot.lane.b32.xlu0 %v8658_v38, %s8501_s26 }
 0x1ef   :  { %7438 = vrot.lane.b32.xlu1 %v8640_v26, %s8502_s27  ;;  %7453 = vrot.lane.b32.xlu0 %v8662_v40, %s8501_s26 }
 0x1f3   :  { %7448 = vrot.lane.b32.xlu1 %v8658_v38, %s8502_s27  ;;  %663 = vrot.lane.b32.xlu0 %v8646_v29, %s8503_s28 }
 0x1f7   :  { %7463 = vrot.lane.b32.xlu1 %v8662_v40, %s8502_s27  ;;  %7458 = vrot.lane.b32.xlu0 %v8644_v28, %s8504_s29 }
 0x1fb   :  { %7468 = vrot.lane.b32.xlu1 %v8644_v28, %s8505_s30  ;;  %665 = vrot.lane.b32.xlu0 %v8642_v27, %s8503_s28 }
 0x1ff   :  { %7473 = vrot.lane.b32.xlu0 %v8640_v26, %s8504_s29 }
 0x203   :  { %667 = vrot.lane.b32.xlu0 %v8664_v41, %s8503_s28 }
 0x207   :  { %7483 = vrot.lane.b32.xlu0 %v8662_v40, %s8504_s29 }
 0x20b   :  { %669 = vrot.lane.b32.xlu0 %v8660_v39, %s8503_s28 }
 0x20f   :  { %7493 = vrot.lane.b32.xlu0 %v8658_v38, %s8504_s29 }
 0x24d   :  { %v7404_v42 = vpop.permute.xlu0 %7403 }
 0x24e   :  { %v7406_v43 = vunpack.i.h.bf16 %v7404_v42  ;;  %v7405_v44 = vunpack.i.l.bf16 %v7404_v42 }
 0x250   :  { %v8704_v45 = vpack.c.bf16 %v7406_v43, %v7405_v44 }
 0x251   :  { %v7409_v46 = vpop.permute.xlu0 %7408 }
 0x252   :  { %v7411_v47 = vunpack.i.h.bf16 %v7409_v46  ;;  %v7410_v48 = vunpack.i.l.bf16 %v7409_v46  ;;  %6814 = vmatprep.mubr.msk.bf16.mxu1 %vm671_vm0, %v8704_v45 }
 0x254   :  { %v8708_v49 = vpack.c.bf16 %v7411_v47, %v7410_v48 }
 0x255   :  { %v7424_v50 = vpop.permute.xlu0 %7423  ;;  %v7414_v53 = vpop.permute.xlu1 %7413 }
 0x256   :  { %v7426_v51 = vunpack.i.h.bf16 %v7424_v50  ;;  %v7425_v52 = vunpack.i.l.bf16 %v7424_v50  ;;  %767 = vrot.lane.b32.xlu1 %v8708_v49, %s8503_s28  ;;  %v7416_v0 = vunpack.i.h.bf16 %v7414_v53  ;;  %v7415_v1 = vunpack.i.l.bf16 %v7414_v53 }
 0x258   :  { %v8712_v54 = vpack.c.bf16 %v7426_v51, %v7425_v52  ;;  %v8736_v8 = vpack.c.bf16 %v7416_v0, %v7415_v1 }
 0x259   :  { %v7434_v55 = vpop.permute.xlu0 %7433  ;;  %v7419_v58 = vpop.permute.xlu1 %7418 }
 0x25a   :  { %765 = vrot.lane.b32.xlu1 %v8704_v45, %s8503_s28  ;;  %866 = vrot.lane.b32.xlu0 %v8712_v54, %s8503_s28  ;;  %v7436_v56 = vunpack.i.h.bf16 %v7434_v55  ;;  %v7435_v57 = vunpack.i.l.bf16 %v7434_v55  ;;  %v7421_v60 = vunpack.i.h.bf16 %v7419_v58  ;;  %v7420_v61 = vunpack.i.l.bf16 %v7419_v58 }
 0x25c   :  { %v8722_v62 = vpack.c.bf16 %v7436_v56, %v7435_v57  ;;  %v8728_v2 = vpack.c.bf16 %v7421_v60, %v7420_v61  ;;  %v6784_v57 = vpop.f32.mrb[8].mxu1 }
 0x25d   :  { %v7444_v59 = vpop.permute.xlu0 %7443  ;;  %v7429_v5 = vpop.permute.xlu1 %7428 }
 0x25e   :  { %7478 = vrot.lane.b32.xlu1 %v8640_v26, %s8505_s30  ;;  %7503 = vrot.lane.b32.xlu0 %v8644_v28, %s8506_s8  ;;  %v7446_v6 = vunpack.i.h.bf16 %v7444_v59  ;;  %v7445_v7 = vunpack.i.l.bf16 %v7444_v59  ;;  %v7431_v10 = vunpack.i.h.bf16 %v7429_v5  ;;  %v7430_v11 = vunpack.i.l.bf16 %v7429_v5  ;;  %v420_v60 = vpop.f32.mrb[9].mxu1 }
 0x25f   :  { %v6785_v61 = vpop.f32.mrb[10].mxu1  ;;  %v421_v5 = vadd.f32 %v8634_v18, %v420_v60 }
 0x260   :  { %v8742_v14 = vpack.c.bf16 %v7446_v6, %v7445_v7  ;;  %v8750_v17 = vpack.c.bf16 %v7431_v10, %v7430_v11  ;;  %v432_v6 = vadd.f32 %v6785_v61, %v8634_v18 }
 0x261   :  { %v7454_v63 = vpop.permute.xlu0 %7453  ;;  %v7439_v20 = vpop.permute.xlu1 %7438 }
 0x262   :  { %7488 = vrot.lane.b32.xlu1 %v8662_v40, %s8505_s30  ;;  %868 = vrot.lane.b32.xlu0 %v8722_v62, %s8503_s28  ;;  %v7456_v12 = vunpack.i.h.bf16 %v7454_v63  ;;  %v7455_v13 = vunpack.i.l.bf16 %v7454_v63  ;;  %v7441_v22 = vunpack.i.h.bf16 %v7439_v20  ;;  %v7440_v23 = vunpack.i.l.bf16 %v7439_v20  ;;  %v423_v63 = vpop.f32.mrb[11].mxu1 }
 0x263   :  { %v6788_v0 = vpop.f32.mrb[12].mxu1  ;;  %v424_v7 = vadd.f32 %v8634_v18, %v423_v63 }
 0x264   :  { %v8752_v19 = vpack.c.bf16 %v7456_v12, %v7455_v13  ;;  %v8764_v32 = vpack.c.bf16 %v7441_v22, %v7440_v23 }
 0x265   :  { %v664_v3 = vpop.permute.xlu0 %663  ;;  %v8816_v11 = vpack.i.bf16 %v424_v7, %v421_v5 }
 0x266   :  { %771 = vrot.lane.b32.xlu1 %v8728_v2, %s8503_s28  ;;  %7513 = vrot.lane.b32.xlu0 %v8640_v26, %s8506_s8  ;;  %v685_v4 = vsel %vm671_vm0, %v664_v3, 0 }
 0x267   :  { %7322 = vmatprep.subr.msk.bf16.mxu0 %vm671_vm0, %v664_v3  ;;  %v436_v3 = vpop.f32.mrb[13].mxu1  ;;  %11948 = vst [vmem:[#allocation2_spill] sm:$0xff] %v8816_v11 }
 0x268   :  { %6791 = vmatpush3.bf16.xpose.msra.mxu0 %v685_v4  ;;  %v429_v4 = vadd.f32 %v6784_v57, %v8634_v18 }
 0x269   :  { %v7459_v9 = vpop.permute.xlu0 %7458 }
 0x26a   :  { %769 = vrot.lane.b32.xlu1 %v8736_v8, %s8503_s28  ;;  %7523 = vrot.lane.b32.xlu0 %v8662_v40, %s8506_s8  ;;  %v7461_v24 = vunpack.i.h.bf16 %v7459_v9  ;;  %v7460_v25 = vunpack.i.l.bf16 %v7459_v9  ;;  %v6789_v9 = vpop.f32.mrb[14].mxu1  ;;  %v8818_v12 = vpack.i.bf16 %v432_v6, %v429_v4  ;;  %v8820_v13 = vpack.c.bf16 %v432_v6, %v429_v4 }
 0x26b   :  { %v448_v10 = vadd.f32 %v6789_v9, %v8634_v18  ;;  %v439_v20 = vpop.f32.mrb[15].mxu1 }
 0x26c   :  { %v8766_v33 = vpack.c.bf16 %v7461_v24, %v7460_v25  ;;  %11949 = vst [vmem:[#allocation3_spill] sm:$0xff] %v8818_v12  ;;  %11950 = vst [vmem:[#allocation4_spill] sm:$0xff] %v8820_v13  ;;  %v440_v22 = vadd.f32 %v8634_v18, %v439_v20 }
 0x26d   :  { %v666_v15 = vpop.permute.xlu0 %665 }
 0x26e   :  { %7498 = vrot.lane.b32.xlu1 %v8658_v38, %s8505_s30  ;;  %872 = vrot.lane.b32.xlu0 %v8742_v14, %s8503_s28  ;;  %v688_v16 = vsel %vm671_vm0, %v666_v15, 0 }
 0x26f   :  { %7323 = vmatprep.subr.msk.bf16.mxu0 %vm671_vm0, %v666_v15 }
 0x270   :  { %6793 = vmatpush3.bf16.xpose.msra.mxu0 %v688_v16  ;;  %v8824_v16 = vpack.c.bf16 %v424_v7, %v421_v5 }
 0x271   :  { %v7474_v21 = vpop.permute.xlu0 %7473 }
 0x272   :  { %967 = vrot.lane.b32.xlu1 %v8750_v17, %s8503_s28  ;;  %870 = vrot.lane.b32.xlu0 %v8752_v19, %s8503_s28  ;;  %v7476_v34 = vunpack.i.h.bf16 %v7474_v21  ;;  %v7475_v35 = vunpack.i.l.bf16 %v7474_v21  ;;  %11952 = vst [vmem:[#allocation6_spill] sm:$0xff] %v8824_v16  ;;  %v437_v21 = vadd.f32 %v8634_v18, %v436_v3 }
 0x274   :  { %v8774_v42 = vpack.c.bf16 %v7476_v34, %v7475_v35  ;;  %v8828_v23 = vpack.i.bf16 %v440_v22, %v437_v21  ;;  %v8830_v24 = vpack.c.bf16 %v440_v22, %v437_v21 }
 0x275   :  { %v668_v30 = vpop.permute.xlu0 %667 }
 0x276   :  { %7508 = vrot.lane.b32.xlu1 %v8644_v28, %s8507_s9  ;;  %7533 = vrot.lane.b32.xlu0 %v8658_v38, %s8506_s8  ;;  %v691_v31 = vsel %vm671_vm0, %v668_v30, 0  ;;  %v7449_v28 = vpop.permute.xlu1 %7448  ;;  %11953 = vst [vmem:[#allocation7_spill] sm:$0xff] %v8828_v23  ;;  %11954 = vst [vmem:[#allocation8_spill] sm:$0xff] %v8830_v24 }
 0x277   :  { %7324 = vmatprep.subr.msk.bf16.mxu0 %vm671_vm0, %v668_v30  ;;  %v7451_v44 = vunpack.i.h.bf16 %v7449_v28  ;;  %v7450_v46 = vunpack.i.l.bf16 %v7449_v28 }
 0x278   :  { %6795 = vmatpush3.bf16.xpose.msra.mxu0 %v691_v31 }
 0x279   :  { %v8768_v36 = vpop.permute.xlu0 %7483 }
 0x27a   :  { %969 = vrot.lane.b32.xlu1 %v8764_v32, %s8503_s28  ;;  %1068 = vrot.lane.b32.xlu0 %v8766_v33, %s8503_s28  ;;  %v7464_v47 = vpop.permute.xlu1 %7463 }
 0x27b   :  { %v7466_v52 = vunpack.i.h.bf16 %v7464_v47  ;;  %v7465_v53 = vunpack.i.l.bf16 %v7464_v47 }
 0x27d   :  { %v670_v37 = vpop.permute.xlu0 %669 }
 0x27e   :  { %7518 = vrot.lane.b32.xlu1 %v8640_v26, %s8507_s9  ;;  %7325 = vmatprep.subr.msk.bf16.mxu0 %vm671_vm0, %v670_v37  ;;  %v694_v43 = vsel %vm671_vm0, %v670_v37, 0  ;;  %v8784_v26 = vpack.c.bf16 %v7451_v44, %v7450_v46  ;;  %v7469_v56 = vpop.permute.xlu1 %7468 }
 0x27f   :  { %1070 = vrot.lane.b32.xlu0 %v8774_v42, %s8503_s28  ;;  %v7471_v58 = vunpack.i.h.bf16 %v7469_v56  ;;  %v7470_v59 = vunpack.i.l.bf16 %v7469_v56 }
 0x280   :  { %6797 = vmatpush3.bf16.xpose.msra.mxu0 %v694_v43 }
 0x281   :  { %v7494_v48 = vpop.permute.xlu0 %7493  ;;  %v8804_v1 = vpack.c.bf16 %v7471_v58, %v7470_v59 }
 0x282   :  { %v7496_v50 = vunpack.i.h.bf16 %v7494_v48  ;;  %v7495_v51 = vunpack.i.l.bf16 %v7494_v48  ;;  %7528 = vrot.lane.b32.xlu1 %v8662_v40, %s8507_s9  ;;  %v8796_v40 = vpack.c.bf16 %v7466_v52, %v7465_v53 }
 0x284   :  { %v8786_v55 = vpack.c.bf16 %v7496_v50, %v7495_v51 }
 0x286   :  { %973 = vrot.lane.b32.xlu1 %v8784_v26, %s8503_s28  ;;  %1074 = vrot.lane.b32.xlu0 %v8786_v55, %s8503_s28 }
 0x287   :  { %6799 = vmatmul.mubr.msk.bf16.vlgmr.msra.gmra.mrb[16].mxu0 %vm671_vm0, %v8642_v27 }
 0x288   :  { %6802 = vmatprep.mubr.msk.bf16.mxu0 %vm671_vm0, %v8664_v41 }
 0x28a   :  { %971 = vrot.lane.b32.xlu1 %v8796_v40, %s8503_s28 }
 0x28e   :  { %7538 = vrot.lane.b32.xlu1 %v8658_v38, %s8507_s9  ;;  %v445_v38 = vadd.f32 %v6788_v0, %v8634_v18 }
 0x28f   :  { %6803 = vmatmul.mubr.msk.bf16.gmra.mrb[20].mxu0 %vm671_vm0, %v8660_v39 }
 0x290   :  { %6830 = vmatprep.mubr.msk.bf16.mxu0 %vm671_vm0, %v8712_v54  ;;  %v8822_v15 = vpack.i.bf16 %v448_v10, %v445_v38  ;;  %v8832_v25 = vpack.c.bf16 %v448_v10, %v445_v38 }
 0x292   :  { %1169 = vrot.lane.b32.xlu1 %v8804_v1, %s8503_s28  ;;  %11951 = vst [vmem:[#allocation5_spill] sm:$0xff] %v8822_v15  ;;  %11955 = vst [vmem:[#allocation9_spill] sm:$0xff] %v8832_v25 }
 0x2c8   :  { %v768_v30 = vpop.permute.xlu1 %767 }
 0x2c9   :  { %v789_v53 = vsel %vm671_vm0, %v768_v30, 0 }
 0x2cc   :  { %v766_v31 = vpop.permute.xlu1 %765  ;;  %v867_v34 = vpop.permute.xlu0 %866 }
 0x2cd   :  { %7326 = vmatprep.subr.msk.bf16.mxu1 %vm671_vm0, %v766_v31  ;;  %7330 = vmatprep.subr.msk.bf16.mxu0 %vm671_vm0, %v867_v34  ;;  %v786_v35 = vsel %vm671_vm0, %v766_v31, 0  ;;  %v887_v28 = vsel %vm671_vm0, %v867_v34, 0 }
 0x2ce   :  { %6807 = vmatpush3.bf16.xpose.msra.mxu1 %v786_v35  ;;  %6823 = vmatpush3.bf16.xpose.msra.mxu0 %v887_v28 }
 0x2cf   :  { %7327 = vmatprep.subr.msk.bf16.mxu1 %vm671_vm0, %v768_v30 }
 0x2d0   :  { %v7479_v18 = vpop.permute.xlu1 %7478  ;;  %v7504_v37 = vpop.permute.xlu0 %7503 }
 0x2d1   :  { %v7481_v43 = vunpack.i.h.bf16 %v7479_v18  ;;  %v7480_v44 = vunpack.i.l.bf16 %v7479_v18  ;;  %v7506_v46 = vunpack.i.h.bf16 %v7504_v37  ;;  %v7505_v47 = vunpack.i.l.bf16 %v7504_v37 }
 0x2d3   :  { %v8839_v48 = vpack.c.bf16 %v7481_v43, %v7480_v44  ;;  %v8841_v50 = vpack.c.bf16 %v7506_v46, %v7505_v47  ;;  %v7486_v43 = vunpack.i.h.bf16 %v8768_v36  ;;  %v7485_v44 = vunpack.i.l.bf16 %v8768_v36 }
 0x2d4   :  { %v8843_v51 = vpop.permute.xlu1 %7488  ;;  %v869_v52 = vpop.permute.xlu0 %868 }
 0x2d5   :  { %1171 = vrot.lane.b32.xlu1 %v8839_v48, %s8503_s28  ;;  %1270 = vrot.lane.b32.xlu0 %v8841_v50, %s8503_s28  ;;  %v890_v56 = vsel %vm671_vm0, %v869_v52, 0 }
 0x2d6   :  { %7331 = vmatprep.subr.msk.bf16.mxu0 %vm671_vm0, %v869_v52  ;;  %6809 = vmatpush3.bf16.xpose.msra.mxu1 %v789_v53 }
 0x2d7   :  { %6825 = vmatpush3.bf16.xpose.msra.mxu0 %v890_v56  ;;  %v8888_v56 = vpack.c.bf16 %v7486_v43, %v7485_v44 }
 0x2d8   :  { %v772_v57 = vpop.permute.xlu1 %771  ;;  %v7514_v58 = vpop.permute.xlu0 %7513 }
 0x2d9   :  { %v7516_v59 = vunpack.i.h.bf16 %v7514_v58  ;;  %v7515_v60 = vunpack.i.l.bf16 %v7514_v58  ;;  %v795_v20 = vsel %vm671_vm0, %v772_v57, 0 }
 0x2db   :  { %v8852_v61 = vpack.c.bf16 %v7516_v59, %v7515_v60 }
 0x2dc   :  { %v770_v63 = vpop.permute.xlu1 %769  ;;  %v8854_v0 = vpop.permute.xlu0 %7523 }
 0x2dd   :  { %7328 = vmatprep.subr.msk.bf16.mxu1 %vm671_vm0, %v770_v63  ;;  %1272 = vrot.lane.b32.xlu0 %v8852_v61, %s8503_s28  ;;  %v792_v3 = vsel %vm671_vm0, %v770_v63, 0 }
 0x2de   :  { %6811 = vmatpush3.bf16.xpose.msra.mxu1 %v792_v3 }
 0x2df   :  { %7329 = vmatprep.subr.msk.bf16.mxu1 %vm671_vm0, %v772_v57 }
 0x2e0   :  { %v7499_v4 = vpop.permute.xlu1 %7498  ;;  %v873_v5 = vpop.permute.xlu0 %872 }
 0x2e1   :  { %v7501_v6 = vunpack.i.h.bf16 %v7499_v4  ;;  %v7500_v7 = vunpack.i.l.bf16 %v7499_v4  ;;  %v896_v47 = vsel %vm671_vm0, %v873_v5, 0 }
 0x2e3   :  { %v8861_v9 = vpack.c.bf16 %v7501_v6, %v7500_v7 }
 0x2e4   :  { %v968_v38 = vpop.permute.xlu1 %967  ;;  %v871_v10 = vpop.permute.xlu0 %870 }
 0x2e5   :  { %1175 = vrot.lane.b32.xlu1 %v8861_v9, %s8503_s28  ;;  %7332 = vmatprep.subr.msk.bf16.mxu0 %vm671_vm0, %v871_v10  ;;  %v893_v21 = vsel %vm671_vm0, %v871_v10, 0  ;;  %v988_v52 = vsel %vm671_vm0, %v968_v38, 0 }
 0x2e6   :  { %6813 = vmatpush3.bf16.xpose.msra.mxu1 %v795_v20  ;;  %6827 = vmatpush3.bf16.xpose.msra.mxu0 %v893_v21 }
 0x2e7   :  { %7333 = vmatprep.subr.msk.bf16.mxu0 %vm671_vm0, %v873_v5  ;;  %7334 = vmatprep.subr.msk.bf16.mxu1 %vm671_vm0, %v968_v38  ;;  %v7526_v38 = vunpack.i.h.bf16 %v8854_v0 }
 0x2e8   :  { %v7509_v22 = vpop.permute.xlu1 %7508  ;;  %v7534_v30 = vpop.permute.xlu0 %7533 }
 0x2e9   :  { %v7511_v31 = vunpack.i.h.bf16 %v7509_v22  ;;  %v7510_v34 = vunpack.i.l.bf16 %v7509_v22  ;;  %v7536_v35 = vunpack.i.h.bf16 %v7534_v30  ;;  %v7535_v28 = vunpack.i.l.bf16 %v7534_v30 }
 0x2ea   :  { %v7490_v22 = vunpack.i.l.bf16 %v8843_v51 }
 0x2eb   :  { %v8870_v18 = vpack.c.bf16 %v7511_v31, %v7510_v34  ;;  %v8872_v37 = vpack.c.bf16 %v7536_v35, %v7535_v28 }
 0x2ec   :  { %v970_v46 = vpop.permute.xlu1 %969  ;;  %v1069_v53 = vpop.permute.xlu0 %1068 }
 0x2ed   :  { %1371 = vrot.lane.b32.xlu1 %v8870_v18, %s8503_s28  ;;  %6815 = vmatmul.mubr.msk.bf16.vlgmr.msra.gmra.mrb[16].mxu1 %vm671_vm0, %v8708_v49  ;;  %v991_v63 = vsel %vm671_vm0, %v970_v46, 0  ;;  %v1089_v3 = vsel %vm671_vm0, %v1069_v53, 0 }
 0x2ee   :  { %1276 = vrot.lane.b32.xlu0 %v8872_v37, %s8503_s28  ;;  %6818 = vmatprep.mubr.msk.bf16.mxu1 %vm671_vm0, %v8736_v8 }
 0x2ef   :  { %6829 = vmatpush3.bf16.xpose.msra.mxu0 %v896_v47  ;;  %6839 = vmatpush3.bf16.xpose.msra.mxu1 %v988_v52 }
 0x2f0   :  { %7335 = vmatprep.subr.msk.bf16.mxu1 %vm671_vm0, %v970_v46  ;;  %7338 = vmatprep.subr.msk.bf16.mxu0 %vm671_vm0, %v1069_v53  ;;  %v7519_v36 = vpop.permute.xlu1 %7518 }
 0x2f1   :  { %v7521_v57 = vunpack.i.h.bf16 %v7519_v36  ;;  %v7520_v58 = vunpack.i.l.bf16 %v7519_v36  ;;  %v1071_v4 = vpop.permute.xlu0 %1070 }
 0x2f2   :  { %1072 = vrot.lane.b32.xlu0 %v8888_v56, %s8503_s28  ;;  %v1092_v7 = vsel %vm671_vm0, %v1071_v4, 0 }
 0x2f3   :  { %v8892_v59 = vpack.c.bf16 %v7521_v57, %v7520_v58 }
 0x2f4   :  { %v8894_v60 = vpop.permute.xlu1 %7528 }
 0x2f5   :  { %1373 = vrot.lane.b32.xlu1 %v8892_v59, %s8503_s28  ;;  %6819 = vmatmul.mubr.msk.bf16.gmra.mrb[20].mxu1 %vm671_vm0, %v8728_v2 }
 0x2f6   :  { %2209 = vrot.lane.b32.xlu0 %v8664_v41, %s8508_s10  ;;  %6831 = vmatmul.mubr.msk.bf16.vlgmr.msra.gmra.mrb[24].mxu0 %vm671_vm0, %v8722_v62 }
 0x2f7   :  { %6834 = vmatprep.mubr.msk.bf16.mxu0 %vm671_vm0, %v8752_v19  ;;  %6841 = vmatpush3.bf16.xpose.msra.mxu1 %v991_v63 }
 0x2f8   :  { %6846 = vmatprep.mubr.msk.bf16.mxu1 %vm671_vm0, %v8750_v17  ;;  %6855 = vmatpush3.bf16.xpose.msra.mxu0 %v1089_v3  ;;  %v974_v5 = vpop.permute.xlu1 %973 }
 0x2f9   :  { %7339 = vmatprep.subr.msk.bf16.mxu0 %vm671_vm0, %v1071_v4 }
 0x2fa   :  { %2294 = vrot.lane.b32.xlu0 %v8704_v45, %s8508_s10  ;;  %v7525_v45 = vunpack.i.l.bf16 %v8854_v0  ;;  %v997_v0 = vsel %vm671_vm0, %v974_v5, 0 }
 0x2fc   :  { %v972_v41 = vpop.permute.xlu1 %971  ;;  %v8931_v31 = vpack.c.bf16 %v7526_v38, %v7525_v45 }
 0x2fd   :  { %7336 = vmatprep.subr.msk.bf16.mxu1 %vm671_vm0, %v972_v41  ;;  %v994_v6 = vsel %vm671_vm0, %v972_v41, 0 }
 0x2fe   :  { %2296 = vrot.lane.b32.xlu0 %v8708_v49, %s8508_s10  ;;  %6835 = vmatmul.mubr.msk.bf16.gmra.mrb[28].mxu0 %vm671_vm0, %v8742_v14  ;;  %v7491_v49 = vunpack.i.h.bf16 %v8843_v51 }
 0x2ff   :  { %6843 = vmatpush3.bf16.xpose.msra.mxu1 %v994_v6  ;;  %6862 = vmatprep.mubr.msk.bf16.mxu0 %vm671_vm0, %v8766_v33 }
 0x300   :  { %6857 = vmatpush3.bf16.xpose.msra.mxu0 %v1092_v7  ;;  %7337 = vmatprep.subr.msk.bf16.mxu1 %vm671_vm0, %v974_v5  ;;  %v7539_v10 = vpop.permute.xlu1 %7538  ;;  %v8938_v35 = vpack.c.bf16 %v7491_v49, %v7490_v22 }
 0x301   :  { %v7541_v20 = vunpack.i.h.bf16 %v7539_v10  ;;  %v7540_v21 = vunpack.i.l.bf16 %v7539_v10 }
 0x302   :  { %2383 = vrot.lane.b32.xlu0 %v8712_v54, %s8508_s10 }
 0x303   :  { %v8929_v30 = vpack.c.bf16 %v7541_v20, %v7540_v21 }
 0x304   :  { %v1170_v34 = vpop.permute.xlu1 %1169 }
 0x305   :  { %1377 = vrot.lane.b32.xlu1 %v8929_v30, %s8503_s28  ;;  %v1190_v54 = vsel %vm671_vm0, %v1170_v34, 0 }
 0x306   :  { %1274 = vrot.lane.b32.xlu0 %v8931_v31, %s8503_s28 }
 0x307   :  { %6845 = vmatpush3.bf16.xpose.msra.mxu1 %v997_v0 }
 0x308   :  { %7342 = vmatprep.subr.msk.bf16.mxu1 %vm671_vm0, %v1170_v34 }
 0x309   :  { %1173 = vrot.lane.b32.xlu1 %v8938_v35, %s8503_s28 }
 0x30a   :  { %2474 = vrot.lane.b32.xlu0 %v8764_v32, %s8508_s10 }
 0x30d   :  { %2205 = vrot.lane.b32.xlu1 %v8646_v29, %s8508_s10  ;;  %v7530_v29 = vunpack.i.l.bf16 %v8894_v60 }
 0x30e   :  { %6847 = vmatmul.mubr.msk.bf16.vlgmr.msra.gmra.mrb[24].mxu1 %vm671_vm0, %v8764_v32  ;;  %2478 = vrot.lane.b32.xlu0 %v8784_v26, %s8508_s10 }
 0x30f   :  { %6850 = vmatprep.mubr.msk.bf16.mxu1 %vm671_vm0, %v8796_v40  ;;  %6871 = vmatpush3.bf16.xpose.msra.mxu1 %v1190_v54 }
 0x311   :  { %2207 = vrot.lane.b32.xlu1 %v8642_v27, %s8508_s10  ;;  %v7531_v27 = vunpack.i.h.bf16 %v8894_v60 }
 0x312   :  { %2561 = vrot.lane.b32.xlu0 %v8766_v33, %s8508_s10 }
 0x315   :  { %2211 = vrot.lane.b32.xlu1 %v8660_v39, %s8508_s10  ;;  %v8984_v39 = vpack.c.bf16 %v7531_v27, %v7530_v29 }
 0x316   :  { %6851 = vmatmul.mubr.msk.bf16.gmra.mrb[28].mxu1 %vm671_vm0, %v8784_v26  ;;  %7558 = vrot.lane.b32.xlu0 %v8822_v15, %s8500_s4 }
 0x317   :  { %6878 = vmatprep.mubr.msk.bf16.mxu1 %vm671_vm0, %v8804_v1 }
 0x319   :  { %7543 = vrot.lane.b32.xlu1 %v8816_v11, %s8500_s4 }
 0x31a   :  { %2652 = vrot.lane.b32.xlu0 %v8839_v48, %s8508_s10 }
 0x31d   :  { %2300 = vrot.lane.b32.xlu1 %v8728_v2, %s8508_s10 }
 0x31e   :  { %7568 = vrot.lane.b32.xlu0 %v8816_v11, %s8502_s27 }
 0x321   :  { %2472 = vrot.lane.b32.xlu1 %v8750_v17, %s8508_s10 }
 0x322   :  { %2567 = vrot.lane.b32.xlu0 %v8786_v55, %s8508_s10 }
 0x325   :  { %7548 = vrot.lane.b32.xlu1 %v8818_v12, %s8500_s4 }
 0x326   :  { %2739 = vrot.lane.b32.xlu0 %v8841_v50, %s8508_s10 }
 0x329   :  { %1375 = vrot.lane.b32.xlu1 %v8984_v39, %s8503_s28 }
 0x32a   :  { %2828 = vrot.lane.b32.xlu0 %v8870_v18, %s8508_s10 }
 0x32d   :  { %2385 = vrot.lane.b32.xlu1 %v8722_v62, %s8508_s10 }
 0x32e   :  { %7573 = vrot.lane.b32.xlu0 %v8818_v12, %s8501_s26 }
 0x331   :  { %7553 = vrot.lane.b32.xlu1 %v8828_v23, %s8500_s4 }
 0x332   :  { %7578 = vrot.lane.b32.xlu0 %v8818_v12, %s8502_s27 }
 0x335   :  { %2389 = vrot.lane.b32.xlu1 %v8742_v14, %s8508_s10  ;;  %v1075_v14 = vpop.permute.xlu0 %1074 }
 0x336   :  { %2741 = vrot.lane.b32.xlu0 %v8852_v61, %s8508_s10  ;;  %v1098_v60 = vsel %vm671_vm0, %v1075_v14, 0 }
 0x339   :  { %2650 = vrot.lane.b32.xlu1 %v8804_v1, %s8508_s10 }
 0x33a   :  { %7583 = vrot.lane.b32.xlu0 %v8828_v23, %s8501_s26 }
 0x33d   :  { %2563 = vrot.lane.b32.xlu1 %v8774_v42, %s8508_s10 }
 0x33e   :  { %2745 = vrot.lane.b32.xlu0 %v8872_v37, %s8508_s10 }
 0x341   :  { %7563 = vrot.lane.b32.xlu1 %v8816_v11, %s8501_s26 }
 0x342   :  { %7598 = vrot.lane.b32.xlu0 %v8822_v15, %s8502_s27 }
 0x345   :  { %2656 = vrot.lane.b32.xlu1 %v8861_v9, %s8508_s10 }
 0x346   :  { %3417 = vrot.lane.b32.xlu0 %v8820_v13, %s8503_s28 }
 0x347   :  { %v1172_v62 = vpop.permute.xlu1 %1171  ;;  %v1271_v17 = vpop.permute.xlu0 %1270 }
 0x348   :  { %7343 = vmatprep.subr.msk.bf16.mxu1 %vm671_vm0, %v1172_v62  ;;  %v1193_v2 = vsel %vm671_vm0, %v1172_v62, 0 }
 0x349   :  { %6873 = vmatpush3.bf16.xpose.msra.mxu1 %v1193_v2  ;;  %2830 = vrot.lane.b32.xlu1 %v8892_v59, %s8508_s10 }
 0x34a   :  { %7613 = vrot.lane.b32.xlu0 %v8818_v12, %s8504_s29 }
 0x34d   :  { %7588 = vrot.lane.b32.xlu1 %v8828_v23, %s8502_s27 }
 0x34e   :  { %3419 = vrot.lane.b32.xlu0 %v8830_v24, %s8503_s28 }
 0x34f   :  { %v1273_v26 = vpop.permute.xlu0 %1272 }
 0x350   :  { %v1294_v7 = vsel %vm671_vm0, %v1273_v26, 0 }
 0x351   :  { %2834 = vrot.lane.b32.xlu1 %v8929_v30, %s8508_s10 }
 0x352   :  { %2565 = vrot.lane.b32.xlu0 %v8888_v56, %s8508_s10 }
 0x355   :  { %7593 = vrot.lane.b32.xlu1 %v8822_v15, %s8501_s26 }
 0x356   :  { %2743 = vrot.lane.b32.xlu0 %v8931_v31, %s8508_s10 }
 0x357   :  { %v1176_v57 = vpop.permute.xlu1 %1175 }
 0x358   :  { %v1199_v21 = vsel %vm671_vm0, %v1176_v57, 0 }
 0x359   :  { %3415 = vrot.lane.b32.xlu1 %v8824_v16, %s8503_s28 }
 0x35a   :  { %v9038_v32 = vpop.f32.mrb[16].mxu0 }
 0x35b   :  { %v9040_v33 = vpop.f32.mrb[17].mxu0 }
 0x35c   :  { %v9042_v1 = vpop.f32.mrb[18].mxu0  ;;  %v1469_v5 = vsel %vm1468_vm1, %v9040_v33, -inf }
 0x35d   :  { %v9044_v51 = vpop.f32.mrb[19].mxu0  ;;  %7603 = vrot.lane.b32.xlu1 %v8816_v11, %s8504_s29 }
 0x35f   :  { %v1372_v63 = vpop.permute.xlu1 %1371 }
 0x360   :  { %v9048_v28 = vpop.permute.xlu0 %1276  ;;  %v1392_v0 = vsel %vm671_vm0, %v1372_v63, 0 }
 0x361   :  { %7608 = vrot.lane.b32.xlu1 %v8816_v11, %s8505_s30  ;;  %v1300_v34 = vsel %vm671_vm0, %v9048_v28, 0 }
 0x362   :  { %v9052_v43 = vpop.f32.mrb[20].mxu0 }
 0x363   :  { %v9054_v44 = vpop.f32.mrb[21].mxu0 }
 0x364   :  { %v1073_v46 = vpop.permute.xlu0 %1072  ;;  %v9056_v47 = vpop.f32.mrb[22].mxu0 }
 0x365   :  { %v9058_v52 = vpop.f32.mrb[23].mxu0  ;;  %7340 = vmatprep.subr.msk.bf16.mxu0 %vm671_vm0, %v1073_v46  ;;  %7618 = vrot.lane.b32.xlu1 %v8818_v12, %s8505_s30  ;;  %v1095_v53 = vsel %vm671_vm0, %v1073_v46, 0  ;;  %v1490_v10 = vsel %vm1468_vm1, %v9056_v47, -inf }
 0x366   :  { %6859 = vmatpush3.bf16.xpose.msra.mxu0 %v1095_v53 }
 0x367   :  { %7341 = vmatprep.subr.msk.bf16.mxu0 %vm671_vm0, %v1075_v14  ;;  %v1374_v3 = vpop.permute.xlu1 %1373 }
 0x368   :  { %v9065_v36 = vpop.permute.xlu0 %2209 }
 0x369   :  { %2298 = vrot.lane.b32.xlu1 %v8736_v8, %s8508_s10  ;;  %v1475_v8 = vsel %vm1468_vm1, %v9038_v32, -inf }
 0x36c   :  { %v9069_v58 = vpop.permute.xlu0 %2294 }
 0x36d   :  { %11956 = vst [vmem:[#allocation10_spill] sm:$0xff] %v9069_v58  ;;  %2387 = vrot.lane.b32.xlu1 %v8752_v19, %s8508_s10  ;;  %v1291_v19 = vsel %vm671_vm0, %v1271_v17, 0 }
 0x36e   :  { %6861 = vmatpush3.bf16.xpose.msra.mxu0 %v1098_v60 }
 0x36f   :  { %7346 = vmatprep.subr.msk.bf16.mxu0 %vm671_vm0, %v1271_v17 }
 0x370   :  { %v9077_v4 = vpop.permute.xlu0 %2296 }
 0x371   :  { %2476 = vrot.lane.b32.xlu1 %v8796_v40, %s8508_s10  ;;  %11957 = vst [vmem:[#allocation11_spill] sm:$0xff] %v9077_v4 }
 0x374   :  { %v2384_v41 = vpop.permute.xlu0 %2383 }
 0x375   :  { %6863 = vmatmul.mubr.msk.bf16.vlgmr.msra.gmra.mrb[32].mxu0 %vm671_vm0, %v8774_v42  ;;  %1476 = vmax.xlane.f32.xlu0 %v1475_v8 }
 0x376   :  { %2654 = vrot.lane.b32.xlu1 %v8938_v35, %s8508_s10  ;;  %6866 = vmatprep.mubr.msk.bf16.mxu0 %vm671_vm0, %v8888_v56  ;;  %v1478_v56 = vsel %vm1468_vm1, %v9042_v1, -inf }
 0x377   :  { %6887 = vmatpush3.bf16.xpose.msra.mxu0 %v1291_v19  ;;  %v9088_v40 = vpop.permute.xlu1 %1377 }
 0x378   :  { %7347 = vmatprep.subr.msk.bf16.mxu0 %vm671_vm0, %v1273_v26  ;;  %v1275_v38 = vpop.permute.xlu0 %1274  ;;  %v1401_v53 = vsel %vm671_vm0, %v9088_v40, 0 }
 0x379   :  { %1470 = vmax.xlane.f32.xlu0 %v1469_v5 }
 0x37a   :  { %2832 = vrot.lane.b32.xlu1 %v8984_v39, %s8508_s10 }
 0x37b   :  { %v1174_v42 = vpop.permute.xlu1 %1173 }
 0x37c   :  { %7344 = vmatprep.subr.msk.bf16.mxu1 %vm671_vm0, %v1174_v42  ;;  %v1196_v6 = vsel %vm671_vm0, %v1174_v42, 0 }
 0x37d   :  { %6867 = vmatmul.mubr.msk.bf16.gmra.mrb[36].mxu0 %vm671_vm0, %v8786_v55  ;;  %1479 = vmax.xlane.f32.xlu0 %v1478_v56  ;;  %v1484_v55 = vsel %vm1468_vm1, %v9058_v52, -inf  ;;  %v9193_v56 = vpop.permute.xlu0 %2474 }
 0x37e   :  { %6875 = vmatpush3.bf16.xpose.msra.mxu1 %v1196_v6  ;;  %6894 = vmatprep.mubr.msk.bf16.mxu0 %vm671_vm0, %v8841_v50  ;;  %v1297_v50 = vsel %vm671_vm0, %v1275_v38, 0  ;;  %11971 = vst [vmem:[#allocation25_spill] sm:$0xff] %v9193_v56 }
 0x37f   :  { %6889 = vmatpush3.bf16.xpose.msra.mxu0 %v1294_v7  ;;  %7345 = vmatprep.subr.msk.bf16.mxu1 %vm671_vm0, %v1176_v57  ;;  %v2206_v45 = vpop.permute.xlu1 %2205 }
 0x380   :  { %7348 = vmatprep.subr.msk.bf16.mxu0 %vm671_vm0, %v1275_v38 }
 0x381   :  { %1491 = vmax.xlane.f32.xlu0 %v1490_v10 }
 0x383   :  { %v2208_v20 = vpop.permute.xlu1 %2207 }
 0x385   :  { %1485 = vmax.xlane.f32.xlu0 %v1484_v55 }
 0x386   :  { %6877 = vmatpush3.bf16.xpose.msra.mxu1 %v1199_v21  ;;  %v1472_v21 = vsel %vm1468_vm1, %v9044_v51, -inf }
 0x387   :  { %6891 = vmatpush3.bf16.xpose.msra.mxu0 %v1297_v50  ;;  %7350 = vmatprep.subr.msk.bf16.mxu1 %vm671_vm0, %v1372_v63  ;;  %v2212_v49 = vpop.permute.xlu1 %2211 }
 0x388   :  { %7349 = vmatprep.subr.msk.bf16.mxu0 %vm671_vm0, %v9048_v28 }
 0x38b   :  { %v7544_v22 = vpop.permute.xlu1 %7543 }
 0x38c   :  { %v7546_v2 = vunpack.i.h.bf16 %v7544_v22  ;;  %v7545_v14 = vunpack.i.l.bf16 %v7544_v22 }
 0x38d   :  { %6879 = vmatmul.mubr.msk.bf16.vlgmr.msra.gmra.mrb[32].mxu1 %vm671_vm0, %v8839_v48  ;;  %v1395_v48 = vsel %vm671_vm0, %v1374_v3, 0 }
 0x38e   :  { %6882 = vmatprep.mubr.msk.bf16.mxu1 %vm671_vm0, %v8938_v35  ;;  %6903 = vmatpush3.bf16.xpose.msra.mxu1 %v1392_v0  ;;  %v1487_v0 = vsel %vm1468_vm1, %v9052_v43, -inf }
 0x38f   :  { %6893 = vmatpush3.bf16.xpose.msra.mxu0 %v1300_v34  ;;  %7351 = vmatprep.subr.msk.bf16.mxu1 %vm671_vm0, %v1374_v3  ;;  %v9123_v54 = vpop.permute.xlu1 %2300 }
 0x390   :  { %11958 = vst [vmem:[#allocation12_spill] sm:$0xff] %v9123_v54  ;;  %6950 = vmatprep.subr.bf16.mxu0 %v2384_v41 }
 0x393   :  { %v9125_v27 = vpop.permute.xlu1 %2472 }
 0x394   :  { %11959 = vst [vmem:[#allocation13_spill] sm:$0xff] %v9125_v27 }
 0x395   :  { %6883 = vmatmul.mubr.msk.bf16.gmra.mrb[36].mxu1 %vm671_vm0, %v8861_v9 }
 0x396   :  { %6895 = vmatmul.mubr.msk.bf16.vlgmr.msra.gmra.mrb[40].mxu0 %vm671_vm0, %v8852_v61  ;;  %6905 = vmatpush3.bf16.xpose.msra.mxu1 %v1395_v48 }
 0x397   :  { %6898 = vmatprep.mubr.msk.bf16.mxu0 %vm671_vm0, %v8931_v31  ;;  %6910 = vmatprep.mubr.msk.bf16.mxu1 %vm671_vm0, %v8870_v18  ;;  %v7549_v35 = vpop.permute.xlu1 %7548  ;;  %v9142_v31 = vpack.c.bf16 %v7546_v2, %v7545_v14  ;;  %v1481_v14 = vsel %vm1468_vm1, %v9054_v44, -inf }
 0x398   :  { %6951 = vmatpush3.bf16.msra.mxu0 %v2384_v41  ;;  %v7551_v29 = vunpack.i.h.bf16 %v7549_v35  ;;  %v7550_v62 = vunpack.i.l.bf16 %v7549_v35 }
 0x399   :  { %11961 = vst [vmem:[#allocation15_spill] sm:$0xff] %v9142_v31 }
 0x39a   :  { %v9136_v17 = vpack.c.bf16 %v7551_v29, %v7550_v62  ;;  %v9225_v29 = vpop.permute.xlu0 %2478 }
 0x39b   :  { %v1376_v9 = vpop.permute.xlu1 %1375  ;;  %11974 = vst [vmem:[#allocation28_spill] sm:$0xff] %v9225_v29 }
 0x39c   :  { %11960 = vst [vmem:[#allocation14_spill] sm:$0xff] %v9136_v17  ;;  %7352 = vmatprep.subr.msk.bf16.mxu1 %vm671_vm0, %v1376_v9  ;;  %3518 = vrot.lane.b32.xlu1 %v9136_v17, %s8503_s28  ;;  %v1398_v61 = vsel %vm671_vm0, %v1376_v9, 0 }
 0x39e   :  { %6899 = vmatmul.mubr.msk.bf16.gmra.mrb[44].mxu0 %vm671_vm0, %v8872_v37  ;;  %6907 = vmatpush3.bf16.xpose.msra.mxu1 %v1398_v61 }
 0x39f   :  { %7353 = vmatprep.subr.msk.bf16.mxu1 %vm671_vm0, %v9088_v40  ;;  %v2386_v18 = vpop.permute.xlu1 %2385 }
 0x3a0   :  { %3516 = vrot.lane.b32.xlu1 %v9142_v31, %s8503_s28  ;;  %6952 = vmatprep.subr.bf16.mxu0 %v2386_v18 }
 0x3a1   :  { %6953 = vmatpush3.bf16.msra.mxu0 %v2386_v18 }
 0x3a3   :  { %v7554_v26 = vpop.permute.xlu1 %7553 }
 0x3a4   :  { %v7556_v28 = vunpack.i.h.bf16 %v7554_v26  ;;  %v7555_v46 = vunpack.i.l.bf16 %v7554_v26 }
 0x3a6   :  { %v9152_v57 = vpack.c.bf16 %v7556_v28, %v7555_v46  ;;  %6909 = vmatpush3.bf16.xpose.msra.mxu1 %v1401_v53  ;;  %v9241_v28 = vpop.permute.xlu0 %2561 }
 0x3a7   :  { %6918 = vmatprep.subr.bf16.mxu1 %v2206_v45  ;;  %v9154_v37 = vpop.permute.xlu1 %2389  ;;  %11976 = vst [vmem:[#allocation30_spill] sm:$0xff] %v9241_v28 }
 0x3a8   :  { %11962 = vst [vmem:[#allocation16_spill] sm:$0xff] %v9152_v57  ;;  %3520 = vrot.lane.b32.xlu1 %v9152_v57, %s8503_s28 }
 0x3ab   :  { %v9158_v60 = vpop.permute.xlu1 %2650 }
 0x3ac   :  { %11963 = vst [vmem:[#allocation17_spill] sm:$0xff] %v9158_v60 }
 0x3ad   :  { %6911 = vmatmul.mubr.msk.bf16.vlgmr.msra.gmra.mrb[40].mxu1 %vm671_vm0, %v8892_v59 }
 0x3ae   :  { %6914 = vmatprep.mubr.msk.bf16.mxu1 %vm671_vm0, %v8984_v39  ;;  %6919 = vmatpush3.bf16.msra.mxu1 %v2206_v45 }
 0x3af   :  { %6920 = vmatprep.subr.bf16.mxu1 %v2208_v20  ;;  %v9164_v63 = vpop.permute.xlu1 %2563 }
 0x3b0   :  { %11964 = vst [vmem:[#allocation18_spill] sm:$0xff] %v9164_v63 }
 0x3b2   :  { %6921 = vmatpush3.bf16.msra.mxu1 %v2208_v20 }
 0x3b3   :  { %6922 = vmatprep.subr.bf16.mxu1 %v9065_v36  ;;  %v9167_v3 = vpop.permute.xlu1 %7563 }
 0x3b4   :  { %11965 = vst [vmem:[#allocation19_spill] sm:$0xff] %v9167_v3 }
 0x3b5   :  { %6915 = vmatmul.mubr.msk.bf16.gmra.mrb[44].mxu1 %vm671_vm0, %v8929_v30 }
 0x3b6   :  { %6923 = vmatpush3.bf16.msra.mxu1 %v9065_v36 }
 0x3b7   :  { %6924 = vmatprep.subr.bf16.mxu1 %v2212_v49  ;;  %v9172_v8 = vpop.permute.xlu1 %2656 }
 0x3b8   :  { %11966 = vst [vmem:[#allocation20_spill] sm:$0xff] %v9172_v8 }
 0x3ba   :  { %6925 = vmatpush3.bf16.msra.mxu1 %v2212_v49 }
 0x3bb   :  { %6934 = vmatprep.subr.bf16.mxu1 %v9069_v58  ;;  %v9175_v59 = vpop.permute.xlu1 %2830 }
 0x3bc   :  { %11967 = vst [vmem:[#allocation21_spill] sm:$0xff] %v9175_v59 }
 0x3bf   :  { %v9177_v39 = vpop.permute.xlu1 %7588 }
 0x3c0   :  { %11968 = vst [vmem:[#allocation22_spill] sm:$0xff] %v9177_v39  ;;  %v9179_v19 = vpop.f32.mrb[16].mxu1 }
 0x3c1   :  { %v9181_v40 = vpop.f32.mrb[17].mxu1  ;;  %v1499_v26 = vsel %vm1468_vm1, %v9179_v19, -inf }
 0x3c2   :  { %v9183_v5 = vpop.f32.mrb[18].mxu1 }
 0x3c3   :  { %v9185_v41 = vpop.f32.mrb[19].mxu1  ;;  %v9187_v30 = vpop.permute.xlu1 %2834  ;;  %v1502_v36 = vsel %vm1468_vm1, %v9183_v5, -inf }
 0x3c4   :  { %11969 = vst [vmem:[#allocation23_spill] sm:$0xff] %v9187_v30  ;;  %1503 = vmax.xlane.f32.xlu0 %v1502_v36  ;;  %v1496_v48 = vsel %vm1468_vm1, %v9185_v41, -inf }
 0x3c7   :  { %v9191_v42 = vpop.permute.xlu1 %7593 }
 0x3c8   :  { %11970 = vst [vmem:[#allocation24_spill] sm:$0xff] %v9191_v42  ;;  %v9195_v6 = vpop.f32.mrb[20].mxu1 }
 0x3c9   :  { %v9197_v7 = vpop.f32.mrb[24].mxu0  ;;  %v9199_v38 = vpop.f32.mrb[21].mxu1 }
 0x3ca   :  { %v9201_v45 = vpop.f32.mrb[25].mxu0  ;;  %v9203_v10 = vpop.f32.mrb[22].mxu1  ;;  %v1523_v36 = vsel %vm1468_vm1, %v9197_v7, -inf }
 0x3cb   :  { %v9205_v20 = vpop.f32.mrb[26].mxu0  ;;  %v9207_v55 = vpop.f32.mrb[23].mxu1  ;;  %v1514_v53 = vsel %vm1468_vm1, %v9203_v10, -inf }
 0x3cc   :  { %v9211_v50 = vpop.permute.xlu1 %3415  ;;  %v9213_v49 = vpop.f32.mrb[27].mxu0  ;;  %1473 = vmax.xlane.f32.xlu1 %v1472_v21  ;;  %v1526_v22 = vsel %vm1468_vm1, %v9205_v20, -inf }
 0x3cd   :  { %11972 = vst [vmem:[#allocation26_spill] sm:$0xff] %v9211_v50  ;;  %1527 = vmax.xlane.f32.xlu0 %v1526_v22  ;;  %v1520_v18 = vsel %vm1468_vm1, %v9213_v49, -inf }
 0x3d0   :  { %v9219_v34 = vpop.permute.xlu1 %7603  ;;  %1488 = vmax.xlane.f32.xlu1 %v1487_v0  ;;  %v9253_v0 = vpop.permute.xlu0 %7558 }
 0x3d1   :  { %11973 = vst [vmem:[#allocation27_spill] sm:$0xff] %v9219_v34  ;;  %1497 = vmax.xlane.f32.xlu0 %v1496_v48  ;;  %v9223_v35 = vpop.f32.mrb[28].mxu0  ;;  %11979 = vst [vmem:[#allocation33_spill] sm:$0xff] %v9253_v0  ;;  %v1493_v48 = vsel %vm1468_vm1, %v9181_v40, -inf }
 0x3d2   :  { %v9227_v62 = vpop.f32.mrb[29].mxu0 }
 0x3d3   :  { %v9229_v2 = vpop.f32.mrb[30].mxu0 }
 0x3d4   :  { %v9233_v9 = vpop.permute.xlu1 %7608  ;;  %v9235_v61 = vpop.f32.mrb[31].mxu0  ;;  %1482 = vmax.xlane.f32.xlu1 %v1481_v14  ;;  %v1538_v22 = vsel %vm1468_vm1, %v9229_v2, -inf }
 0x3d5   :  { %11975 = vst [vmem:[#allocation29_spill] sm:$0xff] %v9233_v9  ;;  %1521 = vmax.xlane.f32.xlu0 %v1520_v18  ;;  %v1508_v18 = vsel %vm1468_vm1, %v9207_v55, -inf  ;;  %v9268_v57 = vpop.permute.xlu0 %2652  ;;  %v1532_v17 = vsel %vm1468_vm1, %v9235_v61, -inf }
 0x3d6   :  { %11980 = vst [vmem:[#allocation34_spill] sm:$0xff] %v9268_v57 }
 0x3d8   :  { %v9243_v46 = vpop.permute.xlu1 %7618  ;;  %1500 = vmax.xlane.f32.xlu1 %v1499_v26 }
 0x3d9   :  { %11977 = vst [vmem:[#allocation31_spill] sm:$0xff] %v9243_v46  ;;  %1515 = vmax.xlane.f32.xlu0 %v1514_v53  ;;  %v9282_v24 = vpop.permute.xlu0 %7568 }
 0x3da   :  { %11981 = vst [vmem:[#allocation35_spill] sm:$0xff] %v9282_v24 }
 0x3dc   :  { %v9249_v21 = vpop.permute.xlu1 %2298  ;;  %1524 = vmax.xlane.f32.xlu1 %v1523_v36 }
 0x3dd   :  { %11978 = vst [vmem:[#allocation32_spill] sm:$0xff] %v9249_v21  ;;  %1539 = vmax.xlane.f32.xlu0 %v1538_v22  ;;  %v1517_v22 = vsel %vm1468_vm1, %v9201_v45, -inf  ;;  %v9294_v16 = vpop.permute.xlu0 %2567 }
 0x3de   :  { %11982 = vst [vmem:[#allocation36_spill] sm:$0xff] %v9294_v16 }
 0x3e0   :  { %v2388_v14 = vpop.permute.xlu1 %2387  ;;  %1494 = vmax.xlane.f32.xlu1 %v1493_v48 }
 0x3e1   :  { %v9259_v26 = vpop.f32.mrb[24].mxu1  ;;  %6954 = vmatprep.subr.bf16.mxu0 %v2388_v14  ;;  %1509 = vmax.xlane.f32.xlu0 %v1508_v18  ;;  %v9298_v30 = vpop.permute.xlu0 %2739 }
 0x3e2   :  { %v9261_v53 = vpop.f32.mrb[25].mxu1  ;;  %6955 = vmatpush3.bf16.msra.mxu0 %v2388_v14  ;;  %v1511_v14 = vsel %vm1468_vm1, %v9195_v6, -inf  ;;  %11983 = vst [vmem:[#allocation37_spill] sm:$0xff] %v9298_v30  ;;  %v1547_v59 = vsel %vm1468_vm1, %v9259_v26, -inf }
 0x3e3   :  { %v9263_v36 = vpop.f32.mrb[26].mxu1  ;;  %6956 = vmatprep.subr.bf16.mxu0 %v9154_v37 }
 0x3e4   :  { %v9270_v48 = vpop.f32.mrb[27].mxu1  ;;  %1518 = vmax.xlane.f32.xlu1 %v1517_v22  ;;  %v1550_v18 = vsel %vm1468_vm1, %v9263_v36, -inf }
 0x3e5   :  { %1533 = vmax.xlane.f32.xlu0 %v1532_v17  ;;  %v1535_v17 = vsel %vm1468_vm1, %v9223_v35, -inf  ;;  %v9302_v34 = vpop.permute.xlu0 %2828 }
 0x3e6   :  { %6957 = vmatpush3.bf16.msra.mxu0 %v9154_v37  ;;  %11984 = vst [vmem:[#allocation38_spill] sm:$0xff] %v9302_v34  ;;  %v9324_v34 = vpop.permute.xlu1 %2476 }
 0x3e7   :  { %6982 = vmatprep.subr.bf16.mxu0 %v9241_v28  ;;  %11995 = vst [vmem:[#allocation49_spill] sm:$0xff] %v9324_v34 }
 0x3e8   :  { %1512 = vmax.xlane.f32.xlu1 %v1511_v14  ;;  %v1505_v14 = vsel %vm1468_vm1, %v9199_v38, -inf }
 0x3e9   :  { %v9280_v31 = vpop.f32.mrb[28].mxu1  ;;  %1551 = vmax.xlane.f32.xlu0 %v1550_v18  ;;  %v1529_v18 = vsel %vm1468_vm1, %v9227_v62, -inf  ;;  %v9304_v42 = vpop.permute.xlu0 %7573 }
 0x3ea   :  { %v9284_v22 = vpop.f32.mrb[29].mxu1  ;;  %11985 = vst [vmem:[#allocation39_spill] sm:$0xff] %v9304_v42  ;;  %v9328_v8 = vpop.permute.xlu1 %2654  ;;  %v1559_v30 = vsel %vm1468_vm1, %v9280_v31, -inf }
 0x3eb   :  { %v9286_v13 = vpop.f32.mrb[30].mxu1  ;;  %11997 = vst [vmem:[#allocation51_spill] sm:$0xff] %v9328_v8  ;;  %v1544_v8 = vsel %vm1468_vm1, %v9270_v48, -inf }
 0x3ec   :  { %v9290_v37 = vpop.f32.mrb[31].mxu1  ;;  %1536 = vmax.xlane.f32.xlu1 %v1535_v17 }
 0x3ed   :  { %v9306_v17 = vpop.permute.xlu0 %7578 }
 0x3ee   :  { %11986 = vst [vmem:[#allocation40_spill] sm:$0xff] %v9306_v17 }
 0x3f0   :  { %1506 = vmax.xlane.f32.xlu1 %v1505_v14 }
 0x3f1   :  { %v9308_v46 = vpop.permute.xlu0 %2741 }
 0x3f2   :  { %11987 = vst [vmem:[#allocation41_spill] sm:$0xff] %v9308_v46 }
 0x3f4   :  { %1530 = vmax.xlane.f32.xlu1 %v1529_v18 }
 0x3f5   :  { %v9310_v9 = vpop.permute.xlu0 %7583 }
 0x3f6   :  { %11988 = vst [vmem:[#allocation42_spill] sm:$0xff] %v9310_v9  ;;  %v9330_v9 = vpop.permute.xlu1 %2832 }
 0x3f7   :  { %11998 = vst [vmem:[#allocation52_spill] sm:$0xff] %v9330_v9  ;;  %v1541_v9 = vsel %vm1468_vm1, %v9261_v53, -inf }
 0x3f8   :  { %1548 = vmax.xlane.f32.xlu1 %v1547_v59 }
 0x3f9   :  { %v9312_v14 = vpop.permute.xlu0 %2745 }
 0x3fa   :  { %11989 = vst [vmem:[#allocation43_spill] sm:$0xff] %v9312_v14 }
 0x3fd   :  { %v9314_v50 = vpop.permute.xlu0 %7598 }
 0x3fe   :  { %11990 = vst [vmem:[#allocation44_spill] sm:$0xff] %v9314_v50 }
 0x401   :  { %v9316_v18 = vpop.permute.xlu0 %3417 }
 0x402   :  { %11991 = vst [vmem:[#allocation45_spill] sm:$0xff] %v9316_v18 }
 0x405   :  { %v9318_v12 = vpop.permute.xlu0 %7613 }
 0x406   :  { %11992 = vst [vmem:[#allocation46_spill] sm:$0xff] %v9318_v12 }
 0x409   :  { %v9320_v39 = vpop.permute.xlu0 %3419 }
 0x40a   :  { %11993 = vst [vmem:[#allocation47_spill] sm:$0xff] %v9320_v39 }
 0x40d   :  { %v9322_v59 = vpop.permute.xlu0 %2565 }
 0x40e   :  { %11994 = vst [vmem:[#allocation48_spill] sm:$0xff] %v9322_v59  ;;  %v9340_v12 = vpop.permute.xlu1 %3518 }
 0x40f   :  { %11999 = vst [vmem:[#allocation53_spill] sm:$0xff] %v9340_v12 }
 0x411   :  { %v9326_v42 = vpop.permute.xlu0 %2743 }
 0x412   :  { %11996 = vst [vmem:[#allocation50_spill] sm:$0xff] %v9326_v42  ;;  %v9353_v12 = vpop.permute.xlu1 %3516 }
 0x413   :  { %12000 = vst [vmem:[#allocation54_spill] sm:$0xff] %v9353_v12 }
 0x415   :  { %v1477_v3 = vpop.xlane.xlu0 %1476 }
 0x419   :  { %v1471_v14 = vpop.xlane.xlu0 %1470 }
 0x41a   :  { %v9367_v12 = vpop.permute.xlu1 %3520 }
 0x41b   :  { %12001 = vst [vmem:[#allocation55_spill] sm:$0xff] %v9367_v12 }
 0x41d   :  { %v1480_v46 = vpop.xlane.xlu0 %1479 }
 0x41e   :  { %v1664_v15 = vsub.f32 %v9042_v1, %v1480_v46  ;;  %v1562_v1 = vsel %vm1468_vm1, %v9286_v13, -inf }
 0x420   :  { %v1731_v60 = vmul.f32 1.442695, %v1664_v15 }
 0x421   :  { %v1492_v0 = vpop.xlane.xlu0 %1491 }
 0x448   :  { %v9332_v25 = vpop.f32.mrb[32].mxu0 }
 0x449   :  { %v9334_v50 = vpop.f32.mrb[33].mxu0  ;;  %v1571_v18 = vsel %vm1468_vm1, %v9332_v25, -inf }
 0x44a   :  { %1572 = vmax.xlane.f32.xlu1 %v1571_v18  ;;  %v9338_v39 = vpop.f32.mrb[34].mxu0  ;;  %v1663_v18 = vsub.f32 %v9038_v32, %v1477_v3 }
 0x44b   :  { %v9342_v11 = vpop.f32.mrb[35].mxu0  ;;  %v1574_v42 = vsel %vm1468_vm1, %v9338_v39, -inf }
 0x44c   :  { %1575 = vmax.xlane.f32.xlu0 %v1574_v42  ;;  %v1565_v42 = vsel %vm1468_vm1, %v9334_v50, -inf  ;;  %v1568_v32 = vsel %vm1468_vm1, %v9342_v11, -inf  ;;  %v1729_v3 = vmul.f32 1.442695, %v1663_v18 }
 0x44e   :  { %1542 = vmax.xlane.f32.xlu1 %v1541_v9  ;;  %7988 = vpow2.f32 %v1729_v3 }
 0x44f   :  { %7990 = vpow2.f32 %v1731_v60 }
 0x450   :  { %1545 = vmax.xlane.f32.xlu0 %v1544_v8  ;;  %v9351_v17 = vpop.f32.mrb[36].mxu0  ;;  %v1661_v8 = vsub.f32 %v9040_v33, %v1471_v14  ;;  %v1486_v14 = vpop.xlane.xlu0 %1485 }
 0x451   :  { %v9355_v57 = vpop.f32.mrb[37].mxu0  ;;  %v1583_v33 = vsel %vm1468_vm1, %v9351_v17, -inf }
 0x452   :  { %1566 = vmax.xlane.f32.xlu1 %v1565_v42  ;;  %v9360_v24 = vpop.f32.mrb[38].mxu0  ;;  %v1725_v46 = vmul.f32 1.442695, %v1661_v8  ;;  %v1668_v42 = vsub.f32 %v9056_v47, %v1492_v0  ;;  %v1666_v8 = vsub.f32 %v9058_v52, %v1486_v14  ;;  %v1553_v47 = vsel %vm1468_vm1, %v9284_v22, -inf }
 0x453   :  { %v9362_v9 = vpop.f32.mrb[39].mxu0  ;;  %v1586_v15 = vsel %vm1468_vm1, %v9360_v24, -inf }
 0x454   :  { %1569 = vmax.xlane.f32.xlu0 %v1568_v32  ;;  %7992 = vpow2.f32 %v1725_v46  ;;  %v1739_v3 = vmul.f32 1.442695, %v1668_v42  ;;  %v1735_v46 = vmul.f32 1.442695, %v1666_v8  ;;  %v9460_v21 = vpop.xlane.xlu0 %1503 }
 0x456   :  { %1560 = vmax.xlane.f32.xlu1 %v1559_v30 }
 0x458   :  { %1563 = vmax.xlane.f32.xlu0 %v1562_v1  ;;  %v9391_v14 = vpop.eup %7988 }
 0x459   :  { %v1474_v18 = vpop.xlane.xlu1 %1473  ;;  %12003 = vst [vmem:[#allocation57_spill] sm:$0xff] %v9391_v14 }
 0x45a   :  { %v1662_v32 = vsub.f32 %v9044_v51, %v1474_v18  ;;  %1584 = vmax.xlane.f32.xlu1 %v1583_v33  ;;  %v1556_v51 = vsel %vm1468_vm1, %v9290_v37, -inf  ;;  %v1577_v33 = vsel %vm1468_vm1, %v9355_v57, -inf }
 0x45c   :  { %v1727_v30 = vmul.f32 1.442695, %v1662_v32  ;;  %1587 = vmax.xlane.f32.xlu0 %v1586_v15 }
 0x45d   :  { %v1489_v1 = vpop.xlane.xlu1 %1488 }
 0x45e   :  { %7994 = vpow2.f32 %v1727_v30  ;;  %v1667_v60 = vsub.f32 %v9052_v43, %v1489_v1  ;;  %1554 = vmax.xlane.f32.xlu1 %v1553_v47  ;;  %v1580_v30 = vsel %vm1468_vm1, %v9362_v9, -inf  ;;  %v1859_v1 = vsel %vm1468_vm1, %v9391_v14, 0.0 }
 0x45f   :  { %7996 = vpow2.f32 %v1739_v3  ;;  %v9400_v3 = vpop.eup %7990 }
 0x460   :  { %v1737_v0 = vmul.f32 1.442695, %v1667_v60  ;;  %v9385_v18 = vpop.f32.mrb[32].mxu1  ;;  %1557 = vmax.xlane.f32.xlu0 %v1556_v51  ;;  %v9404_v47 = vpop.eup %7992 }
 0x461   :  { %v9387_v42 = vpop.f32.mrb[33].mxu1  ;;  %v1483_v52 = vpop.xlane.xlu1 %1482  ;;  %v1595_v27 = vsel %vm1468_vm1, %v9385_v18, -inf }
 0x462   :  { %12002 = vst [vmem:[#allocation56_spill] sm:$0xff] %v9387_v42  ;;  %7998 = vpow2.f32 %v1737_v0  ;;  %v9393_v43 = vpop.f32.mrb[34].mxu1  ;;  %v1665_v32 = vsub.f32 %v9054_v44, %v1483_v52  ;;  %1578 = vmax.xlane.f32.xlu1 %v1577_v33  ;;  %v1862_v44 = vsel %vm1468_vm1, %v9400_v3, 0.0 }
 0x463   :  { %12004 = vst [vmem:[#allocation58_spill] sm:$0xff] %v9393_v43  ;;  %v9396_v15 = vpop.f32.mrb[35].mxu1  ;;  %8000 = vpow2.f32 %v1735_v46  ;;  %v1853_v46 = vsel %vm1468_vm1, %v9404_v47, 0.0 }
 0x464   :  { %12005 = vst [vmem:[#allocation59_spill] sm:$0xff] %v9396_v15  ;;  %v1733_v8 = vmul.f32 1.442695, %v1665_v32  ;;  %1581 = vmax.xlane.f32.xlu0 %v1580_v30 }
 0x465   :  { %v1501_v54 = vpop.xlane.xlu1 %1500 }
 0x466   :  { %8002 = vpow2.f32 %v1733_v8  ;;  %1860 = vadd.xlane.f32.xlu1 %v1859_v1 }
 0x468   :  { %v9408_v60 = vpop.eup %7994  ;;  %v9410_v51 = vpop.f32.mrb[36].mxu1  ;;  %1863 = vadd.xlane.f32.xlu0 %v1862_v44 }
 0x469   :  { %12006 = vst [vmem:[#allocation60_spill] sm:$0xff] %v9408_v60  ;;  %12007 = vst [vmem:[#allocation61_spill] sm:$0xff] %v9410_v51  ;;  %v9412_v0 = vpop.f32.mrb[40].mxu0  ;;  %v9414_v52 = vpop.f32.mrb[37].mxu1  ;;  %v1856_v33 = vsel %vm1468_vm1, %v9408_v60, 0.0  ;;  %v1671_v60 = vsub.f32 %v9179_v19, %v1501_v54 }
 0x46a   :  { %12008 = vst [vmem:[#allocation62_spill] sm:$0xff] %v9412_v0  ;;  %v9420_v32 = vpop.f32.mrb[41].mxu0  ;;  %v9422_v30 = vpop.f32.mrb[38].mxu1  ;;  %1854 = vadd.xlane.f32.xlu1 %v1853_v46 }
 0x46b   :  { %12009 = vst [vmem:[#allocation63_spill] sm:$0xff] %v9420_v32  ;;  %12010 = vst [vmem:[#allocation64_spill] sm:$0xff] %v9422_v30  ;;  %v9424_v8 = vpop.eup %7996  ;;  %v9428_v44 = vpop.f32.mrb[42].mxu0 }
 0x46c   :  { %12011 = vst [vmem:[#allocation65_spill] sm:$0xff] %v9424_v8  ;;  %v9426_v1 = vpop.eup %7998  ;;  %12013 = vst [vmem:[#allocation67_spill] sm:$0xff] %v9428_v44  ;;  %v9430_v12 = vpop.f32.mrb[39].mxu1  ;;  %1857 = vadd.xlane.f32.xlu0 %v1856_v33  ;;  %v1874_v46 = vsel %vm1468_vm1, %v9424_v8, 0.0 }
 0x46d   :  { %12012 = vst [vmem:[#allocation66_spill] sm:$0xff] %v9426_v1  ;;  %12014 = vst [vmem:[#allocation68_spill] sm:$0xff] %v9430_v12  ;;  %v9432_v16 = vpop.f32.mrb[43].mxu0  ;;  %v1871_v59 = vsel %vm1468_vm1, %v9426_v1, 0.0  ;;  %v9436_v29 = vpop.eup %8000 }
 0x46e   :  { %12015 = vst [vmem:[#allocation69_spill] sm:$0xff] %v9432_v16  ;;  %1872 = vadd.xlane.f32.xlu1 %v1871_v59  ;;  %12016 = vst [vmem:[#allocation70_spill] sm:$0xff] %v9436_v29  ;;  %v1868_v56 = vsel %vm1468_vm1, %v9436_v29, 0.0  ;;  %v1589_v29 = vsel %vm1468_vm1, %v9387_v42, -inf  ;;  %v1528_v8 = vpop.xlane.xlu0 %1527 }
 0x46f   :  { %v1680_v19 = vsub.f32 %v9205_v20, %v1528_v8 }
 0x470   :  { %v9440_v63 = vpop.eup %8002  ;;  %1875 = vadd.xlane.f32.xlu0 %v1874_v46  ;;  %v1598_v46 = vsel %vm1468_vm1, %v9393_v43, -inf }
 0x471   :  { %12017 = vst [vmem:[#allocation71_spill] sm:$0xff] %v9440_v63  ;;  %v9442_v34 = vpop.f32.mrb[44].mxu0  ;;  %v1865_v28 = vsel %vm1468_vm1, %v9440_v63, 0.0  ;;  %v1610_v63 = vsel %vm1468_vm1, %v9422_v30, -inf  ;;  %v1604_v30 = vsel %vm1468_vm1, %v9430_v12, -inf }
 0x472   :  { %12018 = vst [vmem:[#allocation72_spill] sm:$0xff] %v9442_v34  ;;  %v9446_v33 = vpop.f32.mrb[45].mxu0  ;;  %1866 = vadd.xlane.f32.xlu1 %v1865_v28  ;;  %v1619_v28 = vsel %vm1468_vm1, %v9412_v0, -inf  ;;  %v9480_v42 = vpop.xlane.xlu0 %1497  ;;  %v1631_v58 = vsel %vm1468_vm1, %v9442_v34, -inf }
 0x473   :  { %12019 = vst [vmem:[#allocation73_spill] sm:$0xff] %v9446_v33  ;;  %v9450_v59 = vpop.f32.mrb[46].mxu0  ;;  %v1625_v14 = vsel %vm1468_vm1, %v9446_v33, -inf }
 0x474   :  { %12020 = vst [vmem:[#allocation74_spill] sm:$0xff] %v9450_v59  ;;  %1869 = vadd.xlane.f32.xlu0 %v1868_v56  ;;  %v9452_v23 = vpop.f32.mrb[47].mxu0  ;;  %v1622_v56 = vsel %vm1468_vm1, %v9428_v44, -inf }
 0x476   :  { %1596 = vmax.xlane.f32.xlu1 %v1595_v27  ;;  %v1525_v27 = vpop.xlane.xlu1 %1524 }
 0x477   :  { %v1679_v34 = vsub.f32 %v9197_v7, %v1525_v27 }
 0x478   :  { %1599 = vmax.xlane.f32.xlu0 %v1598_v46  ;;  %v1592_v46 = vsel %vm1468_vm1, %v9396_v15, -inf }
 0x47a   :  { %1620 = vmax.xlane.f32.xlu1 %v1619_v28  ;;  %v1613_v28 = vsel %vm1468_vm1, %v9420_v32, -inf  ;;  %v1495_v15 = vpop.xlane.xlu1 %1494 }
 0x47b   :  { %v1669_v27 = vsub.f32 %v9181_v40, %v1495_v15 }
 0x47c   :  { %1623 = vmax.xlane.f32.xlu0 %v1622_v56 }
 0x47d   :  { %v1741_v40 = vmul.f32 1.442695, %v1669_v27 }
 0x47e   :  { %1590 = vmax.xlane.f32.xlu1 %v1589_v29  ;;  %v1616_v29 = vsel %vm1468_vm1, %v9432_v16, -inf  ;;  %v9492_v16 = vpop.xlane.xlu0 %1521 }
 0x480   :  { %v9468_v43 = vpop.f32.mrb[40].mxu1  ;;  %1593 = vmax.xlane.f32.xlu0 %v1592_v46  ;;  %v1607_v46 = vsel %vm1468_vm1, %v9410_v51, -inf }
 0x481   :  { %v9470_v1 = vpop.f32.mrb[41].mxu1  ;;  %v1643_v7 = vsel %vm1468_vm1, %v9468_v43, -inf }
 0x482   :  { %v9474_v4 = vpop.f32.mrb[42].mxu1  ;;  %1614 = vmax.xlane.f32.xlu1 %v1613_v28  ;;  %v9505_v51 = vpop.xlane.xlu0 %1515 }
 0x483   :  { %v9476_v56 = vpop.f32.mrb[43].mxu1  ;;  %v1646_v54 = vsel %vm1468_vm1, %v9474_v4, -inf }
 0x484   :  { %1617 = vmax.xlane.f32.xlu0 %v1616_v29  ;;  %v1519_v29 = vpop.xlane.xlu1 %1518  ;;  %v1640_v15 = vsel %vm1468_vm1, %v9476_v56, -inf }
 0x486   :  { %1608 = vmax.xlane.f32.xlu1 %v1607_v46  ;;  %v1634_v46 = vsel %vm1468_vm1, %v9450_v59, -inf  ;;  %v1761_v59 = vmul.f32 1.442695, %v1679_v34  ;;  %v9516_v12 = vpop.xlane.xlu0 %1539 }
 0x488   :  { %v9486_v32 = vpop.f32.mrb[44].mxu1  ;;  %1611 = vmax.xlane.f32.xlu0 %v1610_v63  ;;  %v1601_v63 = vsel %vm1468_vm1, %v9414_v52, -inf  ;;  %8004 = vpow2.f32 %v1761_v59 }
 0x489   :  { %v9488_v28 = vpop.f32.mrb[45].mxu1  ;;  %v1655_v59 = vsel %vm1468_vm1, %v9486_v32, -inf }
 0x48a   :  { %v9494_v44 = vpop.f32.mrb[46].mxu1  ;;  %1632 = vmax.xlane.f32.xlu1 %v1631_v58  ;;  %v1513_v58 = vpop.xlane.xlu1 %1512 }
 0x48b   :  { %v9496_v0 = vpop.f32.mrb[47].mxu1  ;;  %v9528_v20 = vpop.xlane.xlu0 %1509 }
 0x48c   :  { %1635 = vmax.xlane.f32.xlu0 %v1634_v46  ;;  %v1628_v46 = vsel %vm1468_vm1, %v9452_v23, -inf  ;;  %v1652_v27 = vsel %vm1468_vm1, %v9496_v0, -inf }
 0x48e   :  { %1602 = vmax.xlane.f32.xlu1 %v1601_v63  ;;  %v1677_v63 = vsub.f32 %v9201_v45, %v1519_v29  ;;  %v1537_v33 = vpop.xlane.xlu1 %1536  ;;  %v1637_v45 = vsel %vm1468_vm1, %v9470_v1, -inf  ;;  %v1675_v29 = vsub.f32 %v9195_v6, %v1513_v58  ;;  %v1649_v58 = vsel %vm1468_vm1, %v9488_v28, -inf }
 0x490   :  { %1605 = vmax.xlane.f32.xlu0 %v1604_v30  ;;  %v1745_v30 = vmul.f32 1.442695, %v1671_v60  ;;  %v1757_v34 = vmul.f32 1.442695, %v1677_v63  ;;  %v1763_v60 = vmul.f32 1.442695, %v1680_v19 }
 0x491   :  { %v1753_v63 = vmul.f32 1.442695, %v1675_v29 }
 0x492   :  { %1626 = vmax.xlane.f32.xlu1 %v1625_v14  ;;  %v1672_v14 = vsub.f32 %v9183_v5, %v9460_v21  ;;  %8006 = vpow2.f32 %v1745_v30  ;;  %v1507_v8 = vpop.xlane.xlu1 %1506  ;;  %v1670_v5 = vsub.f32 %v9185_v41, %v9480_v42  ;;  %v1658_v21 = vsel %vm1468_vm1, %v9494_v44, -inf  ;;  %v1534_v42 = vpop.xlane.xlu0 %1533 }
 0x493   :  { %8008 = vpow2.f32 %v1757_v34  ;;  %v1673_v6 = vsub.f32 %v9199_v38, %v1507_v8  ;;  %v1678_v41 = vsub.f32 %v9213_v49, %v9492_v16  ;;  %v1676_v38 = vsub.f32 %v9203_v10, %v9505_v51 }
 0x494   :  { %1629 = vmax.xlane.f32.xlu0 %v1628_v46  ;;  %v1747_v46 = vmul.f32 1.442695, %v1672_v14  ;;  %8010 = vpow2.f32 %v1741_v40  ;;  %v1743_v30 = vmul.f32 1.442695, %v1670_v5  ;;  %v1683_v49 = vsub.f32 %v9223_v35, %v1537_v33 }
 0x495   :  { %8012 = vpow2.f32 %v1763_v60  ;;  %v1749_v19 = vmul.f32 1.442695, %v1673_v6  ;;  %v1759_v16 = vmul.f32 1.442695, %v1678_v41  ;;  %v1755_v10 = vmul.f32 1.442695, %v1676_v38 }
 0x496   :  { %1644 = vmax.xlane.f32.xlu1 %v1643_v7  ;;  %v9539_v7 = vpop.eup %8004  ;;  %8014 = vpow2.f32 %v1747_v46  ;;  %v1531_v14 = vpop.xlane.xlu1 %1530  ;;  %v1682_v51 = vsub.f32 %v9235_v61, %v1534_v42  ;;  %v1769_v35 = vmul.f32 1.442695, %v1683_v49  ;;  %v1684_v6 = vsub.f32 %v9229_v2, %v9516_v12 }
 0x497   :  { %8016 = vpow2.f32 %v1753_v63  ;;  %v1907_v34 = vsel %vm1468_vm1, %v9539_v7, 0.0  ;;  %v1552_v60 = vpop.xlane.xlu0 %1551  ;;  %v1681_v33 = vsub.f32 %v9227_v62, %v1531_v14  ;;  %v1674_v12 = vsub.f32 %v9207_v55, %v9528_v20 }
 0x498   :  { %1647 = vmax.xlane.f32.xlu0 %v1646_v54  ;;  %8018 = vpow2.f32 %v1743_v30  ;;  %v1767_v61 = vmul.f32 1.442695, %v1682_v51  ;;  %v1688_v5 = vsub.f32 %v9263_v36, %v1552_v60 }
 0x499   :  { %8020 = vpow2.f32 %v1749_v19  ;;  %v1765_v62 = vmul.f32 1.442695, %v1681_v33  ;;  %v1751_v49 = vmul.f32 1.442695, %v1674_v12 }
 0x49a   :  { %1638 = vmax.xlane.f32.xlu1 %v1637_v45  ;;  %8022 = vpow2.f32 %v1759_v16  ;;  %v1779_v41 = vmul.f32 1.442695, %v1688_v5  ;;  %v1549_v2 = vpop.xlane.xlu1 %1548 }
 0x49b   :  { %8024 = vpow2.f32 %v1755_v10  ;;  %v1687_v14 = vsub.f32 %v9259_v26, %v1549_v2 }
 0x49c   :  { %1641 = vmax.xlane.f32.xlu0 %v1640_v15  ;;  %v9545_v54 = vpop.eup %8006  ;;  %8026 = vpow2.f32 %v1769_v35 }
 0x49d   :  { %v9551_v45 = vpop.eup %8008  ;;  %v1883_v40 = vsel %vm1468_vm1, %v9545_v54, 0.0  ;;  %8028 = vpow2.f32 %v1767_v61  ;;  %v1777_v51 = vmul.f32 1.442695, %v1687_v14 }
 0x49e   :  { %1656 = vmax.xlane.f32.xlu1 %v1655_v59  ;;  %v9556_v15 = vpop.eup %8010  ;;  %v1901_v29 = vsel %vm1468_vm1, %v9551_v45, 0.0  ;;  %8030 = vpow2.f32 %v1765_v62 }
 0x49f   :  { %v9561_v8 = vpop.eup %8012  ;;  %v1877_v59 = vsel %vm1468_vm1, %v9556_v15, 0.0  ;;  %8032 = vpow2.f32 %v1779_v41 }
 0x4a0   :  { %1659 = vmax.xlane.f32.xlu0 %v1658_v21  ;;  %v9566_v46 = vpop.eup %8014  ;;  %v1910_v21 = vsel %vm1468_vm1, %v9561_v8, 0.0 }
 0x4a1   :  { %v9571_v63 = vpop.eup %8016 }
 0x4a2   :  { %1650 = vmax.xlane.f32.xlu1 %v1649_v58  ;;  %v1886_v58 = vsel %vm1468_vm1, %v9566_v46, 0.0  ;;  %v9577_v30 = vpop.eup %8018  ;;  %v1895_v36 = vsel %vm1468_vm1, %v9571_v63, 0.0 }
 0x4a3   :  { %v9581_v42 = vpop.eup %8020  ;;  %v1880_v38 = vsel %vm1468_vm1, %v9577_v30, 0.0 }
 0x4a4   :  { %1653 = vmax.xlane.f32.xlu0 %v1652_v27  ;;  %v1771_v27 = vmul.f32 1.442695, %v1684_v6  ;;  %v9587_v19 = vpop.eup %8022 }
 0x4a5   :  { %v9591_v16 = vpop.eup %8024  ;;  %v1904_v55 = vsel %vm1468_vm1, %v9587_v19, 0.0 }
 0x4a6   :  { %1908 = vadd.xlane.f32.xlu1 %v1907_v34  ;;  %v1889_v34 = vsel %vm1468_vm1, %v9581_v42, 0.0  ;;  %8034 = vpow2.f32 %v1771_v27  ;;  %v9596_v20 = vpop.eup %8026 }
 0x4a7   :  { %v9600_v10 = vpop.eup %8028  ;;  %8036 = vpow2.f32 %v1751_v49  ;;  %v1919_v60 = vsel %vm1468_vm1, %v9596_v20, 0.0 }
 0x4a8   :  { %1884 = vadd.xlane.f32.xlu0 %v1883_v40  ;;  %v1898_v40 = vsel %vm1468_vm1, %v9591_v16, 0.0  ;;  %v1916_v26 = vsel %vm1468_vm1, %v9600_v10, 0.0  ;;  %8038 = vpow2.f32 %v1777_v51 }
 0x4aa   :  { %1902 = vadd.xlane.f32.xlu1 %v1901_v29  ;;  %v9604_v29 = vpop.eup %8030 }
 0x4ab   :  { %v9608_v35 = vpop.eup %8032  ;;  %v1913_v33 = vsel %vm1468_vm1, %v9604_v29, 0.0 }
 0x4ac   :  { %1878 = vadd.xlane.f32.xlu0 %v1877_v59  ;;  %v1934_v61 = vsel %vm1468_vm1, %v9608_v35, 0.0 }
 0x4ae   :  { %1911 = vadd.xlane.f32.xlu1 %v1910_v21 }
 0x4b0   :  { %1887 = vadd.xlane.f32.xlu0 %v1886_v58  ;;  %v9612_v59 = vpop.eup %8034 }
 0x4b1   :  { %v1922_v5 = vsel %vm1468_vm1, %v9612_v59, 0.0  ;;  %v9618_v21 = vpop.eup %8036 }
 0x4b2   :  { %1896 = vadd.xlane.f32.xlu1 %v1895_v36  ;;  %v1892_v6 = vsel %vm1468_vm1, %v9618_v21, 0.0  ;;  %v9622_v62 = vpop.eup %8038 }
 0x4b3   :  { %v1931_v58 = vsel %vm1468_vm1, %v9622_v62, 0.0 }
 0x4b4   :  { %1881 = vadd.xlane.f32.xlu0 %v1880_v38 }
 0x4b6   :  { %1890 = vadd.xlane.f32.xlu1 %v1889_v34 }
 0x4b8   :  { %1905 = vadd.xlane.f32.xlu0 %v1904_v55 }
 0x4ba   :  { %1899 = vadd.xlane.f32.xlu1 %v1898_v40 }
 0x4bc   :  { %1920 = vadd.xlane.f32.xlu0 %v1919_v60 }
 0x4be   :  { %1917 = vadd.xlane.f32.xlu1 %v1916_v26 }
 0x4c0   :  { %1914 = vadd.xlane.f32.xlu0 %v1913_v33 }
 0x4c2   :  { %1935 = vadd.xlane.f32.xlu1 %v1934_v61 }
 0x4c4   :  { %1923 = vadd.xlane.f32.xlu0 %v1922_v5 }
 0x4c8   :  { %1893 = vadd.xlane.f32.xlu0 %v1892_v6 }
 0x4cc   :  { %1932 = vadd.xlane.f32.xlu0 %v1931_v58 }
 0x4d7   :  { %v1573_v41 = vpop.xlane.xlu1 %1572 }
 0x4d8   :  { %v1695_v36 = vsub.f32 %v9332_v25, %v1573_v41 }
 0x4d9   :  { %v1576_v27 = vpop.xlane.xlu0 %1575 }
 0x4da   :  { %v1793_v12 = vmul.f32 1.442695, %v1695_v36  ;;  %v1696_v34 = vsub.f32 %v9338_v39, %v1576_v27 }
 0x4db   :  { %v1543_v2 = vpop.xlane.xlu1 %1542 }
 0x4dc   :  { %8040 = vpow2.f32 %v1793_v12  ;;  %v1685_v38 = vsub.f32 %v9261_v53, %v1543_v2  ;;  %v1795_v26 = vmul.f32 1.442695, %v1696_v34 }
 0x4dd   :  { %v1546_v49 = vpop.xlane.xlu0 %1545 }
 0x4de   :  { %v1773_v14 = vmul.f32 1.442695, %v1685_v38  ;;  %v1686_v55 = vsub.f32 %v9270_v48, %v1546_v49 }
 0x4df   :  { %v1567_v40 = vpop.xlane.xlu1 %1566 }
 0x4e0   :  { %8042 = vpow2.f32 %v1773_v14  ;;  %v1775_v51 = vmul.f32 1.442695, %v1686_v55  ;;  %v1693_v60 = vsub.f32 %v9334_v50, %v1567_v40 }
 0x4e1   :  { %v1570_v33 = vpop.xlane.xlu0 %1569 }
 0x4e2   :  { %8044 = vpow2.f32 %v1775_v51  ;;  %v1789_v25 = vmul.f32 1.442695, %v1693_v60  ;;  %v1694_v61 = vsub.f32 %v9342_v11, %v1570_v33 }
 0x4e3   :  { %v1561_v5 = vpop.xlane.xlu1 %1560 }
 0x4e4   :  { %8046 = vpow2.f32 %v1789_v25  ;;  %v1791_v53 = vmul.f32 1.442695, %v1694_v61  ;;  %v1691_v39 = vsub.f32 %v9280_v31, %v1561_v5 }
 0x4e5   :  { %8048 = vpow2.f32 %v1795_v26  ;;  %v1564_v6 = vpop.xlane.xlu0 %1563 }
 0x4e6   :  { %v9633_v58 = vpop.eup %8040  ;;  %8050 = vpow2.f32 %v1791_v53  ;;  %v1785_v48 = vmul.f32 1.442695, %v1691_v39  ;;  %v1692_v41 = vsub.f32 %v9286_v13, %v1564_v6 }
 0x4e7   :  { %v1585_v50 = vpop.xlane.xlu1 %1584  ;;  %v1955_v36 = vsel %vm1468_vm1, %v9633_v58, 0.0 }
 0x4e8   :  { %8052 = vpow2.f32 %v1785_v48  ;;  %v1787_v27 = vmul.f32 1.442695, %v1692_v41  ;;  %v1699_v11 = vsub.f32 %v9351_v17, %v1585_v50  ;;  %1956 = vadd.xlane.f32.xlu0 %v1955_v36 }
 0x4e9   :  { %v1588_v12 = vpop.xlane.xlu0 %1587 }
 0x4ea   :  { %v9639_v2 = vpop.eup %8042  ;;  %8054 = vpow2.f32 %v1787_v27  ;;  %v1801_v31 = vmul.f32 1.442695, %v1699_v11  ;;  %v1700_v14 = vsub.f32 %v9360_v24, %v1588_v12 }
 0x4eb   :  { %v1555_v38 = vpop.xlane.xlu1 %1554  ;;  %v1925_v34 = vsel %vm1468_vm1, %v9639_v2, 0.0 }
 0x4ec   :  { %v9643_v49 = vpop.eup %8044  ;;  %8056 = vpow2.f32 %v1801_v31  ;;  %v1689_v13 = vsub.f32 %v9284_v22, %v1555_v38  ;;  %1926 = vadd.xlane.f32.xlu0 %v1925_v34  ;;  %v1803_v5 = vmul.f32 1.442695, %v1700_v14 }
 0x4ed   :  { %v1558_v55 = vpop.xlane.xlu0 %1557  ;;  %v1928_v17 = vsel %vm1468_vm1, %v9643_v49, 0.0 }
 0x4ee   :  { %v9649_v40 = vpop.eup %8046  ;;  %v1781_v51 = vmul.f32 1.442695, %v1689_v13  ;;  %v1690_v60 = vsub.f32 %v9290_v37, %v1558_v55  ;;  %1929 = vadd.xlane.f32.xlu1 %v1928_v17 }
 0x4ef   :  { %v9652_v26 = vpop.eup %8048  ;;  %v1579_v33 = vpop.xlane.xlu1 %1578  ;;  %v1949_v25 = vsel %vm1468_vm1, %v9649_v40, 0.0 }
 0x4f0   :  { %v9656_v22 = vpop.eup %8050  ;;  %8058 = vpow2.f32 %v1781_v51  ;;  %v1783_v24 = vmul.f32 1.442695, %v1690_v60  ;;  %v1697_v61 = vsub.f32 %v9355_v57, %v1579_v33  ;;  %1950 = vadd.xlane.f32.xlu0 %v1949_v25  ;;  %v1958_v50 = vsel %vm1468_vm1, %v9652_v26, 0.0 }
 0x4f1   :  { %v1582_v53 = vpop.xlane.xlu0 %1581  ;;  %v1952_v39 = vsel %vm1468_vm1, %v9656_v22, 0.0 }
 0x4f2   :  { %v9661_v37 = vpop.eup %8052  ;;  %8060 = vpow2.f32 %v1783_v24  ;;  %v1797_v6 = vmul.f32 1.442695, %v1697_v61  ;;  %v1698_v48 = vsub.f32 %v9362_v9, %v1582_v53  ;;  %1953 = vadd.xlane.f32.xlu1 %v1952_v39 }
 0x4f3   :  { %v1861_v41 = vpop.xlane.xlu1 %1860  ;;  %v1943_v11 = vsel %vm1468_vm1, %v9661_v37, 0.0 }
 0x4f4   :  { %v9666_v36 = vpop.eup %8054  ;;  %8062 = vpow2.f32 %v1797_v6  ;;  %v1799_v57 = vmul.f32 1.442695, %v1698_v48  ;;  %1959 = vadd.xlane.f32.xlu0 %v1958_v50 }
 0x4f5   :  { %8064 = vpow2.f32 %v1803_v5  ;;  %v1864_v27 = vpop.xlane.xlu0 %1863  ;;  %v1946_v31 = vsel %vm1468_vm1, %v9666_v36, 0.0 }
 0x4f6   :  { %v9670_v12 = vpop.eup %8056  ;;  %8066 = vpow2.f32 %v1799_v57  ;;  %1944 = vadd.xlane.f32.xlu1 %v1943_v11 }
 0x4f7   :  { %12021 = vst [vmem:[#allocation75_spill] sm:$0xff] %v9670_v12  ;;  %8068 = vrcp.f32 %v1864_v27  ;;  %v1855_v9 = vpop.xlane.xlu1 %1854  ;;  %v1967_v34 = vsel %vm1468_vm1, %v9670_v12, 0.0 }
 0x4f8   :  { %8070 = vrcp.f32 %v1855_v9  ;;  %1947 = vadd.xlane.f32.xlu0 %v1946_v31 }
 0x4f9   :  { %8072 = vrcp.f32 %v1861_v41  ;;  %v1858_v38 = vpop.xlane.xlu0 %1857 }
 0x4fa   :  { %v9676_v13 = vpop.eup %8058  ;;  %8074 = vrcp.f32 %v1858_v38  ;;  %1968 = vadd.xlane.f32.xlu1 %v1967_v34  ;;  %v12024_v34 = vld [vmem:[#allocation60_spill] sm:$0xff] }
 0x4fb   :  { %v1873_v14 = vpop.xlane.xlu1 %1872  ;;  %v1937_v51 = vsel %vm1468_vm1, %v9676_v13, 0.0 }
 0x4fc   :  { %v9678_v55 = vpop.eup %8060  ;;  %8076 = vrcp.f32 %v1873_v14 }
 0x4fd   :  { %v1876_v17 = vpop.xlane.xlu0 %1875  ;;  %v1940_v60 = vsel %vm1468_vm1, %v9678_v55, 0.0 }
 0x4fe   :  { %v9684_v33 = vpop.eup %8062  ;;  %1938 = vadd.xlane.f32.xlu1 %v1937_v51  ;;  %1941 = vadd.xlane.f32.xlu0 %v1940_v60  ;;  %8078 = vrcp.f32 %v1876_v17  ;;  %v12025_v17 = vld [vmem:[#allocation57_spill] sm:$0xff] }
 0x4ff   :  { %v9686_v25 = vpop.eup %8064  ;;  %v1867_v24 = vpop.xlane.xlu1 %1866  ;;  %v1961_v39 = vsel %vm1468_vm1, %v9684_v33, 0.0 }
 0x500   :  { %12022 = vst [vmem:[#allocation76_spill] sm:$0xff] %v9686_v25  ;;  %v9688_v61 = vpop.eup %8066  ;;  %8080 = vrcp.f32 %v1867_v24  ;;  %v1970_v31 = vsel %vm1468_vm1, %v9686_v25, 0.0 }
 0x501   :  { %12023 = vst [vmem:[#allocation77_spill] sm:$0xff] %v9688_v61  ;;  %v8069_v5 = vpop.eup %8068  ;;  %v1870_v53 = vpop.xlane.xlu0 %1869  ;;  %v1964_v6 = vsel %vm1468_vm1, %v9688_v61, 0.0  ;;  %v12037_v61 = vld [vmem:[#allocation63_spill] sm:$0xff] }
 0x502   :  { %v8071_v48 = vpop.eup %8070  ;;  %8082 = vrcp.f32 %v1870_v53  ;;  %1962 = vadd.xlane.f32.xlu1 %v1961_v39  ;;  %1965 = vadd.xlane.f32.xlu0 %v1964_v6  ;;  %v2112_v27 = vmul.f32 %v8069_v5, %v9400_v3  ;;  %v12026_v3 = vld [vmem:[#allocation62_spill] sm:$0xff] }
 0x503   :  { %v8073_v41 = vpop.eup %8072  ;;  %v1597_v50 = vpop.xlane.xlu1 %1596  ;;  %v2109_v38 = vmul.f32 %v8071_v48, %v9404_v47  ;;  %v12027_v47 = vld [vmem:[#allocation67_spill] sm:$0xff] }
 0x504   :  { %v8075_v57 = vpop.eup %8074  ;;  %v1703_v11 = vsub.f32 %v9385_v18, %v1597_v50  ;;  %v2111_v51 = vmul.f32 %v8073_v41, %v12025_v17  ;;  %v12028_v41 = vld [vmem:[#allocation10_spill] sm:$0xff] }
 0x505   :  { %v1600_v9 = vpop.xlane.xlu0 %1599  ;;  %v2110_v14 = vmul.f32 %v8075_v57, %v12024_v34  ;;  %v12031_v34 = vld [vmem:[#allocation56_spill] sm:$0xff]  ;;  %v12032_v17 = vld [vmem:[#allocation66_spill] sm:$0xff] }
 0x506   :  { %v1809_v60 = vmul.f32 1.442695, %v1703_v11  ;;  %1971 = vadd.xlane.f32.xlu1 %v1970_v31  ;;  %v8077_v39 = vpop.eup %8076  ;;  %v2174_v6 = vpack.c.bf16 %v2112_v27, %v2111_v51  ;;  %v12029_v11 = vld [vmem:[#allocation71_spill] sm:$0xff] }
 0x507   :  { %v1621_v24 = vpop.xlane.xlu1 %1620  ;;  %v2173_v53 = vpack.c.bf16 %v2110_v14, %v2109_v38  ;;  %v12030_v27 = vld [vmem:[#allocation11_spill] sm:$0xff]  ;;  %v2115_v51 = vmul.f32 %v8077_v39, %v12032_v17  ;;  %v12040_v17 = vld [vmem:[#allocation69_spill] sm:$0xff] }
 0x508   :  { %8084 = vpow2.f32 %v1809_v60  ;;  %v1711_v5 = vsub.f32 %v12026_v3, %v1621_v24  ;;  %v8079_v18 = vpop.eup %8078  ;;  %v12033_v60 = vld [vmem:[#allocation65_spill] sm:$0xff] }
 0x509   :  { %6926 = vmatprep.mubr.msk.bf16.mxu1 %vm1468_vm1, %v2173_v53  ;;  %v1624_v50 = vpop.xlane.xlu0 %1623  ;;  %v2116_v24 = vmul.f32 %v8079_v18, %v12033_v60  ;;  %v12034_v53 = vld [vmem:[#allocation58_spill] sm:$0xff]  ;;  %v12041_v60 = vld [vmem:[#allocation12_spill] sm:$0xff] }
 0x50a   :  { %v8081_v25 = vpop.eup %8080  ;;  %v1825_v12 = vmul.f32 1.442695, %v1711_v5  ;;  %v1712_v48 = vsub.f32 %v12027_v47, %v1624_v50  ;;  %6927 = vmatmul.mubr.msk.bf16.vlgmr.msra.gmra.mrb[48].mxu1 %vm1468_vm1, %v2174_v6  ;;  %v1704_v3 = vsub.f32 %v12034_v53, %v1600_v9  ;;  %v12035_v50 = vld [vmem:[#allocation70_spill] sm:$0xff] }
 0x50b   :  { %6935 = vmatpush3.bf16.msra.mxu1 %v12028_v41  ;;  %v1591_v57 = vpop.xlane.xlu1 %1590  ;;  %v2113_v31 = vmul.f32 %v8081_v25, %v12029_v11 }
 0x50c   :  { %v8083_v38 = vpop.eup %8082  ;;  %8086 = vpow2.f32 %v1825_v12  ;;  %6936 = vmatprep.subr.bf16.mxu1 %v12030_v27  ;;  %v1701_v14 = vsub.f32 %v12031_v34, %v1591_v57  ;;  %v1827_v47 = vmul.f32 1.442695, %v1712_v48  ;;  %v12036_v12 = vld [vmem:[#allocation32_spill] sm:$0xff]  ;;  %v2176_v34 = vpack.c.bf16 %v2116_v24, %v2115_v51 }
 0x50d   :  { %v1594_v5 = vpop.xlane.xlu0 %1593  ;;  %v2114_v6 = vmul.f32 %v8083_v38, %v12035_v50  ;;  %v1811_v39 = vmul.f32 1.442695, %v1704_v3  ;;  %v12039_v38 = vld [vmem:[#allocation59_spill] sm:$0xff] }
 0x50e   :  { %v1805_v41 = vmul.f32 1.442695, %v1701_v14  ;;  %v1702_v48 = vsub.f32 %v12039_v38, %v1594_v5  ;;  %v12042_v5 = vld [vmem:[#allocation61_spill] sm:$0xff] }
 0x50f   :  { %6937 = vmatpush3.bf16.msra.mxu1 %v12030_v27  ;;  %v1615_v25 = vpop.xlane.xlu1 %1614  ;;  %v2175_v11 = vpack.c.bf16 %v2114_v6, %v2113_v31 }
 0x510   :  { %8088 = vpow2.f32 %v1805_v41  ;;  %6938 = vmatprep.subr.bf16.mxu1 %v12036_v12  ;;  %v1709_v57 = vsub.f32 %v12037_v61, %v1615_v25  ;;  %v1807_v3 = vmul.f32 1.442695, %v1702_v48  ;;  %v12043_v41 = vld [vmem:[#allocation13_spill] sm:$0xff]  ;;  %v12044_v25 = vld [vmem:[#allocation64_spill] sm:$0xff] }
 0x511   :  { %6930 = vmatprep.mubr.msk.bf16.mxu1 %vm1468_vm1, %v2175_v11  ;;  %v1618_v18 = vpop.xlane.xlu0 %1617  ;;  %8090 = vpow2.f32 %v1827_v47 }
 0x512   :  { %v9717_v9 = vpop.eup %8084  ;;  %v1821_v14 = vmul.f32 1.442695, %v1709_v57  ;;  %v1710_v27 = vsub.f32 %v12040_v17, %v1618_v18  ;;  %6931 = vmatmul.mubr.msk.bf16.gmra.mrb[52].mxu1 %vm1468_vm1, %v2176_v34 }
 0x513   :  { %12038 = vst [vmem:[#allocation60_spill] sm:$0xff] %v9717_v9  ;;  %6939 = vmatpush3.bf16.msra.mxu1 %v12036_v12  ;;  %v1609_v31 = vpop.xlane.xlu1 %1608  ;;  %v1979_v61 = vsel %vm1468_vm1, %v9717_v9, 0.0 }
 0x514   :  { %8092 = vpow2.f32 %v1821_v14  ;;  %v1823_v51 = vmul.f32 1.442695, %v1710_v27  ;;  %6940 = vmatprep.subr.bf16.mxu1 %v12041_v60  ;;  %1980 = vadd.xlane.f32.xlu0 %v1979_v61  ;;  %v1707_v50 = vsub.f32 %v12042_v5, %v1609_v31 }
 0x515   :  { %8094 = vpow2.f32 %v1811_v39  ;;  %v1612_v24 = vpop.xlane.xlu0 %1611  ;;  %v12046_v39 = vld [vmem:[#allocation72_spill] sm:$0xff] }
 0x516   :  { %v9726_v53 = vpop.eup %8086  ;;  %8096 = vpow2.f32 %v1823_v51  ;;  %v1708_v11 = vsub.f32 %v12044_v25, %v1612_v24  ;;  %v1817_v34 = vmul.f32 1.442695, %v1707_v50  ;;  %v12047_v24 = vld [vmem:[#allocation68_spill] sm:$0xff]  ;;  %v12048_v25 = vld [vmem:[#allocation73_spill] sm:$0xff] }
 0x517   :  { %6941 = vmatpush3.bf16.msra.mxu1 %v12041_v60  ;;  %v1633_v6 = vpop.xlane.xlu1 %1632  ;;  %v2003_v47 = vsel %vm1468_vm1, %v9726_v53, 0.0  ;;  %8098 = vpow2.f32 %v1807_v3 }
 0x518   :  { %6966 = vmatprep.subr.bf16.mxu1 %v12043_v41  ;;  %2004 = vadd.xlane.f32.xlu1 %v2003_v47  ;;  %v1715_v18 = vsub.f32 %v12046_v39, %v1633_v6  ;;  %v1819_v27 = vmul.f32 1.442695, %v1708_v11  ;;  %8100 = vpow2.f32 %v1817_v34  ;;  %v12049_v34 = vld [vmem:[#allocation74_spill] sm:$0xff] }
 0x519   :  { %v1636_v12 = vpop.xlane.xlu0 %1635 }
 0x51a   :  { %v9734_v57 = vpop.eup %8088  ;;  %v1833_v51 = vmul.f32 1.442695, %v1715_v18  ;;  %v1716_v39 = vsub.f32 %v12049_v34, %v1636_v12 }
 0x51b   :  { %12045 = vst [vmem:[#allocation57_spill] sm:$0xff] %v9734_v57  ;;  %v1603_v38 = vpop.xlane.xlu1 %1602  ;;  %v1973_v48 = vsel %vm1468_vm1, %v9734_v57, 0.0  ;;  %v9739_v14 = vpop.eup %8090 }
 0x51c   :  { %v1705_v17 = vsub.f32 %v9414_v52, %v1603_v38  ;;  %1974 = vadd.xlane.f32.xlu1 %v1973_v48  ;;  %v2006_v6 = vsel %vm1468_vm1, %v9739_v14, 0.0 }
 0x51d   :  { %v1606_v31 = vpop.xlane.xlu0 %1605 }
 0x51e   :  { %v9742_v61 = vpop.eup %8092  ;;  %v1813_v60 = vmul.f32 1.442695, %v1705_v17  ;;  %v1706_v3 = vsub.f32 %v12047_v24, %v1606_v31 }
 0x51f   :  { %v9745_v5 = vpop.eup %8094  ;;  %v1627_v50 = vpop.xlane.xlu1 %1626  ;;  %v1997_v47 = vsel %vm1468_vm1, %v9742_v61, 0.0 }
 0x520   :  { %v9751_v52 = vpop.eup %8096  ;;  %8102 = vpow2.f32 %v1813_v60  ;;  %v1713_v11 = vsub.f32 %v12048_v25, %v1627_v50  ;;  %2007 = vadd.xlane.f32.xlu1 %v2006_v6  ;;  %1998 = vadd.xlane.f32.xlu0 %v1997_v47  ;;  %v1815_v18 = vmul.f32 1.442695, %v1706_v3  ;;  %v1982_v60 = vsel %vm1468_vm1, %v9745_v5, 0.0 }
 0x521   :  { %8104 = vpow2.f32 %v1819_v27  ;;  %v1630_v38 = vpop.xlane.xlu0 %1629  ;;  %v2000_v24 = vsel %vm1468_vm1, %v9751_v52, 0.0  ;;  %v9760_v9 = vpop.eup %8098  ;;  %v1835_v27 = vmul.f32 1.442695, %v1716_v39 }
 0x522   :  { %8106 = vpow2.f32 %v1833_v51  ;;  %v1829_v48 = vmul.f32 1.442695, %v1713_v11  ;;  %v1714_v17 = vsub.f32 %v9452_v23, %v1630_v38  ;;  %12050 = vst [vmem:[#allocation62_spill] sm:$0xff] %v9760_v9  ;;  %v1976_v6 = vsel %vm1468_vm1, %v9760_v9, 0.0  ;;  %v9766_v47 = vpop.eup %8100 }
 0x523   :  { %v1645_v31 = vpop.xlane.xlu1 %1644  ;;  %8108 = vpow2.f32 %v1815_v18  ;;  %12051 = vst [vmem:[#allocation67_spill] sm:$0xff] %v9766_v47 }
 0x524   :  { %2001 = vadd.xlane.f32.xlu1 %v2000_v24  ;;  %1983 = vadd.xlane.f32.xlu0 %v1982_v60  ;;  %v1719_v12 = vsub.f32 %v9468_v43, %v1645_v31  ;;  %8110 = vpow2.f32 %v1829_v48  ;;  %v1831_v51 = vmul.f32 1.442695, %v1714_v17  ;;  %v1991_v17 = vsel %vm1468_vm1, %v9766_v47, 0.0 }
 0x525   :  { %v1648_v3 = vpop.xlane.xlu0 %1647  ;;  %8112 = vpow2.f32 %v1835_v27 }
 0x526   :  { %v1720_v23 = vsub.f32 %v9474_v4, %v1648_v3  ;;  %v1841_v25 = vmul.f32 1.442695, %v1719_v12  ;;  %8114 = vpow2.f32 %v1831_v51 }
 0x527   :  { %v1639_v50 = vpop.xlane.xlu1 %1638 }
 0x528   :  { %1977 = vadd.xlane.f32.xlu0 %v1976_v6  ;;  %v1717_v11 = vsub.f32 %v9470_v1, %v1639_v50  ;;  %v1843_v43 = vmul.f32 1.442695, %v1720_v23  ;;  %8116 = vpow2.f32 %v1841_v25 }
 0x529   :  { %v1642_v34 = vpop.xlane.xlu0 %1641 }
 0x52a   :  { %v9769_v39 = vpop.eup %8102  ;;  %v1718_v18 = vsub.f32 %v9476_v56, %v1642_v34  ;;  %v1837_v1 = vmul.f32 1.442695, %v1717_v11  ;;  %8118 = vpow2.f32 %v1843_v43 }
 0x52b   :  { %12052 = vst [vmem:[#allocation10_spill] sm:$0xff] %v9769_v39  ;;  %v9772_v38 = vpop.eup %8104  ;;  %v9774_v4 = vpop.xlane.xlu1 %1656  ;;  %v1985_v48 = vsel %vm1468_vm1, %v9769_v39, 0.0 }
 0x52c   :  { %12053 = vst [vmem:[#allocation71_spill] sm:$0xff] %v9772_v38  ;;  %v9780_v31 = vpop.eup %8106  ;;  %1986 = vadd.xlane.f32.xlu1 %v1985_v48  ;;  %1992 = vadd.xlane.f32.xlu0 %v1991_v17  ;;  %v1839_v56 = vmul.f32 1.442695, %v1718_v18  ;;  %v1994_v12 = vsel %vm1468_vm1, %v9772_v38, 0.0  ;;  %8120 = vpow2.f32 %v1837_v1 }
 0x52d   :  { %12054 = vst [vmem:[#allocation11_spill] sm:$0xff] %v9780_v31  ;;  %v9782_v24 = vpop.xlane.xlu0 %1659  ;;  %v9784_v60 = vpop.eup %8108  ;;  %v2015_v3 = vsel %vm1468_vm1, %v9780_v31, 0.0 }
 0x52e   :  { %12055 = vst [vmem:[#allocation56_spill] sm:$0xff] %v9784_v60  ;;  %v9792_v51 = vpop.eup %8110  ;;  %8122 = vpow2.f32 %v1839_v56  ;;  %v1988_v25 = vsel %vm1468_vm1, %v9784_v60, 0.0 }
 0x52f   :  { %v9786_v27 = vpop.xlane.xlu1 %1650  ;;  %12056 = vst [vmem:[#allocation66_spill] sm:$0xff] %v9792_v51  ;;  %v9796_v50 = vpop.eup %8112  ;;  %v2009_v11 = vsel %vm1468_vm1, %v9792_v51, 0.0 }
 0x530   :  { %1995 = vadd.xlane.f32.xlu1 %v1994_v12  ;;  %2016 = vadd.xlane.f32.xlu0 %v2015_v3  ;;  %12057 = vst [vmem:[#allocation65_spill] sm:$0xff] %v9796_v50  ;;  %v9802_v34 = vpop.eup %8114  ;;  %v2018_v17 = vsel %vm1468_vm1, %v9796_v50, 0.0 }
 0x531   :  { %v9794_v23 = vpop.xlane.xlu0 %1653  ;;  %12058 = vst [vmem:[#allocation58_spill] sm:$0xff] %v9802_v34  ;;  %v2012_v1 = vsel %vm1468_vm1, %v9802_v34, 0.0 }
 0x532   :  { %v9804_v18 = vpop.eup %8116 }
 0x533   :  { %v1909_v6 = vpop.xlane.xlu1 %1908  ;;  %12059 = vst [vmem:[#allocation70_spill] sm:$0xff] %v9804_v18 }
 0x534   :  { %1989 = vadd.xlane.f32.xlu1 %v1988_v25  ;;  %2010 = vadd.xlane.f32.xlu0 %v2009_v11  ;;  %v9810_v56 = vpop.eup %8118  ;;  %v2027_v25 = vsel %vm1468_vm1, %v9804_v18, 0.0 }
 0x535   :  { %v1885_v43 = vpop.xlane.xlu0 %1884  ;;  %12060 = vst [vmem:[#allocation32_spill] sm:$0xff] %v9810_v56  ;;  %v2030_v11 = vsel %vm1468_vm1, %v9810_v56, 0.0 }
 0x536   :  { %v9812_v3 = vpop.eup %8120 }
 0x537   :  { %v1903_v48 = vpop.xlane.xlu1 %1902  ;;  %12061 = vst [vmem:[#allocation63_spill] sm:$0xff] %v9812_v3 }
 0x538   :  { %2019 = vadd.xlane.f32.xlu0 %v2018_v17  ;;  %2013 = vadd.xlane.f32.xlu1 %v2012_v1  ;;  %v9818_v51 = vpop.eup %8122  ;;  %v2021_v17 = vsel %vm1468_vm1, %v9812_v3, 0.0 }
 0x539   :  { %v1879_v12 = vpop.xlane.xlu0 %1878  ;;  %12062 = vst [vmem:[#allocation59_spill] sm:$0xff] %v9818_v51  ;;  %v2024_v1 = vsel %vm1468_vm1, %v9818_v51, 0.0 }
 0x53b   :  { %v1912_v31 = vpop.xlane.xlu1 %1911 }
 0x53c   :  { %2028 = vadd.xlane.f32.xlu1 %v2027_v25  ;;  %2031 = vadd.xlane.f32.xlu0 %v2030_v11 }
 0x53d   :  { %v1888_v50 = vpop.xlane.xlu0 %1887 }
 0x53e   :  { %8124 = vrcp.f32 %v1888_v50 }
 0x53f   :  { %v1897_v34 = vpop.xlane.xlu1 %1896  ;;  %8126 = vrcp.f32 %v1879_v12 }
 0x540   :  { %2022 = vadd.xlane.f32.xlu1 %v2021_v17  ;;  %2025 = vadd.xlane.f32.xlu0 %v2024_v1  ;;  %8128 = vrcp.f32 %v1885_v43 }
 0x541   :  { %v1882_v18 = vpop.xlane.xlu0 %1881 }
 0x542   :  { %8130 = vrcp.f32 %v1882_v18 }
 0x543   :  { %8132 = vrcp.f32 %v1912_v31  ;;  %v1891_v56 = vpop.xlane.xlu1 %1890 }
 0x544   :  { %8134 = vrcp.f32 %v1903_v48 }
 0x545   :  { %8136 = vrcp.f32 %v1909_v6  ;;  %v1906_v25 = vpop.xlane.xlu0 %1905 }
 0x546   :  { %8138 = vrcp.f32 %v1906_v25 }
 0x547   :  { %v1900_v50 = vpop.xlane.xlu1 %1899 }
 0x548   :  { %v8125_v11 = vpop.eup %8124 }
 0x549   :  { %v1921_v47 = vpop.xlane.xlu0 %1920  ;;  %v8127_v60 = vpop.eup %8126  ;;  %v2120_v12 = vmul.f32 %v8125_v11, %v9566_v46  ;;  %v12069_v11 = vld [vmem:[#allocation48_spill] sm:$0xff] }
 0x54a   :  { %v8129_v3 = vpop.eup %8128  ;;  %v2117_v18 = vmul.f32 %v8127_v60, %v9556_v15 }
 0x54b   :  { %v1918_v39 = vpop.xlane.xlu1 %1917  ;;  %v2119_v6 = vmul.f32 %v8129_v3, %v9545_v54 }
 0x54c   :  { %v8131_v38 = vpop.eup %8130  ;;  %8140 = vrcp.f32 %v1918_v39  ;;  %v12063_v39 = vld [vmem:[#allocation7_spill] sm:$0xff] }
 0x54d   :  { %v8133_v17 = vpop.eup %8132  ;;  %v1915_v43 = vpop.xlane.xlu0 %1914  ;;  %v2118_v31 = vmul.f32 %v8131_v38, %v9577_v30  ;;  %v2178_v57 = vpack.c.bf16 %v2120_v12, %v2119_v6  ;;  %v12064_v38 = vld [vmem:[#allocation25_spill] sm:$0xff] }
 0x54e   :  { %v8135_v48 = vpop.eup %8134  ;;  %8142 = vrcp.f32 %v1915_v43  ;;  %v2128_v9 = vmul.f32 %v8133_v17, %v9561_v8 }
 0x54f   :  { %v8137_v1 = vpop.eup %8136  ;;  %v2177_v25 = vpack.c.bf16 %v2118_v31, %v2117_v18  ;;  %8144 = vrcp.f32 %v1921_v47  ;;  %v2125_v15 = vmul.f32 %v8135_v48, %v9551_v45  ;;  %v1721_v31 = vsub.f32 %v9488_v28, %v9786_v27 }
 0x550   :  { %v8139_v51 = vpop.eup %8138  ;;  %v2127_v54 = vmul.f32 %v8137_v1, %v9539_v7  ;;  %v12065_v7 = vld [vmem:[#allocation30_spill] sm:$0xff]  ;;  %v12070_v1 = vld [vmem:[#allocation36_spill] sm:$0xff]  ;;  %v1724_v27 = vsub.f32 %v9494_v44, %v9782_v24 }
 0x551   :  { %6942 = vmatprep.mubr.msk.bf16.mxu1 %vm1468_vm1, %v2177_v25  ;;  %v1924_v46 = vpop.xlane.xlu0 %1923  ;;  %7628 = vrot.lane.b32.xlu1 %v12063_v39, %s8505_s30  ;;  %v2126_v30 = vmul.f32 %v8139_v51, %v9587_v19  ;;  %v12071_v25 = vld [vmem:[#allocation17_spill] sm:$0xff] }
 0x552   :  { %8146 = vrcp.f32 %v1924_v46  ;;  %6943 = vmatmul.mubr.msk.bf16.vlgmr.msra.gmra.mrb[56].mxu1 %vm1468_vm1, %v2178_v57  ;;  %v2182_v47 = vpack.c.bf16 %v2128_v9, %v2127_v54  ;;  %v12067_v57 = vld [vmem:[#allocation18_spill] sm:$0xff]  ;;  %v1845_v46 = vmul.f32 1.442695, %v1721_v31 }
 0x553   :  { %8148 = vrcp.f32 %v1900_v50  ;;  %6967 = vmatpush3.bf16.msra.mxu1 %v12043_v41  ;;  %v2181_v8 = vpack.c.bf16 %v2126_v30, %v2125_v15  ;;  %v12066_v41 = vld [vmem:[#allocation49_spill] sm:$0xff]  ;;  %v12068_v50 = vld [vmem:[#allocation28_spill] sm:$0xff] }
 0x554   :  { %8150 = vrcp.f32 %v1891_v56  ;;  %6968 = vmatprep.subr.bf16.mxu1 %v12064_v38  ;;  %v12072_v30 = vld [vmem:[#allocation37_spill] sm:$0xff] }
 0x555   :  { %8152 = vrcp.f32 %v1897_v34  ;;  %6958 = vmatprep.mubr.msk.bf16.mxu0 %vm1468_vm1, %v2181_v8  ;;  %v1894_v60 = vpop.xlane.xlu0 %1893 }
 0x556   :  { %v8141_v45 = vpop.eup %8140  ;;  %8154 = vrcp.f32 %v1894_v60  ;;  %6959 = vmatmul.mubr.msk.bf16.vlgmr.msra.gmra.mrb[48].mxu0 %vm1468_vm1, %v2182_v47  ;;  %7623 = vrot.lane.b32.xlu0 %v12063_v39, %s8504_s29 }
 0x557   :  { %6969 = vmatpush3.bf16.msra.mxu1 %v12064_v38  ;;  %6983 = vmatpush3.bf16.msra.mxu0 %v12065_v7  ;;  %v2130_v19 = vmul.f32 %v8141_v45, %v9600_v10 }
 0x558   :  { %v8143_v9 = vpop.eup %8142  ;;  %6970 = vmatprep.subr.bf16.mxu1 %v12066_v41  ;;  %6984 = vmatprep.subr.bf16.mxu0 %v12067_v57 }
 0x559   :  { %v2129_v51 = vmul.f32 %v8143_v9, %v9604_v29  ;;  %v8145_v34 = vpop.eup %8144  ;;  %v1723_v29 = vsub.f32 %v9486_v32, %v9774_v4  ;;  %v1933_v24 = vpop.xlane.xlu0 %1932 }
 0x55a   :  { %v2131_v10 = vmul.f32 %v8145_v34, %v9596_v20 }
 0x55b   :  { %6971 = vmatpush3.bf16.msra.mxu1 %v12066_v41  ;;  %6985 = vmatpush3.bf16.msra.mxu0 %v12067_v57  ;;  %v2183_v56 = vpack.c.bf16 %v2130_v19, %v2129_v51  ;;  %v1849_v4 = vmul.f32 1.442695, %v1723_v29  ;;  %v12073_v51 = vld [vmem:[#allocation33_spill] sm:$0xff] }
 0x55c   :  { %v8147_v3 = vpop.eup %8146  ;;  %6972 = vmatprep.subr.bf16.mxu1 %v12068_v50  ;;  %6986 = vmatprep.subr.bf16.mxu0 %v12069_v11  ;;  %v7561_v34 = vunpack.i.h.bf16 %v12073_v51 }
 0x55d   :  { %v8149_v12 = vpop.eup %8148  ;;  %6962 = vmatprep.mubr.msk.bf16.mxu0 %vm1468_vm1, %v2183_v56  ;;  %v2132_v17 = vmul.f32 %v8147_v3, %v9612_v59  ;;  %8156 = vpow2.f32 %v1849_v4  ;;  %v7560_v56 = vunpack.i.l.bf16 %v12073_v51 }
 0x55e   :  { %v8151_v43 = vpop.eup %8150  ;;  %v2124_v20 = vmul.f32 %v8149_v12, %v9591_v16  ;;  %8158 = vpow2.f32 %v1845_v46 }
 0x55f   :  { %v8153_v18 = vpop.eup %8152  ;;  %6973 = vmatpush3.bf16.msra.mxu1 %v12068_v50  ;;  %6987 = vmatpush3.bf16.msra.mxu0 %v12069_v11  ;;  %v2184_v48 = vpack.c.bf16 %v2132_v17, %v2131_v10  ;;  %v2121_v32 = vmul.f32 %v8151_v43, %v9581_v42  ;;  %v1851_v42 = vmul.f32 1.442695, %v1724_v27  ;;  %v9894_v10 = vpack.c.bf16 %v7561_v34, %v7560_v56  ;;  %v12082_v56 = vld [vmem:[#allocation19_spill] sm:$0xff] }
 0x560   :  { %v8155_v6 = vpop.eup %8154  ;;  %6988 = vmatprep.subr.bf16.mxu0 %v12070_v1  ;;  %6998 = vmatprep.subr.bf16.mxu1 %v12071_v25  ;;  %v2123_v28 = vmul.f32 %v8153_v18, %v9571_v63  ;;  %v1722_v63 = vsub.f32 %v9496_v0, %v9794_v23  ;;  %v1936_v0 = vpop.xlane.xlu1 %1935 }
 0x561   :  { %6963 = vmatmul.mubr.msk.bf16.gmra.mrb[52].mxu0 %vm1468_vm1, %v2184_v48  ;;  %v2122_v59 = vmul.f32 %v8155_v6, %v9618_v21  ;;  %8160 = vpow2.f32 %v1851_v42 }
 0x562   :  { %v2180_v54 = vpack.c.bf16 %v2124_v20, %v2123_v28  ;;  %v1847_v16 = vmul.f32 1.442695, %v1722_v63  ;;  %v12074_v20 = vld [vmem:[#allocation35_spill] sm:$0xff] }
 0x563   :  { %6989 = vmatpush3.bf16.msra.mxu0 %v12070_v1  ;;  %v2179_v15 = vpack.c.bf16 %v2122_v59, %v2121_v32  ;;  %v7571_v32 = vunpack.i.h.bf16 %v12074_v20  ;;  %v7570_v59 = vunpack.i.l.bf16 %v12074_v20 }
 0x564   :  { %7014 = vmatprep.subr.bf16.mxu0 %v12072_v30  ;;  %8162 = vpow2.f32 %v1847_v16 }
 0x565   :  { %6946 = vmatprep.mubr.msk.bf16.mxu1 %vm1468_vm1, %v2179_v15  ;;  %8164 = vrcp.f32 %v1933_v24  ;;  %v12075_v15 = vld [vmem:[#allocation5_spill] sm:$0xff]  ;;  %v9909_v16 = vpack.c.bf16 %v7571_v32, %v7570_v59  ;;  %v12087_v59 = vld [vmem:[#allocation43_spill] sm:$0xff] }
 0x566   :  { %6947 = vmatmul.mubr.msk.bf16.gmra.mrb[60].mxu1 %vm1468_vm1, %v2180_v54 }
 0x567   :  { %v9876_v44 = vpop.eup %8156 }
 0x568   :  { %v9878_v21 = vpop.eup %8158  ;;  %v2039_v47 = vsel %vm1468_vm1, %v9876_v44, 0.0 }
 0x569   :  { %v2033_v8 = vsel %vm1468_vm1, %v9878_v21, 0.0 }
 0x56b   :  { %v9884_v38 = vpop.eup %8160 }
 0x56c   :  { %v2042_v23 = vsel %vm1468_vm1, %v9884_v38, 0.0 }
 0x56e   :  { %v9888_v45 = vpop.eup %8162 }
 0x56f   :  { %v2036_v9 = vsel %vm1468_vm1, %v9888_v45, 0.0  ;;  %v8165_v50 = vpop.eup %8164 }
 0x570   :  { %v2135_v29 = vmul.f32 %v8165_v50, %v9622_v62  ;;  %v12083_v50 = vld [vmem:[#allocation20_spill] sm:$0xff] }
 0x575   :  { %v1957_v60 = vpop.xlane.xlu0 %1956  ;;  %2034 = vadd.xlane.f32.xlu1 %v2033_v8  ;;  %2040 = vadd.xlane.f32.xlu0 %v2039_v47  ;;  %v12076_v47 = vld [vmem:[#allocation34_spill] sm:$0xff] }
 0x579   :  { %v1927_v7 = vpop.xlane.xlu0 %1926  ;;  %2043 = vadd.xlane.f32.xlu0 %v2042_v23 }
 0x57a   :  { %8166 = vrcp.f32 %v1927_v7 }
 0x57b   :  { %8168 = vrcp.f32 %v1936_v0  ;;  %v1930_v19 = vpop.xlane.xlu1 %1929  ;;  %v12077_v0 = vld [vmem:[#allocation40_spill] sm:$0xff] }
 0x57c   :  { %8170 = vrcp.f32 %v1930_v19  ;;  %v7581_v23 = vunpack.i.h.bf16 %v12077_v0  ;;  %v12080_v19 = vld [vmem:[#allocation2_spill] sm:$0xff] }
 0x57d   :  { %v1951_v41 = vpop.xlane.xlu0 %1950  ;;  %2037 = vadd.xlane.f32.xlu0 %v2036_v9 }
 0x57e   :  { %8172 = vrcp.f32 %v1951_v41  ;;  %v12081_v41 = vld [vmem:[#allocation9_spill] sm:$0xff] }
 0x57f   :  { %8174 = vrcp.f32 %v1957_v60  ;;  %v1954_v57 = vpop.xlane.xlu1 %1953 }
 0x580   :  { %8176 = vrcp.f32 %v1954_v57 }
 0x581   :  { %v1960_v3 = vpop.xlane.xlu0 %1959 }
 0x582   :  { %8178 = vrcp.f32 %v1960_v3  ;;  %v7566_v3 = vunpack.i.h.bf16 %v12082_v56 }
 0x583   :  { %v1945_v11 = vpop.xlane.xlu1 %1944 }
 0x584   :  { %v8167_v12 = vpop.eup %8166 }
 0x585   :  { %v8169_v17 = vpop.eup %8168  ;;  %v1948_v18 = vpop.xlane.xlu0 %1947  ;;  %v2133_v48 = vmul.f32 %v8167_v12, %v9639_v2  ;;  %v12084_v12 = vld [vmem:[#allocation50_spill] sm:$0xff] }
 0x586   :  { %v8171_v43 = vpop.eup %8170  ;;  %3522 = vrot.lane.b32.xlu1 %v9894_v10, %s8503_s28  ;;  %v2136_v4 = vmul.f32 %v8169_v17, %v9608_v35  ;;  %8180 = vrcp.f32 %v1948_v18  ;;  %v12085_v18 = vld [vmem:[#allocation22_spill] sm:$0xff] }
 0x587   :  { %v1969_v31 = vpop.xlane.xlu1 %1968  ;;  %v2134_v6 = vmul.f32 %v8171_v43, %v9643_v49  ;;  %8182 = vrcp.f32 %v1945_v11 }
 0x588   :  { %v8173_v1 = vpop.eup %8172  ;;  %v2186_v62 = vpack.c.bf16 %v2136_v4, %v2135_v29 }
 0x589   :  { %v8175_v28 = vpop.eup %8174  ;;  %v2185_v27 = vpack.c.bf16 %v2134_v6, %v2133_v48  ;;  %v2141_v49 = vmul.f32 %v8173_v1, %v9649_v40  ;;  %v7590_v48 = vunpack.i.l.bf16 %v12085_v18 }
 0x58a   :  { %v8177_v46 = vpop.eup %8176  ;;  %7638 = vrot.lane.b32.xlu1 %v12075_v15, %s8505_s30  ;;  %v2143_v35 = vmul.f32 %v8175_v28, %v9633_v58  ;;  %v7580_v58 = vunpack.i.l.bf16 %v12077_v0 }
 0x58b   :  { %v1939_v54 = vpop.xlane.xlu1 %1938  ;;  %6974 = vmatprep.mubr.msk.bf16.mxu1 %vm1468_vm1, %v2185_v27  ;;  %v1942_v2 = vpop.xlane.xlu0 %1941  ;;  %v2142_v42 = vmul.f32 %v8177_v46, %v9656_v22 }
 0x58c   :  { %v8179_v63 = vpop.eup %8178  ;;  %8184 = vrcp.f32 %v1939_v54  ;;  %6975 = vmatmul.mubr.msk.bf16.vlgmr.msra.gmra.mrb[64].mxu1 %vm1468_vm1, %v2186_v62  ;;  %v9930_v51 = vpack.c.bf16 %v7581_v23, %v7580_v58 }
 0x58d   :  { %v2144_v24 = vmul.f32 %v8179_v63, %v9652_v26  ;;  %8186 = vrcp.f32 %v1942_v2  ;;  %6999 = vmatpush3.bf16.msra.mxu1 %v12071_v25  ;;  %v2189_v8 = vpack.c.bf16 %v2142_v42, %v2141_v49  ;;  %v12078_v26 = vld [vmem:[#allocation51_spill] sm:$0xff]  ;;  %v12079_v25 = vld [vmem:[#allocation41_spill] sm:$0xff]  ;;  %v12091_v63 = vld [vmem:[#allocation26_spill] sm:$0xff] }
 0x58e   :  { %7000 = vmatprep.subr.bf16.mxu1 %v12076_v47  ;;  %3718 = vrot.lane.b32.xlu1 %v9909_v16, %s8503_s28  ;;  %v12090_v2 = vld [vmem:[#allocation39_spill] sm:$0xff] }
 0x58f   :  { %v2190_v40 = vpack.c.bf16 %v2144_v24, %v2143_v35  ;;  %v1963_v22 = vpop.xlane.xlu1 %1962  ;;  %6990 = vmatprep.mubr.msk.bf16.mxu0 %vm1468_vm1, %v2189_v8  ;;  %v1966_v60 = vpop.xlane.xlu0 %1965  ;;  %v7576_v49 = vunpack.i.h.bf16 %v12090_v2  ;;  %v7575_v42 = vunpack.i.l.bf16 %v12090_v2  ;;  %v12092_v35 = vld [vmem:[#allocation75_spill] sm:$0xff]  ;;  %v12093_v8 = vld [vmem:[#allocation76_spill] sm:$0xff] }
 0x590   :  { %8188 = vrcp.f32 %v1963_v22  ;;  %v8181_v9 = vpop.eup %8180 }
 0x591   :  { %8190 = vrcp.f32 %v1966_v60  ;;  %7001 = vmatpush3.bf16.msra.mxu1 %v12076_v47  ;;  %6991 = vmatmul.mubr.msk.bf16.vlgmr.msra.gmra.mrb[56].mxu0 %vm1468_vm1, %v2190_v40  ;;  %v8183_v57 = vpop.eup %8182  ;;  %v2140_v43 = vmul.f32 %v8181_v9, %v9666_v36  ;;  %v12094_v40 = vld [vmem:[#allocation44_spill] sm:$0xff]  ;;  %v9978_v23 = vpack.c.bf16 %v7576_v49, %v7575_v42  ;;  %v12096_v9 = vld [vmem:[#allocation29_spill] sm:$0xff] }
 0x592   :  { %8192 = vrcp.f32 %v1969_v31  ;;  %7002 = vmatprep.subr.bf16.mxu1 %v12078_v26  ;;  %7015 = vmatpush3.bf16.msra.mxu0 %v12072_v30  ;;  %v7565_v30 = vunpack.i.l.bf16 %v12082_v56  ;;  %v7591_v31 = vunpack.i.h.bf16 %v12085_v18  ;;  %v2139_v6 = vmul.f32 %v8183_v57, %v9661_v37  ;;  %v12089_v37 = vld [vmem:[#allocation77_spill] sm:$0xff]  ;;  %v12098_v18 = vld [vmem:[#allocation24_spill] sm:$0xff] }
 0x593   :  { %7016 = vmatprep.subr.bf16.mxu0 %v12079_v25  ;;  %v1972_v7 = vpop.xlane.xlu1 %1971  ;;  %7648 = vrot.lane.b32.xlu1 %v12080_v19, %s8507_s9  ;;  %v7601_v22 = vunpack.i.h.bf16 %v12094_v40  ;;  %v7600_v60 = vunpack.i.l.bf16 %v12094_v40  ;;  %v7611_v57 = vunpack.i.h.bf16 %v12096_v9 }
 0x594   :  { %8194 = vrcp.f32 %v1972_v7  ;;  %3421 = vrot.lane.b32.xlu0 %v12081_v41, %s8503_s28  ;;  %v9949_v20 = vpack.c.bf16 %v7566_v3, %v7565_v30  ;;  %v2188_v4 = vpack.c.bf16 %v2140_v43, %v2139_v6  ;;  %v9961_v62 = vpack.c.bf16 %v7591_v31, %v7590_v48 }
 0x595   :  { %7003 = vmatpush3.bf16.msra.mxu1 %v12078_v26  ;;  %v9985_v58 = vpack.c.bf16 %v7601_v22, %v7600_v60  ;;  %v7596_v31 = vunpack.i.h.bf16 %v12098_v18  ;;  %v7595_v48 = vunpack.i.l.bf16 %v12098_v18 }
 0x596   :  { %v8185_v34 = vpop.eup %8184  ;;  %7004 = vmatprep.subr.bf16.mxu1 %v12083_v50  ;;  %7017 = vmatpush3.bf16.msra.mxu0 %v12079_v25  ;;  %v12095_v25 = vld [vmem:[#allocation42_spill] sm:$0xff] }
 0x597   :  { %v8187_v11 = vpop.eup %8186  ;;  %7018 = vmatprep.subr.bf16.mxu0 %v12084_v12  ;;  %3720 = vrot.lane.b32.xlu1 %v9930_v51, %s8503_s28  ;;  %v2137_v17 = vmul.f32 %v8185_v34, %v9676_v13  ;;  %v12086_v13 = vld [vmem:[#allocation38_spill] sm:$0xff]  ;;  %v7586_v7 = vunpack.i.h.bf16 %v12095_v25  ;;  %v7610_v34 = vunpack.i.l.bf16 %v12096_v9 }
 0x598   :  { %7633 = vrot.lane.b32.xlu0 %v12075_v15, %s8504_s29  ;;  %v2138_v29 = vmul.f32 %v8187_v11, %v9678_v55  ;;  %v12088_v55 = vld [vmem:[#allocation3_spill] sm:$0xff] }
 0x599   :  { %7005 = vmatpush3.bf16.msra.mxu1 %v12083_v50  ;;  %v10001_v50 = vpack.c.bf16 %v7611_v57, %v7610_v34  ;;  %v12097_v11 = vld [vmem:[#allocation31_spill] sm:$0xff]  ;;  %v12101_v57 = vld [vmem:[#allocation57_spill] sm:$0xff] }
 0x59a   :  { %v8189_v1 = vpop.eup %8188  ;;  %7019 = vmatpush3.bf16.msra.mxu0 %v12084_v12  ;;  %7030 = vmatprep.subr.bf16.mxu1 %v12086_v13  ;;  %v2187_v36 = vpack.c.bf16 %v2138_v29, %v2137_v17  ;;  %v7621_v12 = vunpack.i.h.bf16 %v12097_v11  ;;  %v7620_v17 = vunpack.i.l.bf16 %v12097_v11 }
 0x59b   :  { %v8191_v32 = vpop.eup %8190  ;;  %7020 = vmatprep.subr.bf16.mxu0 %v12087_v59  ;;  %7658 = vrot.lane.b32.xlu1 %v12088_v55, %s8507_s9  ;;  %v2145_v28 = vmul.f32 %v8189_v1, %v9684_v33 }
 0x59c   :  { %v8193_v27 = vpop.eup %8192  ;;  %6978 = vmatprep.mubr.msk.bf16.mxu1 %vm1468_vm1, %v2187_v36  ;;  %3617 = vrot.lane.b32.xlu0 %v9949_v20, %s8503_s28  ;;  %v2146_v46 = vmul.f32 %v8191_v32, %v12089_v37  ;;  %v10011_v6 = vpack.c.bf16 %v7621_v12, %v7620_v17  ;;  %v10013_v32 = vpack.c.bf16 %v7596_v31, %v7595_v48  ;;  %v12105_v31 = vld [vmem:[#allocation21_spill] sm:$0xff] }
 0x59d   :  { %6979 = vmatmul.mubr.msk.bf16.gmra.mrb[68].mxu1 %vm1468_vm1, %v2188_v4  ;;  %v2147_v24 = vmul.f32 %v8193_v27, %v12092_v35 }
 0x59e   :  { %v8195_v54 = vpop.eup %8194  ;;  %7021 = vmatpush3.bf16.msra.mxu0 %v12087_v59  ;;  %v2191_v33 = vpack.c.bf16 %v2146_v46, %v2145_v28 }
 0x59f   :  { %7354 = vmatprep.subr.msk.bf16.mxu0 %vm671_vm0, %v12091_v63  ;;  %3722 = vrot.lane.b32.xlu1 %v9961_v62, %s8503_s28  ;;  %v2148_v47 = vmul.f32 %v8195_v54, %v12093_v8  ;;  %v12100_v54 = vld [vmem:[#allocation46_spill] sm:$0xff] }
 0x5a0   :  { %6994 = vmatprep.mubr.msk.bf16.mxu0 %vm1468_vm1, %v2191_v33  ;;  %7643 = vrot.lane.b32.xlu0 %v12080_v19, %s8506_s8  ;;  %v7585_v19 = vunpack.i.l.bf16 %v12095_v25  ;;  %v7616_v2 = vunpack.i.h.bf16 %v12100_v54  ;;  %v7615_v49 = vunpack.i.l.bf16 %v12100_v54  ;;  %v12109_v54 = vld [vmem:[#allocation10_spill] sm:$0xff] }
 0x5a1   :  { %v2192_v0 = vpack.c.bf16 %v2148_v47, %v2147_v24  ;;  %v1981_v56 = vpop.xlane.xlu0 %1980 }
 0x5a2   :  { %v9995_v30 = vpack.c.bf16 %v7586_v7, %v7585_v19 }
 0x5a3   :  { %7668 = vrot.lane.b32.xlu1 %v12063_v39, %s8507_s9  ;;  %6995 = vmatmul.mubr.msk.bf16.gmra.mrb[60].mxu0 %vm1468_vm1, %v2192_v0  ;;  %v10032_v0 = vpack.c.bf16 %v7616_v2, %v7615_v49  ;;  %v12110_v49 = vld [vmem:[#allocation56_spill] sm:$0xff] }
 0x5a4   :  { %3619 = vrot.lane.b32.xlu0 %v9978_v23, %s8503_s28 }
 0x5a5   :  { %v2005_v26 = vpop.xlane.xlu1 %2004 }
 0x5a7   :  { %3724 = vrot.lane.b32.xlu1 %v9985_v58, %s8503_s28 }
 0x5a8   :  { %7653 = vrot.lane.b32.xlu0 %v12088_v55, %s8506_s8  ;;  %v12099_v55 = vld [vmem:[#allocation27_spill] sm:$0xff] }
 0x5a9   :  { %v1975_v3 = vpop.xlane.xlu1 %1974  ;;  %v7605_v4 = vunpack.i.l.bf16 %v12099_v55 }
 0x5ab   :  { %7678 = vrot.lane.b32.xlu1 %v12075_v15, %s8507_s9 }
 0x5ac   :  { %3621 = vrot.lane.b32.xlu0 %v9995_v30, %s8503_s28 }
 0x5ad   :  { %v2008_v43 = vpop.xlane.xlu1 %2007  ;;  %v1999_v29 = vpop.xlane.xlu0 %1998 }
 0x5ae   :  { %8196 = vrcp.f32 %v2008_v43  ;;  %v12104_v43 = vld [vmem:[#allocation45_spill] sm:$0xff] }
 0x5af   :  { %3920 = vrot.lane.b32.xlu1 %v10001_v50, %s8503_s28  ;;  %8198 = vrcp.f32 %v1999_v29 }
 0x5b0   :  { %7663 = vrot.lane.b32.xlu0 %v12063_v39, %s8506_s8  ;;  %8200 = vrcp.f32 %v2005_v26  ;;  %v7606_v39 = vunpack.i.h.bf16 %v12099_v55 }
 0x5b1   :  { %v2002_v1 = vpop.xlane.xlu1 %2001  ;;  %v1984_v36 = vpop.xlane.xlu0 %1983 }
 0x5b2   :  { %8202 = vrcp.f32 %v2002_v1  ;;  %v10025_v42 = vpack.c.bf16 %v7606_v39, %v7605_v4  ;;  %v12106_v4 = vld [vmem:[#allocation52_spill] sm:$0xff] }
 0x5b3   :  { %8204 = vrcp.f32 %v1984_v36  ;;  %3922 = vrot.lane.b32.xlu1 %v10011_v6, %s8503_s28 }
 0x5b4   :  { %8206 = vrcp.f32 %v1975_v3  ;;  %3623 = vrot.lane.b32.xlu0 %v10013_v32, %s8503_s28  ;;  %v12103_v3 = vld [vmem:[#allocation60_spill] sm:$0xff] }
 0x5b5   :  { %8208 = vrcp.f32 %v1981_v56  ;;  %v1978_v59 = vpop.xlane.xlu0 %1977  ;;  %v12102_v56 = vld [vmem:[#allocation62_spill] sm:$0xff] }
 0x5b6   :  { %8210 = vrcp.f32 %v1978_v59  ;;  %v3439_v59 = vsel %vm671_vm0, %v12104_v43, 0 }
 0x5b8   :  { %7673 = vrot.lane.b32.xlu0 %v12075_v15, %s8506_s8  ;;  %v8197_v28 = vpop.eup %8196 }
 0x5b9   :  { %v1987_v27 = vpop.xlane.xlu1 %1986  ;;  %v1993_v37 = vpop.xlane.xlu0 %1992  ;;  %v2160_v24 = vmul.f32 %v8197_v28, %v9739_v14  ;;  %v12107_v28 = vld [vmem:[#allocation47_spill] sm:$0xff] }
 0x5ba   :  { %v8199_v46 = vpop.eup %8198 }
 0x5bb   :  { %v8201_v33 = vpop.eup %8200  ;;  %v2157_v40 = vmul.f32 %v8199_v46, %v9742_v61 }
 0x5bc   :  { %v8203_v35 = vpop.eup %8202  ;;  %3819 = vrot.lane.b32.xlu0 %v10025_v42, %s8503_s28  ;;  %v2159_v26 = vmul.f32 %v8201_v33, %v9726_v53 }
 0x5bd   :  { %v8205_v8 = vpop.eup %8204  ;;  %v1996_v47 = vpop.xlane.xlu1 %1995  ;;  %v2158_v22 = vmul.f32 %v8203_v35, %v9751_v52 }
 0x5be   :  { %v2017_v15 = vpop.xlane.xlu0 %2016  ;;  %v8207_v60 = vpop.eup %8206  ;;  %8212 = vrcp.f32 %v1996_v47  ;;  %v2198_v14 = vpack.c.bf16 %v2160_v24, %v2159_v26  ;;  %v2152_v9 = vmul.f32 %v8205_v8, %v9745_v5  ;;  %v3436_v5 = vsel %vm671_vm0, %v12091_v63, 0  ;;  %v12111_v24 = vld [vmem:[#allocation67_spill] sm:$0xff] }
 0x5bf   :  { %v8209_v25 = vpop.eup %8208  ;;  %v2197_v7 = vpack.c.bf16 %v2158_v22, %v2157_v40  ;;  %8214 = vrcp.f32 %v1987_v27  ;;  %v2149_v34 = vmul.f32 %v8207_v60, %v12101_v57  ;;  %v12112_v22 = vld [vmem:[#allocation23_spill] sm:$0xff] }
 0x5c0   :  { %v8211_v19 = vpop.eup %8210  ;;  %3821 = vrot.lane.b32.xlu0 %v10032_v0, %s8503_s28  ;;  %8216 = vrcp.f32 %v1993_v37  ;;  %v2151_v11 = vmul.f32 %v8209_v25, %v12103_v3 }
 0x5c1   :  { %v1990_v61 = vpop.xlane.xlu1 %1989  ;;  %7022 = vmatprep.mubr.msk.bf16.mxu0 %vm1468_vm1, %v2197_v7  ;;  %v2150_v53 = vmul.f32 %v8211_v19, %v12102_v56  ;;  %v3442_v19 = vsel %vm671_vm0, %v12107_v28, 0 }
 0x5c2   :  { %v2011_v52 = vpop.xlane.xlu0 %2010  ;;  %8218 = vrcp.f32 %v1990_v61  ;;  %7023 = vmatmul.mubr.msk.bf16.vlgmr.msra.gmra.mrb[64].mxu0 %vm1468_vm1, %v2198_v14  ;;  %v2194_v17 = vpack.c.bf16 %v2152_v9, %v2151_v11  ;;  %v12113_v14 = vld [vmem:[#allocation66_spill] sm:$0xff]  ;;  %v12115_v11 = vld [vmem:[#allocation11_spill] sm:$0xff] }
 0x5c3   :  { %7047 = vmatpush3.bf16.xpose.msra.mxu0 %v3436_v5  ;;  %v2193_v12 = vpack.c.bf16 %v2150_v53, %v2149_v34  ;;  %8220 = vrcp.f32 %v2011_v52  ;;  %v12114_v61 = vld [vmem:[#allocation58_spill] sm:$0xff] }
 0x5c4   :  { %7355 = vmatprep.subr.msk.bf16.mxu0 %vm671_vm0, %v12104_v43  ;;  %8222 = vrcp.f32 %v2017_v15 }
 0x5c5   :  { %v2014_v29 = vpop.xlane.xlu1 %2013  ;;  %7006 = vmatprep.mubr.msk.bf16.mxu1 %vm1468_vm1, %v2193_v12  ;;  %v12116_v12 = vld [vmem:[#allocation65_spill] sm:$0xff] }
 0x5c6   :  { %v2020_v18 = vpop.xlane.xlu0 %2019  ;;  %8224 = vrcp.f32 %v2014_v29  ;;  %7007 = vmatmul.mubr.msk.bf16.vlgmr.msra.gmra.mrb[72].mxu1 %vm1468_vm1, %v2194_v17 }
 0x5c7   :  { %8226 = vrcp.f32 %v2020_v18  ;;  %7031 = vmatpush3.bf16.msra.mxu1 %v12086_v13  ;;  %v12108_v13 = vld [vmem:[#allocation71_spill] sm:$0xff]  ;;  %v12117_v18 = vld [vmem:[#allocation54_spill] sm:$0xff] }
 0x5c8   :  { %7032 = vmatprep.subr.bf16.mxu1 %v12105_v31  ;;  %v8213_v63 = vpop.eup %8212 }
 0x5c9   :  { %v2029_v48 = vpop.xlane.xlu1 %2028  ;;  %v8215_v36 = vpop.eup %8214  ;;  %v2156_v27 = vmul.f32 %v8213_v63, %v12108_v13  ;;  %v12121_v13 = vld [vmem:[#allocation63_spill] sm:$0xff] }
 0x5ca   :  { %v2032_v1 = vpop.xlane.xlu0 %2031  ;;  %v8217_v55 = vpop.eup %8216  ;;  %8228 = vrcp.f32 %v2029_v48  ;;  %v2153_v2 = vmul.f32 %v8215_v36, %v12109_v54  ;;  %v12118_v36 = vld [vmem:[#allocation6_spill] sm:$0xff] }
 0x5cb   :  { %7033 = vmatpush3.bf16.msra.mxu1 %v12105_v31  ;;  %7049 = vmatpush3.bf16.xpose.msra.mxu0 %v3439_v59  ;;  %8230 = vrcp.f32 %v2032_v1  ;;  %v2155_v8 = vmul.f32 %v8217_v55, %v12111_v24  ;;  %v12119_v55 = vld [vmem:[#allocation70_spill] sm:$0xff]  ;;  %v3537_v24 = vsel %vm671_vm0, %v12117_v18, 0 }
 0x5cc   :  { %v8219_v39 = vpop.eup %8218  ;;  %7034 = vmatprep.subr.bf16.mxu1 %v12106_v4  ;;  %7356 = vmatprep.subr.msk.bf16.mxu0 %vm671_vm0, %v12107_v28 }
 0x5cd   :  { %v2023_v37 = vpop.xlane.xlu1 %2022  ;;  %v2154_v33 = vmul.f32 %v8219_v39, %v12110_v49  ;;  %v8221_v35 = vpop.eup %8220  ;;  %v2196_v60 = vpack.c.bf16 %v2156_v27, %v2155_v8 }
 0x5ce   :  { %v2026_v46 = vpop.xlane.xlu0 %2025  ;;  %8232 = vrcp.f32 %v2023_v37  ;;  %v8223_v47 = vpop.eup %8222  ;;  %v2161_v9 = vmul.f32 %v8221_v35, %v12113_v14  ;;  %v12122_v37 = vld [vmem:[#allocation59_spill] sm:$0xff] }
 0x5cf   :  { %8234 = vrcp.f32 %v2026_v46  ;;  %7035 = vmatpush3.bf16.msra.mxu1 %v12106_v4  ;;  %v2195_v15 = vpack.c.bf16 %v2154_v33, %v2153_v2  ;;  %v2163_v5 = vmul.f32 %v8223_v47, %v12115_v11  ;;  %v12120_v4 = vld [vmem:[#allocation32_spill] sm:$0xff]  ;;  %v12127_v47 = vld [vmem:[#allocation53_spill] sm:$0xff] }
 0x5d0   :  { %v8225_v40 = vpop.eup %8224  ;;  %7036 = vmatprep.subr.bf16.mxu1 %v12112_v22 }
 0x5d1   :  { %v8227_v26 = vpop.eup %8226  ;;  %v7629_v25 = vpop.permute.xlu1 %7628  ;;  %7010 = vmatprep.mubr.msk.bf16.mxu1 %vm1468_vm1, %v2195_v15  ;;  %v2162_v52 = vmul.f32 %v8225_v40, %v12114_v61 }
 0x5d2   :  { %v7624_v7 = vpop.permute.xlu0 %7623  ;;  %v7631_v57 = vunpack.i.h.bf16 %v7629_v25  ;;  %v7630_v34 = vunpack.i.l.bf16 %v7629_v25  ;;  %7011 = vmatmul.mubr.msk.bf16.gmra.mrb[76].mxu1 %vm1468_vm1, %v2196_v60  ;;  %v2164_v17 = vmul.f32 %v8227_v26, %v12116_v12  ;;  %v3540_v60 = vsel %vm671_vm0, %v12127_v47, 0  ;;  %v12132_v25 = vld [vmem:[#allocation55_spill] sm:$0xff] }
 0x5d3   :  { %v7626_v56 = vunpack.i.h.bf16 %v7624_v7  ;;  %v7625_v53 = vunpack.i.l.bf16 %v7624_v7  ;;  %7037 = vmatpush3.bf16.msra.mxu1 %v12112_v22  ;;  %7051 = vmatpush3.bf16.xpose.msra.mxu0 %v3442_v19  ;;  %v2199_v3 = vpack.c.bf16 %v2162_v52, %v2161_v9  ;;  %v3543_v7 = vsel %vm671_vm0, %v12132_v25, 0 }
 0x5d4   :  { %v10072_v43 = vpack.c.bf16 %v7631_v57, %v7630_v34  ;;  %7358 = vmatprep.subr.msk.bf16.mxu1 %vm671_vm0, %v12117_v18  ;;  %v8229_v31 = vpop.eup %8228  ;;  %v2200_v63 = vpack.c.bf16 %v2164_v17, %v2163_v5 }
 0x5d5   :  { %v10074_v29 = vpack.c.bf16 %v7626_v56, %v7625_v53  ;;  %7026 = vmatprep.mubr.msk.bf16.mxu0 %vm1468_vm1, %v2199_v3  ;;  %v8231_v48 = vpop.eup %8230  ;;  %v2167_v39 = vmul.f32 %v8229_v31, %v12119_v55 }
 0x5d6   :  { %3924 = vrot.lane.b32.xlu1 %v10072_v43, %s8503_s28  ;;  %7027 = vmatmul.mubr.msk.bf16.gmra.mrb[68].mxu0 %vm1468_vm1, %v2200_v63  ;;  %v2168_v28 = vmul.f32 %v8231_v48, %v12120_v4 }
 0x5d7   :  { %3823 = vrot.lane.b32.xlu0 %v10074_v29, %s8503_s28  ;;  %7054 = vmatprep.mubr.msk.bf16.mxu0 %vm671_vm0, %v12118_v36 }
 0x5d8   :  { %v8233_v1 = vpop.eup %8232  ;;  %v2202_v2 = vpack.c.bf16 %v2168_v28, %v2167_v39 }
 0x5d9   :  { %v8235_v59 = vpop.eup %8234  ;;  %v2165_v27 = vmul.f32 %v8233_v1, %v12121_v13 }
 0x5da   :  { %v2166_v46 = vmul.f32 %v8235_v59, %v12122_v37 }
 0x5dc   :  { %v2201_v54 = vpack.c.bf16 %v2166_v46, %v2165_v27 }
 0x5dd   :  { %v10090_v49 = vpop.f32.mrb[48].mxu1 }
 0x5de   :  { %12123 = vst [vmem:[#allocation69_spill] sm:$0xff] %v10090_v49  ;;  %v10092_v33 = vpop.f32.mrb[49].mxu1  ;;  %7038 = vmatprep.mubr.msk.bf16.mxu1 %vm1468_vm1, %v2201_v54 }
 0x5df   :  { %12124 = vst [vmem:[#allocation12_spill] sm:$0xff] %v10092_v33  ;;  %v10095_v35 = vpop.f32.mrb[50].mxu1  ;;  %7039 = vmatmul.mubr.msk.bf16.vlgmr.msra.gmra.mrb[80].mxu1 %vm1468_vm1, %v2202_v2 }
 0x5e0   :  { %12125 = vst [vmem:[#allocation61_spill] sm:$0xff] %v10095_v35  ;;  %7063 = vmatpush3.bf16.xpose.msra.mxu1 %v3537_v24  ;;  %v10100_v8 = vpop.f32.mrb[51].mxu1  ;;  %v12133_v24 = vld [vmem:[#allocation4_spill] sm:$0xff] }
 0x5e1   :  { %12126 = vst [vmem:[#allocation13_spill] sm:$0xff] %v10100_v8  ;;  %7359 = vmatprep.subr.msk.bf16.mxu1 %vm671_vm0, %v12127_v47 }
 0x5e5   :  { %v10104_v15 = vpop.f32.mrb[52].mxu1 }
 0x5e6   :  { %12128 = vst [vmem:[#allocation64_spill] sm:$0xff] %v10104_v15  ;;  %v10106_v40 = vpop.f32.mrb[53].mxu1 }
 0x5e7   :  { %12129 = vst [vmem:[#allocation72_spill] sm:$0xff] %v10106_v40  ;;  %v10108_v22 = vpop.f32.mrb[54].mxu1 }
 0x5e8   :  { %12130 = vst [vmem:[#allocation68_spill] sm:$0xff] %v10108_v22  ;;  %7065 = vmatpush3.bf16.xpose.msra.mxu1 %v3540_v60  ;;  %v10112_v26 = vpop.f32.mrb[55].mxu1 }
 0x5e9   :  { %12131 = vst [vmem:[#allocation73_spill] sm:$0xff] %v10112_v26  ;;  %7360 = vmatprep.subr.msk.bf16.mxu1 %vm671_vm0, %v12132_v25  ;;  %v12134_v25 = vld [vmem:[#allocation8_spill] sm:$0xff] }
 0x5f0   :  { %7067 = vmatpush3.bf16.xpose.msra.mxu1 %v3543_v7 }
 0x602   :  { %v2035_v19 = vpop.xlane.xlu1 %2034  ;;  %v2041_v14 = vpop.xlane.xlu0 %2040 }
 0x606   :  { %v3523_v9 = vpop.permute.xlu1 %3522  ;;  %v2044_v61 = vpop.xlane.xlu0 %2043 }
 0x607   :  { %7361 = vmatprep.subr.msk.bf16.mxu1 %vm671_vm0, %v3523_v9  ;;  %v3546_v52 = vsel %vm671_vm0, %v3523_v9, 0  ;;  %8236 = vrcp.f32 %v2044_v61 }
 0x608   :  { %7069 = vmatpush3.bf16.xpose.msra.mxu1 %v3546_v52  ;;  %8238 = vrcp.f32 %v2035_v19 }
 0x609   :  { %8240 = vrcp.f32 %v2041_v14 }
 0x60a   :  { %v7639_v57 = vpop.permute.xlu1 %7638  ;;  %v2038_v34 = vpop.xlane.xlu0 %2037 }
 0x60b   :  { %v7641_v56 = vunpack.i.h.bf16 %v7639_v57  ;;  %v7640_v53 = vunpack.i.l.bf16 %v7639_v57  ;;  %8242 = vrcp.f32 %v2038_v34 }
 0x60d   :  { %v10120_v3 = vpack.c.bf16 %v7641_v56, %v7640_v53 }
 0x60e   :  { %v3719_v11 = vpop.permute.xlu1 %3718  ;;  %v3422_v5 = vpop.permute.xlu0 %3421 }
 0x60f   :  { %3926 = vrot.lane.b32.xlu1 %v10120_v3, %s8503_s28  ;;  %7357 = vmatprep.subr.msk.bf16.mxu0 %vm671_vm0, %v3422_v5  ;;  %v3445_v12 = vsel %vm671_vm0, %v3422_v5, 0 }
 0x610   :  { %7366 = vmatprep.subr.msk.bf16.mxu1 %vm671_vm0, %v3719_v11  ;;  %7053 = vmatpush3.bf16.xpose.msra.mxu0 %v3445_v12 }
 0x611   :  { %v8237_v17 = vpop.eup %8236 }
 0x612   :  { %v7649_v18 = vpop.permute.xlu1 %7648  ;;  %v7634_v31 = vpop.permute.xlu0 %7633  ;;  %v2172_v27 = vmul.f32 %v8237_v17, %v9884_v38  ;;  %v3739_v17 = vsel %vm671_vm0, %v3719_v11, 0 }
 0x613   :  { %v8239_v63 = vpop.eup %8238  ;;  %v7651_v48 = vunpack.i.h.bf16 %v7649_v18  ;;  %v7650_v1 = vunpack.i.l.bf16 %v7649_v18  ;;  %v7636_v59 = vunpack.i.h.bf16 %v7634_v31  ;;  %v7635_v55 = vunpack.i.l.bf16 %v7634_v31 }
 0x614   :  { %v8241_v39 = vpop.eup %8240  ;;  %v2169_v54 = vmul.f32 %v8239_v63, %v9878_v21 }
 0x615   :  { %v8243_v4 = vpop.eup %8242  ;;  %v10127_v28 = vpack.c.bf16 %v7651_v48, %v7650_v1  ;;  %v10129_v13 = vpack.c.bf16 %v7636_v59, %v7635_v55  ;;  %v2171_v60 = vmul.f32 %v8241_v39, %v9876_v44  ;;  %v12135_v44 = vld [vmem:[#allocation15_spill] sm:$0xff]  ;;  %v12136_v1 = vld [vmem:[#allocation14_spill] sm:$0xff]  ;;  %v12137_v59 = vld [vmem:[#allocation16_spill] sm:$0xff] }
 0x616   :  { %v10132_v37 = vpop.permute.xlu1 %3720  ;;  %v3618_v46 = vpop.permute.xlu0 %3617  ;;  %v2170_v2 = vmul.f32 %v8243_v4, %v9888_v45 }
 0x617   :  { %4122 = vrot.lane.b32.xlu1 %v10127_v28, %s8503_s28  ;;  %7055 = vmatmul.mubr.msk.bf16.vlgmr.msra.gmra.mrb[72].mxu0 %vm671_vm0, %v12133_v24  ;;  %v3638_v47 = vsel %vm671_vm0, %v3618_v46, 0  ;;  %v2204_v21 = vpack.c.bf16 %v2172_v27, %v2171_v60 }
 0x618   :  { %7362 = vmatprep.subr.msk.bf16.mxu0 %vm671_vm0, %v3618_v46  ;;  %3825 = vrot.lane.b32.xlu0 %v10129_v13, %s8503_s28  ;;  %v2203_v38 = vpack.c.bf16 %v2170_v2, %v2169_v54 }
 0x619   :  { %7058 = vmatprep.mubr.msk.bf16.mxu0 %vm671_vm0, %v12134_v25  ;;  %7079 = vmatpush3.bf16.xpose.msra.mxu0 %v3638_v47 }
 0x61a   :  { %v7659_v45 = vpop.permute.xlu1 %7658  ;;  %7042 = vmatprep.mubr.msk.bf16.mxu1 %vm1468_vm1, %v2203_v38  ;;  %v7644_v7 = vpop.permute.xlu0 %7643 }
 0x61b   :  { %v7661_v19 = vunpack.i.h.bf16 %v7659_v45  ;;  %v7660_v14 = vunpack.i.l.bf16 %v7659_v45  ;;  %v7646_v9 = vunpack.i.h.bf16 %v7644_v7  ;;  %v7645_v61 = vunpack.i.l.bf16 %v7644_v7  ;;  %7043 = vmatmul.mubr.msk.bf16.gmra.mrb[84].mxu1 %vm1468_vm1, %v2204_v21 }
 0x61c   :  { %7070 = vmatprep.mubr.msk.bf16.mxu1 %vm671_vm0, %v12135_v44 }
 0x61d   :  { %v10151_v52 = vpack.c.bf16 %v7661_v19, %v7660_v14  ;;  %v10153_v57 = vpack.c.bf16 %v7646_v9, %v7645_v61 }
 0x61e   :  { %v3723_v34 = vpop.permute.xlu1 %3722  ;;  %v3620_v56 = vpop.permute.xlu0 %3619 }
 0x61f   :  { %4124 = vrot.lane.b32.xlu1 %v10151_v52, %s8503_s28  ;;  %7059 = vmatmul.mubr.msk.bf16.gmra.mrb[76].mxu0 %vm671_vm0, %v12081_v41  ;;  %v3641_v53 = vsel %vm671_vm0, %v3620_v56, 0 }
 0x620   :  { %7363 = vmatprep.subr.msk.bf16.mxu0 %vm671_vm0, %v3620_v56  ;;  %4021 = vrot.lane.b32.xlu0 %v10153_v57, %s8503_s28  ;;  %v3742_v56 = vsel %vm671_vm0, %v10132_v37, 0 }
 0x621   :  { %7081 = vmatpush3.bf16.xpose.msra.mxu0 %v3641_v53  ;;  %7086 = vmatprep.mubr.msk.bf16.mxu0 %vm671_vm0, %v9949_v20 }
 0x622   :  { %v7669_v5 = vpop.permute.xlu1 %7668  ;;  %v7654_v12 = vpop.permute.xlu0 %7653 }
 0x623   :  { %v7671_v18 = vunpack.i.h.bf16 %v7669_v5  ;;  %v7670_v31 = vunpack.i.l.bf16 %v7669_v5  ;;  %v7656_v63 = vunpack.i.h.bf16 %v7654_v12  ;;  %v7655_v48 = vunpack.i.l.bf16 %v7654_v12  ;;  %7071 = vmatmul.mubr.msk.bf16.vlgmr.msra.gmra.mrb[88].mxu1 %vm671_vm0, %v12136_v1 }
 0x624   :  { %7095 = vmatpush3.bf16.xpose.msra.mxu1 %v3739_v17  ;;  %7074 = vmatprep.mubr.msk.bf16.mxu1 %vm671_vm0, %v12137_v59 }
 0x625   :  { %v10170_v55 = vpack.c.bf16 %v7671_v18, %v7670_v31  ;;  %v10172_v39 = vpack.c.bf16 %v7656_v63, %v7655_v48  ;;  %v10174_v4 = vpop.f32.mrb[56].mxu1  ;;  %7367 = vmatprep.subr.msk.bf16.mxu1 %vm671_vm0, %v10132_v37 }
 0x626   :  { %12138 = vst [vmem:[#allocation74_spill] sm:$0xff] %v10174_v4  ;;  %v10178_v11 = vpop.f32.mrb[57].mxu1  ;;  %v10180_v27 = vpop.permute.xlu1 %3724 }
 0x627   :  { %12139 = vst [vmem:[#allocation7_spill] sm:$0xff] %v10178_v11  ;;  %v10182_v46 = vpop.f32.mrb[58].mxu1  ;;  %v3622_v54 = vpop.permute.xlu0 %3621  ;;  %4126 = vrot.lane.b32.xlu1 %v10170_v55, %s8503_s28  ;;  %4023 = vrot.lane.b32.xlu0 %v10172_v39, %s8503_s28 }
 0x628   :  { %12140 = vst [vmem:[#allocation25_spill] sm:$0xff] %v10182_v46  ;;  %v10190_v47 = vpop.f32.mrb[59].mxu1  ;;  %7364 = vmatprep.subr.msk.bf16.mxu0 %vm671_vm0, %v3622_v54  ;;  %v3644_v60 = vsel %vm671_vm0, %v3622_v54, 0 }
 0x629   :  { %12141 = vst [vmem:[#allocation30_spill] sm:$0xff] %v10190_v47  ;;  %v10196_v21 = vpop.f32.mrb[48].mxu0  ;;  %7083 = vmatpush3.bf16.xpose.msra.mxu0 %v3644_v60  ;;  %v3745_v60 = vsel %vm671_vm0, %v3723_v34, 0 }
 0x62a   :  { %12142 = vst [vmem:[#allocation49_spill] sm:$0xff] %v10196_v21  ;;  %v10198_v45 = vpop.f32.mrb[49].mxu0  ;;  %v7679_v7 = vpop.permute.xlu1 %7678 }
 0x62b   :  { %12143 = vst [vmem:[#allocation18_spill] sm:$0xff] %v10198_v45  ;;  %v7681_v19 = vunpack.i.h.bf16 %v7679_v7  ;;  %v7680_v14 = vunpack.i.l.bf16 %v7679_v7  ;;  %v10200_v9 = vpop.f32.mrb[50].mxu0  ;;  %v7664_v61 = vpop.permute.xlu0 %7663  ;;  %7075 = vmatmul.mubr.msk.bf16.gmra.mrb[92].mxu1 %vm671_vm0, %v9894_v10 }
 0x62c   :  { %12144 = vst [vmem:[#allocation28_spill] sm:$0xff] %v10200_v9  ;;  %v7666_v5 = vunpack.i.h.bf16 %v7664_v61  ;;  %v7665_v12 = vunpack.i.l.bf16 %v7664_v61  ;;  %v10208_v17 = vpop.f32.mrb[51].mxu0  ;;  %7097 = vmatpush3.bf16.xpose.msra.mxu1 %v3742_v56  ;;  %7102 = vmatprep.mubr.msk.bf16.mxu1 %vm671_vm0, %v9909_v16 }
 0x62d   :  { %12145 = vst [vmem:[#allocation48_spill] sm:$0xff] %v10208_v17  ;;  %v10212_v18 = vpack.c.bf16 %v7681_v19, %v7680_v14  ;;  %7368 = vmatprep.subr.msk.bf16.mxu1 %vm671_vm0, %v3723_v34 }
 0x62e   :  { %v10217_v63 = vpack.c.bf16 %v7666_v5, %v7665_v12 }
 0x62f   :  { %12146 = vst [vmem:[#allocation36_spill] sm:$0xff] %v10212_v18  ;;  %v3624_v37 = vpop.permute.xlu0 %3623  ;;  %4128 = vrot.lane.b32.xlu1 %v10212_v18, %s8503_s28 }
 0x630   :  { %7365 = vmatprep.subr.msk.bf16.mxu0 %vm671_vm0, %v3624_v37  ;;  %4025 = vrot.lane.b32.xlu0 %v10217_v63, %s8503_s28  ;;  %v3647_v48 = vsel %vm671_vm0, %v3624_v37, 0 }
 0x631   :  { %7085 = vmatpush3.bf16.xpose.msra.mxu0 %v3647_v48 }
 0x633   :  { %v7674_v54 = vpop.permute.xlu0 %7673  ;;  %4955 = vrot.lane.b32.xlu1 %v12118_v36, %s8508_s10 }
 0x634   :  { %v7676_v7 = vunpack.i.h.bf16 %v7674_v54  ;;  %v7675_v19 = vunpack.i.l.bf16 %v7674_v54  ;;  %v10228_v14 = vpop.f32.mrb[52].mxu0  ;;  %7099 = vmatpush3.bf16.xpose.msra.mxu1 %v3745_v60 }
 0x635   :  { %12147 = vst [vmem:[#allocation17_spill] sm:$0xff] %v10228_v14  ;;  %v10230_v61 = vpop.f32.mrb[53].mxu0  ;;  %7369 = vmatprep.subr.msk.bf16.mxu1 %vm671_vm0, %v10180_v27 }
 0x636   :  { %12148 = vst [vmem:[#allocation37_spill] sm:$0xff] %v10230_v61  ;;  %v10234_v56 = vpack.c.bf16 %v7676_v7, %v7675_v19  ;;  %v10236_v5 = vpop.f32.mrb[54].mxu0  ;;  %v3748_v19 = vsel %vm671_vm0, %v10180_v27, 0 }
 0x637   :  { %12150 = vst [vmem:[#allocation35_spill] sm:$0xff] %v10236_v5  ;;  %v10240_v36 = vpop.f32.mrb[55].mxu0  ;;  %v3820_v34 = vpop.permute.xlu0 %3819  ;;  %4957 = vrot.lane.b32.xlu1 %v12133_v24, %s8508_s10 }
 0x638   :  { %12149 = vst [vmem:[#allocation33_spill] sm:$0xff] %v10234_v56  ;;  %12151 = vst [vmem:[#allocation5_spill] sm:$0xff] %v10240_v36  ;;  %7087 = vmatmul.mubr.msk.bf16.vlgmr.msra.gmra.mrb[80].mxu0 %vm671_vm0, %v9978_v23  ;;  %7370 = vmatprep.subr.msk.bf16.mxu0 %vm671_vm0, %v3820_v34  ;;  %v3840_v48 = vsel %vm671_vm0, %v3820_v34, 0  ;;  %v3921_v34 = vpop.permute.xlu1 %3920 }
 0x639   :  { %4027 = vrot.lane.b32.xlu0 %v10234_v56, %s8503_s28  ;;  %v10252_v54 = vpop.f32.mrb[60].mxu1  ;;  %7090 = vmatprep.mubr.msk.bf16.mxu0 %vm671_vm0, %v9995_v30 }
 0x63a   :  { %12152 = vst [vmem:[#allocation34_spill] sm:$0xff] %v10252_v54  ;;  %7111 = vmatpush3.bf16.xpose.msra.mxu0 %v3840_v48  ;;  %v10256_v24 = vpop.f32.mrb[61].mxu1 }
 0x63b   :  { %12153 = vst [vmem:[#allocation40_spill] sm:$0xff] %v10256_v24  ;;  %v10258_v60 = vpop.f32.mrb[62].mxu1  ;;  %v3822_v7 = vpop.permute.xlu0 %3821  ;;  %4959 = vrot.lane.b32.xlu1 %v12134_v25, %s8508_s10 }
 0x63c   :  { %12154 = vst [vmem:[#allocation51_spill] sm:$0xff] %v10258_v60  ;;  %v10266_v12 = vpop.f32.mrb[63].mxu1  ;;  %7101 = vmatpush3.bf16.xpose.msra.mxu1 %v3748_v19  ;;  %7371 = vmatprep.subr.msk.bf16.mxu0 %vm671_vm0, %v3822_v7  ;;  %v3843_v25 = vsel %vm671_vm0, %v3822_v7, 0 }
 0x63d   :  { %12155 = vst [vmem:[#allocation41_spill] sm:$0xff] %v10266_v12  ;;  %5044 = vrot.lane.b32.xlu0 %v12135_v44, %s8508_s10  ;;  %7374 = vmatprep.subr.msk.bf16.mxu1 %vm671_vm0, %v3921_v34  ;;  %v3941_v44 = vsel %vm671_vm0, %v3921_v34, 0 }
 0x63f   :  { %5048 = vrot.lane.b32.xlu1 %v12137_v59, %s8508_s10  ;;  %v3923_v59 = vpop.permute.xlu1 %3922 }
 0x640   :  { %7091 = vmatmul.mubr.msk.bf16.gmra.mrb[84].mxu0 %vm671_vm0, %v10013_v32 }
 0x641   :  { %5046 = vrot.lane.b32.xlu0 %v12136_v1, %s8508_s10  ;;  %7118 = vmatprep.mubr.msk.bf16.mxu0 %vm671_vm0, %v10025_v42 }
 0x642   :  { %7113 = vmatpush3.bf16.xpose.msra.mxu0 %v3843_v25 }
 0x643   :  { %7103 = vmatmul.mubr.msk.bf16.vlgmr.msra.gmra.mrb[96].mxu1 %vm671_vm0, %v9930_v51  ;;  %4961 = vrot.lane.b32.xlu1 %v12081_v41, %s8508_s10 }
 0x644   :  { %7106 = vmatprep.mubr.msk.bf16.mxu1 %vm671_vm0, %v9961_v62  ;;  %7127 = vmatpush3.bf16.xpose.msra.mxu1 %v3941_v44 }
 0x645   :  { %5050 = vrot.lane.b32.xlu0 %v9894_v10, %s8508_s10  ;;  %7375 = vmatprep.subr.msk.bf16.mxu1 %vm671_vm0, %v3923_v59  ;;  %v3944_v10 = vsel %vm671_vm0, %v3923_v59, 0 }
 0x647   :  { %5133 = vrot.lane.b32.xlu1 %v9949_v20, %s8508_s10 }
 0x648   :  { %v3925_v27 = vpop.permute.xlu1 %3924 }
 0x649   :  { %v3824_v1 = vpop.permute.xlu0 %3823  ;;  %5224 = vrot.lane.b32.xlu0 %v9930_v51, %s8508_s10 }
 0x64a   :  { %7372 = vmatprep.subr.msk.bf16.mxu0 %vm671_vm0, %v3824_v1  ;;  %v3846_v41 = vsel %vm671_vm0, %v3824_v1, 0 }
 0x64b   :  { %7115 = vmatpush3.bf16.xpose.msra.mxu0 %v3846_v41  ;;  %7107 = vmatmul.mubr.msk.bf16.gmra.mrb[100].mxu1 %vm671_vm0, %v9985_v58 }
 0x64c   :  { %5222 = vrot.lane.b32.xlu1 %v9909_v16, %s8508_s10  ;;  %7129 = vmatpush3.bf16.xpose.msra.mxu1 %v3944_v10  ;;  %v3947_v16 = vsel %vm671_vm0, %v3925_v27, 0 }
 0x64d   :  { %7134 = vmatprep.mubr.msk.bf16.mxu1 %vm671_vm0, %v10001_v50  ;;  %5228 = vrot.lane.b32.xlu0 %v9985_v58, %s8508_s10 }
 0x64e   :  { %7376 = vmatprep.subr.msk.bf16.mxu1 %vm671_vm0, %v3925_v27 }
 0x650   :  { %5135 = vrot.lane.b32.xlu1 %v9978_v23, %s8508_s10 }
 0x651   :  { %5402 = vrot.lane.b32.xlu0 %v10011_v6, %s8508_s10 }
 0x654   :  { %5137 = vrot.lane.b32.xlu1 %v9995_v30, %s8508_s10  ;;  %7131 = vmatpush3.bf16.xpose.msra.mxu1 %v3947_v16 }
 0x655   :  { %5406 = vrot.lane.b32.xlu0 %v10120_v3, %s8508_s10 }
 0x658   :  { %5226 = vrot.lane.b32.xlu1 %v9961_v62, %s8508_s10 }
 0x659   :  { %5491 = vrot.lane.b32.xlu0 %v10172_v39, %s8508_s10 }
 0x65c   :  { %5139 = vrot.lane.b32.xlu1 %v10013_v32, %s8508_s10 }
 0x65d   :  { %5493 = vrot.lane.b32.xlu0 %v10217_v63, %s8508_s10 }
 0x65f   :  { %v10326_v51 = vpop.f32.mrb[64].mxu1 }
 0x660   :  { %12156 = vst [vmem:[#allocation2_spill] sm:$0xff] %v10326_v51  ;;  %5311 = vrot.lane.b32.xlu1 %v10025_v42, %s8508_s10  ;;  %v10330_v20 = vpop.f32.mrb[65].mxu1 }
 0x661   :  { %12157 = vst [vmem:[#allocation9_spill] sm:$0xff] %v10330_v20  ;;  %v10332_v23 = vpop.f32.mrb[66].mxu1 }
 0x662   :  { %12158 = vst [vmem:[#allocation19_spill] sm:$0xff] %v10332_v23  ;;  %v10336_v58 = vpop.f32.mrb[67].mxu1 }
 0x663   :  { %12159 = vst [vmem:[#allocation20_spill] sm:$0xff] %v10336_v58 }
 0x664   :  { %5400 = vrot.lane.b32.xlu1 %v10001_v50, %s8508_s10  ;;  %v10342_v32 = vpop.f32.mrb[56].mxu0 }
 0x665   :  { %12160 = vst [vmem:[#allocation50_spill] sm:$0xff] %v10342_v32  ;;  %v10344_v7 = vpop.f32.mrb[57].mxu0 }
 0x666   :  { %12161 = vst [vmem:[#allocation22_spill] sm:$0xff] %v10344_v7  ;;  %v10346_v42 = vpop.f32.mrb[58].mxu0 }
 0x667   :  { %12162 = vst [vmem:[#allocation38_spill] sm:$0xff] %v10346_v42  ;;  %v10350_v34 = vpop.f32.mrb[59].mxu0 }
 0x668   :  { %12163 = vst [vmem:[#allocation43_spill] sm:$0xff] %v10350_v34  ;;  %5313 = vrot.lane.b32.xlu1 %v10032_v0, %s8508_s10 }
 0x66c   :  { %5315 = vrot.lane.b32.xlu1 %v10074_v29, %s8508_s10 }
 0x670   :  { %5404 = vrot.lane.b32.xlu1 %v10072_v43, %s8508_s10  ;;  %v10360_v50 = vpop.f32.mrb[68].mxu1 }
 0x671   :  { %12164 = vst [vmem:[#allocation3_spill] sm:$0xff] %v10360_v50  ;;  %v10362_v44 = vpop.f32.mrb[69].mxu1 }
 0x672   :  { %12165 = vst [vmem:[#allocation77_spill] sm:$0xff] %v10362_v44  ;;  %v10364_v59 = vpop.f32.mrb[70].mxu1 }
 0x673   :  { %12166 = vst [vmem:[#allocation39_spill] sm:$0xff] %v10364_v59  ;;  %v10368_v41 = vpop.f32.mrb[71].mxu1 }
 0x674   :  { %12167 = vst [vmem:[#allocation26_spill] sm:$0xff] %v10368_v41  ;;  %5317 = vrot.lane.b32.xlu1 %v10129_v13, %s8508_s10 }
 0x676   :  { %v10374_v27 = vpop.f32.mrb[60].mxu0 }
 0x677   :  { %12168 = vst [vmem:[#allocation75_spill] sm:$0xff] %v10374_v27  ;;  %v10376_v16 = vpop.f32.mrb[61].mxu0 }
 0x678   :  { %12169 = vst [vmem:[#allocation76_spill] sm:$0xff] %v10376_v16  ;;  %5489 = vrot.lane.b32.xlu1 %v10153_v57, %s8508_s10  ;;  %v10380_v48 = vpop.f32.mrb[62].mxu0 }
 0x679   :  { %12170 = vst [vmem:[#allocation44_spill] sm:$0xff] %v10380_v48  ;;  %v10384_v1 = vpop.f32.mrb[63].mxu0 }
 0x67a   :  { %12171 = vst [vmem:[#allocation42_spill] sm:$0xff] %v10384_v1 }
 0x67c   :  { %5578 = vrot.lane.b32.xlu1 %v10127_v28, %s8508_s10 }
 0x680   :  { %5580 = vrot.lane.b32.xlu1 %v10151_v52, %s8508_s10 }
 0x681   :  { %v3927_v10 = vpop.permute.xlu1 %3926 }
 0x682   :  { %7377 = vmatprep.subr.msk.bf16.mxu1 %vm671_vm0, %v3927_v10  ;;  %v3950_v31 = vsel %vm671_vm0, %v3927_v10, 0 }
 0x683   :  { %7133 = vmatpush3.bf16.xpose.msra.mxu1 %v3950_v31 }
 0x684   :  { %5582 = vrot.lane.b32.xlu1 %v10170_v55, %s8508_s10 }
 0x689   :  { %v4123_v25 = vpop.permute.xlu1 %4122 }
 0x68a   :  { %v3826_v37 = vpop.permute.xlu0 %3825  ;;  %7135 = vmatmul.mubr.msk.bf16.vlgmr.msra.gmra.mrb[104].mxu1 %vm671_vm0, %v10011_v6  ;;  %7382 = vmatprep.subr.msk.bf16.mxu1 %vm671_vm0, %v4123_v25  ;;  %v4143_v30 = vsel %vm671_vm0, %v4123_v25, 0 }
 0x68b   :  { %7373 = vmatprep.subr.msk.bf16.mxu0 %vm671_vm0, %v3826_v37  ;;  %v3849_v38 = vsel %vm671_vm0, %v3826_v37, 0  ;;  %7138 = vmatprep.mubr.msk.bf16.mxu1 %vm671_vm0, %v10072_v43 }
 0x68c   :  { %7117 = vmatpush3.bf16.xpose.msra.mxu0 %v3849_v38  ;;  %7159 = vmatpush3.bf16.xpose.msra.mxu1 %v4143_v30 }
 0x691   :  { %v4125_v31 = vpop.permute.xlu1 %4124 }
 0x692   :  { %v4022_v10 = vpop.permute.xlu0 %4021  ;;  %7139 = vmatmul.mubr.msk.bf16.gmra.mrb[108].mxu1 %vm671_vm0, %v10120_v3  ;;  %7383 = vmatprep.subr.msk.bf16.mxu1 %vm671_vm0, %v4125_v31  ;;  %v4146_v6 = vsel %vm671_vm0, %v4125_v31, 0 }
 0x693   :  { %7119 = vmatmul.mubr.msk.bf16.vlgmr.msra.gmra.mrb[88].mxu0 %vm671_vm0, %v10032_v0  ;;  %7378 = vmatprep.subr.msk.bf16.mxu0 %vm671_vm0, %v4022_v10  ;;  %v4042_v37 = vsel %vm671_vm0, %v4022_v10, 0 }
 0x694   :  { %7122 = vmatprep.mubr.msk.bf16.mxu0 %vm671_vm0, %v10074_v29  ;;  %7143 = vmatpush3.bf16.xpose.msra.mxu0 %v4042_v37 }
 0x695   :  { %7161 = vmatpush3.bf16.xpose.msra.mxu1 %v4146_v6  ;;  %7166 = vmatprep.mubr.msk.bf16.mxu1 %vm671_vm0, %v10127_v28  ;;  %v10416_v43 = vpop.f32.mrb[64].mxu0 }
 0x696   :  { %12172 = vst [vmem:[#allocation29_spill] sm:$0xff] %v10416_v43  ;;  %v10418_v3 = vpop.f32.mrb[65].mxu0 }
 0x697   :  { %12173 = vst [vmem:[#allocation31_spill] sm:$0xff] %v10418_v3  ;;  %v10420_v38 = vpop.f32.mrb[66].mxu0 }
 0x698   :  { %12174 = vst [vmem:[#allocation24_spill] sm:$0xff] %v10420_v38  ;;  %v10424_v30 = vpop.f32.mrb[67].mxu0 }
 0x699   :  { %12175 = vst [vmem:[#allocation27_spill] sm:$0xff] %v10424_v30  ;;  %v4127_v29 = vpop.permute.xlu1 %4126  ;;  %v10428_v31 = vpop.f32.mrb[72].mxu1 }
 0x69a   :  { %12176 = vst [vmem:[#allocation46_spill] sm:$0xff] %v10428_v31  ;;  %v4024_v10 = vpop.permute.xlu0 %4023  ;;  %v10430_v6 = vpop.f32.mrb[73].mxu1  ;;  %7384 = vmatprep.subr.msk.bf16.mxu1 %vm671_vm0, %v4127_v29  ;;  %v4149_v28 = vsel %vm671_vm0, %v4127_v29, 0 }
 0x69b   :  { %12177 = vst [vmem:[#allocation57_spill] sm:$0xff] %v10430_v6  ;;  %7123 = vmatmul.mubr.msk.bf16.gmra.mrb[92].mxu0 %vm671_vm0, %v10129_v13  ;;  %7379 = vmatprep.subr.msk.bf16.mxu0 %vm671_vm0, %v4024_v10  ;;  %v10437_v37 = vpop.f32.mrb[74].mxu1  ;;  %v4045_v0 = vsel %vm671_vm0, %v4024_v10, 0 }
 0x69c   :  { %12178 = vst [vmem:[#allocation62_spill] sm:$0xff] %v10437_v37  ;;  %7145 = vmatpush3.bf16.xpose.msra.mxu0 %v4045_v0  ;;  %7150 = vmatprep.mubr.msk.bf16.mxu0 %vm671_vm0, %v10153_v57  ;;  %v10444_v19 = vpop.f32.mrb[75].mxu1 }
 0x69d   :  { %12179 = vst [vmem:[#allocation60_spill] sm:$0xff] %v10444_v19  ;;  %7163 = vmatpush3.bf16.xpose.msra.mxu1 %v4149_v28 }
 0x6a1   :  { %v4129_v13 = vpop.permute.xlu1 %4128 }
 0x6a2   :  { %v4026_v62 = vpop.permute.xlu0 %4025  ;;  %7385 = vmatprep.subr.msk.bf16.mxu1 %vm671_vm0, %v4129_v13  ;;  %v4152_v53 = vsel %vm671_vm0, %v4129_v13, 0 }
 0x6a3   :  { %7380 = vmatprep.subr.msk.bf16.mxu0 %vm671_vm0, %v4026_v62  ;;  %v4048_v10 = vsel %vm671_vm0, %v4026_v62, 0 }
 0x6a4   :  { %7147 = vmatpush3.bf16.xpose.msra.mxu0 %v4048_v10 }
 0x6a5   :  { %7165 = vmatpush3.bf16.xpose.msra.mxu1 %v4152_v53  ;;  %v4956_v0 = vpop.permute.xlu1 %4955  ;;  %v10452_v57 = vpop.f32.mrb[76].mxu1 }
 0x6a6   :  { %12180 = vst [vmem:[#allocation45_spill] sm:$0xff] %v10452_v57  ;;  %v10454_v25 = vpop.f32.mrb[77].mxu1 }
 0x6a7   :  { %12181 = vst [vmem:[#allocation21_spill] sm:$0xff] %v10454_v25  ;;  %v10456_v28 = vpop.f32.mrb[78].mxu1 }
 0x6a8   :  { %12182 = vst [vmem:[#allocation52_spill] sm:$0xff] %v10456_v28  ;;  %v10460_v2 = vpop.f32.mrb[79].mxu1 }
 0x6a9   :  { %12183 = vst [vmem:[#allocation47_spill] sm:$0xff] %v10460_v2  ;;  %v4958_v40 = vpop.permute.xlu1 %4957  ;;  %v10464_v26 = vpop.f32.mrb[68].mxu0 }
 0x6aa   :  { %12184 = vst [vmem:[#allocation71_spill] sm:$0xff] %v10464_v26  ;;  %v10466_v53 = vpop.f32.mrb[69].mxu0 }
 0x6ab   :  { %v4028_v62 = vpop.permute.xlu0 %4027  ;;  %12185 = vst [vmem:[#allocation10_spill] sm:$0xff] %v10466_v53  ;;  %v10471_v10 = vpop.f32.mrb[70].mxu0 }
 0x6ac   :  { %7381 = vmatprep.subr.msk.bf16.mxu0 %vm671_vm0, %v4028_v62  ;;  %7167 = vmatmul.mubr.msk.bf16.vlgmr.msra.gmra.mrb[112].mxu1 %vm671_vm0, %v10151_v52  ;;  %12186 = vst [vmem:[#allocation56_spill] sm:$0xff] %v10471_v10  ;;  %v4051_v29 = vsel %vm671_vm0, %v4028_v62, 0  ;;  %v10478_v13 = vpop.f32.mrb[71].mxu0 }
 0x6ad   :  { %7149 = vmatpush3.bf16.xpose.msra.mxu0 %v4051_v29  ;;  %7170 = vmatprep.mubr.msk.bf16.mxu1 %vm671_vm0, %v10170_v55  ;;  %12187 = vst [vmem:[#allocation67_spill] sm:$0xff] %v10478_v13  ;;  %v4960_v22 = vpop.permute.xlu1 %4959 }
 0x6ae   :  { %7174 = vmatprep.subr.bf16.mxu0 %v4956_v0 }
 0x6af   :  { %v5045_v8 = vpop.permute.xlu0 %5044 }
 0x6b0   :  { %7190 = vmatprep.subr.bf16.mxu1 %v5045_v8 }
 0x6b1   :  { %7191 = vmatpush3.bf16.msra.mxu1 %v5045_v8  ;;  %v5049_v52 = vpop.permute.xlu1 %5048 }
 0x6b2   :  { %v10482_v35 = vpop.f32.mrb[80].mxu1 }
 0x6b3   :  { %12188 = vst [vmem:[#allocation23_spill] sm:$0xff] %v10482_v35  ;;  %v5047_v62 = vpop.permute.xlu0 %5046  ;;  %v10484_v49 = vpop.f32.mrb[81].mxu1 }
 0x6b4   :  { %12189 = vst [vmem:[#allocation66_spill] sm:$0xff] %v10484_v49  ;;  %7151 = vmatmul.mubr.msk.bf16.vlgmr.msra.gmra.mrb[96].mxu0 %vm671_vm0, %v10172_v39  ;;  %7171 = vmatmul.mubr.msk.bf16.gmra.mrb[116].mxu1 %vm671_vm0, %v10212_v18  ;;  %v10490_v55 = vpop.f32.mrb[82].mxu1 }
 0x6b5   :  { %12190 = vst [vmem:[#allocation58_spill] sm:$0xff] %v10490_v55  ;;  %7192 = vmatprep.subr.bf16.mxu1 %v5047_v62  ;;  %7154 = vmatprep.mubr.msk.bf16.mxu0 %vm671_vm0, %v10217_v63  ;;  %v10496_v8 = vpop.f32.mrb[83].mxu1  ;;  %v4962_v33 = vpop.permute.xlu1 %4961 }
 0x6b6   :  { %12191 = vst [vmem:[#allocation11_spill] sm:$0xff] %v10496_v8  ;;  %7175 = vmatpush3.bf16.msra.mxu0 %v4956_v0  ;;  %7193 = vmatpush3.bf16.msra.mxu1 %v5047_v62 }
 0x6b7   :  { %7176 = vmatprep.subr.bf16.mxu0 %v4958_v40  ;;  %7194 = vmatprep.subr.bf16.mxu1 %v5049_v52  ;;  %v5051_v53 = vpop.permute.xlu0 %5050 }
 0x6b9   :  { %v10500_v15 = vpop.permute.xlu1 %5133 }
 0x6ba   :  { %12192 = vst [vmem:[#allocation65_spill] sm:$0xff] %v10500_v15  ;;  %7177 = vmatpush3.bf16.msra.mxu0 %v4958_v40  ;;  %7195 = vmatpush3.bf16.msra.mxu1 %v5049_v52 }
 0x6bb   :  { %7178 = vmatprep.subr.bf16.mxu0 %v4960_v22  ;;  %7196 = vmatprep.subr.bf16.mxu1 %v5051_v53 }
 0x6bc   :  { %7155 = vmatmul.mubr.msk.bf16.gmra.mrb[100].mxu0 %vm671_vm0, %v10234_v56 }
 0x6be   :  { %v10504_v63 = vpop.permute.xlu1 %5222  ;;  %7179 = vmatpush3.bf16.msra.mxu0 %v4960_v22  ;;  %7197 = vmatpush3.bf16.msra.mxu1 %v5051_v53 }
 0x6bf   :  { %12193 = vst [vmem:[#allocation54_spill] sm:$0xff] %v10504_v63  ;;  %7180 = vmatprep.subr.bf16.mxu0 %v4962_v33  ;;  %7222 = vmatprep.subr.bf16.mxu1 %v10504_v63 }
 0x6c2   :  { %7181 = vmatpush3.bf16.msra.mxu0 %v4962_v33 }
 0x6c3   :  { %7206 = vmatprep.subr.bf16.mxu0 %v10500_v15 }
 0x6ea   :  { %v10508_v0 = vpop.f32.mrb[72].mxu0 }
 0x6eb   :  { %v10510_v62 = vpop.f32.mrb[73].mxu0  ;;  %v4225_v40 = vsel %vm1468_vm1, %v10508_v0, -inf }
 0x6ec   :  { %v10514_v52 = vpop.f32.mrb[74].mxu0  ;;  %4226 = vmax.xlane.f32.xlu0 %v4225_v40  ;;  %v4219_v29 = vsel %vm1468_vm1, %v10510_v62, -inf }
 0x6ed   :  { %v10516_v39 = vpop.f32.mrb[75].mxu0  ;;  %v4228_v44 = vsel %vm1468_vm1, %v10514_v52, -inf }
 0x6ee   :  { %v10518_v22 = vpop.f32.mrb[84].mxu1  ;;  %v4222_v53 = vsel %vm1468_vm1, %v10516_v39, -inf }
 0x6ef   :  { %12194 = vst [vmem:[#allocation6_spill] sm:$0xff] %v10518_v22  ;;  %v10522_v33 = vpop.f32.mrb[85].mxu1  ;;  %4223 = vmax.xlane.f32.xlu1 %v4222_v53 }
 0x6f0   :  { %12195 = vst [vmem:[#allocation70_spill] sm:$0xff] %v10522_v33  ;;  %v10526_v13 = vpop.f32.mrb[86].mxu1  ;;  %4220 = vmax.xlane.f32.xlu0 %v4219_v29 }
 0x6f1   :  { %12196 = vst [vmem:[#allocation32_spill] sm:$0xff] %v10526_v13  ;;  %v10530_v40 = vpop.f32.mrb[87].mxu1 }
 0x6f2   :  { %12197 = vst [vmem:[#allocation63_spill] sm:$0xff] %v10530_v40  ;;  %v10534_v16 = vpop.f32.mrb[76].mxu0 }
 0x6f3   :  { %v10536_v1 = vpop.f32.mrb[77].mxu0  ;;  %v4237_v53 = vsel %vm1468_vm1, %v10534_v16, -inf }
 0x6f4   :  { %v10542_v41 = vpop.f32.mrb[78].mxu0  ;;  %4238 = vmax.xlane.f32.xlu1 %v4237_v53  ;;  %4229 = vmax.xlane.f32.xlu0 %v4228_v44  ;;  %v4231_v2 = vsel %vm1468_vm1, %v10536_v1, -inf }
 0x6f5   :  { %v10544_v29 = vpop.f32.mrb[79].mxu0  ;;  %v4240_v33 = vsel %vm1468_vm1, %v10542_v41, -inf }
 0x6f6   :  { %v10546_v25 = vpop.f32.mrb[88].mxu1  ;;  %v4234_v53 = vsel %vm1468_vm1, %v10544_v29, -inf }
 0x6f7   :  { %v10548_v61 = vpop.f32.mrb[89].mxu1  ;;  %v4249_v44 = vsel %vm1468_vm1, %v10546_v25, -inf }
 0x6f8   :  { %v10554_v40 = vpop.f32.mrb[90].mxu1  ;;  %4232 = vmax.xlane.f32.xlu1 %v4231_v2  ;;  %4241 = vmax.xlane.f32.xlu0 %v4240_v33 }
 0x6f9   :  { %v10556_v36 = vpop.f32.mrb[91].mxu1  ;;  %v4252_v22 = vsel %vm1468_vm1, %v10554_v40, -inf }
 0x6fa   :  { %v4246_v10 = vsel %vm1468_vm1, %v10556_v36, -inf }
 0x6fc   :  { %4250 = vmax.xlane.f32.xlu1 %v4249_v44  ;;  %4235 = vmax.xlane.f32.xlu0 %v4234_v53 }
 0x6fe   :  { %v10562_v24 = vpop.f32.mrb[92].mxu1 }
 0x6ff   :  { %v10564_v12 = vpop.f32.mrb[93].mxu1 }
 0x700   :  { %v10568_v13 = vpop.f32.mrb[94].mxu1  ;;  %4253 = vmax.xlane.f32.xlu0 %v4252_v22  ;;  %v4243_v22 = vsel %vm1468_vm1, %v10548_v61, -inf }
 0x701   :  { %v10570_v2 = vpop.f32.mrb[95].mxu1 }
 0x70b   :  { %v10572_v33 = vpop.f32.mrb[80].mxu0 }
 0x70c   :  { %v10574_v49 = vpop.f32.mrb[81].mxu0  ;;  %v4273_v44 = vsel %vm1468_vm1, %v10572_v33, -inf }
 0x70d   :  { %v10578_v53 = vpop.f32.mrb[82].mxu0  ;;  %4274 = vmax.xlane.f32.xlu1 %v4273_v44  ;;  %v4267_v44 = vsel %vm1468_vm1, %v10574_v49, -inf }
 0x70e   :  { %v10580_v8 = vpop.f32.mrb[83].mxu0  ;;  %v4276_v26 = vsel %vm1468_vm1, %v10578_v53, -inf }
 0x70f   :  { %4277 = vmax.xlane.f32.xlu0 %v4276_v26 }
 0x711   :  { %4244 = vmax.xlane.f32.xlu1 %v4243_v22  ;;  %v4270_v22 = vsel %vm1468_vm1, %v10580_v8, -inf }
 0x713   :  { %v10588_v3 = vpop.f32.mrb[84].mxu0  ;;  %4247 = vmax.xlane.f32.xlu0 %v4246_v10  ;;  %v4261_v10 = vsel %vm1468_vm1, %v10562_v24, -inf }
 0x714   :  { %v10590_v30 = vpop.f32.mrb[85].mxu0  ;;  %v4285_v48 = vsel %vm1468_vm1, %v10588_v3, -inf }
 0x715   :  { %v10594_v57 = vpop.f32.mrb[86].mxu0  ;;  %4268 = vmax.xlane.f32.xlu1 %v4267_v44  ;;  %v4264_v44 = vsel %vm1468_vm1, %v10568_v13, -inf }
 0x716   :  { %v10596_v28 = vpop.f32.mrb[87].mxu0  ;;  %v10598_v26 = vpop.f32.mrb[96].mxu1 }
 0x717   :  { %v10602_v6 = vpop.f32.mrb[97].mxu1  ;;  %4271 = vmax.xlane.f32.xlu0 %v4270_v22  ;;  %v4288_v22 = vsel %vm1468_vm1, %v10594_v57, -inf  ;;  %v4282_v20 = vsel %vm1468_vm1, %v10596_v28, -inf }
 0x718   :  { %v10604_v19 = vpop.f32.mrb[98].mxu1  ;;  %v4291_v32 = vsel %vm1468_vm1, %v10602_v6, -inf }
 0x719   :  { %v10608_v27 = vpop.f32.mrb[99].mxu1  ;;  %4262 = vmax.xlane.f32.xlu1 %v4261_v10  ;;  %v4255_v10 = vsel %vm1468_vm1, %v10564_v12, -inf  ;;  %v4300_v58 = vsel %vm1468_vm1, %v10604_v19, -inf }
 0x71b   :  { %4265 = vmax.xlane.f32.xlu0 %v4264_v44  ;;  %v4258_v44 = vsel %vm1468_vm1, %v10570_v2, -inf }
 0x71d   :  { %4286 = vmax.xlane.f32.xlu1 %v4285_v48  ;;  %v4279_v48 = vsel %vm1468_vm1, %v10590_v30, -inf }
 0x71e   :  { %v10614_v7 = vpop.f32.mrb[100].mxu1 }
 0x71f   :  { %v10618_v34 = vpop.f32.mrb[101].mxu1  ;;  %4289 = vmax.xlane.f32.xlu0 %v4288_v22  ;;  %v4297_v22 = vsel %vm1468_vm1, %v10598_v26, -inf }
 0x720   :  { %12198 = vst [vmem:[#allocation59_spill] sm:$0xff] %v10618_v34  ;;  %v10620_v50 = vpop.f32.mrb[102].mxu1 }
 0x721   :  { %12199 = vst [vmem:[#allocation53_spill] sm:$0xff] %v10620_v50  ;;  %v10624_v59 = vpop.f32.mrb[103].mxu1  ;;  %4256 = vmax.xlane.f32.xlu1 %v4255_v10  ;;  %v10636_v10 = vpop.permute.xlu1 %5135 }
 0x722   :  { %12200 = vst [vmem:[#allocation55_spill] sm:$0xff] %v10624_v59  ;;  %12201 = vst [vmem:[#allocation4_spill] sm:$0xff] %v10636_v10 }
 0x723   :  { %4259 = vmax.xlane.f32.xlu0 %v4258_v44 }
 0x725   :  { %4280 = vmax.xlane.f32.xlu1 %v4279_v48  ;;  %v10638_v14 = vpop.permute.xlu1 %5137 }
 0x726   :  { %12202 = vst [vmem:[#allocation8_spill] sm:$0xff] %v10638_v14 }
 0x727   :  { %4283 = vmax.xlane.f32.xlu0 %v4282_v20  ;;  %v10648_v20 = vpop.permute.xlu0 %5224 }
 0x728   :  { %12207 = vst [vmem:[#allocation79_spill] sm:$0xff] %v10648_v20 }
 0x729   :  { %4298 = vmax.xlane.f32.xlu1 %v4297_v22  ;;  %v10640_v44 = vpop.permute.xlu1 %5226 }
 0x72a   :  { %12203 = vst [vmem:[#allocation15_spill] sm:$0xff] %v10640_v44 }
 0x72b   :  { %4301 = vmax.xlane.f32.xlu0 %v4300_v58  ;;  %v10652_v22 = vpop.permute.xlu0 %5228 }
 0x72c   :  { %12209 = vst [vmem:[#allocation81_spill] sm:$0xff] %v10652_v22 }
 0x72d   :  { %v10642_v5 = vpop.permute.xlu1 %5139 }
 0x72e   :  { %12204 = vst [vmem:[#allocation14_spill] sm:$0xff] %v10642_v5 }
 0x72f   :  { %v10664_v35 = vpop.permute.xlu0 %5402 }
 0x730   :  { %12215 = vst [vmem:[#allocation87_spill] sm:$0xff] %v10664_v35 }
 0x731   :  { %v10644_v48 = vpop.permute.xlu1 %5311 }
 0x732   :  { %12205 = vst [vmem:[#allocation16_spill] sm:$0xff] %v10644_v48 }
 0x733   :  { %v10684_v35 = vpop.permute.xlu0 %5406 }
 0x734   :  { %12221 = vst [vmem:[#allocation93_spill] sm:$0xff] %v10684_v35 }
 0x735   :  { %v10646_v45 = vpop.permute.xlu1 %5400 }
 0x736   :  { %12206 = vst [vmem:[#allocation78_spill] sm:$0xff] %v10646_v45 }
 0x737   :  { %v10698_v20 = vpop.permute.xlu0 %5491 }
 0x738   :  { %12224 = vst [vmem:[#allocation96_spill] sm:$0xff] %v10698_v20  ;;  %v4312_v20 = vsel %vm1468_vm1, %v10620_v50, -inf }
 0x739   :  { %v10650_v17 = vpop.permute.xlu1 %5313 }
 0x73a   :  { %12208 = vst [vmem:[#allocation80_spill] sm:$0xff] %v10650_v17 }
 0x73b   :  { %v10716_v63 = vpop.permute.xlu0 %5493 }
 0x73c   :  { %12229 = vst [vmem:[#allocation101_spill] sm:$0xff] %v10716_v63 }
 0x73d   :  { %v10656_v58 = vpop.permute.xlu1 %5315 }
 0x73e   :  { %12211 = vst [vmem:[#allocation83_spill] sm:$0xff] %v10656_v58 }
 0x741   :  { %v10666_v55 = vpop.permute.xlu1 %5404 }
 0x742   :  { %12216 = vst [vmem:[#allocation88_spill] sm:$0xff] %v10666_v55 }
 0x745   :  { %v10690_v44 = vpop.permute.xlu1 %5317 }
 0x746   :  { %12222 = vst [vmem:[#allocation94_spill] sm:$0xff] %v10690_v44 }
 0x749   :  { %v10704_v23 = vpop.permute.xlu1 %5489 }
 0x74a   :  { %12226 = vst [vmem:[#allocation98_spill] sm:$0xff] %v10704_v23 }
 0x74d   :  { %v10718_v21 = vpop.permute.xlu1 %5578 }
 0x74e   :  { %12230 = vst [vmem:[#allocation102_spill] sm:$0xff] %v10718_v21  ;;  %v4306_v21 = vsel %vm1468_vm1, %v10624_v59, -inf }
 0x751   :  { %v10728_v9 = vpop.permute.xlu1 %5580 }
 0x752   :  { %12231 = vst [vmem:[#allocation103_spill] sm:$0xff] %v10728_v9 }
 0x75d   :  { %v10654_v54 = vpop.f32.mrb[104].mxu1 }
 0x75e   :  { %12210 = vst [vmem:[#allocation82_spill] sm:$0xff] %v10654_v54  ;;  %v10658_v60 = vpop.f32.mrb[105].mxu1 }
 0x75f   :  { %12212 = vst [vmem:[#allocation84_spill] sm:$0xff] %v10658_v60  ;;  %v10660_v11 = vpop.f32.mrb[106].mxu1 }
 0x760   :  { %12213 = vst [vmem:[#allocation85_spill] sm:$0xff] %v10660_v11  ;;  %v10662_v47 = vpop.f32.mrb[107].mxu1  ;;  %v4348_v46 = vsel %vm1468_vm1, %v10660_v11, -inf }
 0x761   :  { %12214 = vst [vmem:[#allocation86_spill] sm:$0xff] %v10662_v47 }
 0x765   :  { %v10668_v56 = vpop.f32.mrb[108].mxu1 }
 0x766   :  { %12217 = vst [vmem:[#allocation89_spill] sm:$0xff] %v10668_v56  ;;  %v10670_v45 = vpop.f32.mrb[88].mxu0  ;;  %v10672_v43 = vpop.f32.mrb[109].mxu1 }
 0x767   :  { %12218 = vst [vmem:[#allocation90_spill] sm:$0xff] %v10672_v43  ;;  %v10674_v38 = vpop.f32.mrb[89].mxu0  ;;  %v10676_v22 = vpop.f32.mrb[110].mxu1  ;;  %v4321_v58 = vsel %vm1468_vm1, %v10670_v45, -inf }
 0x768   :  { %12219 = vst [vmem:[#allocation91_spill] sm:$0xff] %v10676_v22  ;;  %4322 = vmax.xlane.f32.xlu1 %v4321_v58  ;;  %v10680_v31 = vpop.f32.mrb[90].mxu0  ;;  %v10682_v37 = vpop.f32.mrb[111].mxu1  ;;  %v4294_v58 = vsel %vm1468_vm1, %v10608_v27, -inf  ;;  %v4315_v51 = vsel %vm1468_vm1, %v10674_v38, -inf }
 0x769   :  { %12220 = vst [vmem:[#allocation92_spill] sm:$0xff] %v10682_v37  ;;  %v10686_v55 = vpop.f32.mrb[91].mxu0  ;;  %v4324_v17 = vsel %vm1468_vm1, %v10680_v31, -inf }
 0x76a   :  { %4325 = vmax.xlane.f32.xlu0 %v4324_v17 }
 0x76c   :  { %4292 = vmax.xlane.f32.xlu1 %v4291_v32  ;;  %v4318_v32 = vsel %vm1468_vm1, %v10686_v55, -inf }
 0x76e   :  { %4295 = vmax.xlane.f32.xlu0 %v4294_v58  ;;  %v10696_v42 = vpop.f32.mrb[92].mxu0  ;;  %v4309_v58 = vsel %vm1468_vm1, %v10614_v7, -inf }
 0x76f   :  { %12223 = vst [vmem:[#allocation95_spill] sm:$0xff] %v10696_v42  ;;  %v10700_v35 = vpop.f32.mrb[93].mxu0 }
 0x770   :  { %12225 = vst [vmem:[#allocation97_spill] sm:$0xff] %v10700_v35  ;;  %4316 = vmax.xlane.f32.xlu1 %v4315_v51  ;;  %v10706_v17 = vpop.f32.mrb[94].mxu0  ;;  %v4333_v51 = vsel %vm1468_vm1, %v10696_v42, -inf }
 0x771   :  { %12227 = vst [vmem:[#allocation99_spill] sm:$0xff] %v10706_v17  ;;  %v10708_v44 = vpop.f32.mrb[95].mxu0  ;;  %v4336_v23 = vsel %vm1468_vm1, %v10706_v17, -inf  ;;  %v4339_v17 = vsel %vm1468_vm1, %v10658_v60, -inf }
 0x772   :  { %12228 = vst [vmem:[#allocation100_spill] sm:$0xff] %v10708_v44  ;;  %4319 = vmax.xlane.f32.xlu0 %v4318_v32  ;;  %v4330_v9 = vsel %vm1468_vm1, %v10708_v44, -inf }
 0x774   :  { %4310 = vmax.xlane.f32.xlu1 %v4309_v58  ;;  %v4303_v58 = vsel %vm1468_vm1, %v10618_v34, -inf  ;;  %v4360_v34 = vsel %vm1468_vm1, %v10676_v22, -inf }
 0x776   :  { %4313 = vmax.xlane.f32.xlu0 %v4312_v20 }
 0x778   :  { %4334 = vmax.xlane.f32.xlu1 %v4333_v51  ;;  %v4327_v51 = vsel %vm1468_vm1, %v10700_v35, -inf }
 0x779   :  { %v10724_v32 = vpop.xlane.xlu0 %4226 }
 0x77a   :  { %4337 = vmax.xlane.f32.xlu0 %v4336_v23  ;;  %v4413_v22 = vsub.f32 %v10508_v0, %v10724_v32 }
 0x77c   :  { %4304 = vmax.xlane.f32.xlu1 %v4303_v58  ;;  %v10744_v58 = vpop.permute.xlu1 %5582 }
 0x77d   :  { %v10736_v63 = vpop.xlane.xlu0 %4220  ;;  %12232 = vst [vmem:[#allocation104_spill] sm:$0xff] %v10744_v58 }
 0x77e   :  { %4307 = vmax.xlane.f32.xlu0 %v4306_v21  ;;  %v4345_v21 = vsel %vm1468_vm1, %v10654_v54, -inf }
 0x77f   :  { %v10732_v20 = vpop.f32.mrb[112].mxu1 }
 0x780   :  { %v10738_v23 = vpop.f32.mrb[113].mxu1  ;;  %4328 = vmax.xlane.f32.xlu1 %v4327_v51  ;;  %v10752_v5 = vpop.xlane.xlu1 %4223  ;;  %v4393_v0 = vsel %vm1468_vm1, %v10732_v20, -inf }
 0x781   :  { %v10740_v48 = vpop.f32.mrb[114].mxu1  ;;  %v4230_v51 = vpop.xlane.xlu0 %4229  ;;  %v4412_v32 = vsub.f32 %v10516_v39, %v10752_v5 }
 0x782   :  { %v10746_v4 = vpop.f32.mrb[115].mxu1  ;;  %4331 = vmax.xlane.f32.xlu0 %v4330_v9 }
 0x783   :  { %v4390_v39 = vsel %vm1468_vm1, %v10746_v4, -inf }
 0x784   :  { %4346 = vmax.xlane.f32.xlu1 %v4345_v21  ;;  %v4239_v54 = vpop.xlane.xlu1 %4238 }
 0x785   :  { %v4242_v44 = vpop.xlane.xlu0 %4241 }
 0x786   :  { %4349 = vmax.xlane.f32.xlu0 %v4348_v46 }
 0x787   :  { %v10754_v18 = vpop.f32.mrb[116].mxu1  ;;  %v10756_v14 = vpop.f32.mrb[96].mxu0 }
 0x788   :  { %12233 = vst [vmem:[#allocation105_spill] sm:$0xff] %v10756_v14  ;;  %v10758_v10 = vpop.f32.mrb[97].mxu0  ;;  %v10760_v58 = vpop.f32.mrb[117].mxu1  ;;  %v4369_v9 = vsel %vm1468_vm1, %v10756_v14, -inf  ;;  %v4342_v14 = vsel %vm1468_vm1, %v10662_v47, -inf }
 0x789   :  { %12234 = vst [vmem:[#allocation106_spill] sm:$0xff] %v10758_v10  ;;  %v10764_v15 = vpop.f32.mrb[118].mxu1  ;;  %4370 = vmax.xlane.f32.xlu1 %v4369_v9  ;;  %v10766_v21 = vpop.f32.mrb[98].mxu0  ;;  %v4363_v35 = vsel %vm1468_vm1, %v10758_v10, -inf }
 0x78a   :  { %12235 = vst [vmem:[#allocation107_spill] sm:$0xff] %v10766_v21  ;;  %v10768_v11 = vpop.f32.mrb[99].mxu0  ;;  %v10770_v59 = vpop.f32.mrb[119].mxu1  ;;  %v4372_v46 = vsel %vm1468_vm1, %v10766_v21, -inf }
 0x78b   :  { %4373 = vmax.xlane.f32.xlu0 %v4372_v46  ;;  %v4233_v60 = vpop.xlane.xlu1 %4232  ;;  %v4236_v47 = vpop.xlane.xlu0 %4235 }
 0x78d   :  { %4340 = vmax.xlane.f32.xlu1 %v4339_v17  ;;  %v4366_v17 = vsel %vm1468_vm1, %v10768_v11, -inf }
 0x78f   :  { %4343 = vmax.xlane.f32.xlu0 %v4342_v14  ;;  %v10778_v9 = vpop.f32.mrb[100].mxu0  ;;  %v4357_v14 = vsel %vm1468_vm1, %v10668_v56, -inf  ;;  %v4251_v10 = vpop.xlane.xlu1 %4250  ;;  %v4351_v56 = vsel %vm1468_vm1, %v10672_v43, -inf  ;;  %v4411_v43 = vsub.f32 %v10510_v62, %v10736_v63  ;;  %v4417_v63 = vsub.f32 %v10534_v16, %v4239_v54 }
 0x790   :  { %12236 = vst [vmem:[#allocation108_spill] sm:$0xff] %v10778_v9  ;;  %v10780_v50 = vpop.f32.mrb[101].mxu0  ;;  %v4387_v62 = vsel %vm1468_vm1, %v10738_v23, -inf  ;;  %v4405_v16 = vsel %vm1468_vm1, %v10754_v18, -inf }
 0x791   :  { %4364 = vmax.xlane.f32.xlu1 %v4363_v35  ;;  %v10784_v21 = vpop.f32.mrb[102].mxu0  ;;  %v4381_v35 = vsel %vm1468_vm1, %v10778_v9, -inf  ;;  %v4479_v9 = vmul.f32 1.442695, %v4413_v22  ;;  %v4475_v22 = vmul.f32 1.442695, %v4411_v43  ;;  %v4415_v43 = vsub.f32 %v10536_v1, %v4233_v60 }
 0x792   :  { %12237 = vst [vmem:[#allocation109_spill] sm:$0xff] %v10784_v21  ;;  %v10786_v46 = vpop.f32.mrb[103].mxu0  ;;  %v4384_v42 = vsel %vm1468_vm1, %v10784_v21, -inf  ;;  %v4414_v21 = vsub.f32 %v10514_v52, %v4230_v51  ;;  %v4396_v51 = vsel %vm1468_vm1, %v10740_v48, -inf  ;;  %v4399_v1 = vsel %vm1468_vm1, %v10760_v58, -inf }
 0x793   :  { %4367 = vmax.xlane.f32.xlu0 %v4366_v17  ;;  %v10798_v17 = vpop.xlane.xlu0 %4253  ;;  %8244 = vpow2.f32 %v4479_v9 }
 0x795   :  { %4358 = vmax.xlane.f32.xlu1 %v4357_v14 }
 0x797   :  { %4361 = vmax.xlane.f32.xlu0 %v4360_v34  ;;  %v4354_v34 = vsel %vm1468_vm1, %v10682_v37, -inf }
 0x799   :  { %4382 = vmax.xlane.f32.xlu1 %v4381_v35 }
 0x79a   :  { %v10802_v14 = vpop.xlane.xlu1 %4274 }
 0x79b   :  { %4385 = vmax.xlane.f32.xlu0 %v4384_v42  ;;  %v4375_v42 = vsel %vm1468_vm1, %v10780_v50, -inf }
 0x79c   :  { %v10808_v35 = vpop.xlane.xlu0 %4277 }
 0x79d   :  { %4352 = vmax.xlane.f32.xlu1 %v4351_v56  ;;  %v4378_v56 = vsel %vm1468_vm1, %v10786_v46, -inf }
 0x79e   :  { %v10817_v37 = vpop.xlane.xlu1 %4244 }
 0x79f   :  { %4355 = vmax.xlane.f32.xlu0 %v4354_v34  ;;  %v4481_v34 = vmul.f32 1.442695, %v4414_v21  ;;  %v4487_v21 = vmul.f32 1.442695, %v4417_v63  ;;  %v4429_v63 = vsub.f32 %v10572_v33, %v10802_v14  ;;  %v4419_v14 = vsub.f32 %v10548_v61, %v10817_v37 }
 0x7a0   :  { %v10823_v52 = vpop.xlane.xlu0 %4247 }
 0x7a1   :  { %4376 = vmax.xlane.f32.xlu1 %v4375_v42  ;;  %v4477_v42 = vmul.f32 1.442695, %v4412_v32  ;;  %8246 = vpow2.f32 %v4481_v34  ;;  %v4421_v32 = vsub.f32 %v10546_v25, %v4251_v10  ;;  %v10848_v34 = vpop.eup %8244  ;;  %v4511_v33 = vmul.f32 1.442695, %v4429_v63 }
 0x7a2   :  { %v10831_v5 = vpop.xlane.xlu1 %4268  ;;  %8248 = vpow2.f32 %v4475_v22  ;;  %v4402_v22 = vsel %vm1468_vm1, %v10770_v59, -inf  ;;  %v4491_v61 = vmul.f32 1.442695, %v4419_v14 }
 0x7a3   :  { %4379 = vmax.xlane.f32.xlu0 %v4378_v56  ;;  %v4418_v56 = vsub.f32 %v10542_v41, %v4242_v44  ;;  %8250 = vpow2.f32 %v4477_v42  ;;  %v4416_v41 = vsub.f32 %v10544_v29, %v4236_v47  ;;  %v4408_v44 = vsel %vm1468_vm1, %v10764_v15, -inf }
 0x7a4   :  { %v10836_v54 = vpop.xlane.xlu0 %4271  ;;  %8252 = vpow2.f32 %v4487_v21  ;;  %v4422_v47 = vsub.f32 %v10554_v40, %v10798_v17  ;;  %v4495_v10 = vmul.f32 1.442695, %v4421_v32  ;;  %v4430_v17 = vsub.f32 %v10578_v53, %v10808_v35 }
 0x7a5   :  { %4394 = vmax.xlane.f32.xlu1 %v4393_v0  ;;  %v4489_v9 = vmul.f32 1.442695, %v4418_v56  ;;  %v4483_v0 = vmul.f32 1.442695, %v4415_v43  ;;  %v4420_v35 = vsub.f32 %v10556_v36, %v10823_v52  ;;  %v4427_v37 = vsub.f32 %v10574_v49, %v10831_v5 }
 0x7a6   :  { %v10844_v60 = vpop.xlane.xlu1 %4262  ;;  %v4497_v40 = vmul.f32 1.442695, %v4422_v47  ;;  %v4513_v53 = vmul.f32 1.442695, %v4430_v17  ;;  %v4428_v52 = vsub.f32 %v10580_v8, %v10836_v54 }
 0x7a7   :  { %4397 = vmax.xlane.f32.xlu0 %v4396_v51  ;;  %8254 = vpow2.f32 %v4489_v9  ;;  %v4485_v51 = vmul.f32 1.442695, %v4416_v41  ;;  %v4493_v36 = vmul.f32 1.442695, %v4420_v35  ;;  %v4507_v49 = vmul.f32 1.442695, %v4427_v37 }
 0x7a8   :  { %v10852_v29 = vpop.xlane.xlu0 %4265  ;;  %8256 = vpow2.f32 %v4483_v0  ;;  %v4425_v5 = vsub.f32 %v10562_v24, %v10844_v60  ;;  %v4509_v8 = vmul.f32 1.442695, %v4428_v52 }
 0x7a9   :  { %4388 = vmax.xlane.f32.xlu1 %v4387_v62  ;;  %v4609_v62 = vsel %vm1468_vm1, %v10848_v34, 0.0  ;;  %8258 = vpow2.f32 %v4485_v51 }
 0x7aa   :  { %v4287_v56 = vpop.xlane.xlu1 %4286  ;;  %8260 = vpow2.f32 %v4495_v10 }
 0x7ab   :  { %4391 = vmax.xlane.f32.xlu0 %v4390_v39  ;;  %v10856_v25 = vpop.eup %8246  ;;  %8262 = vpow2.f32 %v4497_v40  ;;  %v4433_v54 = vsub.f32 %v10588_v3, %v4287_v56 }
 0x7ac   :  { %v10862_v42 = vpop.eup %8248  ;;  %v4612_v39 = vsel %vm1468_vm1, %v10856_v25, 0.0  ;;  %v10872_v43 = vpop.xlane.xlu0 %4289  ;;  %8264 = vpow2.f32 %v4511_v33 }
 0x7ad   :  { %4406 = vmax.xlane.f32.xlu1 %v4405_v16  ;;  %v10868_v21 = vpop.eup %8250  ;;  %v4603_v16 = vsel %vm1468_vm1, %v10862_v42, 0.0  ;;  %8266 = vpow2.f32 %v4513_v53  ;;  %v4519_v3 = vmul.f32 1.442695, %v4433_v54 }
 0x7ae   :  { %v10876_v9 = vpop.eup %8252  ;;  %v4606_v41 = vsel %vm1468_vm1, %v10868_v21, 0.0  ;;  %v4257_v0 = vpop.xlane.xlu1 %4256  ;;  %8268 = vpow2.f32 %v4491_v61 }
 0x7af   :  { %4409 = vmax.xlane.f32.xlu0 %v4408_v44  ;;  %v4621_v32 = vsel %vm1468_vm1, %v10876_v9, 0.0  ;;  %8270 = vpow2.f32 %v4493_v36  ;;  %v4423_v24 = vsub.f32 %v10564_v12, %v4257_v0 }
 0x7b0   :  { %v10892_v51 = vpop.xlane.xlu0 %4259  ;;  %8272 = vpow2.f32 %v4507_v49 }
 0x7b1   :  { %4400 = vmax.xlane.f32.xlu1 %v4399_v1  ;;  %v10882_v44 = vpop.eup %8254  ;;  %8274 = vpow2.f32 %v4509_v8  ;;  %v4499_v35 = vmul.f32 1.442695, %v4423_v24 }
 0x7b2   :  { %v10888_v1 = vpop.eup %8256  ;;  %v4624_v47 = vsel %vm1468_vm1, %v10882_v44, 0.0 }
 0x7b3   :  { %4403 = vmax.xlane.f32.xlu0 %v4402_v22  ;;  %v10896_v22 = vpop.eup %8258  ;;  %v4615_v10 = vsel %vm1468_vm1, %v10888_v1, 0.0 }
 0x7b4   :  { %v10902_v63 = vpop.eup %8260  ;;  %v4618_v40 = vsel %vm1468_vm1, %v10896_v22, 0.0  ;;  %v4284_v60 = vpop.xlane.xlu0 %4283 }
 0x7b5   :  { %4610 = vadd.xlane.f32.xlu1 %v4609_v62  ;;  %v4281_v62 = vpop.xlane.xlu1 %4280  ;;  %v10907_v17 = vpop.eup %8262  ;;  %v4633_v33 = vsel %vm1468_vm1, %v10902_v63, 0.0  ;;  %v4432_v12 = vsub.f32 %v10596_v28, %v4284_v60 }
 0x7b6   :  { %v10912_v14 = vpop.eup %8264  ;;  %v4431_v56 = vsub.f32 %v10590_v30, %v4281_v62  ;;  %v4426_v30 = vsub.f32 %v10568_v13, %v10852_v29  ;;  %v4434_v13 = vsub.f32 %v10594_v57, %v10872_v43  ;;  %v4424_v57 = vsub.f32 %v10570_v2, %v10892_v51 }
 0x7b7   :  { %4613 = vadd.xlane.f32.xlu0 %v4612_v39  ;;  %v4503_v39 = vmul.f32 1.442695, %v4425_v5  ;;  %v10917_v53 = vpop.eup %8266  ;;  %v4657_v61 = vsel %vm1468_vm1, %v10912_v14, 0.0  ;;  %v4517_v28 = vmul.f32 1.442695, %v4432_v12 }
 0x7b8   :  { %v10922_v37 = vpop.eup %8268  ;;  %v4515_v0 = vmul.f32 1.442695, %v4431_v56  ;;  %v4505_v5 = vmul.f32 1.442695, %v4426_v30  ;;  %v4521_v62 = vmul.f32 1.442695, %v4434_v13 }
 0x7b9   :  { %4604 = vadd.xlane.f32.xlu1 %v4603_v16  ;;  %v4636_v16 = vsel %vm1468_vm1, %v10907_v17, 0.0  ;;  %8276 = vpow2.f32 %v4503_v39  ;;  %v10928_v36 = vpop.eup %8270  ;;  %v4501_v60 = vmul.f32 1.442695, %v4424_v57 }
 0x7ba   :  { %8278 = vpow2.f32 %v4519_v3  ;;  %v10933_v49 = vpop.eup %8272  ;;  %v4630_v29 = vsel %vm1468_vm1, %v10928_v36, 0.0 }
 0x7bb   :  { %4607 = vadd.xlane.f32.xlu0 %v4606_v41  ;;  %v4299_v41 = vpop.xlane.xlu1 %4298  ;;  %8280 = vpow2.f32 %v4499_v35 }
 0x7bc   :  { %v4437_v52 = vsub.f32 %v10598_v26, %v4299_v41  ;;  %8282 = vpow2.f32 %v4515_v0  ;;  %v4651_v26 = vsel %vm1468_vm1, %v10933_v49, 0.0 }
 0x7bd   :  { %4622 = vadd.xlane.f32.xlu1 %v4621_v32  ;;  %v4660_v32 = vsel %vm1468_vm1, %v10917_v53, 0.0  ;;  %8284 = vpow2.f32 %v4517_v28 }
 0x7be   :  { %v4527_v8 = vmul.f32 1.442695, %v4437_v52  ;;  %8286 = vpow2.f32 %v4505_v5  ;;  %v4302_v52 = vpop.xlane.xlu0 %4301 }
 0x7bf   :  { %4625 = vadd.xlane.f32.xlu0 %v4624_v47  ;;  %v4627_v47 = vsel %vm1468_vm1, %v10922_v37, 0.0 }
 0x7c0   :  { %8288 = vpow2.f32 %v4527_v8 }
 0x7c1   :  { %4616 = vadd.xlane.f32.xlu1 %v4615_v10  ;;  %v10939_v10 = vpop.eup %8274  ;;  %8290 = vpow2.f32 %v4521_v62  ;;  %v4438_v62 = vsub.f32 %v10604_v19, %v4302_v52 }
 0x7c2   :  { %v4654_v43 = vsel %vm1468_vm1, %v10939_v10, 0.0  ;;  %8292 = vpow2.f32 %v4501_v60 }
 0x7c3   :  { %4619 = vadd.xlane.f32.xlu0 %v4618_v40  ;;  %v10943_v54 = vpop.eup %8276 }
 0x7c4   :  { %v10949_v40 = vpop.eup %8278  ;;  %v4645_v39 = vsel %vm1468_vm1, %v10943_v54, 0.0 }
 0x7c5   :  { %4634 = vadd.xlane.f32.xlu1 %v4633_v33  ;;  %v10953_v24 = vpop.eup %8280  ;;  %v4669_v33 = vsel %vm1468_vm1, %v10949_v40, 0.0 }
 0x7c6   :  { %v10957_v2 = vpop.eup %8282  ;;  %v4639_v51 = vsel %vm1468_vm1, %v10953_v24, 0.0 }
 0x7c7   :  { %4637 = vadd.xlane.f32.xlu0 %v4636_v16  ;;  %v10961_v3 = vpop.eup %8284  ;;  %v4663_v56 = vsel %vm1468_vm1, %v10957_v2, 0.0 }
 0x7c8   :  { %v10965_v16 = vpop.eup %8286  ;;  %v4666_v35 = vsel %vm1468_vm1, %v10961_v3, 0.0 }
 0x7c9   :  { %4658 = vadd.xlane.f32.xlu1 %v4657_v61  ;;  %v4648_v41 = vsel %vm1468_vm1, %v10965_v16, 0.0 }
 0x7ca   :  { %v10969_v12 = vpop.eup %8288 }
 0x7cb   :  { %4661 = vadd.xlane.f32.xlu0 %v4660_v32  ;;  %v10973_v61 = vpop.eup %8290  ;;  %v4681_v30 = vsel %vm1468_vm1, %v10969_v12, 0.0 }
 0x7cc   :  { %v4672_v0 = vsel %vm1468_vm1, %v10973_v61, 0.0  ;;  %v10979_v32 = vpop.eup %8292 }
 0x7cd   :  { %4628 = vadd.xlane.f32.xlu1 %v4627_v47  ;;  %v4642_v28 = vsel %vm1468_vm1, %v10979_v32, 0.0 }
 0x7cf   :  { %4631 = vadd.xlane.f32.xlu0 %v4630_v29 }
 0x7d1   :  { %4652 = vadd.xlane.f32.xlu1 %v4651_v26 }
 0x7d3   :  { %4655 = vadd.xlane.f32.xlu0 %v4654_v43 }
 0x7d5   :  { %4646 = vadd.xlane.f32.xlu1 %v4645_v39 }
 0x7d7   :  { %4670 = vadd.xlane.f32.xlu0 %v4669_v33  ;;  %v4529_v33 = vmul.f32 1.442695, %v4438_v62 }
 0x7d9   :  { %4640 = vadd.xlane.f32.xlu1 %v4639_v51 }
 0x7db   :  { %4664 = vadd.xlane.f32.xlu0 %v4663_v56 }
 0x7dd   :  { %4667 = vadd.xlane.f32.xlu1 %v4666_v35 }
 0x7df   :  { %4649 = vadd.xlane.f32.xlu0 %v4648_v41 }
 0x7e1   :  { %4682 = vadd.xlane.f32.xlu1 %v4681_v30 }
 0x7e3   :  { %4673 = vadd.xlane.f32.xlu0 %v4672_v0 }
 0x7e7   :  { %4643 = vadd.xlane.f32.xlu0 %v4642_v28 }
 0x7f5   :  { %v4323_v47 = vpop.xlane.xlu1 %4322 }
 0x7f6   :  { %v4445_v5 = vsub.f32 %v10670_v45, %v4323_v47 }
 0x7f7   :  { %v4326_v13 = vpop.xlane.xlu0 %4325 }
 0x7f8   :  { %v4543_v29 = vmul.f32 1.442695, %v4445_v5  ;;  %v4446_v56 = vsub.f32 %v10680_v31, %v4326_v13  ;;  %v12238_v13 = vld [vmem:[#allocation95_spill] sm:$0xff] }
 0x7f9   :  { %v4293_v8 = vpop.xlane.xlu1 %4292 }
 0x7fa   :  { %8294 = vpow2.f32 %v4543_v29  ;;  %v4435_v26 = vsub.f32 %v10602_v6, %v4293_v8  ;;  %v4545_v28 = vmul.f32 1.442695, %v4446_v56 }
 0x7fb   :  { %v4296_v57 = vpop.xlane.xlu0 %4295 }
 0x7fc   :  { %v4523_v43 = vmul.f32 1.442695, %v4435_v26  ;;  %v4436_v52 = vsub.f32 %v10608_v27, %v4296_v57  ;;  %v12239_v27 = vld [vmem:[#allocation59_spill] sm:$0xff] }
 0x7fd   :  { %v4317_v39 = vpop.xlane.xlu1 %4316 }
 0x7fe   :  { %8296 = vpow2.f32 %v4523_v43  ;;  %v4443_v60 = vsub.f32 %v10674_v38, %v4317_v39 }
 0x7ff   :  { %v4320_v51 = vpop.xlane.xlu0 %4319 }
 0x800   :  { %v4539_v35 = vmul.f32 1.442695, %v4443_v60  ;;  %v4444_v45 = vsub.f32 %v10686_v55, %v4320_v51 }
 0x801   :  { %v4311_v41 = vpop.xlane.xlu1 %4310 }
 0x802   :  { %8298 = vpow2.f32 %v4539_v35  ;;  %v4541_v30 = vmul.f32 1.442695, %v4444_v45  ;;  %v4441_v6 = vsub.f32 %v10614_v7, %v4311_v41  ;;  %v4525_v7 = vmul.f32 1.442695, %v4436_v52  ;;  %v12240_v45 = vld [vmem:[#allocation97_spill] sm:$0xff] }
 0x803   :  { %8300 = vpow2.f32 %v4529_v33  ;;  %v4314_v19 = vpop.xlane.xlu0 %4313  ;;  %v12242_v52 = vld [vmem:[#allocation53_spill] sm:$0xff] }
 0x804   :  { %v10990_v0 = vpop.eup %8294  ;;  %8302 = vpow2.f32 %v4541_v30  ;;  %v4535_v38 = vmul.f32 1.442695, %v4441_v6 }
 0x805   :  { %v4335_v47 = vpop.xlane.xlu1 %4334  ;;  %v4705_v31 = vsel %vm1468_vm1, %v10990_v0, 0.0 }
 0x806   :  { %8304 = vpow2.f32 %v4535_v38  ;;  %4706 = vadd.xlane.f32.xlu0 %v4705_v31  ;;  %v4449_v29 = vsub.f32 %v12238_v13, %v4335_v47  ;;  %v4442_v38 = vsub.f32 %v12242_v52, %v4314_v19  ;;  %v12243_v31 = vld [vmem:[#allocation100_spill] sm:$0xff] }
 0x807   :  { %v4338_v55 = vpop.xlane.xlu0 %4337  ;;  %8306 = vpow2.f32 %v4545_v28 }
 0x808   :  { %v10995_v5 = vpop.eup %8296  ;;  %8308 = vpow2.f32 %v4525_v7  ;;  %v4551_v39 = vmul.f32 1.442695, %v4449_v29 }
 0x809   :  { %v4305_v8 = vpop.xlane.xlu1 %4304  ;;  %v4675_v26 = vsel %vm1468_vm1, %v10995_v5, 0.0 }
 0x80a   :  { %v4439_v62 = vsub.f32 %v12239_v27, %v4305_v8  ;;  %4676 = vadd.xlane.f32.xlu1 %v4675_v26  ;;  %v12244_v27 = vld [vmem:[#allocation82_spill] sm:$0xff] }
 0x80b   :  { %v4308_v57 = vpop.xlane.xlu0 %4307 }
 0x80c   :  { %v11001_v43 = vpop.eup %8298  ;;  %v4531_v60 = vmul.f32 1.442695, %v4439_v62 }
 0x80d   :  { %v11003_v33 = vpop.eup %8300  ;;  %v4329_v51 = vpop.xlane.xlu1 %4328  ;;  %v4699_v56 = vsel %vm1468_vm1, %v11001_v43, 0.0 }
 0x80e   :  { %v11007_v35 = vpop.eup %8302  ;;  %8310 = vpow2.f32 %v4531_v60  ;;  %v4447_v41 = vsub.f32 %v12240_v45, %v4329_v51  ;;  %4700 = vadd.xlane.f32.xlu0 %v4699_v56  ;;  %v4684_v29 = vsel %vm1468_vm1, %v11003_v33, 0.0  ;;  %v12245_v51 = vld [vmem:[#allocation99_spill] sm:$0xff] }
 0x80f   :  { %v4332_v30 = vpop.xlane.xlu0 %4331  ;;  %v4702_v6 = vsel %vm1468_vm1, %v11007_v35, 0.0  ;;  %8312 = vpow2.f32 %v4551_v39  ;;  %v4537_v39 = vmul.f32 1.442695, %v4442_v38  ;;  %v4450_v56 = vsub.f32 %v12245_v51, %v4338_v55 }
 0x810   :  { %v11012_v28 = vpop.eup %8304  ;;  %v4547_v47 = vmul.f32 1.442695, %v4447_v41  ;;  %v4448_v7 = vsub.f32 %v12243_v31, %v4332_v30  ;;  %4703 = vadd.xlane.f32.xlu1 %v4702_v6  ;;  %v12247_v31 = vld [vmem:[#allocation55_spill] sm:$0xff] }
 0x811   :  { %12241 = vst [vmem:[#allocation95_spill] sm:$0xff] %v11012_v28  ;;  %v4347_v13 = vpop.xlane.xlu1 %4346  ;;  %v11018_v8 = vpop.eup %8306  ;;  %v4693_v19 = vsel %vm1468_vm1, %v11012_v28, 0.0 }
 0x812   :  { %v4549_v26 = vmul.f32 1.442695, %v4448_v7  ;;  %v4453_v62 = vsub.f32 %v12244_v27, %v4347_v13  ;;  %4685 = vadd.xlane.f32.xlu0 %v4684_v29  ;;  %8314 = vpow2.f32 %v4547_v47  ;;  %v4708_v41 = vsel %vm1468_vm1, %v11018_v8, 0.0  ;;  %v11026_v30 = vpop.eup %8308  ;;  %v12249_v27 = vld [vmem:[#allocation84_spill] sm:$0xff] }
 0x813   :  { %v4350_v60 = vpop.xlane.xlu0 %4349  ;;  %v4553_v47 = vmul.f32 1.442695, %v4450_v56  ;;  %v4440_v7 = vsub.f32 %v12247_v31, %v4308_v57  ;;  %v4678_v55 = vsel %vm1468_vm1, %v11026_v30, 0.0 }
 0x814   :  { %8316 = vpow2.f32 %v4549_v26  ;;  %v4559_v45 = vmul.f32 1.442695, %v4453_v62  ;;  %4694 = vadd.xlane.f32.xlu1 %v4693_v19 }
 0x815   :  { %v4533_v19 = vmul.f32 1.442695, %v4440_v7 }
 0x816   :  { %8318 = vpow2.f32 %v4559_v45  ;;  %v4371_v6 = vpop.xlane.xlu1 %4370  ;;  %4709 = vadd.xlane.f32.xlu0 %v4708_v41 }
 0x817   :  { %8320 = vpow2.f32 %v4537_v39  ;;  %v12250_v39 = vld [vmem:[#allocation105_spill] sm:$0xff] }
 0x818   :  { %v11028_v52 = vpop.eup %8310  ;;  %v4374_v38 = vpop.xlane.xlu0 %4373  ;;  %8322 = vpow2.f32 %v4553_v47  ;;  %v4461_v51 = vsub.f32 %v12250_v39, %v4371_v6  ;;  %v12253_v6 = vld [vmem:[#allocation106_spill] sm:$0xff] }
 0x819   :  { %12246 = vst [vmem:[#allocation59_spill] sm:$0xff] %v11028_v52  ;;  %v4687_v13 = vsel %vm1468_vm1, %v11028_v52, 0.0  ;;  %v11035_v29 = vpop.eup %8312  ;;  %v12255_v52 = vld [vmem:[#allocation89_spill] sm:$0xff] }
 0x81a   :  { %12248 = vst [vmem:[#allocation97_spill] sm:$0xff] %v11035_v29  ;;  %v4341_v26 = vpop.xlane.xlu1 %4340  ;;  %4679 = vadd.xlane.f32.xlu0 %v4678_v55  ;;  %4688 = vadd.xlane.f32.xlu1 %v4687_v13  ;;  %v4717_v41 = vsel %vm1468_vm1, %v11035_v29, 0.0  ;;  %v4575_v47 = vmul.f32 1.442695, %v4461_v51  ;;  %v12256_v51 = vld [vmem:[#allocation85_spill] sm:$0xff] }
 0x81b   :  { %v4451_v62 = vsub.f32 %v12249_v27, %v4341_v26 }
 0x81c   :  { %v4344_v56 = vpop.xlane.xlu0 %4343  ;;  %v11039_v57 = vpop.eup %8314 }
 0x81d   :  { %v4555_v45 = vmul.f32 1.442695, %v4451_v62  ;;  %v4711_v62 = vsel %vm1468_vm1, %v11039_v57, 0.0 }
 0x81e   :  { %v11043_v31 = vpop.eup %8316  ;;  %v4365_v28 = vpop.xlane.xlu1 %4364  ;;  %4718 = vadd.xlane.f32.xlu0 %v4717_v41 }
 0x81f   :  { %12251 = vst [vmem:[#allocation53_spill] sm:$0xff] %v11043_v31  ;;  %8324 = vpow2.f32 %v4555_v45  ;;  %v4714_v55 = vsel %vm1468_vm1, %v11043_v31, 0.0  ;;  %v4459_v7 = vsub.f32 %v12253_v6, %v4365_v28  ;;  %v4454_v31 = vsub.f32 %v12256_v51, %v4350_v60  ;;  %v12260_v51 = vld [vmem:[#allocation90_spill] sm:$0xff] }
 0x820   :  { %v11047_v13 = vpop.eup %8318  ;;  %8326 = vpow2.f32 %v4533_v19  ;;  %v4368_v26 = vpop.xlane.xlu0 %4367  ;;  %4715 = vadd.xlane.f32.xlu1 %v4714_v55 }
 0x821   :  { %12252 = vst [vmem:[#allocation100_spill] sm:$0xff] %v11047_v13  ;;  %v4460_v27 = vsub.f32 %v10768_v11, %v4368_v26  ;;  %v11053_v39 = vpop.eup %8320  ;;  %v4729_v19 = vsel %vm1468_vm1, %v11047_v13, 0.0  ;;  %8328 = vpow2.f32 %v4575_v47  ;;  %v4571_v28 = vmul.f32 1.442695, %v4459_v7 }
 0x822   :  { %12254 = vst [vmem:[#allocation82_spill] sm:$0xff] %v11053_v39  ;;  %v4359_v41 = vpop.xlane.xlu1 %4358  ;;  %4712 = vadd.xlane.f32.xlu0 %v4711_v62  ;;  %v4696_v6 = vsel %vm1468_vm1, %v11053_v39, 0.0  ;;  %v11063_v26 = vpop.eup %8322  ;;  %v12258_v62 = vld [vmem:[#allocation107_spill] sm:$0xff] }
 0x823   :  { %v4573_v45 = vmul.f32 1.442695, %v4460_v27  ;;  %v4457_v29 = vsub.f32 %v12255_v52, %v4359_v41  ;;  %12257 = vst [vmem:[#allocation99_spill] sm:$0xff] %v11063_v26  ;;  %v4561_v52 = vmul.f32 1.442695, %v4454_v31  ;;  %v4462_v41 = vsub.f32 %v12258_v62, %v4374_v38  ;;  %v12261_v31 = vld [vmem:[#allocation86_spill] sm:$0xff] }
 0x824   :  { %v11059_v55 = vpop.xlane.xlu0 %4361  ;;  %4730 = vadd.xlane.f32.xlu1 %v4729_v19  ;;  %v4720_v7 = vsel %vm1468_vm1, %v11063_v26, 0.0 }
 0x825   :  { %8330 = vpow2.f32 %v4573_v45  ;;  %v4567_v11 = vmul.f32 1.442695, %v4457_v29  ;;  %v4577_v38 = vmul.f32 1.442695, %v4462_v41 }
 0x826   :  { %v4383_v27 = vpop.xlane.xlu1 %4382  ;;  %4697 = vadd.xlane.f32.xlu0 %v4696_v6 }
 0x827   :  { %8332 = vpow2.f32 %v4567_v11 }
 0x828   :  { %8334 = vpow2.f32 %v4571_v28  ;;  %v11066_v60 = vpop.xlane.xlu0 %4385  ;;  %v4452_v28 = vsub.f32 %v12261_v31, %v4344_v56 }
 0x829   :  { %v11068_v47 = vpop.eup %8324  ;;  %8336 = vpow2.f32 %v4561_v52 }
 0x82a   :  { %12259 = vst [vmem:[#allocation55_spill] sm:$0xff] %v11068_v47  ;;  %v11072_v29 = vpop.eup %8326  ;;  %v4353_v45 = vpop.xlane.xlu1 %4352  ;;  %4721 = vadd.xlane.f32.xlu0 %v4720_v7  ;;  %v4723_v19 = vsel %vm1468_vm1, %v11068_v47, 0.0 }
 0x82b   :  { %v4455_v11 = vsub.f32 %v12260_v51, %v4353_v45  ;;  %4724 = vadd.xlane.f32.xlu1 %v4723_v19  ;;  %v4690_v13 = vsel %vm1468_vm1, %v11072_v29, 0.0  ;;  %v11082_v39 = vpop.eup %8328  ;;  %v4557_v45 = vmul.f32 1.442695, %v4452_v28  ;;  %v12263_v19 = vld [vmem:[#allocation108_spill] sm:$0xff] }
 0x82c   :  { %v11078_v6 = vpop.xlane.xlu0 %4355  ;;  %12262 = vst [vmem:[#allocation84_spill] sm:$0xff] %v11082_v39  ;;  %v4465_v52 = vsub.f32 %v12263_v19, %v4383_v27  ;;  %v4753_v31 = vsel %vm1468_vm1, %v11082_v39, 0.0 }
 0x82d   :  { %v4563_v62 = vmul.f32 1.442695, %v4455_v11 }
 0x82e   :  { %v4377_v26 = vpop.xlane.xlu1 %4376  ;;  %4691 = vadd.xlane.f32.xlu0 %v4690_v13  ;;  %v4583_v27 = vmul.f32 1.442695, %v4465_v52 }
 0x82f   :  { %v11084_v7 = vpop.eup %8330  ;;  %8338 = vpow2.f32 %v4563_v62  ;;  %v4463_v62 = vsub.f32 %v10780_v50, %v4377_v26  ;;  %v12265_v50 = vld [vmem:[#allocation91_spill] sm:$0xff] }
 0x830   :  { %8340 = vpow2.f32 %v4577_v38  ;;  %v4380_v41 = vpop.xlane.xlu0 %4379  ;;  %v4750_v56 = vsel %vm1468_vm1, %v11084_v7, 0.0  ;;  %v4458_v26 = vsub.f32 %v12265_v50, %v11059_v55 }
 0x831   :  { %v11089_v51 = vpop.eup %8332  ;;  %v4464_v11 = vsub.f32 %v10786_v46, %v4380_v41  ;;  %4751 = vadd.xlane.f32.xlu1 %v4750_v56  ;;  %8342 = vpow2.f32 %v4557_v45 }
 0x832   :  { %12264 = vst [vmem:[#allocation105_spill] sm:$0xff] %v11089_v51  ;;  %v11094_v13 = vpop.eup %8334  ;;  %v4395_v47 = vpop.xlane.xlu1 %4394  ;;  %4754 = vadd.xlane.f32.xlu0 %v4753_v31  ;;  %v4741_v46 = vsel %vm1468_vm1, %v11089_v51, 0.0  ;;  %v4569_v55 = vmul.f32 1.442695, %v4458_v26 }
 0x833   :  { %v4581_v38 = vmul.f32 1.442695, %v4464_v11  ;;  %v4469_v28 = vsub.f32 %v10732_v20, %v4395_v47  ;;  %v4747_v56 = vsel %vm1468_vm1, %v11094_v13, 0.0  ;;  %v11104_v39 = vpop.eup %8336  ;;  %v4579_v47 = vmul.f32 1.442695, %v4463_v62 }
 0x834   :  { %v11098_v19 = vpop.xlane.xlu0 %4397 }
 0x835   :  { %8344 = vpow2.f32 %v4581_v38  ;;  %v4591_v41 = vmul.f32 1.442695, %v4469_v28  ;;  %4742 = vadd.xlane.f32.xlu1 %v4741_v46  ;;  %v4732_v38 = vsel %vm1468_vm1, %v11104_v39, 0.0 }
 0x836   :  { %v4389_v11 = vpop.xlane.xlu1 %4388  ;;  %4748 = vadd.xlane.f32.xlu0 %v4747_v56 }
 0x837   :  { %8346 = vpow2.f32 %v4591_v41  ;;  %v4467_v20 = vsub.f32 %v10738_v23, %v4389_v11  ;;  %v12267_v11 = vld [vmem:[#allocation92_spill] sm:$0xff] }
 0x838   :  { %8348 = vpow2.f32 %v4583_v27  ;;  %v4392_v45 = vpop.xlane.xlu0 %4391  ;;  %v12266_v27 = vld [vmem:[#allocation109_spill] sm:$0xff] }
 0x839   :  { %v11109_v52 = vpop.eup %8338  ;;  %v4587_v31 = vmul.f32 1.442695, %v4467_v20  ;;  %v4466_v62 = vsub.f32 %v12266_v27, %v11066_v60  ;;  %v4456_v20 = vsub.f32 %v12267_v11, %v11078_v6 }
 0x83a   :  { %v11113_v28 = vpop.eup %8340  ;;  %v4407_v46 = vpop.xlane.xlu1 %4406  ;;  %4733 = vadd.xlane.f32.xlu0 %v4732_v38  ;;  %v4735_v41 = vsel %vm1468_vm1, %v11109_v52, 0.0 }
 0x83b   :  { %8350 = vpow2.f32 %v4587_v31  ;;  %v4473_v23 = vsub.f32 %v10754_v18, %v4407_v46  ;;  %4736 = vadd.xlane.f32.xlu1 %v4735_v41  ;;  %v4756_v38 = vsel %vm1468_vm1, %v11113_v28, 0.0  ;;  %v11126_v51 = vpop.eup %8342  ;;  %v4585_v60 = vmul.f32 1.442695, %v4466_v62 }
 0x83c   :  { %8352 = vpow2.f32 %v4579_v47  ;;  %v11120_v56 = vpop.xlane.xlu0 %4409  ;;  %v4565_v41 = vmul.f32 1.442695, %v4456_v20  ;;  %v4726_v27 = vsel %vm1468_vm1, %v11126_v51, 0.0  ;;  %v4468_v20 = vsub.f32 %v10746_v4, %v4392_v45 }
 0x83d   :  { %v4599_v50 = vmul.f32 1.442695, %v4473_v23 }
 0x83e   :  { %v4401_v31 = vpop.xlane.xlu1 %4400  ;;  %4757 = vadd.xlane.f32.xlu0 %v4756_v38 }
 0x83f   :  { %v11128_v18 = vpop.eup %8344  ;;  %8354 = vpow2.f32 %v4599_v50  ;;  %v4471_v26 = vsub.f32 %v10760_v58, %v4401_v31  ;;  %v4470_v58 = vsub.f32 %v10740_v48, %v11098_v19 }
 0x840   :  { %8356 = vpow2.f32 %v4569_v55  ;;  %v11131_v47 = vpop.xlane.xlu0 %4403  ;;  %v4762_v6 = vsel %vm1468_vm1, %v11128_v18, 0.0 }
 0x841   :  { %v11135_v46 = vpop.eup %8346  ;;  %v4595_v23 = vmul.f32 1.442695, %v4471_v26  ;;  %4763 = vadd.xlane.f32.xlu1 %v4762_v6  ;;  %v4593_v48 = vmul.f32 1.442695, %v4470_v58 }
 0x842   :  { %v11139_v11 = vpop.eup %8348  ;;  %v4611_v50 = vpop.xlane.xlu1 %4610  ;;  %4727 = vadd.xlane.f32.xlu0 %v4726_v27  ;;  %v4777_v62 = vsel %vm1468_vm1, %v11135_v46, 0.0 }
 0x843   :  { %12268 = vst [vmem:[#allocation106_spill] sm:$0xff] %v11139_v11  ;;  %8358 = vpow2.f32 %v4595_v23  ;;  %v4765_v31 = vsel %vm1468_vm1, %v11139_v11, 0.0 }
 0x844   :  { %8360 = vpow2.f32 %v4585_v60  ;;  %v4614_v55 = vpop.xlane.xlu0 %4613 }
 0x845   :  { %v11145_v38 = vpop.eup %8350  ;;  %8362 = vpow2.f32 %v4565_v41  ;;  %4778 = vadd.xlane.f32.xlu1 %v4777_v62  ;;  %v4589_v41 = vmul.f32 1.442695, %v4468_v20  ;;  %v4474_v62 = vsub.f32 %v10764_v15, %v11120_v56  ;;  %v4472_v56 = vsub.f32 %v10770_v59, %v11131_v47 }
 0x846   :  { %v11150_v26 = vpop.eup %8352  ;;  %8364 = vrcp.f32 %v4614_v55  ;;  %v4605_v60 = vpop.xlane.xlu1 %4604  ;;  %4766 = vadd.xlane.f32.xlu0 %v4765_v31  ;;  %v4771_v6 = vsel %vm1468_vm1, %v11145_v38, 0.0 }
 0x847   :  { %8366 = vrcp.f32 %v4605_v60  ;;  %v4759_v4 = vsel %vm1468_vm1, %v11150_v26, 0.0  ;;  %v4601_v15 = vmul.f32 1.442695, %v4474_v62  ;;  %v4597_v62 = vmul.f32 1.442695, %v4472_v56 }
 0x848   :  { %8368 = vrcp.f32 %v4611_v50  ;;  %v4608_v19 = vpop.xlane.xlu0 %4607 }
 0x849   :  { %v11154_v23 = vpop.eup %8354  ;;  %8370 = vrcp.f32 %v4608_v19  ;;  %4772 = vadd.xlane.f32.xlu1 %v4771_v6 }
 0x84a   :  { %12269 = vst [vmem:[#allocation89_spill] sm:$0xff] %v11154_v23  ;;  %v11158_v45 = vpop.eup %8356  ;;  %v4623_v27 = vpop.xlane.xlu1 %4622  ;;  %4760 = vadd.xlane.f32.xlu0 %v4759_v4  ;;  %8372 = vpow2.f32 %v4593_v48  ;;  %v4789_v50 = vsel %vm1468_vm1, %v11154_v23, 0.0 }
 0x84b   :  { %8374 = vpow2.f32 %v4589_v41  ;;  %v4744_v20 = vsel %vm1468_vm1, %v11158_v45, 0.0 }
 0x84c   :  { %v4626_v55 = vpop.xlane.xlu0 %4625 }
 0x84d   :  { %v11162_v58 = vpop.eup %8358  ;;  %4790 = vadd.xlane.f32.xlu1 %v4789_v50  ;;  %8376 = vrcp.f32 %v4626_v55 }
 0x84e   :  { %12270 = vst [vmem:[#allocation85_spill] sm:$0xff] %v11162_v58  ;;  %v11168_v31 = vpop.eup %8360  ;;  %v4617_v60 = vpop.xlane.xlu1 %4616  ;;  %4745 = vadd.xlane.f32.xlu0 %v4744_v20  ;;  %v4783_v41 = vsel %vm1468_vm1, %v11162_v58, 0.0 }
 0x84f   :  { %12271 = vst [vmem:[#allocation107_spill] sm:$0xff] %v11168_v31  ;;  %v11170_v48 = vpop.eup %8362  ;;  %8378 = vrcp.f32 %v4617_v60  ;;  %v4768_v55 = vsel %vm1468_vm1, %v11168_v31, 0.0 }
 0x850   :  { %v8365_v19 = vpop.eup %8364  ;;  %8380 = vrcp.f32 %v4623_v27  ;;  %v4620_v6 = vpop.xlane.xlu0 %4619  ;;  %v4738_v47 = vsel %vm1468_vm1, %v11170_v48, 0.0 }
 0x851   :  { %v8367_v4 = vpop.eup %8366  ;;  %8382 = vrcp.f32 %v4620_v6  ;;  %4784 = vadd.xlane.f32.xlu1 %v4783_v41  ;;  %v4862_v27 = vmul.f32 %v8365_v19, %v10856_v25 }
 0x852   :  { %v8369_v50 = vpop.eup %8368  ;;  %v4635_v20 = vpop.xlane.xlu1 %4634  ;;  %4769 = vadd.xlane.f32.xlu0 %v4768_v55  ;;  %v4859_v11 = vmul.f32 %v8367_v4, %v10862_v42  ;;  %8384 = vpow2.f32 %v4601_v15  ;;  %v12272_v15 = vld [vmem:[#allocation65_spill] sm:$0xff] }
 0x853   :  { %v8371_v60 = vpop.eup %8370  ;;  %v4861_v59 = vmul.f32 %v8369_v50, %v10848_v34  ;;  %8386 = vpow2.f32 %v4597_v62 }
 0x854   :  { %v4638_v23 = vpop.xlane.xlu0 %4637  ;;  %v4860_v58 = vmul.f32 %v8371_v60, %v10868_v21  ;;  %v11184_v6 = vpop.eup %8372 }
 0x855   :  { %v11186_v31 = vpop.eup %8374  ;;  %v4924_v25 = vpack.c.bf16 %v4862_v27, %v4861_v59  ;;  %v4780_v34 = vsel %vm1468_vm1, %v11184_v6, 0.0  ;;  %8388 = vrcp.f32 %v4638_v23 }
 0x856   :  { %v4659_v41 = vpop.xlane.xlu1 %4658  ;;  %4739 = vadd.xlane.f32.xlu0 %v4738_v47  ;;  %v4923_v55 = vpack.c.bf16 %v4860_v58, %v4859_v11  ;;  %v12273_v58 = vld [vmem:[#allocation4_spill] sm:$0xff]  ;;  %v4774_v23 = vsel %vm1468_vm1, %v11186_v31, 0.0 }
 0x857   :  { %v8377_v19 = vpop.eup %8376 }
 0x858   :  { %7182 = vmatprep.mubr.msk.bf16.mxu0 %vm1468_vm1, %v4923_v55  ;;  %v4662_v42 = vpop.xlane.xlu0 %4661  ;;  %v4866_v50 = vmul.f32 %v8377_v19, %v10882_v44  ;;  %v12274_v44 = vld [vmem:[#allocation8_spill] sm:$0xff] }
 0x859   :  { %v8379_v21 = vpop.eup %8378  ;;  %7183 = vmatmul.mubr.msk.bf16.vlgmr.msra.gmra.mrb[104].mxu0 %vm1468_vm1, %v4924_v25 }
 0x85a   :  { %v8381_v4 = vpop.eup %8380  ;;  %7207 = vmatpush3.bf16.msra.mxu0 %v12272_v15  ;;  %v4629_v56 = vpop.xlane.xlu1 %4628  ;;  %4781 = vadd.xlane.f32.xlu0 %v4780_v34  ;;  %v4863_v27 = vmul.f32 %v8379_v21, %v10888_v1  ;;  %v12276_v21 = vld [vmem:[#allocation14_spill] sm:$0xff] }
 0x85b   :  { %v8383_v11 = vpop.eup %8382  ;;  %8390 = vrcp.f32 %v4629_v56  ;;  %7208 = vmatprep.subr.bf16.mxu0 %v12273_v58  ;;  %v4865_v59 = vmul.f32 %v8381_v4, %v10876_v9 }
 0x85c   :  { %8392 = vrcp.f32 %v4635_v20  ;;  %v4632_v60 = vpop.xlane.xlu0 %4631  ;;  %v4864_v62 = vmul.f32 %v8383_v11, %v10896_v22  ;;  %v11201_v25 = vpop.eup %8384  ;;  %v12275_v20 = vld [vmem:[#allocation36_spill] sm:$0xff]  ;;  %v12277_v11 = vld [vmem:[#allocation25_spill] sm:$0xff] }
 0x85d   :  { %8394 = vrcp.f32 %v4632_v60  ;;  %v4926_v1 = vpack.c.bf16 %v4866_v50, %v4865_v59  ;;  %v4792_v19 = vsel %vm1468_vm1, %v11201_v25, 0.0 }
 0x85e   :  { %8396 = vrcp.f32 %v4662_v42  ;;  %7209 = vmatpush3.bf16.msra.mxu0 %v12273_v58  ;;  %v4653_v47 = vpop.xlane.xlu1 %4652  ;;  %4775 = vadd.xlane.f32.xlu0 %v4774_v23  ;;  %v4925_v55 = vpack.c.bf16 %v4864_v62, %v4863_v27  ;;  %v11211_v42 = vpop.eup %8386  ;;  %v12278_v58 = vld [vmem:[#allocation74_spill] sm:$0xff]  ;;  %v12280_v23 = vld [vmem:[#allocation16_spill] sm:$0xff] }
 0x85f   :  { %8398 = vrcp.f32 %v4653_v47  ;;  %7210 = vmatprep.subr.bf16.mxu0 %v12274_v44  ;;  %v12279_v50 = vpack.i.bf16 %v12277_v11, %v12278_v58  ;;  %v4786_v60 = vsel %vm1468_vm1, %v11211_v42, 0.0  ;;  %v12282_v11 = vld [vmem:[#allocation49_spill] sm:$0xff] }
 0x860   :  { %8400 = vrcp.f32 %v4659_v41  ;;  %7186 = vmatprep.mubr.msk.bf16.mxu0 %vm1468_vm1, %v4925_v55  ;;  %v4656_v22 = vpop.xlane.xlu0 %4655  ;;  %v8389_v41 = vpop.eup %8388 }
 0x861   :  { %8402 = vrcp.f32 %v4656_v22  ;;  %7187 = vmatmul.mubr.msk.bf16.gmra.mrb[108].mxu0 %vm1468_vm1, %v4926_v1  ;;  %v4870_v62 = vmul.f32 %v8389_v41, %v10907_v17 }
 0x862   :  { %7211 = vmatpush3.bf16.msra.mxu0 %v12274_v44  ;;  %v4647_v9 = vpop.xlane.xlu1 %4646  ;;  %5584 = vrot.lane.b32.xlu1 %v12275_v20, %s8508_s10 }
 0x863   :  { %7212 = vmatprep.subr.bf16.mxu0 %v12276_v21  ;;  %4793 = vadd.xlane.f32.xlu0 %v4792_v19 }
 0x864   :  { %v4671_v34 = vpop.xlane.xlu0 %4670 }
 0x865   :  { %v8391_v4 = vpop.eup %8390 }
 0x866   :  { %v8393_v15 = vpop.eup %8392  ;;  %7213 = vmatpush3.bf16.msra.mxu0 %v12276_v21  ;;  %v4641_v56 = vpop.xlane.xlu1 %4640  ;;  %7688 = vrot.lane.b32.xlu1 %v12279_v50, %s8509_s1  ;;  %v4867_v55 = vmul.f32 %v8391_v4, %v10922_v37  ;;  %v12281_v21 = vld [vmem:[#allocation28_spill] sm:$0xff] }
 0x867   :  { %v8395_v27 = vpop.eup %8394  ;;  %7238 = vmatprep.subr.bf16.mxu0 %v12280_v23  ;;  %4787 = vadd.xlane.f32.xlu0 %v4786_v60  ;;  %v4869_v22 = vmul.f32 %v8393_v15, %v10902_v63  ;;  %v12283_v17 = vpack.i.bf16 %v12281_v21, %v12282_v11  ;;  %v12284_v15 = vld [vmem:[#allocation54_spill] sm:$0xff] }
 0x868   :  { %v8397_v59 = vpop.eup %8396  ;;  %v4665_v47 = vpop.xlane.xlu0 %4664  ;;  %v4868_v44 = vmul.f32 %v8395_v27, %v10928_v36  ;;  %v12285_v27 = vld [vmem:[#allocation19_spill] sm:$0xff]  ;;  %v12294_v21 = vld [vmem:[#allocation62_spill] sm:$0xff] }
 0x869   :  { %v8399_v1 = vpop.eup %8398  ;;  %8404 = vrcp.f32 %v4665_v47  ;;  %v4928_v50 = vpack.c.bf16 %v4870_v62, %v4869_v22  ;;  %v4878_v60 = vmul.f32 %v8397_v59, %v10917_v53  ;;  %v12286_v62 = vld [vmem:[#allocation2_spill] sm:$0xff]  ;;  %v12293_v22 = vld [vmem:[#allocation80_spill] sm:$0xff] }
 0x86a   :  { %v8401_v20 = vpop.eup %8400  ;;  %v4668_v19 = vpop.xlane.xlu1 %4667  ;;  %7698 = vrot.lane.b32.xlu1 %v12283_v17, %s8510_s11  ;;  %v4927_v41 = vpack.c.bf16 %v4868_v44, %v4867_v55  ;;  %v4875_v63 = vmul.f32 %v8399_v1, %v10933_v49  ;;  %v12287_v47 = vpack.i.bf16 %v12285_v27, %v12286_v62  ;;  %v12288_v55 = vld [vmem:[#allocation79_spill] sm:$0xff]  ;;  %v12290_v44 = vld [vmem:[#allocation50_spill] sm:$0xff] }
 0x86b   :  { %v8403_v58 = vpop.eup %8402  ;;  %8406 = vrcp.f32 %v4668_v19  ;;  %v4877_v4 = vmul.f32 %v8401_v20, %v10912_v14  ;;  %v12292_v1 = vld [vmem:[#allocation15_spill] sm:$0xff]  ;;  %v12295_v11 = vld [vmem:[#allocation46_spill] sm:$0xff] }
 0x86c   :  { %7198 = vmatprep.mubr.msk.bf16.mxu1 %vm1468_vm1, %v4927_v41  ;;  %v4650_v37 = vpop.xlane.xlu0 %4649  ;;  %v4876_v36 = vmul.f32 %v8403_v58, %v10939_v10  ;;  %8408 = vrcp.f32 %v4671_v34  ;;  %v12289_v10 = vld [vmem:[#allocation38_spill] sm:$0xff]  ;;  %v12296_v17 = vpack.i.bf16 %v12294_v21, %v12295_v11  ;;  %v12298_v41 = vld [vmem:[#allocation83_spill] sm:$0xff] }
 0x86d   :  { %7199 = vmatmul.mubr.msk.bf16.vlgmr.msra.gmra.mrb[120].mxu1 %vm1468_vm1, %v4928_v50  ;;  %v4932_v59 = vpack.c.bf16 %v4878_v60, %v4877_v4  ;;  %v12291_v34 = vpack.i.bf16 %v12289_v10, %v12290_v44  ;;  %v12303_v4 = vld [vmem:[#allocation78_spill] sm:$0xff] }
 0x86e   :  { %7223 = vmatpush3.bf16.msra.mxu1 %v12284_v15  ;;  %7708 = vrot.lane.b32.xlu1 %v12287_v47, %s8511_s12  ;;  %v4931_v53 = vpack.c.bf16 %v4876_v36, %v4875_v63  ;;  %v12302_v36 = vld [vmem:[#allocation94_spill] sm:$0xff]  ;;  %v12304_v47 = vld [vmem:[#allocation33_spill] sm:$0xff] }
 0x86f   :  { %7224 = vmatprep.subr.bf16.mxu1 %v12288_v55  ;;  %v12308_v44 = vld [vmem:[#allocation98_spill] sm:$0xff] }
 0x870   :  { %7214 = vmatprep.mubr.msk.bf16.mxu0 %vm1468_vm1, %v4931_v53  ;;  %v4674_v49 = vpop.xlane.xlu0 %4673  ;;  %v12313_v21 = vld [vmem:[#allocation34_spill] sm:$0xff] }
 0x871   :  { %8410 = vrcp.f32 %v4674_v49  ;;  %7215 = vmatmul.mubr.msk.bf16.vlgmr.msra.gmra.mrb[112].mxu0 %vm1468_vm1, %v4932_v59  ;;  %v12305_v49 = vld [vmem:[#allocation58_spill] sm:$0xff] }
 0x872   :  { %8412 = vrcp.f32 %v4650_v37  ;;  %7225 = vmatpush3.bf16.msra.mxu1 %v12288_v55  ;;  %7239 = vmatpush3.bf16.msra.mxu0 %v12280_v23 }
 0x873   :  { %v8405_v14 = vpop.eup %8404  ;;  %8414 = vrcp.f32 %v4641_v56  ;;  %7718 = vrot.lane.b32.xlu1 %v12291_v34, %s8512_s13  ;;  %7226 = vmatprep.subr.bf16.mxu1 %v12292_v1 }
 0x874   :  { %8416 = vrcp.f32 %v4647_v9  ;;  %7240 = vmatprep.subr.bf16.mxu0 %v12293_v22  ;;  %v4644_v20 = vpop.xlane.xlu0 %4643  ;;  %v4879_v56 = vmul.f32 %v8405_v14, %v10957_v2  ;;  %v12297_v9 = vld [vmem:[#allocation81_spill] sm:$0xff]  ;;  %v12299_v2 = vld [vmem:[#allocation24_spill] sm:$0xff]  ;;  %v12306_v14 = vld [vmem:[#allocation23_spill] sm:$0xff] }
 0x875   :  { %v8407_v19 = vpop.eup %8406  ;;  %8418 = vrcp.f32 %v4644_v20  ;;  %v12307_v10 = vpack.i.bf16 %v12305_v49, %v12306_v14  ;;  %v12336_v49 = vld [vmem:[#allocation52_spill] sm:$0xff]  ;;  %v12337_v14 = vld [vmem:[#allocation45_spill] sm:$0xff] }
 0x876   :  { %7227 = vmatpush3.bf16.msra.mxu1 %v12292_v1  ;;  %7241 = vmatpush3.bf16.msra.mxu0 %v12293_v22  ;;  %v4880_v23 = vmul.f32 %v8407_v19, %v10961_v3  ;;  %v8409_v50 = vpop.eup %8408  ;;  %v12300_v3 = vld [vmem:[#allocation29_spill] sm:$0xff]  ;;  %v12309_v1 = vld [vmem:[#allocation30_spill] sm:$0xff]  ;;  %v12310_v22 = vld [vmem:[#allocation7_spill] sm:$0xff] }
 0x877   :  { %7728 = vrot.lane.b32.xlu1 %v12296_v17, %s8513_s14  ;;  %7228 = vmatprep.subr.bf16.mxu1 %v12297_v9  ;;  %v12301_v37 = vpack.i.bf16 %v12299_v2, %v12300_v3  ;;  %v4881_v15 = vmul.f32 %v8409_v50, %v10949_v40  ;;  %v12311_v20 = vpack.i.bf16 %v12309_v1, %v12310_v22  ;;  %v12316_v17 = vld [vmem:[#allocation18_spill] sm:$0xff]  ;;  %v12322_v50 = vld [vmem:[#allocation9_spill] sm:$0xff]  ;;  %v12324_v2 = vld [vmem:[#allocation39_spill] sm:$0xff] }
 0x878   :  { %7242 = vmatprep.subr.bf16.mxu0 %v12298_v41  ;;  %v4933_v58 = vpack.c.bf16 %v4880_v23, %v4879_v56  ;;  %v12312_v23 = vld [vmem:[#allocation51_spill] sm:$0xff] }
 0x879   :  { %v12314_v11 = vpack.i.bf16 %v12312_v23, %v12313_v21  ;;  %v12325_v3 = vld [vmem:[#allocation3_spill] sm:$0xff] }
 0x87a   :  { %7229 = vmatpush3.bf16.msra.mxu1 %v12297_v9  ;;  %7243 = vmatpush3.bf16.msra.mxu0 %v12298_v41  ;;  %v12318_v9 = vld [vmem:[#allocation35_spill] sm:$0xff]  ;;  %v12319_v41 = vld [vmem:[#allocation17_spill] sm:$0xff] }
 0x87b   :  { %v8411_v60 = vpop.eup %8410  ;;  %7738 = vrot.lane.b32.xlu1 %v12301_v37, %s8514_s15  ;;  %7218 = vmatprep.mubr.msk.bf16.mxu0 %vm1468_vm1, %v4933_v58  ;;  %v12321_v58 = vld [vmem:[#allocation20_spill] sm:$0xff]  ;;  %v12326_v37 = vpack.i.bf16 %v12324_v2, %v12325_v3  ;;  %v12345_v21 = vld [vmem:[#allocation11_spill] sm:$0xff]  ;;  %v12354_v2 = vld [vmem:[#allocation5_spill] sm:$0xff] }
 0x87c   :  { %v8413_v63 = vpop.eup %8412  ;;  %7244 = vmatprep.subr.bf16.mxu0 %v12302_v36  ;;  %7254 = vmatprep.subr.bf16.mxu1 %v12303_v4  ;;  %v4882_v27 = vmul.f32 %v8411_v60, %v10973_v61  ;;  %v12323_v60 = vpack.i.bf16 %v12321_v58, %v12322_v50  ;;  %v12355_v3 = vld [vmem:[#allocation37_spill] sm:$0xff] }
 0x87d   :  { %v8415_v62 = vpop.eup %8414  ;;  %5495 = vrot.lane.b32.xlu0 %v12304_v47, %s8508_s10  ;;  %v4874_v40 = vmul.f32 %v8413_v63, %v10965_v16  ;;  %v12327_v63 = vld [vmem:[#allocation43_spill] sm:$0xff] }
 0x87e   :  { %v8417_v53 = vpop.eup %8416  ;;  %7245 = vmatpush3.bf16.msra.mxu0 %v12302_v36  ;;  %v4934_v59 = vpack.c.bf16 %v4882_v27, %v4881_v15  ;;  %v4871_v61 = vmul.f32 %v8415_v62, %v10953_v24  ;;  %v12315_v24 = vld [vmem:[#allocation48_spill] sm:$0xff]  ;;  %v12328_v36 = vld [vmem:[#allocation22_spill] sm:$0xff]  ;;  %v12331_v62 = vld [vmem:[#allocation75_spill] sm:$0xff] }
 0x87f   :  { %v8419_v55 = vpop.eup %8418  ;;  %7748 = vrot.lane.b32.xlu1 %v12307_v10, %s8515_s16  ;;  %7270 = vmatprep.subr.bf16.mxu0 %v12308_v44  ;;  %v4873_v19 = vmul.f32 %v8417_v53, %v10943_v54  ;;  %v12320_v54 = vpack.i.bf16 %v12318_v9, %v12319_v41  ;;  %v12329_v15 = vpack.i.bf16 %v12327_v63, %v12328_v36  ;;  %v12330_v27 = vld [vmem:[#allocation44_spill] sm:$0xff]  ;;  %v12351_v41 = vld [vmem:[#allocation41_spill] sm:$0xff] }
 0x880   :  { %7219 = vmatmul.mubr.msk.bf16.gmra.mrb[116].mxu0 %vm1468_vm1, %v4934_v59  ;;  %v4872_v34 = vmul.f32 %v8419_v55, %v10979_v32  ;;  %v12317_v32 = vpack.i.bf16 %v12315_v24, %v12316_v17  ;;  %v12332_v47 = vpack.i.bf16 %v12330_v27, %v12331_v62  ;;  %v12333_v53 = vld [vmem:[#allocation60_spill] sm:$0xff]  ;;  %v12334_v59 = vld [vmem:[#allocation57_spill] sm:$0xff]  ;;  %v12338_v10 = vpack.i.bf16 %v12336_v49, %v12337_v14  ;;  %v12349_v17 = vld [vmem:[#allocation6_spill] sm:$0xff] }
 0x881   :  { %7683 = vrot.lane.b32.xlu0 %v12311_v20, %s8509_s1  ;;  %v4930_v16 = vpack.c.bf16 %v4874_v40, %v4873_v19  ;;  %v12335_v55 = vpack.i.bf16 %v12333_v53, %v12334_v59  ;;  %v4683_v40 = vpop.xlane.xlu1 %4682  ;;  %v12342_v20 = vld [vmem:[#allocation56_spill] sm:$0xff]  ;;  %v12343_v19 = vld [vmem:[#allocation71_spill] sm:$0xff]  ;;  %v12358_v27 = vld [vmem:[#allocation77_spill] sm:$0xff] }
 0x882   :  { %v4929_v56 = vpack.c.bf16 %v4872_v34, %v4871_v61  ;;  %v12339_v61 = vld [vmem:[#allocation27_spill] sm:$0xff]  ;;  %v12348_v24 = vld [vmem:[#allocation32_spill] sm:$0xff]  ;;  %v12360_v49 = vld [vmem:[#allocation42_spill] sm:$0xff] }
 0x883   :  { %7758 = vrot.lane.b32.xlu1 %v12314_v11, %s8509_s1  ;;  %v12340_v34 = vld [vmem:[#allocation31_spill] sm:$0xff]  ;;  %v12346_v11 = vld [vmem:[#allocation66_spill] sm:$0xff]  ;;  %v12361_v14 = vld [vmem:[#allocation76_spill] sm:$0xff] }
 0x884   :  { %7202 = vmatprep.mubr.msk.bf16.mxu1 %vm1468_vm1, %v4929_v56  ;;  %v12341_v1 = vpack.i.bf16 %v12339_v61, %v12340_v34  ;;  %v12344_v56 = vpack.i.bf16 %v12342_v20, %v12343_v19  ;;  %v12363_v19 = vld [vmem:[#allocation47_spill] sm:$0xff] }
 0x885   :  { %7693 = vrot.lane.b32.xlu0 %v12317_v32, %s8510_s11  ;;  %7203 = vmatmul.mubr.msk.bf16.gmra.mrb[124].mxu1 %vm1468_vm1, %v4930_v16  ;;  %v12347_v16 = vpack.i.bf16 %v12345_v21, %v12346_v11  ;;  %v12350_v32 = vpack.i.bf16 %v12348_v24, %v12349_v17 }
 0x887   :  { %7768 = vrot.lane.b32.xlu1 %v12320_v54, %s8510_s11  ;;  %v12352_v54 = vld [vmem:[#allocation40_spill] sm:$0xff] }
 0x888   :  { %v12353_v58 = vpack.i.bf16 %v12351_v41, %v12352_v54 }
 0x889   :  { %7703 = vrot.lane.b32.xlu0 %v12323_v60, %s8511_s12 }
 0x88b   :  { %7778 = vrot.lane.b32.xlu1 %v12326_v37, %s8511_s12  ;;  %v12356_v37 = vpack.i.bf16 %v12354_v2, %v12355_v3  ;;  %v12369_v3 = vld [vmem:[#allocation63_spill] sm:$0xff] }
 0x88d   :  { %7713 = vrot.lane.b32.xlu0 %v12329_v15, %s8512_s13  ;;  %v12357_v15 = vld [vmem:[#allocation26_spill] sm:$0xff] }
 0x88e   :  { %v12359_v62 = vpack.i.bf16 %v12357_v15, %v12358_v27  ;;  %v12372_v15 = vld [vmem:[#allocation96_spill] sm:$0xff] }
 0x88f   :  { %7788 = vrot.lane.b32.xlu1 %v12332_v47, %s8512_s13 }
 0x891   :  { %7723 = vrot.lane.b32.xlu0 %v12335_v55, %s8513_s14 }
 0x893   :  { %7798 = vrot.lane.b32.xlu1 %v12338_v10, %s8513_s14  ;;  %v4707_v22 = vpop.xlane.xlu0 %4706  ;;  %v12362_v10 = vpack.i.bf16 %v12360_v49, %v12361_v14  ;;  %v12375_v14 = vld [vmem:[#allocation53_spill] sm:$0xff] }
 0x895   :  { %7733 = vrot.lane.b32.xlu0 %v12341_v1, %s8514_s15 }
 0x897   :  { %7808 = vrot.lane.b32.xlu1 %v12344_v56, %s8514_s15  ;;  %v4677_v23 = vpop.xlane.xlu1 %4676  ;;  %v12364_v56 = vld [vmem:[#allocation21_spill] sm:$0xff] }
 0x899   :  { %7743 = vrot.lane.b32.xlu0 %v12347_v16, %s8515_s16 }
 0x89b   :  { %7818 = vrot.lane.b32.xlu1 %v12350_v32, %s8515_s16  ;;  %v4701_v9 = vpop.xlane.xlu0 %4700  ;;  %v12366_v32 = vld [vmem:[#allocation67_spill] sm:$0xff] }
 0x89c   :  { %8420 = vrcp.f32 %v4701_v9  ;;  %v12367_v9 = vld [vmem:[#allocation10_spill] sm:$0xff] }
 0x89d   :  { %7753 = vrot.lane.b32.xlu0 %v12353_v58, %s8509_s1  ;;  %v4704_v50 = vpop.xlane.xlu1 %4703  ;;  %v12368_v41 = vpack.i.bf16 %v12366_v32, %v12367_v9  ;;  %v12381_v32 = vld [vmem:[#allocation102_spill] sm:$0xff] }
 0x89e   :  { %8422 = vrcp.f32 %v4704_v50 }
 0x89f   :  { %v4686_v60 = vpop.xlane.xlu0 %4685  ;;  %8424 = vrcp.f32 %v4707_v22 }
 0x8a1   :  { %7763 = vrot.lane.b32.xlu0 %v12356_v37, %s8510_s11  ;;  %v4695_v36 = vpop.xlane.xlu1 %4694  ;;  %v12370_v37 = vld [vmem:[#allocation70_spill] sm:$0xff] }
 0x8a3   :  { %v4710_v63 = vpop.xlane.xlu0 %4709 }
 0x8a4   :  { %8426 = vrcp.f32 %v4710_v63  ;;  %v12371_v63 = vpack.i.bf16 %v12369_v3, %v12370_v37 }
 0x8a5   :  { %7773 = vrot.lane.b32.xlu0 %v12359_v62, %s8511_s12  ;;  %8428 = vrcp.f32 %v4686_v60 }
 0x8a6   :  { %v8421_v47 = vpop.eup %8420  ;;  %8430 = vrcp.f32 %v4677_v23  ;;  %v12365_v23 = vpack.i.bf16 %v12363_v19, %v12364_v56  ;;  %v12378_v19 = vld [vmem:[#allocation97_spill] sm:$0xff] }
 0x8a7   :  { %v4680_v53 = vpop.xlane.xlu0 %4679  ;;  %8432 = vrcp.f32 %v4683_v40  ;;  %v4689_v55 = vpop.xlane.xlu1 %4688  ;;  %v4891_v61 = vmul.f32 %v8421_v47, %v11001_v43 }
 0x8a8   :  { %v8423_v59 = vpop.eup %8422  ;;  %8434 = vrcp.f32 %v4680_v53 }
 0x8a9   :  { %7783 = vrot.lane.b32.xlu0 %v12362_v10, %s8512_s13  ;;  %v4892_v34 = vmul.f32 %v8423_v59, %v11007_v35  ;;  %v8425_v20 = vpop.eup %8424 }
 0x8aa   :  { %v4893_v11 = vmul.f32 %v8425_v20, %v10990_v0 }
 0x8ab   :  { %v4719_v1 = vpop.xlane.xlu0 %4718  ;;  %v4939_v22 = vpack.c.bf16 %v4892_v34, %v4891_v61 }
 0x8ad   :  { %7793 = vrot.lane.b32.xlu0 %v12365_v23, %s8513_s14  ;;  %v4716_v40 = vpop.xlane.xlu1 %4715  ;;  %7246 = vmatprep.mubr.msk.bf16.mxu0 %vm1468_vm1, %v4939_v22  ;;  %v12377_v22 = vld [vmem:[#allocation93_spill] sm:$0xff]  ;;  %v12379_v23 = vld [vmem:[#allocation99_spill] sm:$0xff] }
 0x8ae   :  { %v8427_v21 = vpop.eup %8426  ;;  %8436 = vrcp.f32 %v4716_v40 }
 0x8af   :  { %v4894_v16 = vmul.f32 %v8427_v21, %v11018_v8  ;;  %v4713_v43 = vpop.xlane.xlu0 %4712  ;;  %v8429_v24 = vpop.eup %8428 }
 0x8b0   :  { %8438 = vrcp.f32 %v4713_v43  ;;  %v8431_v35 = vpop.eup %8430  ;;  %v4886_v50 = vmul.f32 %v8429_v24, %v11003_v33 }
 0x8b1   :  { %v4940_v17 = vpack.c.bf16 %v4894_v16, %v4893_v11  ;;  %7803 = vrot.lane.b32.xlu0 %v12368_v41, %s8514_s15  ;;  %v8433_v54 = vpop.eup %8432  ;;  %v4883_v0 = vmul.f32 %v8431_v35, %v10995_v5  ;;  %8440 = vrcp.f32 %v4719_v1  ;;  %v4731_v62 = vpop.xlane.xlu1 %4730  ;;  %v12376_v1 = vld [vmem:[#allocation88_spill] sm:$0xff]  ;;  %v12380_v35 = vld [vmem:[#allocation82_spill] sm:$0xff]  ;;  %v12382_v41 = vld [vmem:[#allocation59_spill] sm:$0xff] }
 0x8b2   :  { %v8435_v58 = vpop.eup %8434  ;;  %v4885_v2 = vmul.f32 %v8433_v54, %v10969_v12  ;;  %v12373_v12 = vld [vmem:[#allocation101_spill] sm:$0xff] }
 0x8b3   :  { %7247 = vmatmul.mubr.msk.bf16.vlgmr.msra.gmra.mrb[120].mxu0 %vm1468_vm1, %v4940_v17  ;;  %v4698_v60 = vpop.xlane.xlu0 %4697  ;;  %v4884_v8 = vmul.f32 %v8435_v58, %v11026_v30 }
 0x8b4   :  { %7271 = vmatpush3.bf16.msra.mxu0 %v12308_v44  ;;  %v4936_v27 = vpack.c.bf16 %v4886_v50, %v4885_v2  ;;  %v12374_v44 = vld [vmem:[#allocation87_spill] sm:$0xff] }
 0x8b5   :  { %7813 = vrot.lane.b32.xlu0 %v12371_v63, %s8515_s16  ;;  %7272 = vmatprep.subr.bf16.mxu0 %v12372_v15  ;;  %v4935_v33 = vpack.c.bf16 %v4884_v8, %v4883_v0  ;;  %v12383_v50 = vld [vmem:[#allocation95_spill] sm:$0xff] }
 0x8b7   :  { %v4722_v47 = vpop.xlane.xlu0 %4721  ;;  %7230 = vmatprep.mubr.msk.bf16.mxu1 %vm1468_vm1, %v4935_v33 }
 0x8b8   :  { %v8437_v53 = vpop.eup %8436  ;;  %7273 = vmatpush3.bf16.msra.mxu0 %v12372_v15  ;;  %8442 = vrcp.f32 %v4722_v47  ;;  %7231 = vmatmul.mubr.msk.bf16.vlgmr.msra.gmra.mrb[128].mxu1 %vm1468_vm1, %v4936_v27  ;;  %v4725_v30 = vpop.xlane.xlu1 %4724 }
 0x8b9   :  { %8444 = vrcp.f32 %v4698_v60  ;;  %7274 = vmatprep.subr.bf16.mxu0 %v12373_v12  ;;  %7255 = vmatpush3.bf16.msra.mxu1 %v12303_v4  ;;  %v4896_v10 = vmul.f32 %v8437_v53, %v12375_v14 }
 0x8ba   :  { %v8439_v5 = vpop.eup %8438  ;;  %8446 = vrcp.f32 %v4689_v55  ;;  %7256 = vmatprep.subr.bf16.mxu1 %v12374_v44 }
 0x8bb   :  { %8448 = vrcp.f32 %v4695_v36  ;;  %v4692_v59 = vpop.xlane.xlu0 %4691  ;;  %v4895_v49 = vmul.f32 %v8439_v5, %v11039_v57  ;;  %v8441_v36 = vpop.eup %8440 }
 0x8bc   :  { %7275 = vmatpush3.bf16.msra.mxu0 %v12373_v12  ;;  %8450 = vrcp.f32 %v4692_v59  ;;  %v4897_v56 = vmul.f32 %v8441_v36, %v12378_v19  ;;  %v12386_v19 = vld [vmem:[#allocation103_spill] sm:$0xff] }
 0x8bd   :  { %v4941_v61 = vpack.c.bf16 %v4896_v10, %v4895_v49  ;;  %7257 = vmatpush3.bf16.msra.mxu1 %v12374_v44 }
 0x8be   :  { %v4752_v34 = vpop.xlane.xlu1 %4751  ;;  %7258 = vmatprep.subr.bf16.mxu1 %v12376_v1 }
 0x8bf   :  { %7250 = vmatprep.mubr.msk.bf16.mxu0 %vm1468_vm1, %v4941_v61  ;;  %v11396_v4 = vpop.xlane.xlu0 %4754  ;;  %8452 = vrcp.f32 %v4752_v34  ;;  %v12384_v34 = vld [vmem:[#allocation55_spill] sm:$0xff] }
 0x8c1   :  { %7259 = vmatpush3.bf16.msra.mxu1 %v12376_v1  ;;  %v12385_v1 = vld [vmem:[#allocation100_spill] sm:$0xff] }
 0x8c2   :  { %v8443_v55 = vpop.eup %8442  ;;  %7260 = vmatprep.subr.bf16.mxu1 %v12377_v22  ;;  %v4743_v24 = vpop.xlane.xlu1 %4742 }
 0x8c3   :  { %v8445_v57 = vpop.eup %8444  ;;  %v4749_v20 = vpop.xlane.xlu0 %4748  ;;  %v4898_v40 = vmul.f32 %v8443_v55, %v12379_v23  ;;  %v12387_v23 = vld [vmem:[#allocation104_spill] sm:$0xff] }
 0x8c4   :  { %v8447_v21 = vpop.eup %8446  ;;  %8454 = vrcp.f32 %v4749_v20  ;;  %v4890_v17 = vmul.f32 %v8445_v57, %v12380_v35 }
 0x8c5   :  { %v8449_v11 = vpop.eup %8448  ;;  %v4942_v16 = vpack.c.bf16 %v4898_v40, %v4897_v56  ;;  %7261 = vmatpush3.bf16.msra.mxu1 %v12377_v22  ;;  %v4887_v54 = vmul.f32 %v8447_v21, %v12382_v41 }
 0x8c6   :  { %v8451_v43 = vpop.eup %8450  ;;  %7286 = vmatprep.subr.bf16.mxu1 %v12381_v32  ;;  %v4889_v60 = vmul.f32 %v8449_v11, %v12383_v50  ;;  %v12388_v50 = vld [vmem:[#allocation105_spill] sm:$0xff] }
 0x8c7   :  { %7251 = vmatmul.mubr.msk.bf16.gmra.mrb[124].mxu0 %vm1468_vm1, %v4942_v16  ;;  %v4734_v9 = vpop.xlane.xlu0 %4733  ;;  %v4888_v58 = vmul.f32 %v8451_v43, %v11072_v29 }
 0x8c8   :  { %v4737_v8 = vpop.xlane.xlu1 %4736  ;;  %v4938_v2 = vpack.c.bf16 %v4890_v17, %v4889_v60  ;;  %8456 = vrcp.f32 %v4734_v9 }
 0x8c9   :  { %v4937_v0 = vpack.c.bf16 %v4888_v58, %v4887_v54  ;;  %v8453_v37 = vpop.eup %8452  ;;  %8458 = vrcp.f32 %v4725_v30 }
 0x8ca   :  { %8460 = vrcp.f32 %v4731_v62  ;;  %v4908_v29 = vmul.f32 %v8453_v37, %v11084_v7 }
 0x8cb   :  { %7234 = vmatprep.mubr.msk.bf16.mxu1 %vm1468_vm1, %v4937_v0  ;;  %v4758_v3 = vpop.xlane.xlu0 %4757 }
 0x8cc   :  { %7235 = vmatmul.mubr.msk.bf16.gmra.mrb[132].mxu1 %vm1468_vm1, %v4938_v2 }
 0x8ce   :  { %v8455_v63 = vpop.eup %8454  ;;  %v4764_v15 = vpop.xlane.xlu1 %4763 }
 0x8cf   :  { %v4728_v33 = vpop.xlane.xlu0 %4727  ;;  %v4907_v27 = vmul.f32 %v8455_v63, %v11094_v13 }
 0x8d0   :  { %8462 = vrcp.f32 %v4728_v33 }
 0x8d1   :  { %v4947_v47 = vpack.c.bf16 %v4908_v29, %v4907_v27  ;;  %v12389_v27 = vld [vmem:[#allocation84_spill] sm:$0xff] }
 0x8d2   :  { %v4779_v53 = vpop.xlane.xlu1 %4778  ;;  %v8457_v44 = vpop.eup %8456 }
 0x8d3   :  { %7278 = vmatprep.mubr.msk.bf16.mxu0 %vm1468_vm1, %v4947_v47  ;;  %v4767_v12 = vpop.xlane.xlu0 %4766  ;;  %v8459_v49 = vpop.eup %8458  ;;  %v4902_v30 = vmul.f32 %v8457_v44, %v11104_v39 }
 0x8d4   :  { %v8461_v14 = vpop.eup %8460  ;;  %v4899_v13 = vmul.f32 %v8459_v49, %v12384_v34 }
 0x8d5   :  { %v4901_v36 = vmul.f32 %v8461_v14, %v12385_v1  ;;  %v7986_v14 = vld [vmem:[%s11730_s5] sm:$0xff]  }
 0x8d6   :  { %v4773_v5 = vpop.xlane.xlu1 %4772 }
 0x8d7   :  { %v4761_v59 = vpop.xlane.xlu0 %4760  ;;  %v4944_v57 = vpack.c.bf16 %v4902_v30, %v4901_v36 }
 0x8da   :  { %v8463_v10 = vpop.eup %8462  ;;  %v4791_v62 = vpop.xlane.xlu1 %4790 }
 0x8db   :  { %v4746_v61 = vpop.xlane.xlu0 %4745  ;;  %v4900_v7 = vmul.f32 %v8463_v10, %v11126_v51 }
 0x8dc   :  { %8464 = vrcp.f32 %v4746_v61 }
 0x8dd   :  { %v4943_v55 = vpack.c.bf16 %v4900_v7, %v4899_v13  ;;  %8466 = vrcp.f32 %v4737_v8  ;;  %v12390_v7 = vld [vmem:[#allocation69_spill] sm:$0xff] }
 0x8de   :  { %v4785_v22 = vpop.xlane.xlu1 %4784  ;;  %8468 = vrcp.f32 %v4743_v24 }
 0x8df   :  { %7262 = vmatprep.mubr.msk.bf16.mxu1 %vm1468_vm1, %v4943_v55  ;;  %v4770_v20 = vpop.xlane.xlu0 %4769 }
 0x8e0   :  { %7263 = vmatmul.mubr.msk.bf16.vlgmr.msra.gmra.mrb[136].mxu1 %vm1468_vm1, %v4944_v57 }
 0x8e1   :  { %7287 = vmatpush3.bf16.msra.mxu1 %v12381_v32 }
 0x8e2   :  { %v5585_v39 = vpop.permute.xlu1 %5584  ;;  %7288 = vmatprep.subr.bf16.mxu1 %v12386_v19 }
 0x8e3   :  { %v4740_v56 = vpop.xlane.xlu0 %4739 }
 0x8e4   :  { %8470 = vrcp.f32 %v4740_v56 }
 0x8e5   :  { %8472 = vrcp.f32 %v11396_v4  ;;  %7289 = vmatpush3.bf16.msra.mxu1 %v12386_v19 }
 0x8e6   :  { %8474 = vrcp.f32 %v4758_v3  ;;  %v11424_v51 = vpop.permute.xlu1 %7688  ;;  %7290 = vmatprep.subr.bf16.mxu1 %v12387_v23  ;;  %v8465_v11 = vpop.eup %8464 }
 0x8e7   :  { %8476 = vrcp.f32 %v4764_v15  ;;  %v4782_v40 = vpop.xlane.xlu0 %4781  ;;  %v8467_v16 = vpop.eup %8466  ;;  %v4906_v17 = vmul.f32 %v8465_v11, %v11158_v45  ;;  %v7690_v47 = vunpack.i.l.bf16 %v11424_v51 }
 0x8e8   :  { %8478 = vrcp.f32 %v4773_v5  ;;  %v8469_v43 = vpop.eup %8468  ;;  %v4903_v9 = vmul.f32 %v8467_v16, %v11109_v52  ;;  %v7691_v5 = vunpack.i.h.bf16 %v11424_v51  ;;  %v7987_v51 = vld [vmem:[%s11730_s5 + $0x8] sm:$0xff]  }
 0x8e9   :  { %8480 = vrcp.f32 %v4782_v40  ;;  %7291 = vmatpush3.bf16.msra.mxu1 %v12387_v23  ;;  %v4905_v60 = vmul.f32 %v8469_v43, %v12388_v50  ;;  %v3143_v1 = vsel %vm671_vm0, %v12390_v7, %v7690_v47  ;;  %v12395_v47 = vld [vmem:[#allocation89_spill] sm:$0xff] }
 0x8ea   :  { %8482 = vrcp.f32 %v4761_v59  ;;  %v11428_v21 = vpop.permute.xlu1 %7698  ;;  %7292 = vmatprep.subr.bf16.mxu1 %v5585_v39 }
 0x8eb   :  { %8484 = vrcp.f32 %v4779_v53  ;;  %v4776_v4 = vpop.xlane.xlu0 %4775  ;;  %v4946_v37 = vpack.c.bf16 %v4906_v17, %v4905_v60  ;;  %v7700_v44 = vunpack.i.l.bf16 %v11428_v21 }
 0x8ec   :  { %8486 = vrcp.f32 %v4776_v4 }
 0x8ed   :  { %7293 = vmatpush3.bf16.msra.mxu1 %v5585_v39  ;;  %8488 = vrcp.f32 %v4767_v12  ;;  %v3152_v19 = vsel %vm3149_vm2, %v3143_v1, %v7700_v44  ;;  %v12396_v1 = vld [vmem:[#allocation13_spill] sm:$0xff] }
 0x8ee   :  { %v8471_v24 = vpop.eup %8470  ;;  %v11430_v35 = vpop.permute.xlu1 %7708  ;;  %8490 = vrcp.f32 %v4770_v20  ;;  %v12391_v20 = vld [vmem:[#allocation61_spill] sm:$0xff] }
 0x8ef   :  { %v8473_v32 = vpop.eup %8472  ;;  %v4904_v41 = vmul.f32 %v8471_v24, %v11170_v48  ;;  %v7711_v61 = vunpack.i.h.bf16 %v11430_v35  ;;  %v3144_v39 = vsel %vm671_vm0, %v12391_v20, %v7691_v5 }
 0x8f0   :  { %v8475_v54 = vpop.eup %8474  ;;  %v4794_v58 = vpop.xlane.xlu0 %4793  ;;  %v4909_v29 = vmul.f32 %v8473_v32, %v12389_v27  ;;  %v12394_v27 = vld [vmem:[#allocation106_spill] sm:$0xff] }
 0x8f1   :  { %v8477_v0 = vpop.eup %8476  ;;  %v4945_v8 = vpack.c.bf16 %v4904_v41, %v4903_v9  ;;  %8492 = vrcp.f32 %v4794_v58  ;;  %v4910_v45 = vmul.f32 %v8475_v54, %v11113_v28  ;;  %v12392_v54 = vld [vmem:[#allocation107_spill] sm:$0xff] }
 0x8f2   :  { %v8479_v2 = vpop.eup %8478  ;;  %v11436_v3 = vpop.permute.xlu1 %7718  ;;  %8494 = vrcp.f32 %v4785_v22 }
 0x8f3   :  { %v8481_v63 = vpop.eup %8480  ;;  %7266 = vmatprep.mubr.msk.bf16.mxu1 %vm1468_vm1, %v4945_v8  ;;  %8496 = vrcp.f32 %v4791_v62  ;;  %v4915_v28 = vmul.f32 %v8479_v2, %v11145_v38  ;;  %v4948_v10 = vpack.c.bf16 %v4910_v45, %v4909_v29  ;;  %v7710_v62 = vunpack.i.l.bf16 %v11430_v35 }
 0x8f4   :  { %v8483_v52 = vpop.eup %8482  ;;  %v4788_v48 = vpop.xlane.xlu0 %4787  ;;  %7267 = vmatmul.mubr.msk.bf16.gmra.mrb[140].mxu1 %vm1468_vm1, %v4946_v37  ;;  %v4918_v53 = vmul.f32 %v8481_v63, %v11184_v6  ;;  %v7701_v6 = vunpack.i.h.bf16 %v11428_v21  ;;  %v7720_v34 = vunpack.i.l.bf16 %v11436_v3 }
 0x8f5   :  { %v8485_v15 = vpop.eup %8484  ;;  %8498 = vrcp.f32 %v4788_v48  ;;  %v4911_v49 = vmul.f32 %v8483_v52, %v11150_v26  ;;  %v4912_v26 = vmul.f32 %v8477_v0, %v11128_v18  ;;  %v3161_v21 = vsel %vm3158_vm3, %v3152_v19, %v7710_v62  ;;  %v12393_v52 = vld [vmem:[#allocation85_spill] sm:$0xff] }
 0x8f6   :  { %v8487_v33 = vpop.eup %8486  ;;  %v7729_v12 = vpop.permute.xlu1 %7728  ;;  %v4917_v30 = vmul.f32 %v8485_v15, %v11135_v46  ;;  %v7721_v46 = vunpack.i.h.bf16 %v11436_v3  ;;  %v3153_v40 = vsel %vm3149_vm2, %v3144_v39, %v7701_v6  ;;  %v3170_v35 = vsel %vm3167_vm4, %v3161_v21, %v7720_v34 }
 0x8f7   :  { %v4916_v59 = vmul.f32 %v8487_v33, %v11186_v31  ;;  %v8489_v13 = vpop.eup %8488  ;;  %v7730_v55 = vunpack.i.l.bf16 %v7729_v12  ;;  %v7731_v56 = vunpack.i.h.bf16 %v7729_v12  ;;  %v4949_v18 = vpack.c.bf16 %v4912_v26, %v4911_v49 }
 0x8f8   :  { %v5496_v38 = vpop.permute.xlu0 %5495  ;;  %v4952_v36 = vpack.c.bf16 %v4918_v53, %v4917_v30  ;;  %v8491_v22 = vpop.eup %8490  ;;  %v3162_v24 = vsel %vm3158_vm3, %v3153_v40, %v7711_v61  ;;  %v4913_v29 = vmul.f32 %v8489_v13, %v12394_v27  ;;  %v12399_v40 = vld [vmem:[#allocation64_spill] sm:$0xff] }
 0x8f9   :  { %7276 = vmatprep.subr.bf16.mxu0 %v5496_v38  ;;  %v4951_v31 = vpack.c.bf16 %v4916_v59, %v4915_v28  ;;  %v3171_v32 = vsel %vm3167_vm4, %v3162_v24, %v7721_v46  ;;  %v3179_v9 = vsel %vm3176_vm5, %v3170_v35, %v7730_v55  ;;  %v4914_v58 = vmul.f32 %v8491_v22, %v12392_v54  ;;  %v12397_v46 = vld [vmem:[#allocation12_spill] sm:$0xff] }
 0x8fa   :  { %v7739_v57 = vpop.permute.xlu1 %7738  ;;  %7277 = vmatpush3.bf16.msra.mxu0 %v5496_v38  ;;  %v3180_v60 = vsel %vm3176_vm5, %v3171_v32, %v7731_v56 }
 0x8fb   :  { %7294 = vmatprep.mubr.msk.bf16.mxu1 %vm1468_vm1, %v4951_v31  ;;  %7302 = vmatprep.subr.bf16.mxu0 %v7986_v14  ;;  %v8493_v23 = vpop.eup %8492  ;;  %v7741_v11 = vunpack.i.h.bf16 %v7739_v57  ;;  %v7740_v4 = vunpack.i.l.bf16 %v7739_v57  ;;  %v4950_v5 = vpack.c.bf16 %v4914_v58, %v4913_v29 }
 0x8fc   :  { %v7684_v16 = vpop.permute.xlu0 %7683  ;;  %7295 = vmatmul.mubr.msk.bf16.vlgmr.msra.gmra.mrb[144].mxu1 %vm1468_vm1, %v4952_v36  ;;  %v8495_v43 = vpop.eup %8494  ;;  %v4922_v2 = vmul.f32 %v8493_v23, %v11201_v25 }
 0x8fd   :  { %7279 = vmatmul.mubr.msk.bf16.vlgmr.msra.gmra.mrb[128].mxu0 %vm1468_vm1, %v4948_v10  ;;  %v8497_v17 = vpop.eup %8496  ;;  %v3188_v3 = vsel %vm3185_vm6, %v3179_v9, %v7740_v4  ;;  %v3189_v37 = vsel %vm3185_vm6, %v3180_v60, %v7741_v11  ;;  %v4919_v45 = vmul.f32 %v8495_v43, %v12393_v52  ;;  %v7686_v10 = vunpack.i.h.bf16 %v7684_v16 }
 0x8fe   :  { %v7749_v41 = vpop.permute.xlu1 %7748  ;;  %7282 = vmatprep.mubr.msk.bf16.mxu0 %vm1468_vm1, %v4949_v18  ;;  %7303 = vmatpush3.bf16.msra.mxu0 %v7986_v14  ;;  %v4921_v25 = vmul.f32 %v8497_v17, %v12395_v47  ;;  %v7685_v30 = vunpack.i.l.bf16 %v7684_v16 }
 0x8ff   :  { %v8499_v50 = vpop.eup %8498  ;;  %v7751_v0 = vunpack.i.h.bf16 %v7749_v41  ;;  %v7750_v8 = vunpack.i.l.bf16 %v7749_v41  ;;  %7304 = vmatprep.subr.bf16.mxu0 %v7987_v51  ;;  %v3142_v36 = vsel %vm671_vm0, %v12396_v1, %v7686_v10 }
 0x900   :  { %v7694_v63 = vpop.permute.xlu0 %7693  ;;  %v4920_v48 = vmul.f32 %v8499_v50, %v11211_v42  ;;  %v4954_v44 = vpack.c.bf16 %v4922_v2, %v4921_v25  ;;  %v3141_v55 = vsel %vm671_vm0, %v12397_v46, %v7685_v30 }
 0x901   :  { %v11485_v15 = vsel %vm3194_vm7, %v3188_v3, %v7750_v8  ;;  %v11488_v33 = vsel %vm3194_vm7, %v3189_v37, %v7751_v0  ;;  %v7696_v62 = vunpack.i.h.bf16 %v7694_v63  ;;  %v7695_v38 = vunpack.i.l.bf16 %v7694_v63 }
 0x902   :  { %v5948_v53 = vpack.c.bf16 %v11488_v33, %v11485_v15  ;;  %v7759_v12 = vpop.permute.xlu1 %7758  ;;  %v4953_v28 = vpack.c.bf16 %v4920_v48, %v4919_v45  ;;  %7305 = vmatpush3.bf16.msra.mxu0 %v7987_v51  ;;  %v12398_v51 = vld [vmem:[#allocation68_spill] sm:$0xff] }
 0x903   :  { %v7761_v61 = vunpack.i.h.bf16 %v7759_v12  ;;  %v7760_v34 = vunpack.i.l.bf16 %v7759_v12  ;;  %v3150_v39 = vsel %vm3149_vm2, %v3141_v55, %v7695_v38  ;;  %v3151_v19 = vsel %vm3149_vm2, %v3142_v36, %v7696_v62 }
 0x904   :  { %7298 = vmatprep.mubr.msk.bf16.mxu1 %vm1468_vm1, %v4953_v28  ;;  %v7704_v42 = vpop.permute.xlu0 %7703 }
 0x905   :  { %7283 = vmatmul.mubr.msk.bf16.gmra.mrb[132].mxu0 %vm1468_vm1, %v4950_v5  ;;  %7299 = vmatmul.mubr.msk.bf16.gmra.mrb[148].mxu1 %vm1468_vm1, %v4954_v44  ;;  %v7706_v26 = vunpack.i.h.bf16 %v7704_v42  ;;  %v7705_v13 = vunpack.i.l.bf16 %v7704_v42  ;;  %v3148_v23 = vsel %vm671_vm0, %v12398_v51, %v7761_v61  ;;  %v3147_v21 = vsel %vm671_vm0, %v12399_v40, %v7760_v34  ;;  %v12401_v51 = vld [vmem:[#allocation72_spill] sm:$0xff] }
 0x906   :  { %v7769_v59 = vpop.permute.xlu1 %7768 }
 0x907   :  { %v7770_v7 = vunpack.i.l.bf16 %v7769_v59  ;;  %v3159_v43 = vsel %vm3158_vm3, %v3150_v39, %v7705_v13  ;;  %v3160_v24 = vsel %vm3158_vm3, %v3151_v19, %v7706_v26  ;;  %v7771_v35 = vunpack.i.h.bf16 %v7769_v59 }
 0x908   :  { %v7714_v49 = vpop.permute.xlu0 %7713 }
 0x909   :  { %v7716_v57 = vunpack.i.h.bf16 %v7714_v49  ;;  %v7715_v22 = vunpack.i.l.bf16 %v7714_v49  ;;  %v3156_v17 = vsel %vm3149_vm2, %v3147_v21, %v7770_v7  ;;  %v3157_v47 = vsel %vm3149_vm2, %v3148_v23, %v7771_v35 }
 0x90a   :  { %v7779_v14 = vpop.permute.xlu1 %7778 }
 0x90b   :  { %v3168_v32 = vsel %vm3167_vm4, %v3159_v43, %v7715_v22  ;;  %v3169_v9 = vsel %vm3167_vm4, %v3160_v24, %v7716_v57  ;;  %v7781_v41 = vunpack.i.h.bf16 %v7779_v14  ;;  %v7780_v54 = vunpack.i.l.bf16 %v7779_v14 }
 0x90c   :  { %v7724_v6 = vpop.permute.xlu0 %7723 }
 0x90d   :  { %v7726_v56 = vunpack.i.h.bf16 %v7724_v6  ;;  %v7725_v18 = vunpack.i.l.bf16 %v7724_v6  ;;  %v3165_v44 = vsel %vm3158_vm3, %v3156_v17, %v7780_v54  ;;  %v3166_v42 = vsel %vm3158_vm3, %v3157_v47, %v7781_v41 }
 0x90e   :  { %v7789_v31 = vpop.permute.xlu1 %7788 }
 0x90f   :  { %v3177_v50 = vsel %vm3176_vm5, %v3168_v32, %v7725_v18  ;;  %v3178_v60 = vsel %vm3176_vm5, %v3169_v9, %v7726_v56  ;;  %v7791_v2 = vunpack.i.h.bf16 %v7789_v31  ;;  %v7790_v3 = vunpack.i.l.bf16 %v7789_v31  ;;  %v12400_v56 = vld [vmem:[#allocation73_spill] sm:$0xff] }
 0x910   :  { %v7734_v20 = vpop.permute.xlu0 %7733 }
 0x911   :  { %v7736_v11 = vunpack.i.h.bf16 %v7734_v20  ;;  %v7735_v4 = vunpack.i.l.bf16 %v7734_v20  ;;  %v3174_v59 = vsel %vm3167_vm4, %v3165_v44, %v7790_v3  ;;  %v3175_v49 = vsel %vm3167_vm4, %v3166_v42, %v7791_v2 }
 0x912   :  { %v7799_v16 = vpop.permute.xlu1 %7798 }
 0x913   :  { %v3186_v37 = vsel %vm3185_vm6, %v3177_v50, %v7735_v4  ;;  %v3187_v63 = vsel %vm3185_vm6, %v3178_v60, %v7736_v11  ;;  %v7801_v45 = vunpack.i.h.bf16 %v7799_v16  ;;  %v7800_v48 = vunpack.i.l.bf16 %v7799_v16 }
 0x914   :  { %v7744_v58 = vpop.permute.xlu0 %7743 }
 0x915   :  { %v7746_v0 = vunpack.i.h.bf16 %v7744_v58  ;;  %v7745_v8 = vunpack.i.l.bf16 %v7744_v58  ;;  %v3183_v10 = vsel %vm3176_vm5, %v3174_v59, %v7800_v48  ;;  %v3184_v30 = vsel %vm3176_vm5, %v3175_v49, %v7801_v45 }
 0x916   :  { %v7809_v52 = vpop.permute.xlu1 %7808 }
 0x917   :  { %v3195_v27 = vsel %vm3194_vm7, %v3186_v37, %v7745_v8  ;;  %v3196_v29 = vsel %vm3194_vm7, %v3187_v63, %v7746_v0  ;;  %v7811_v12 = vunpack.i.h.bf16 %v7809_v52  ;;  %v7810_v28 = vunpack.i.l.bf16 %v7809_v52 }
 0x918   :  { %v5947_v25 = vpack.c.bf16 %v3196_v29, %v3195_v27  ;;  %v7754_v5 = vpop.permute.xlu0 %7753 }
 0x919   :  { %v3192_v38 = vsel %vm3185_vm6, %v3183_v10, %v7810_v28  ;;  %v3193_v61 = vsel %vm3185_vm6, %v3184_v30, %v7811_v12  ;;  %v7756_v46 = vunpack.i.h.bf16 %v7754_v5  ;;  %v7755_v55 = vunpack.i.l.bf16 %v7754_v5 }
 0x91a   :  { %v7819_v14 = vpop.permute.xlu1 %7818  ;;  %7306 = vmatprep.mubr.msk.bf16.mxu0 %vm5978_vm8, %v5947_v25 }
 0x91b   :  { %v7821_v6 = vunpack.i.h.bf16 %v7819_v14  ;;  %v7820_v62 = vunpack.i.l.bf16 %v7819_v14  ;;  %7307 = vmatmul.mubr.msk.bf16.vlgmr.msra.gmra.mrb[136].mxu0 %vm5978_vm8, %v5948_v53  ;;  %v3146_v18 = vsel %vm671_vm0, %v12400_v56, %v7756_v46  ;;  %v3145_v23 = vsel %vm671_vm0, %v12401_v51, %v7755_v55 }
 0x91c   :  { %v7764_v34 = vpop.permute.xlu0 %7763 }
 0x91d   :  { %v3201_v31 = vsel %vm3194_vm7, %v3192_v38, %v7820_v62  ;;  %v3202_v26 = vsel %vm3194_vm7, %v3193_v61, %v7821_v6  ;;  %v7766_v57 = vunpack.i.h.bf16 %v7764_v34  ;;  %v7765_v22 = vunpack.i.l.bf16 %v7764_v34 }
 0x91e   :  { %v5950_v13 = vpack.c.bf16 %v3202_v26, %v3201_v31 }
 0x91f   :  { %v3154_v4 = vsel %vm3149_vm2, %v3145_v23, %v7765_v22  ;;  %v3155_v16 = vsel %vm3149_vm2, %v3146_v18, %v7766_v57 }
 0x920   :  { %v7774_v7 = vpop.permute.xlu0 %7773 }
 0x921   :  { %v7776_v15 = vunpack.i.h.bf16 %v7774_v7  ;;  %v7775_v33 = vunpack.i.l.bf16 %v7774_v7 }
 0x923   :  { %v3163_v17 = vsel %vm3158_vm3, %v3154_v4, %v7775_v33  ;;  %v3164_v32 = vsel %vm3158_vm3, %v3155_v16, %v7776_v15 }
 0x924   :  { %v7784_v1 = vpop.permute.xlu0 %7783 }
 0x925   :  { %v7786_v53 = vunpack.i.h.bf16 %v7784_v1  ;;  %v7785_v20 = vunpack.i.l.bf16 %v7784_v1 }
 0x927   :  { %v3172_v41 = vsel %vm3167_vm4, %v3163_v17, %v7785_v20  ;;  %v3173_v54 = vsel %vm3167_vm4, %v3164_v32, %v7786_v53 }
 0x928   :  { %v7794_v36 = vpop.permute.xlu0 %7793 }
 0x929   :  { %v7796_v40 = vunpack.i.h.bf16 %v7794_v36  ;;  %v7795_v21 = vunpack.i.l.bf16 %v7794_v36 }
 0x92b   :  { %v3181_v50 = vsel %vm3176_vm5, %v3172_v41, %v7795_v21  ;;  %v3182_v60 = vsel %vm3176_vm5, %v3173_v54, %v7796_v40 }
 0x92c   :  { %v11534_v39 = vpop.f32.mrb[104].mxu0  ;;  %v7804_v19 = vpop.permute.xlu0 %7803 }
 0x92d   :  { %v11540_v11 = vpop.f32.mrb[105].mxu0  ;;  %v7806_v43 = vunpack.i.h.bf16 %v7804_v19  ;;  %v7805_v24 = vunpack.i.l.bf16 %v7804_v19 }
 0x92e   :  { %v11544_v35 = vpop.f32.mrb[106].mxu0 }
 0x92f   :  { %v11548_v9 = vpop.f32.mrb[107].mxu0  ;;  %v3190_v2 = vsel %vm3185_vm6, %v3181_v50, %v7805_v24  ;;  %v3191_v3 = vsel %vm3185_vm6, %v3182_v60, %v7806_v43 }
 0x930   :  { %v7814_v58 = vpop.permute.xlu0 %7813 }
 0x931   :  { %v7816_v0 = vunpack.i.h.bf16 %v7814_v58  ;;  %v7815_v8 = vunpack.i.l.bf16 %v7814_v58 }
 0x933   :  { %v3199_v37 = vsel %vm3194_vm7, %v3190_v2, %v7815_v8  ;;  %v3200_v63 = vsel %vm3194_vm7, %v3191_v3, %v7816_v0 }
 0x934   :  { %v5949_v52 = vpack.c.bf16 %v3200_v63, %v3199_v37  ;;  %v11558_v45 = vpop.f32.mrb[108].mxu0 }
 0x935   :  { %v11560_v48 = vpop.f32.mrb[109].mxu0 }
 0x936   :  { %v11562_v27 = vpop.f32.mrb[110].mxu0  ;;  %7310 = vmatprep.mubr.msk.bf16.mxu0 %vm5978_vm8, %v5949_v52 }
 0x937   :  { %v11565_v29 = vpop.f32.mrb[111].mxu0  ;;  %7311 = vmatmul.mubr.msk.bf16.gmra.mrb[140].mxu0 %vm5978_vm8, %v5950_v13 }
 0x940   :  { %v7200_v47 = vpop.f32.mrb[120].mxu1 }
 0x941   :  { %v5102_v25 = vpop.f32.mrb[121].mxu1 }
 0x942   :  { %v7201_v12 = vpop.f32.mrb[122].mxu1 }
 0x943   :  { %v7822_v28 = vpack.i.bf16 %v7201_v12, %v7200_v47  ;;  %v5105_v5 = vpop.f32.mrb[123].mxu1 }
 0x944   :  { %v7832_v44 = vpack.i.bf16 %v5105_v5, %v5102_v25  ;;  %v7216_v42 = vpop.f32.mrb[112].mxu0 }
 0x945   :  { %7823 = vrot.lane.b32.xlu1 %v7822_v28, %s8509_s1  ;;  %v5191_v59 = vpop.f32.mrb[113].mxu0 }
 0x946   :  { %7833 = vrot.lane.b32.xlu0 %v7832_v44, %s8509_s1  ;;  %v7217_v49 = vpop.f32.mrb[114].mxu0 }
 0x947   :  { %v7827_v14 = vpack.i.bf16 %v7217_v49, %v7216_v42  ;;  %v5194_v10 = vpop.f32.mrb[115].mxu0 }
 0x948   :  { %v7837_v30 = vpack.i.bf16 %v5194_v10, %v5191_v59 }
 0x949   :  { %7828 = vrot.lane.b32.xlu1 %v7827_v14, %s8510_s11 }
 0x94a   :  { %7838 = vrot.lane.b32.xlu0 %v7837_v30, %s8510_s11 }
 0x953   :  { %v7220_v6 = vpop.f32.mrb[116].mxu0 }
 0x954   :  { %v5207_v62 = vpop.f32.mrb[117].mxu0 }
 0x955   :  { %v7221_v38 = vpop.f32.mrb[118].mxu0 }
 0x956   :  { %v7847_v61 = vpack.i.bf16 %v7221_v38, %v7220_v6  ;;  %v5210_v34 = vpop.f32.mrb[119].mxu0 }
 0x957   :  { %v7857_v31 = vpack.i.bf16 %v5210_v34, %v5207_v62 }
 0x958   :  { %v7204_v26 = vpop.f32.mrb[124].mxu1 }
 0x959   :  { %v5118_v13 = vpop.f32.mrb[125].mxu1 }
 0x95a   :  { %v7205_v7 = vpop.f32.mrb[126].mxu1 }
 0x95b   :  { %v7842_v1 = vpack.i.bf16 %v7205_v7, %v7204_v26  ;;  %v5121_v36 = vpop.f32.mrb[127].mxu1 }
 0x95c   :  { %v7852_v46 = vpack.i.bf16 %v5121_v36, %v5118_v13 }
 0x95d   :  { %7843 = vrot.lane.b32.xlu1 %v7842_v1, %s8509_s1 }
 0x95e   :  { %7853 = vrot.lane.b32.xlu0 %v7852_v46, %s8509_s1 }
 0x961   :  { %7848 = vrot.lane.b32.xlu1 %v7847_v61, %s8510_s11 }
 0x962   :  { %7858 = vrot.lane.b32.xlu0 %v7857_v31, %s8510_s11 }
 0x986   :  { %v7248_v55 = vpop.f32.mrb[120].mxu0 }
 0x987   :  { %v5369_v57 = vpop.f32.mrb[121].mxu0 }
 0x988   :  { %v7249_v22 = vpop.f32.mrb[122].mxu0 }
 0x989   :  { %v7867_v15 = vpack.i.bf16 %v7249_v22, %v7248_v55  ;;  %v5372_v33 = vpop.f32.mrb[123].mxu0 }
 0x98a   :  { %v7877_v53 = vpack.i.bf16 %v5372_v33, %v5369_v57 }
 0x98b   :  { %v7232_v20 = vpop.f32.mrb[128].mxu1 }
 0x98c   :  { %v5280_v19 = vpop.f32.mrb[129].mxu1 }
 0x98d   :  { %v7233_v56 = vpop.f32.mrb[130].mxu1 }
 0x98e   :  { %v7862_v18 = vpack.i.bf16 %v7233_v56, %v7232_v20  ;;  %v5283_v51 = vpop.f32.mrb[131].mxu1 }
 0x98f   :  { %v7872_v23 = vpack.i.bf16 %v5283_v51, %v5280_v19 }
 0x990   :  { %7863 = vrot.lane.b32.xlu1 %v7862_v18, %s8511_s12 }
 0x991   :  { %7873 = vrot.lane.b32.xlu0 %v7872_v23, %s8511_s12 }
 0x994   :  { %7868 = vrot.lane.b32.xlu1 %v7867_v15, %s8512_s13 }
 0x995   :  { %7878 = vrot.lane.b32.xlu0 %v7877_v53, %s8512_s13  ;;  %v11599_v53 = vld [vmem:[%s11731_s6] ss:$0 sm:$0xff] }
 0x99a   :  { %v7252_v40 = vpop.f32.mrb[124].mxu0 }
 0x99b   :  { %v5385_v21 = vpop.f32.mrb[125].mxu0 }
 0x99c   :  { %v7253_v4 = vpop.f32.mrb[126].mxu0 }
 0x99d   :  { %v7887_v16 = vpack.i.bf16 %v7253_v4, %v7252_v40  ;;  %v5388_v43 = vpop.f32.mrb[127].mxu0 }
 0x99e   :  { %v7897_v24 = vpack.i.bf16 %v5388_v43, %v5385_v21 }
 0x99f   :  { %v7236_v17 = vpop.f32.mrb[132].mxu1 }
 0x9a0   :  { %v5296_v32 = vpop.f32.mrb[133].mxu1 }
 0x9a1   :  { %v7237_v41 = vpop.f32.mrb[134].mxu1 }
 0x9a2   :  { %v7882_v54 = vpack.i.bf16 %v7237_v41, %v7236_v17  ;;  %v5299_v58 = vpop.f32.mrb[135].mxu1 }
 0x9a3   :  { %v7892_v50 = vpack.i.bf16 %v5299_v58, %v5296_v32 }
 0x9a4   :  { %7883 = vrot.lane.b32.xlu1 %v7882_v54, %s8511_s12 }
 0x9a5   :  { %7893 = vrot.lane.b32.xlu0 %v7892_v50, %s8511_s12 }
 0x9a8   :  { %7888 = vrot.lane.b32.xlu1 %v7887_v16, %s8512_s13 }
 0x9a9   :  { %7898 = vrot.lane.b32.xlu0 %v7897_v24, %s8512_s13 }
 0x9b3   :  { %v7264_v60 = vpop.f32.mrb[136].mxu1 }
 0x9b4   :  { %v5458_v0 = vpop.f32.mrb[137].mxu1 }
 0x9b5   :  { %v7265_v8 = vpop.f32.mrb[138].mxu1 }
 0x9b6   :  { %v7902_v2 = vpack.i.bf16 %v7265_v8, %v7264_v60  ;;  %v5461_v3 = vpop.f32.mrb[139].mxu1 }
 0x9b7   :  { %v7912_v37 = vpack.i.bf16 %v5461_v3, %v5458_v0  ;;  %v7824_v0 = vpop.permute.xlu1 %7823 }
 0x9b8   :  { %7903 = vrot.lane.b32.xlu1 %v7902_v2, %s8513_s14  ;;  %v7834_v8 = vpop.permute.xlu0 %7833 }
 0x9b9   :  { %7913 = vrot.lane.b32.xlu0 %v7912_v37, %s8513_s14 }
 0x9bb   :  { %v7829_v2 = vpop.permute.xlu1 %7828 }
 0x9bc   :  { %v7839_v3 = vpop.permute.xlu0 %7838 }
 0x9c7   :  { %v7268_v63 = vpop.f32.mrb[140].mxu1 }
 0x9c8   :  { %v5474_v52 = vpop.f32.mrb[141].mxu1 }
 0x9c9   :  { %v7269_v47 = vpop.f32.mrb[142].mxu1 }
 0x9ca   :  { %v7922_v25 = vpack.i.bf16 %v7269_v47, %v7268_v63  ;;  %v5477_v12 = vpop.f32.mrb[143].mxu1 }
 0x9cb   :  { %v7927_v28 = vpack.i.bf16 %v5477_v12, %v5474_v52 }
 0x9cf   :  { %v7296_v5 = vpop.f32.mrb[144].mxu1  ;;  %v7844_v37 = vpop.permute.xlu1 %7843 }
 0x9d0   :  { %v7280_v44 = vpop.f32.mrb[128].mxu0  ;;  %v5636_v59 = vpop.f32.mrb[145].mxu1 }
 0x9d1   :  { %v5547_v42 = vpop.f32.mrb[129].mxu0  ;;  %v7297_v14 = vpop.f32.mrb[146].mxu1 }
 0x9d2   :  { %v7281_v49 = vpop.f32.mrb[130].mxu0  ;;  %v7932_v30 = vpack.i.bf16 %v7297_v14, %v7296_v5  ;;  %v5639_v38 = vpop.f32.mrb[147].mxu1  ;;  %v7835_v14 = vunpack.i.l.bf16 %v7834_v8 }
 0x9d3   :  { %v7907_v10 = vpack.i.bf16 %v7281_v49, %v7280_v44  ;;  %v5550_v6 = vpop.f32.mrb[131].mxu0  ;;  %v7937_v61 = vpack.i.bf16 %v5639_v38, %v5636_v59  ;;  %v7854_v63 = vpop.permute.xlu0 %7853  ;;  %v7826_v59 = vunpack.i.h.bf16 %v7824_v0  ;;  %v7825_v49 = vunpack.i.l.bf16 %v7824_v0 }
 0x9d4   :  { %v7917_v62 = vpack.i.bf16 %v5550_v6, %v5547_v42  ;;  %v7849_v52 = vpop.permute.xlu1 %7848  ;;  %v7830_v6 = vunpack.i.l.bf16 %v7829_v2  ;;  %v7841_v38 = vunpack.i.h.bf16 %v7839_v3 }
 0x9d5   :  { %7908 = vrot.lane.b32.xlu1 %v7907_v10, %s8514_s15  ;;  %v7836_v10 = vunpack.i.h.bf16 %v7834_v8 }
 0x9d6   :  { %7918 = vrot.lane.b32.xlu0 %v7917_v62, %s8514_s15  ;;  %v7840_v62 = vunpack.i.l.bf16 %v7839_v3 }
 0x9d7   :  { %v7859_v47 = vpop.permute.xlu0 %7858 }
 0x9d8   :  { %v7284_v34 = vpop.f32.mrb[132].mxu0  ;;  %v7300_v31 = vpop.f32.mrb[148].mxu1 }
 0x9d9   :  { %v5652_v26 = vpop.f32.mrb[149].mxu1  ;;  %7923 = vrot.lane.b32.xlu1 %v7922_v25, %s8513_s14  ;;  %v5563_v13 = vpop.f32.mrb[133].mxu0 }
 0x9da   :  { %v7301_v7 = vpop.f32.mrb[150].mxu1  ;;  %7928 = vrot.lane.b32.xlu0 %v7927_v28, %s8513_s14  ;;  %v7285_v1 = vpop.f32.mrb[134].mxu0 }
 0x9db   :  { %v7957_v36 = vpack.i.bf16 %v7301_v7, %v7300_v31  ;;  %v7947_v46 = vpack.i.bf16 %v7285_v1, %v7284_v34  ;;  %v5566_v55 = vpop.f32.mrb[135].mxu0  ;;  %v5655_v57 = vpop.f32.mrb[151].mxu1  ;;  %v5894_v31 = vsel %vm671_vm0, %v11544_v35, %v7826_v59  ;;  %v7846_v7 = vunpack.i.h.bf16 %v7844_v37 }
 0x9dc   :  { %v7942_v22 = vpack.i.bf16 %v5566_v55, %v5563_v13  ;;  %v7952_v15 = vpack.i.bf16 %v5655_v57, %v5652_v26  ;;  %v5893_v26 = vsel %vm671_vm0, %v11534_v39, %v7825_v49  ;;  %v5891_v13 = vsel %vm671_vm0, %v11540_v11, %v7835_v14 }
 0x9dd   :  { %7933 = vrot.lane.b32.xlu1 %v7932_v30, %s8515_s16  ;;  %v7831_v30 = vunpack.i.h.bf16 %v7829_v2  ;;  %v5892_v1 = vsel %vm671_vm0, %v11548_v9, %v7836_v10  ;;  %v5899_v55 = vsel %vm3149_vm2, %v5891_v13, %v7840_v62  ;;  %v7856_v35 = vunpack.i.h.bf16 %v7854_v63 }
 0x9de   :  { %7938 = vrot.lane.b32.xlu0 %v7937_v61, %s8515_s16  ;;  %v5900_v57 = vsel %vm3149_vm2, %v5892_v1, %v7841_v38  ;;  %v7851_v39 = vunpack.i.h.bf16 %v7849_v52  ;;  %v7860_v11 = vunpack.i.l.bf16 %v7859_v47  ;;  %v5898_v9 = vsel %vm671_vm0, %v11562_v27, %v7846_v7 }
 0x9e1   :  { %7948 = vrot.lane.b32.xlu1 %v7947_v46, %s8514_s15  ;;  %v5901_v46 = vsel %vm3149_vm2, %v5893_v26, %v7830_v6 }
 0x9e2   :  { %7943 = vrot.lane.b32.xlu0 %v7942_v22, %s8514_s15  ;;  %v7845_v22 = vunpack.i.l.bf16 %v7844_v37 }
 0x9e5   :  { %7958 = vrot.lane.b32.xlu1 %v7957_v36, %s8515_s16  ;;  %v5902_v36 = vsel %vm3149_vm2, %v5894_v31, %v7831_v30 }
 0x9e6   :  { %7953 = vrot.lane.b32.xlu0 %v7952_v15, %s8515_s16  ;;  %v7855_v15 = vunpack.i.l.bf16 %v7854_v63 }
 0x9ee   :  { %v7308_v33 = vpop.f32.mrb[136].mxu0 }
 0x9ef   :  { %v6037_v20 = vpop.f32.mrb[137].mxu0  ;;  %v6046_v56 = vadd.f32 %v7308_v33, %v11599_v53 }
 0x9f0   :  { %v7309_v19 = vpop.f32.mrb[138].mxu0  ;;  %v6038_v23 = vadd.f32 %v11599_v53, %v6037_v20  ;;  %v7850_v20 = vunpack.i.l.bf16 %v7849_v52 }
 0x9f1   :  { %v6049_v18 = vadd.f32 %v7309_v19, %v11599_v53  ;;  %v6040_v51 = vpop.f32.mrb[139].mxu0  ;;  %v7861_v19 = vunpack.i.h.bf16 %v7859_v47 }
 0x9f2   :  { %v6041_v40 = vadd.f32 %v11599_v53, %v6040_v51 }
 0x9f3   :  { %v6389_v21 = vpack.c.bf16 %v6049_v18, %v6046_v56 }
 0x9f4   :  { %v6384_v4 = vpack.c.bf16 %v6041_v40, %v6038_v23 }
 0x9f5   :  { %6421 = vst [vmem:[%s11732_s7 + $0x8] sm:$0xff] %v6389_v21  }
 0x9f6   :  { %6385 = vst [vmem:[%s11732_s7] sm:$0xff] %v6384_v4  }
 0xa02   :  { %v7864_v25 = vpop.permute.xlu1 %7863 }
 0xa03   :  { %v7874_v12 = vpop.permute.xlu0 %7873  ;;  %v7866_v18 = vunpack.i.h.bf16 %v7864_v25  ;;  %v7865_v51 = vunpack.i.l.bf16 %v7864_v25 }
 0xa04   :  { %v7875_v23 = vunpack.i.l.bf16 %v7874_v12  ;;  %v7876_v40 = vunpack.i.h.bf16 %v7874_v12 }
 0xa05   :  { %v5910_v0 = vsel %vm3158_vm3, %v5902_v36, %v7866_v18 }
 0xa06   :  { %v7869_v28 = vpop.permute.xlu1 %7868 }
 0xa07   :  { %v7879_v5 = vpop.permute.xlu0 %7878  ;;  %v7871_v21 = vunpack.i.h.bf16 %v7869_v28  ;;  %v7870_v4 = vunpack.i.l.bf16 %v7869_v28 }
 0xa09   :  { %v5918_v3 = vsel %vm3167_vm4, %v5910_v0, %v7871_v21 }
 0xa0a   :  { %v7312_v16 = vpop.f32.mrb[140].mxu0 }
 0xa0b   :  { %v6053_v43 = vpop.f32.mrb[141].mxu0  ;;  %v6062_v17 = vadd.f32 %v7312_v16, %v11599_v53  ;;  %v7880_v16 = vunpack.i.l.bf16 %v7879_v5 }
 0xa0c   :  { %v7313_v24 = vpop.f32.mrb[142].mxu0  ;;  %v6054_v54 = vadd.f32 %v11599_v53, %v6053_v43  ;;  %v5897_v43 = vsel %vm671_vm0, %v11558_v45, %v7845_v22  ;;  %v5909_v45 = vsel %vm3158_vm3, %v5901_v46, %v7865_v51 }
 0xa0d   :  { %v6065_v32 = vadd.f32 %v7313_v24, %v11599_v53  ;;  %v6056_v41 = vpop.f32.mrb[143].mxu0  ;;  %v5896_v24 = vsel %vm671_vm0, %v11565_v29, %v7856_v35  ;;  %v5905_v27 = vsel %vm3149_vm2, %v5897_v43, %v7850_v20  ;;  %v5907_v29 = vsel %vm3158_vm3, %v5899_v55, %v7875_v23 }
 0xa0e   :  { %v6057_v58 = vadd.f32 %v11599_v53, %v6056_v41  ;;  %v5917_v2 = vsel %vm3167_vm4, %v5909_v45, %v7870_v4  ;;  %v5915_v37 = vsel %vm3167_vm4, %v5907_v29, %v7880_v16 }
 0xa0f   :  { %v6399_v50 = vpack.c.bf16 %v6065_v32, %v6062_v17  ;;  %v5895_v17 = vsel %vm671_vm0, %v11560_v48, %v7855_v15  ;;  %v7881_v32 = vunpack.i.h.bf16 %v7879_v5  ;;  %v5908_v48 = vsel %vm3158_vm3, %v5900_v57, %v7876_v40 }
 0xa10   :  { %v6394_v60 = vpack.c.bf16 %v6057_v58, %v6054_v54  ;;  %v5906_v54 = vsel %vm3149_vm2, %v5898_v9, %v7851_v39  ;;  %v5903_v58 = vsel %vm3149_vm2, %v5895_v17, %v7860_v11 }
 0xa11   :  { %6423 = vst [vmem:[%s11732_s7 + $0x18] sm:$0xff] %v6399_v50   ;;  %v5904_v50 = vsel %vm3149_vm2, %v5896_v24, %v7861_v19  ;;  %v5916_v63 = vsel %vm3167_vm4, %v5908_v48, %v7881_v32 }
 0xa12   :  { %6422 = vst [vmem:[%s11732_s7 + $0x10] sm:$0xff] %v6394_v60  }
 0xa16   :  { %v11621_v44 = vpop.permute.xlu1 %7883 }
 0xa17   :  { %v11623_v42 = vpop.permute.xlu0 %7893  ;;  %v7886_v8 = vunpack.i.h.bf16 %v11621_v44  ;;  %v7885_v28 = vunpack.i.l.bf16 %v11621_v44 }
 0xa18   :  { %v7896_v5 = vunpack.i.h.bf16 %v11623_v42  ;;  %v7895_v30 = vunpack.i.l.bf16 %v11623_v42 }
 0xa19   :  { %v5914_v10 = vsel %vm3158_vm3, %v5906_v54, %v7886_v8  ;;  %v5913_v40 = vsel %vm3158_vm3, %v5905_v27, %v7885_v28 }
 0xa1a   :  { %v11625_v61 = vpop.permute.xlu1 %7888  ;;  %v5911_v24 = vsel %vm3158_vm3, %v5903_v58, %v7895_v30  ;;  %v5912_v17 = vsel %vm3158_vm3, %v5904_v50, %v7896_v5 }
 0xa1b   :  { %v11627_v34 = vpop.permute.xlu0 %7898  ;;  %v7891_v38 = vunpack.i.h.bf16 %v11625_v61  ;;  %v7890_v31 = vunpack.i.l.bf16 %v11625_v61 }
 0xa1c   :  { %v7901_v26 = vunpack.i.h.bf16 %v11627_v34  ;;  %v7900_v44 = vunpack.i.l.bf16 %v11627_v34 }
 0xa1d   :  { %v5921_v54 = vsel %vm3167_vm4, %v5913_v40, %v7890_v31 }
 0xa1e   :  { %v5919_v27 = vsel %vm3167_vm4, %v5911_v24, %v7900_v44  ;;  %v5920_v29 = vsel %vm3167_vm4, %v5912_v17, %v7901_v26 }
 0xa2a   :  { %v7904_v33 = vpop.permute.xlu1 %7903 }
 0xa2b   :  { %v7914_v56 = vpop.permute.xlu0 %7913  ;;  %v7906_v52 = vunpack.i.h.bf16 %v7904_v33  ;;  %v7905_v47 = vunpack.i.l.bf16 %v7904_v33 }
 0xa2c   :  { %v7915_v25 = vunpack.i.l.bf16 %v7914_v56  ;;  %v7916_v59 = vunpack.i.h.bf16 %v7914_v56 }
 0xa2d   :  { %v5926_v7 = vsel %vm3176_vm5, %v5918_v3, %v7906_v52  ;;  %v5925_v1 = vsel %vm3176_vm5, %v5917_v2, %v7905_v47 }
 0xa2e   :  { %v5923_v36 = vsel %vm3176_vm5, %v5915_v37, %v7915_v25  ;;  %v5924_v42 = vsel %vm3176_vm5, %v5916_v63, %v7916_v59 }
 0xa47   :  { %v7909_v41 = vpop.permute.xlu1 %7908 }
 0xa48   :  { %v7919_v60 = vpop.permute.xlu0 %7918  ;;  %v7911_v49 = vunpack.i.h.bf16 %v7909_v41  ;;  %v7910_v6 = vunpack.i.l.bf16 %v7909_v41 }
 0xa49   :  { %v7920_v62 = vunpack.i.l.bf16 %v7919_v60  ;;  %v7921_v13 = vunpack.i.h.bf16 %v7919_v60  ;;  %v5922_v60 = vsel %vm3167_vm4, %v5914_v10, %v7891_v38 }
 0xa4a   :  { %v5934_v55 = vsel %vm3185_vm6, %v5926_v7, %v7911_v49  ;;  %v5933_v61 = vsel %vm3185_vm6, %v5925_v1, %v7910_v6 }
 0xa4b   :  { %v7924_v12 = vpop.permute.xlu1 %7923  ;;  %v5931_v15 = vsel %vm3185_vm6, %v5923_v36, %v7920_v62  ;;  %v5932_v39 = vsel %vm3185_vm6, %v5924_v42, %v7921_v13 }
 0xa4c   :  { %v7929_v14 = vpop.permute.xlu0 %7928  ;;  %v7926_v20 = vunpack.i.h.bf16 %v7924_v12  ;;  %v7925_v56 = vunpack.i.l.bf16 %v7924_v12 }
 0xa4d   :  { %v7931_v21 = vunpack.i.h.bf16 %v7929_v14  ;;  %v7930_v4 = vunpack.i.l.bf16 %v7929_v14 }
 0xa4e   :  { %v5930_v8 = vsel %vm3176_vm5, %v5922_v60, %v7926_v20  ;;  %v5929_v58 = vsel %vm3176_vm5, %v5921_v54, %v7925_v56 }
 0xa4f   :  { %v7934_v46 = vpop.permute.xlu1 %7933  ;;  %v5927_v50 = vsel %vm3176_vm5, %v5919_v27, %v7930_v4  ;;  %v5928_v2 = vsel %vm3176_vm5, %v5920_v29, %v7931_v21 }
 0xa50   :  { %v7936_v57 = vunpack.i.h.bf16 %v7934_v46  ;;  %v7935_v22 = vunpack.i.l.bf16 %v7934_v46  ;;  %v7939_v35 = vpop.permute.xlu0 %7938 }
 0xa51   :  { %v7941_v33 = vunpack.i.h.bf16 %v7939_v35  ;;  %v7940_v34 = vunpack.i.l.bf16 %v7939_v35 }
 0xa52   :  { %v5941_v19 = vsel %vm3194_vm7, %v5933_v61, %v7935_v22  ;;  %v5942_v11 = vsel %vm3194_vm7, %v5934_v55, %v7936_v57 }
 0xa53   :  { %v5952_v9 = vpack.c.bf16 %v5942_v11, %v5941_v19  ;;  %v5939_v18 = vsel %vm3194_vm7, %v5931_v15, %v7940_v34  ;;  %v5940_v51 = vsel %vm3194_vm7, %v5932_v39, %v7941_v33  ;;  %v7949_v23 = vpop.permute.xlu1 %7948 }
 0xa54   :  { %v5951_v16 = vpack.c.bf16 %v5940_v51, %v5939_v18  ;;  %v7944_v43 = vpop.permute.xlu0 %7943  ;;  %v7951_v32 = vunpack.i.h.bf16 %v7949_v23  ;;  %v7950_v41 = vunpack.i.l.bf16 %v7949_v23 }
 0xa55   :  { %v7946_v0 = vunpack.i.h.bf16 %v7944_v43  ;;  %v7945_v45 = vunpack.i.l.bf16 %v7944_v43 }
 0xa56   :  { %7314 = vmatprep.mubr.msk.bf16.mxu0 %vm5978_vm8, %v5951_v16  ;;  %v5938_v52 = vsel %vm3185_vm6, %v5930_v8, %v7951_v32  ;;  %v5937_v47 = vsel %vm3185_vm6, %v5929_v58, %v7950_v41 }
 0xa57   :  { %v7959_v48 = vpop.permute.xlu1 %7958  ;;  %7315 = vmatmul.mubr.msk.bf16.gmra.mrb[144].mxu0 %vm5978_vm8, %v5952_v9  ;;  %v5935_v28 = vsel %vm3185_vm6, %v5927_v50, %v7945_v45  ;;  %v5936_v5 = vsel %vm3185_vm6, %v5928_v2, %v7946_v0 }
 0xa58   :  { %v7961_v3 = vunpack.i.h.bf16 %v7959_v48  ;;  %v7960_v37 = vunpack.i.l.bf16 %v7959_v48  ;;  %v7954_v63 = vpop.permute.xlu0 %7953 }
 0xa59   :  { %v7956_v25 = vunpack.i.h.bf16 %v7954_v63  ;;  %v7955_v12 = vunpack.i.l.bf16 %v7954_v63 }
 0xa5a   :  { %v5945_v59 = vsel %vm3194_vm7, %v5937_v47, %v7960_v37  ;;  %v5946_v49 = vsel %vm3194_vm7, %v5938_v52, %v7961_v3 }
 0xa5b   :  { %v5954_v14 = vpack.c.bf16 %v5946_v49, %v5945_v59  ;;  %v5943_v10 = vsel %vm3194_vm7, %v5935_v28, %v7955_v12  ;;  %v5944_v30 = vsel %vm3194_vm7, %v5936_v5, %v7956_v25 }
 0xa5c   :  { %v5953_v6 = vpack.c.bf16 %v5944_v30, %v5943_v10 }
 0xa5e   :  { %7318 = vmatprep.mubr.msk.bf16.mxu0 %vm5978_vm8, %v5953_v6 }
 0xa5f   :  { %7319 = vmatmul.mubr.msk.bf16.gmra.mrb[148].mxu0 %vm5978_vm8, %v5954_v14 }
 0xb2a   :  { %v7316_v62 = vpop.f32.mrb[144].mxu0 }
 0xb2b   :  { %v6069_v38 = vpop.f32.mrb[145].mxu0  ;;  %v6078_v26 = vadd.f32 %v7316_v62, %v11599_v53 }
 0xb2c   :  { %v7317_v31 = vpop.f32.mrb[146].mxu0  ;;  %v6070_v7 = vadd.f32 %v11599_v53, %v6069_v38 }
 0xb2d   :  { %v6081_v13 = vadd.f32 %v7317_v31, %v11599_v53  ;;  %v6072_v44 = vpop.f32.mrb[147].mxu0 }
 0xb2e   :  { %v6073_v1 = vadd.f32 %v11599_v53, %v6072_v44 }
 0xb2f   :  { %v6409_v36 = vpack.c.bf16 %v6081_v13, %v6078_v26 }
 0xb30   :  { %v6404_v46 = vpack.c.bf16 %v6073_v1, %v6070_v7 }
 0xb31   :  { %6425 = vst [vmem:[%s11732_s7 + $0x28] sm:$0xff] %v6409_v36  }
 0xb32   :  { %6424 = vst [vmem:[%s11732_s7 + $0x20] sm:$0xff] %v6404_v46   ;;  %v7320_v42 = vpop.f32.mrb[148].mxu0 }
 0xb33   :  { %v6085_v55 = vpop.f32.mrb[149].mxu0  ;;  %v6094_v22 = vadd.f32 %v7320_v42, %v11599_v53 }
 0xb34   :  { %v7321_v57 = vpop.f32.mrb[150].mxu0  ;;  %v6086_v15 = vadd.f32 %v11599_v53, %v6085_v55 }
 0xb35   :  { %v6097_v35 = vadd.f32 %v7321_v57, %v11599_v53  ;;  %v6088_v61 = vpop.f32.mrb[151].mxu0 }
 0xb36   :  { %v6089_v33 = vadd.f32 %v11599_v53, %v6088_v61 }
 0xb37   :  { %v6419_v34 = vpack.c.bf16 %v6097_v35, %v6094_v22 }
 0xb38   :  { %v6414_v39 = vpack.c.bf16 %v6089_v33, %v6086_v15 }
 0xb39   :  { %6427 = vst [vmem:[%s11732_s7 + $0x38] sm:$0xff] %v6419_v34  }
 0xb3a   :  { %6426 = vst [vmem:[%s11732_s7 + $0x30] sm:$0xff] %v6414_v39  }

</bundles_post_ra>
